<compile_context>
chip_gen: v7x
topology: tpu7x:2x2x1
jax: 0.10.0
libtpu: 0.0.40
codegen_flags: <defaults>
</compile_context>

<pallas_src>
import functools
import math

import jax
import jax.numpy as jnp
from jax.experimental import pallas as pl
from jax.experimental.pallas import tpu as pltpu

LANE_PAD = 128  # pad seq_len to a multiple of this (lane-dense score tiles)

_CompilerParams = getattr(pltpu, "CompilerParams", None) or getattr(
    pltpu, "TPUCompilerParams", None)


def _round_up(a, m):
    return ((a + m - 1) // m) * m


def _layernorm(x, w, b, eps=1e-5):
    # PyTorch LayerNorm: biased variance, eps inside sqrt; computed in f32.
    x32 = x.astype(jnp.float32)
    mu = jnp.mean(x32, axis=-1, keepdims=True)
    var = jnp.mean((x32 - mu) ** 2, axis=-1, keepdims=True)
    y = (x32 - mu) * jax.lax.rsqrt(var + eps)
    return y * w.astype(jnp.float32) + b.astype(jnp.float32)


def residual_attention_block_kernel(
    x_ref,
    ln1_w_ref, ln1_b_ref,
    w_qkv_ref, b_qkv_ref,
    wo_ref, bo_ref,
    ln2_w_ref, ln2_b_ref,
    w_fc_ref, b_fc_ref,
    w_proj_ref, b_proj_ref,
    out_ref,
    o_scratch,                     # (bt*lp, E) bf16 VMEM: packed per-head PV
    *, n_head, seq_len, n_mlp_chunks,
):
    bt, lp, dm = x_ref.shape             # batch tile, padded seq, d_model
    hd = dm // n_head
    m = bt * lp
    cdt = w_qkv_ref.dtype                # matmul compute dtype (bf16)

    x = x_ref[...]                       # (bt, lp, dm)
    x2d = x.reshape(m, dm)               # M-filled slab for the big matmuls

    # ---------------- attention branch ----------------
    h1 = _layernorm(x2d, ln1_w_ref[0], ln1_b_ref[0])                 # f32
    qkv = jnp.dot(h1.astype(cdt), w_qkv_ref[...],
                  preferred_element_type=jnp.float32) + b_qkv_ref[...]
    # [#5] single bf16 cast of the whole (m, 3E) activation
    qkv = qkv.astype(cdt).reshape(bt, lp, 3 * dm)

    kmask = None
    if lp > seq_len:
        # mask padded key columns before softmax
        kmask = jax.lax.broadcasted_iota(jnp.int32, (1, 1, lp), 2) < seq_len

    if hasattr(pl, "reciprocal"):
        recip = lambda d: pl.reciprocal(d, approx=True)
    else:  # fallback for older JAX
        recip = lambda d: 1.0 / d

    for h in range(n_head):              # static loop; matmuls batched over bt
        off = h * hd
        q_h = qkv[:, :, off:off + hd]                    # 1/sqrt(hd) folded in
        k_h = qkv[:, :, dm + off:dm + off + hd]
        v_h = qkv[:, :, 2 * dm + off:2 * dm + off + hd]

        s = jnp.einsum("bld,bmd->blm", q_h, k_h,
                       preferred_element_type=jnp.float32)           # (bt,lp,lp)
        if kmask is not None:
            s = jnp.where(kmask, s, -1e30)
        s = s - jnp.max(s, axis=-1, keepdims=True)
        p = jnp.exp(s)
        denom = jnp.sum(p, axis=-1, keepdims=True)                   # (bt,lp,1)

        o_h = jnp.einsum("blm,bmd->bld", p.astype(cdt), v_h,
                         preferred_element_type=jnp.float32)         # (bt,lp,hd)
        # [#4] normalize AFTER the PV matmul: scale (lp,hd), not (lp,lp)
        o_h = o_h * recip(denom)
        # [#3] pack this head's output into the (m, E) scratch slab
        o_scratch[:, off:off + hd] = o_h.reshape(m, hd).astype(cdt)

    # [#3] one full-contraction output projection for all heads
    attn = jnp.dot(o_scratch[...], wo_ref[...],
                   preferred_element_type=jnp.float32) + bo_ref[...]  # (m, E)

    x1 = x2d.astype(jnp.float32) + attn                  # first residual

    # ---------------- MLP branch ----------------
    h2 = _layernorm(x1, ln2_w_ref[0], ln2_b_ref[0]).astype(cdt)
    dff = w_fc_ref.shape[1]
    ck = dff // n_mlp_chunks             # chunk the hidden dim (v7x VMEM relief)
    mlp = None
    for c in range(n_mlp_chunks):
        lo = c * ck
        fc = jnp.dot(h2, w_fc_ref[:, lo:lo + ck],
                     preferred_element_type=jnp.float32) + b_fc_ref[:, lo:lo + ck]
        g = fc * jax.nn.sigmoid(1.702 * fc)              # QuickGELU in f32
        part = jnp.dot(g.astype(cdt), w_proj_ref[lo:lo + ck, :],
                       preferred_element_type=jnp.float32)
        mlp = part if mlp is None else mlp + part
    mlp = mlp + b_proj_ref[...]

    out_ref[...] = (x1 + mlp).reshape(bt, lp, dm).astype(out_ref.dtype)


def _zero_index_map(ndim):
    return lambda b: (0,) * ndim


def _pick_batch_tile(n, lp, target_rows=512):
    """Largest divisor of n with bt*lp <= target rows, keeping >=2 grid steps."""
    bt = 1
    for c in range(1, n + 1):
        if n % c == 0 and c * lp <= max(target_rows, lp):
            bt = c
    while bt > 1 and n // bt < 2:        # keep both v7x TensorCores busy
        bt -= 1
        while n % bt:
            bt -= 1
    # v7x: prefer an even step count so the two TensorCores get balanced work.
    if bt > 1 and (n // bt) % 2 == 1:
        even = [c for c in range(1, bt) if n % c == 0 and (n // c) % 2 == 0]
        if even:
            bt = max(even)
    return bt


def _estimate_vmem_limit_bytes(bt, lp, dm, plist, x_itemsize, single_buffer):
    """Explicit scoped-VMEM budget: weights + pipelined x tiles + f32 temps."""
    m = bt * lp
    w = sum(math.prod(p.shape) * p.dtype.itemsize for p in plist)
    if not single_buffer:
        w *= 2                                            # double-buffered weights
    io = 2 * 2 * m * dm * x_itemsize                      # in + out x tiles, 2-deep
    temps = 4 * m * (3 * dm + 2 * 4 * dm + 3 * dm) + 4 * bt * lp * lp
    est = int(1.5 * (w + io + temps)) + (4 << 20)
    return int(max(32 << 20, min(est, 100 << 20)))


def residual_attention_block(x, kparams, n_head, *, batch_tile=None,
                             target_rows=512, n_mlp_chunks=1,
                             single_buffer_weights=None):
    """x: (L, N, E). kparams: kernel-ready params from prepare_kernel_params.

    target_rows: ~512 on v5e/v6e (128 MiB VMEM); use 256-384 and/or
    n_mlp_chunks=2 on v7x (64 MiB/TC) at CLIP scale.
    """
    L, N, E = x.shape
    lp = _round_up(L, LANE_PAD)

    xb = jnp.transpose(x, (1, 0, 2))     # (N, L, E): grid over batch
    if lp != L:
        xb = jnp.pad(xb, ((0, 0), (0, lp - L), (0, 0)))

    bt = batch_tile or _pick_batch_tile(N, lp, target_rows)
    assert N % bt == 0, "batch tile must divide batch size"

    order = ("ln1_w", "ln1_b", "w_qkv", "b_qkv", "wo", "bo",
             "ln2_w", "ln2_b", "w_fc", "b_fc", "w_proj", "b_proj")
    plist = [kparams[k] for k in order]
    cdt = kparams["w_qkv"].dtype

    kern = functools.partial(residual_attention_block_kernel,
                             n_head=n_head, seq_len=L,
                             n_mlp_chunks=n_mlp_chunks)

    def run(single_buffer):
        in_specs = [pl.BlockSpec((bt, lp, E), lambda b: (b, 0, 0))]
        for p in plist:                  # weights fully resident, constant index
            imap = _zero_index_map(p.ndim)
            if single_buffer:
                # [#1] constant index map => double-buffering buys nothing;
                # single-buffer to halve weight VMEM (key for v7x 64 MiB/TC).
                in_specs.append(
                    pl.BlockSpec(p.shape, imap, pipeline_mode=pl.Buffered(1)))
            else:
                in_specs.append(pl.BlockSpec(p.shape, imap))
        return pl.pallas_call(
            kern,
            out_shape=jax.ShapeDtypeStruct((N, lp, E), x.dtype),
            grid=(N // bt,),
            in_specs=in_specs,
            out_specs=pl.BlockSpec((bt, lp, E), lambda b: (b, 0, 0)),
            scratch_shapes=[pltpu.VMEM((bt * lp, E), cdt)],
            compiler_params=_CompilerParams(
                dimension_semantics=("parallel",),
                vmem_limit_bytes=_estimate_vmem_limit_bytes(
                    bt, lp, E, plist, x.dtype.itemsize, single_buffer)),
        )(xb, *plist)

    if single_buffer_weights is None:
        # Prefer single-buffered weights; fall back cleanly if this JAX/Mosaic
        # build rejects pipeline_mode / Buffered(1).
        try:
            out = run(True)
        except Exception:
            out = run(False)
    else:
        out = run(single_buffer_weights)

    return jnp.transpose(out[:, :L, :], (1, 0, 2))       # back to (L, N, E)


def init_torch_like_params(key, d_model):
    """Deterministic synthetic weights in PyTorch parameter layout."""
    E = d_model
    ks = jax.random.split(key, 12)
    s = 0.02
    return {
        "ln1_w": 1.0 + 0.1 * jax.random.normal(ks[0], (E,), jnp.float32),
        "ln1_b": 0.05 * jax.random.normal(ks[1], (E,), jnp.float32),
        "in_proj_w": s * jax.random.normal(ks[2], (3 * E, E), jnp.float32),
        "in_proj_b": s * jax.random.normal(ks[3], (3 * E,), jnp.float32),
        "out_proj_w": s * jax.random.normal(ks[4], (E, E), jnp.float32),
        "out_proj_b": s * jax.random.normal(ks[5], (E,), jnp.float32),
        "ln2_w": 1.0 + 0.1 * jax.random.normal(ks[6], (E,), jnp.float32),
        "ln2_b": 0.05 * jax.random.normal(ks[7], (E,), jnp.float32),
        "c_fc_w": s * jax.random.normal(ks[8], (4 * E, E), jnp.float32),
        "c_fc_b": s * jax.random.normal(ks[9], (4 * E,), jnp.float32),
        "c_proj_w": s * jax.random.normal(ks[10], (E, 4 * E), jnp.float32),
        "c_proj_b": s * jax.random.normal(ks[11], (E,), jnp.float32),
    }


def prepare_kernel_params(tp, n_head, compute_dtype=jnp.bfloat16):
    """One-time weight prep: fuse QKV, pre-transpose, fold 1/sqrt(hd) into Q,
    keep W_o un-split (single full-K output projection), cast matmul weights
    to bf16 (biases/LN stay f32)."""
    E = tp["ln1_w"].shape[0]
    hd = E // n_head
    scale = 1.0 / math.sqrt(hd)

    w_qkv = tp["in_proj_w"].T                          # (E, 3E)
    b_qkv = tp["in_proj_b"]                            # (3E,)
    qscale = jnp.concatenate([jnp.full((E,), scale, jnp.float32),
                              jnp.ones((2 * E,), jnp.float32)])
    w_qkv = w_qkv * qscale[None, :]
    b_qkv = b_qkv * qscale

    f32 = jnp.float32
    return {
        "ln1_w": tp["ln1_w"].reshape(1, E).astype(f32),
        "ln1_b": tp["ln1_b"].reshape(1, E).astype(f32),
        "w_qkv": w_qkv.astype(compute_dtype),
        "b_qkv": b_qkv.reshape(1, 3 * E).astype(f32),
        "wo": tp["out_proj_w"].T.astype(compute_dtype),     # (E, E), un-split
        "bo": tp["out_proj_b"].reshape(1, E).astype(f32),
        "ln2_w": tp["ln2_w"].reshape(1, E).astype(f32),
        "ln2_b": tp["ln2_b"].reshape(1, E).astype(f32),
        "w_fc": tp["c_fc_w"].T.astype(compute_dtype),       # (E, 4E)
        "b_fc": tp["c_fc_b"].reshape(1, 4 * E).astype(f32),
        "w_proj": tp["c_proj_w"].T.astype(compute_dtype),   # (4E, E)
        "b_proj": tp["c_proj_b"].reshape(1, E).astype(f32),
    }


def reference(x, tp, n_head):
    """Pure-JAX f32 reference mirroring the PyTorch forward."""
    L, N, E = x.shape
    hd = E // n_head

    def ln(t, w, b):
        t32 = t.astype(jnp.float32)
        mu = t32.mean(-1, keepdims=True)
        var = ((t32 - mu) ** 2).mean(-1, keepdims=True)
        return (t32 - mu) / jnp.sqrt(var + 1e-5) * w + b

    h1 = ln(x, tp["ln1_w"], tp["ln1_b"])
    qkv = h1 @ tp["in_proj_w"].T + tp["in_proj_b"]
    q, k, v = qkv[..., :E], qkv[..., E:2 * E], qkv[..., 2 * E:]
    q = q.reshape(L, N, n_head, hd) / math.sqrt(hd)
    k = k.reshape(L, N, n_head, hd)
    v = v.reshape(L, N, n_head, hd)
    s = jnp.einsum("lnhd,mnhd->nhlm", q, k)
    a = jax.nn.softmax(s, axis=-1)
    o = jnp.einsum("nhlm,mnhd->lnhd", a, v).reshape(L, N, E)
    x1 = x + (o @ tp["out_proj_w"].T + tp["out_proj_b"])
    h2 = ln(x1, tp["ln2_w"], tp["ln2_b"])
    fc = h2 @ tp["c_fc_w"].T + tp["c_fc_b"]
    g = fc * jax.nn.sigmoid(1.702 * fc)
    return x1 + (g @ tp["c_proj_w"].T + tp["c_proj_b"])


if __name__ == "__main__":
    L, N, E, H = 8, 2, 32, 4            # seq=8, batch=2, d_model=32, n_head=4
    key = jax.random.PRNGKey(0)
    kx, kp = jax.random.split(key)
    x = jax.random.normal(kx, (L, N, E), jnp.float32)

    tparams = init_torch_like_params(kp, E)
    kparams = prepare_kernel_params(tparams, H)

    y = residual_attention_block(x, kparams, H)
    y = jax.block_until_ready(y)

    y_ref = reference(x, tparams, H)
    assert y.shape == (L, N, E)
    max_err = float(jnp.max(jnp.abs(y - y_ref)))
    # bf16 matmul operands with f32 accumulation -> loosened tolerance.
    assert jnp.allclose(y, y_ref, atol=2e-2, rtol=2e-2), (
        f"mismatch vs JAX reference (max abs err {max_err})")
    print("KERNEL_OK")
</pallas_src>

<mosaic_0001>
module attributes {stable_mosaic.version = 11 : i64} {
  func.func @residual_attention_block_kernel(%arg0: i32, %arg1: memref<1x128x32xf32, #tpu.memory_space<vmem>>, %arg2: memref<1x32xf32, #tpu.memory_space<vmem>>, %arg3: memref<1x32xf32, #tpu.memory_space<vmem>>, %arg4: memref<32x96xbf16, #tpu.memory_space<vmem>>, %arg5: memref<1x96xf32, #tpu.memory_space<vmem>>, %arg6: memref<32x32xbf16, #tpu.memory_space<vmem>>, %arg7: memref<1x32xf32, #tpu.memory_space<vmem>>, %arg8: memref<1x32xf32, #tpu.memory_space<vmem>>, %arg9: memref<1x32xf32, #tpu.memory_space<vmem>>, %arg10: memref<32x128xbf16, #tpu.memory_space<vmem>>, %arg11: memref<1x128xf32, #tpu.memory_space<vmem>>, %arg12: memref<128x32xbf16, #tpu.memory_space<vmem>>, %arg13: memref<1x32xf32, #tpu.memory_space<vmem>>, %arg14: memref<1x128x32xf32, #tpu.memory_space<vmem>>, %arg15: memref<128x32xbf16, #tpu.memory_space<vmem>>) attributes {dimension_semantics = [#tpu.dimension_semantics<parallel>], iteration_bounds = array<i64: 2>, scalar_prefetch = 0 : i64, scratch_operands = 1 : i64, tpu.core_type = #tpu.core_type<tc>, window_params = [{transform_indices = @transform_0, window_bounds = array<i64: 1, 128, 32>}, {pipeline_mode = #tpu.pipeline_mode<synchronous>, transform_indices = @transform_1, window_bounds = array<i64: 1, 32>}, {pipeline_mode = #tpu.pipeline_mode<synchronous>, transform_indices = @transform_2, window_bounds = array<i64: 1, 32>}, {pipeline_mode = #tpu.pipeline_mode<synchronous>, transform_indices = @transform_3, window_bounds = array<i64: 32, 96>}, {pipeline_mode = #tpu.pipeline_mode<synchronous>, transform_indices = @transform_4, window_bounds = array<i64: 1, 96>}, {pipeline_mode = #tpu.pipeline_mode<synchronous>, transform_indices = @transform_5, window_bounds = array<i64: 32, 32>}, {pipeline_mode = #tpu.pipeline_mode<synchronous>, transform_indices = @transform_6, window_bounds = array<i64: 1, 32>}, {pipeline_mode = #tpu.pipeline_mode<synchronous>, transform_indices = @transform_7, window_bounds = array<i64: 1, 32>}, {pipeline_mode = #tpu.pipeline_mode<synchronous>, transform_indices = @transform_8, window_bounds = array<i64: 1, 32>}, {pipeline_mode = #tpu.pipeline_mode<synchronous>, transform_indices = @transform_9, window_bounds = array<i64: 32, 128>}, {pipeline_mode = #tpu.pipeline_mode<synchronous>, transform_indices = @transform_10, window_bounds = array<i64: 1, 128>}, {pipeline_mode = #tpu.pipeline_mode<synchronous>, transform_indices = @transform_11, window_bounds = array<i64: 128, 32>}, {pipeline_mode = #tpu.pipeline_mode<synchronous>, transform_indices = @transform_12, window_bounds = array<i64: 1, 32>}, {transform_indices = @transform_13, window_bounds = array<i64: 1, 128, 32>}]} {
    %c0 = arith.constant 0 : index
    %c0_0 = arith.constant 0 : index
    %c0_1 = arith.constant 0 : index
    %0 = vector.load %arg1[%c0, %c0_0, %c0_1] : memref<1x128x32xf32, #tpu.memory_space<vmem>>, vector<1x128x32xf32>
    %1 = vector.shape_cast %0 : vector<1x128x32xf32> to vector<128x32xf32>
    %c0_2 = arith.constant 0 : index
    %c0_3 = arith.constant 0 : index
    %2 = vector.load %arg2[%c0_2, %c0_3] : memref<1x32xf32, #tpu.memory_space<vmem>>, vector<1x32xf32>
    %3 = vector.shape_cast %2 : vector<1x32xf32> to vector<32xf32>
    %c0_4 = arith.constant 0 : index
    %c0_5 = arith.constant 0 : index
    %4 = vector.load %arg3[%c0_4, %c0_5] : memref<1x32xf32, #tpu.memory_space<vmem>>, vector<1x32xf32>
    %5 = vector.shape_cast %4 : vector<1x32xf32> to vector<32xf32>
    %cst = arith.constant dense<0.000000e+00> : vector<128xf32>
    %6 = vector.multi_reduction <add>, %1, %cst [1] : vector<128x32xf32> to vector<128xf32>
    %7 = vector.shape_cast %6 : vector<128xf32> to vector<128x1xf32>
    %cst_6 = arith.constant 3.200000e+01 : f32
    %8 = vector.broadcast %cst_6 : f32 to vector<128x1xf32>
    %9 = arith.divf %7, %8 : vector<128x1xf32>
    %10 = vector.broadcast %9 : vector<128x1xf32> to vector<128x32xf32>
    %11 = arith.subf %1, %10 : vector<128x32xf32>
    %12 = arith.mulf %11, %11 : vector<128x32xf32>
    %cst_7 = arith.constant dense<0.000000e+00> : vector<128xf32>
    %13 = vector.multi_reduction <add>, %12, %cst_7 [1] : vector<128x32xf32> to vector<128xf32>
    %14 = vector.shape_cast %13 : vector<128xf32> to vector<128x1xf32>
    %cst_8 = arith.constant 3.200000e+01 : f32
    %15 = vector.broadcast %cst_8 : f32 to vector<128x1xf32>
    %16 = arith.divf %14, %15 : vector<128x1xf32>
    %17 = vector.broadcast %9 : vector<128x1xf32> to vector<128x32xf32>
    %18 = arith.subf %1, %17 : vector<128x32xf32>
    %cst_9 = arith.constant 9.99999974E-6 : f32
    %19 = vector.broadcast %cst_9 : f32 to vector<128x1xf32>
    %20 = arith.addf %16, %19 : vector<128x1xf32>
    %21 = math.rsqrt %20 : vector<128x1xf32>
    %22 = vector.broadcast %21 : vector<128x1xf32> to vector<128x32xf32>
    %23 = arith.mulf %18, %22 : vector<128x32xf32>
    %24 = vector.shape_cast %3 : vector<32xf32> to vector<1x32xf32>
    %25 = vector.broadcast %24 : vector<1x32xf32> to vector<128x32xf32>
    %26 = arith.mulf %23, %25 : vector<128x32xf32>
    %27 = vector.shape_cast %5 : vector<32xf32> to vector<1x32xf32>
    %28 = vector.broadcast %27 : vector<1x32xf32> to vector<128x32xf32>
    %29 = arith.addf %26, %28 : vector<128x32xf32>
    %30 = arith.truncf %29 : vector<128x32xf32> to vector<128x32xbf16>
    %c0_10 = arith.constant 0 : index
    %c0_11 = arith.constant 0 : index
    %31 = vector.load %arg4[%c0_10, %c0_11] : memref<32x96xbf16, #tpu.memory_space<vmem>>, vector<32x96xbf16>
    %cst_12 = arith.constant dense<0.000000e+00> : vector<128x96xf32>
    %32 = tpu.matmul %30, %31, %cst_12 {dimension_numbers = #tpu.dot_dimension_numbers<[1], [0], [0], [1], [0, 0, 1, 1], [], []>} : vector<128x32xbf16>, vector<32x96xbf16>, vector<128x96xf32> -> vector<128x96xf32>
    %c0_13 = arith.constant 0 : index
    %c0_14 = arith.constant 0 : index
    %33 = vector.load %arg5[%c0_13, %c0_14] : memref<1x96xf32, #tpu.memory_space<vmem>>, vector<1x96xf32>
    %34 = vector.broadcast %33 : vector<1x96xf32> to vector<128x96xf32>
    %35 = arith.addf %32, %34 : vector<128x96xf32>
    %36 = arith.truncf %35 : vector<128x96xf32> to vector<128x96xbf16>
    %37 = vector.shape_cast %36 : vector<128x96xbf16> to vector<1x128x96xbf16>
    %38 = tpu.iota {dimensions = array<i32: 2>} : vector<1x1x128xi32>
    %c8_i32 = arith.constant 8 : i32
    %39 = vector.broadcast %c8_i32 : i32 to vector<1x1x128xi32>
    %40 = arith.cmpi slt, %38, %39 : vector<1x1x128xi32>
    %41 = vector.extract_strided_slice %37 {offsets = [0, 0, 0], sizes = [1, 128, 8], strides = [1, 1, 1]} : vector<1x128x96xbf16> to vector<1x128x8xbf16>
    %42 = vector.extract_strided_slice %37 {offsets = [0, 0, 32], sizes = [1, 128, 8], strides = [1, 1, 1]} : vector<1x128x96xbf16> to vector<1x128x8xbf16>
    %43 = vector.extract_strided_slice %37 {offsets = [0, 0, 64], sizes = [1, 128, 8], strides = [1, 1, 1]} : vector<1x128x96xbf16> to vector<1x128x8xbf16>
    "tpu.trace_start"() <{level = 10 : i32, message = "bld,bmd->blm"}> : () -> ()
    %cst_15 = arith.constant dense<0.000000e+00> : vector<1x128x128xf32>
    %44 = tpu.matmul %41, %42, %cst_15 {dimension_numbers = #tpu.dot_dimension_numbers<[2], [2], [1], [1], [0, 0, 0, 1, 1, 1], [0], [0]>} : vector<1x128x8xbf16>, vector<1x128x8xbf16>, vector<1x128x128xf32> -> vector<1x128x128xf32>
    %cst_16 = arith.constant -1.000000e+30 : f32
    "tpu.trace_stop"() : () -> ()
    %45 = vector.shape_cast %40 : vector<1x1x128xi1> to vector<1x1x128xi1>
    %46 = vector.broadcast %45 : vector<1x1x128xi1> to vector<1x128x128xi1>
    %47 = vector.broadcast %cst_16 : f32 to vector<1x128x128xf32>
    %48 = arith.select %46, %44, %47 : vector<1x128x128xi1>, vector<1x128x128xf32>
    %cst_17 = arith.constant dense<0xFF800000> : vector<1x128xf32>
    %49 = vector.multi_reduction <maximumf>, %48, %cst_17 [2] : vector<1x128x128xf32> to vector<1x128xf32>
    %50 = vector.shape_cast %49 : vector<1x128xf32> to vector<1x128x1xf32>
    %51 = vector.broadcast %50 : vector<1x128x1xf32> to vector<1x128x128xf32>
    %52 = arith.subf %48, %51 : vector<1x128x128xf32>
    %53 = math.exp %52 : vector<1x128x128xf32>
    %cst_18 = arith.constant dense<0.000000e+00> : vector<1x128xf32>
    %54 = vector.multi_reduction <add>, %53, %cst_18 [2] : vector<1x128x128xf32> to vector<1x128xf32>
    %55 = vector.shape_cast %54 : vector<1x128xf32> to vector<1x128x1xf32>
    %56 = arith.truncf %53 : vector<1x128x128xf32> to vector<1x128x128xbf16>
    "tpu.trace_start"() <{level = 10 : i32, message = "blm,bmd->bld"}> : () -> ()
    %cst_19 = arith.constant dense<0.000000e+00> : vector<1x128x8xf32>
    %57 = tpu.matmul %56, %43, %cst_19 {dimension_numbers = #tpu.dot_dimension_numbers<[2], [1], [1], [2], [0, 0, 0, 1, 1, 2], [0], [0]>} : vector<1x128x128xbf16>, vector<1x128x8xbf16>, vector<1x128x8xf32> -> vector<1x128x8xf32>
    "tpu.trace_stop"() : () -> ()
    %58 = tpu.reciprocal %55 {approx = true} : vector<1x128x1xf32> -> vector<1x128x1xf32>
    %59 = vector.broadcast %58 : vector<1x128x1xf32> to vector<1x128x8xf32>
    %60 = arith.mulf %57, %59 : vector<1x128x8xf32>
    %61 = vector.shape_cast %60 : vector<1x128x8xf32> to vector<128x8xf32>
    %62 = arith.truncf %61 : vector<128x8xf32> to vector<128x8xbf16>
    %c0_20 = arith.constant 0 : index
    %c0_21 = arith.constant 0 : index
    %63 = vector.load %arg15[%c0_20, %c0_21] : memref<128x32xbf16, #tpu.memory_space<vmem>>, vector<128x8xbf16>
    tpu.vector_store %arg15[%c0_20, %c0_21], %62 {strides = array<i32>} : memref<128x32xbf16, #tpu.memory_space<vmem>>, vector<128x8xbf16>,
    %64 = vector.extract_strided_slice %37 {offsets = [0, 0, 8], sizes = [1, 128, 8], strides = [1, 1, 1]} : vector<1x128x96xbf16> to vector<1x128x8xbf16>
    %65 = vector.extract_strided_slice %37 {offsets = [0, 0, 40], sizes = [1, 128, 8], strides = [1, 1, 1]} : vector<1x128x96xbf16> to vector<1x128x8xbf16>
    %66 = vector.extract_strided_slice %37 {offsets = [0, 0, 72], sizes = [1, 128, 8], strides = [1, 1, 1]} : vector<1x128x96xbf16> to vector<1x128x8xbf16>
    "tpu.trace_start"() <{level = 10 : i32, message = "bld,bmd->blm"}> : () -> ()
    %cst_22 = arith.constant dense<0.000000e+00> : vector<1x128x128xf32>
    %67 = tpu.matmul %64, %65, %cst_22 {dimension_numbers = #tpu.dot_dimension_numbers<[2], [2], [1], [1], [0, 0, 0, 1, 1, 1], [0], [0]>} : vector<1x128x8xbf16>, vector<1x128x8xbf16>, vector<1x128x128xf32> -> vector<1x128x128xf32>
    %cst_23 = arith.constant -1.000000e+30 : f32
    "tpu.trace_stop"() : () -> ()
    %68 = vector.shape_cast %40 : vector<1x1x128xi1> to vector<1x1x128xi1>
    %69 = vector.broadcast %68 : vector<1x1x128xi1> to vector<1x128x128xi1>
    %70 = vector.broadcast %cst_23 : f32 to vector<1x128x128xf32>
    %71 = arith.select %69, %67, %70 : vector<1x128x128xi1>, vector<1x128x128xf32>
    %cst_24 = arith.constant dense<0xFF800000> : vector<1x128xf32>
    %72 = vector.multi_reduction <maximumf>, %71, %cst_24 [2] : vector<1x128x128xf32> to vector<1x128xf32>
    %73 = vector.shape_cast %72 : vector<1x128xf32> to vector<1x128x1xf32>
    %74 = vector.broadcast %73 : vector<1x128x1xf32> to vector<1x128x128xf32>
    %75 = arith.subf %71, %74 : vector<1x128x128xf32>
    %76 = math.exp %75 : vector<1x128x128xf32>
    %cst_25 = arith.constant dense<0.000000e+00> : vector<1x128xf32>
    %77 = vector.multi_reduction <add>, %76, %cst_25 [2] : vector<1x128x128xf32> to vector<1x128xf32>
    %78 = vector.shape_cast %77 : vector<1x128xf32> to vector<1x128x1xf32>
    %79 = arith.truncf %76 : vector<1x128x128xf32> to vector<1x128x128xbf16>
    "tpu.trace_start"() <{level = 10 : i32, message = "blm,bmd->bld"}> : () -> ()
    %cst_26 = arith.constant dense<0.000000e+00> : vector<1x128x8xf32>
    %80 = tpu.matmul %79, %66, %cst_26 {dimension_numbers = #tpu.dot_dimension_numbers<[2], [1], [1], [2], [0, 0, 0, 1, 1, 2], [0], [0]>} : vector<1x128x128xbf16>, vector<1x128x8xbf16>, vector<1x128x8xf32> -> vector<1x128x8xf32>
    "tpu.trace_stop"() : () -> ()
    %81 = tpu.reciprocal %78 {approx = true} : vector<1x128x1xf32> -> vector<1x128x1xf32>
    %82 = vector.broadcast %81 : vector<1x128x1xf32> to vector<1x128x8xf32>
    %83 = arith.mulf %80, %82 : vector<1x128x8xf32>
    %84 = vector.shape_cast %83 : vector<1x128x8xf32> to vector<128x8xf32>
    %85 = arith.truncf %84 : vector<128x8xf32> to vector<128x8xbf16>
    %c0_27 = arith.constant 0 : index
    %c8 = arith.constant 8 : index
    %86 = vector.load %arg15[%c0_27, %c8] : memref<128x32xbf16, #tpu.memory_space<vmem>>, vector<128x8xbf16>
    tpu.vector_store %arg15[%c0_27, %c8], %85 {strides = array<i32>} : memref<128x32xbf16, #tpu.memory_space<vmem>>, vector<128x8xbf16>,
    %87 = vector.extract_strided_slice %37 {offsets = [0, 0, 16], sizes = [1, 128, 8], strides = [1, 1, 1]} : vector<1x128x96xbf16> to vector<1x128x8xbf16>
    %88 = vector.extract_strided_slice %37 {offsets = [0, 0, 48], sizes = [1, 128, 8], strides = [1, 1, 1]} : vector<1x128x96xbf16> to vector<1x128x8xbf16>
    %89 = vector.extract_strided_slice %37 {offsets = [0, 0, 80], sizes = [1, 128, 8], strides = [1, 1, 1]} : vector<1x128x96xbf16> to vector<1x128x8xbf16>
    "tpu.trace_start"() <{level = 10 : i32, message = "bld,bmd->blm"}> : () -> ()
    %cst_28 = arith.constant dense<0.000000e+00> : vector<1x128x128xf32>
    %90 = tpu.matmul %87, %88, %cst_28 {dimension_numbers = #tpu.dot_dimension_numbers<[2], [2], [1], [1], [0, 0, 0, 1, 1, 1], [0], [0]>} : vector<1x128x8xbf16>, vector<1x128x8xbf16>, vector<1x128x128xf32> -> vector<1x128x128xf32>
    %cst_29 = arith.constant -1.000000e+30 : f32
    "tpu.trace_stop"() : () -> ()
    %91 = vector.shape_cast %40 : vector<1x1x128xi1> to vector<1x1x128xi1>
    %92 = vector.broadcast %91 : vector<1x1x128xi1> to vector<1x128x128xi1>
    %93 = vector.broadcast %cst_29 : f32 to vector<1x128x128xf32>
    %94 = arith.select %92, %90, %93 : vector<1x128x128xi1>, vector<1x128x128xf32>
    %cst_30 = arith.constant dense<0xFF800000> : vector<1x128xf32>
    %95 = vector.multi_reduction <maximumf>, %94, %cst_30 [2] : vector<1x128x128xf32> to vector<1x128xf32>
    %96 = vector.shape_cast %95 : vector<1x128xf32> to vector<1x128x1xf32>
    %97 = vector.broadcast %96 : vector<1x128x1xf32> to vector<1x128x128xf32>
    %98 = arith.subf %94, %97 : vector<1x128x128xf32>
    %99 = math.exp %98 : vector<1x128x128xf32>
    %cst_31 = arith.constant dense<0.000000e+00> : vector<1x128xf32>
    %100 = vector.multi_reduction <add>, %99, %cst_31 [2] : vector<1x128x128xf32> to vector<1x128xf32>
    %101 = vector.shape_cast %100 : vector<1x128xf32> to vector<1x128x1xf32>
    %102 = arith.truncf %99 : vector<1x128x128xf32> to vector<1x128x128xbf16>
    "tpu.trace_start"() <{level = 10 : i32, message = "blm,bmd->bld"}> : () -> ()
    %cst_32 = arith.constant dense<0.000000e+00> : vector<1x128x8xf32>
    %103 = tpu.matmul %102, %89, %cst_32 {dimension_numbers = #tpu.dot_dimension_numbers<[2], [1], [1], [2], [0, 0, 0, 1, 1, 2], [0], [0]>} : vector<1x128x128xbf16>, vector<1x128x8xbf16>, vector<1x128x8xf32> -> vector<1x128x8xf32>
    "tpu.trace_stop"() : () -> ()
    %104 = tpu.reciprocal %101 {approx = true} : vector<1x128x1xf32> -> vector<1x128x1xf32>
    %105 = vector.broadcast %104 : vector<1x128x1xf32> to vector<1x128x8xf32>
    %106 = arith.mulf %103, %105 : vector<1x128x8xf32>
    %107 = vector.shape_cast %106 : vector<1x128x8xf32> to vector<128x8xf32>
    %108 = arith.truncf %107 : vector<128x8xf32> to vector<128x8xbf16>
    %c0_33 = arith.constant 0 : index
    %c16 = arith.constant 16 : index
    %109 = vector.load %arg15[%c0_33, %c16] : memref<128x32xbf16, #tpu.memory_space<vmem>>, vector<128x8xbf16>
    tpu.vector_store %arg15[%c0_33, %c16], %108 {strides = array<i32>} : memref<128x32xbf16, #tpu.memory_space<vmem>>, vector<128x8xbf16>,
    %110 = vector.extract_strided_slice %37 {offsets = [0, 0, 24], sizes = [1, 128, 8], strides = [1, 1, 1]} : vector<1x128x96xbf16> to vector<1x128x8xbf16>
    %111 = vector.extract_strided_slice %37 {offsets = [0, 0, 56], sizes = [1, 128, 8], strides = [1, 1, 1]} : vector<1x128x96xbf16> to vector<1x128x8xbf16>
    %112 = vector.extract_strided_slice %37 {offsets = [0, 0, 88], sizes = [1, 128, 8], strides = [1, 1, 1]} : vector<1x128x96xbf16> to vector<1x128x8xbf16>
    "tpu.trace_start"() <{level = 10 : i32, message = "bld,bmd->blm"}> : () -> ()
    %cst_34 = arith.constant dense<0.000000e+00> : vector<1x128x128xf32>
    %113 = tpu.matmul %110, %111, %cst_34 {dimension_numbers = #tpu.dot_dimension_numbers<[2], [2], [1], [1], [0, 0, 0, 1, 1, 1], [0], [0]>} : vector<1x128x8xbf16>, vector<1x128x8xbf16>, vector<1x128x128xf32> -> vector<1x128x128xf32>
    %cst_35 = arith.constant -1.000000e+30 : f32
    "tpu.trace_stop"() : () -> ()
    %114 = vector.shape_cast %40 : vector<1x1x128xi1> to vector<1x1x128xi1>
    %115 = vector.broadcast %114 : vector<1x1x128xi1> to vector<1x128x128xi1>
    %116 = vector.broadcast %cst_35 : f32 to vector<1x128x128xf32>
    %117 = arith.select %115, %113, %116 : vector<1x128x128xi1>, vector<1x128x128xf32>
    %cst_36 = arith.constant dense<0xFF800000> : vector<1x128xf32>
    %118 = vector.multi_reduction <maximumf>, %117, %cst_36 [2] : vector<1x128x128xf32> to vector<1x128xf32>
    %119 = vector.shape_cast %118 : vector<1x128xf32> to vector<1x128x1xf32>
    %120 = vector.broadcast %119 : vector<1x128x1xf32> to vector<1x128x128xf32>
    %121 = arith.subf %117, %120 : vector<1x128x128xf32>
    %122 = math.exp %121 : vector<1x128x128xf32>
    %cst_37 = arith.constant dense<0.000000e+00> : vector<1x128xf32>
    %123 = vector.multi_reduction <add>, %122, %cst_37 [2] : vector<1x128x128xf32> to vector<1x128xf32>
    %124 = vector.shape_cast %123 : vector<1x128xf32> to vector<1x128x1xf32>
    %125 = arith.truncf %122 : vector<1x128x128xf32> to vector<1x128x128xbf16>
    "tpu.trace_start"() <{level = 10 : i32, message = "blm,bmd->bld"}> : () -> ()
    %cst_38 = arith.constant dense<0.000000e+00> : vector<1x128x8xf32>
    %126 = tpu.matmul %125, %112, %cst_38 {dimension_numbers = #tpu.dot_dimension_numbers<[2], [1], [1], [2], [0, 0, 0, 1, 1, 2], [0], [0]>} : vector<1x128x128xbf16>, vector<1x128x8xbf16>, vector<1x128x8xf32> -> vector<1x128x8xf32>
    "tpu.trace_stop"() : () -> ()
    %127 = tpu.reciprocal %124 {approx = true} : vector<1x128x1xf32> -> vector<1x128x1xf32>
    %128 = vector.broadcast %127 : vector<1x128x1xf32> to vector<1x128x8xf32>
    %129 = arith.mulf %126, %128 : vector<1x128x8xf32>
    %130 = vector.shape_cast %129 : vector<1x128x8xf32> to vector<128x8xf32>
    %131 = arith.truncf %130 : vector<128x8xf32> to vector<128x8xbf16>
    %c0_39 = arith.constant 0 : index
    %c24 = arith.constant 24 : index
    %132 = vector.load %arg15[%c0_39, %c24] : memref<128x32xbf16, #tpu.memory_space<vmem>>, vector<128x8xbf16>
    tpu.vector_store %arg15[%c0_39, %c24], %131 {strides = array<i32>} : memref<128x32xbf16, #tpu.memory_space<vmem>>, vector<128x8xbf16>,
    %c0_40 = arith.constant 0 : index
    %c0_41 = arith.constant 0 : index
    %133 = vector.load %arg15[%c0_40, %c0_41] : memref<128x32xbf16, #tpu.memory_space<vmem>>, vector<128x32xbf16>
    %c0_42 = arith.constant 0 : index
    %c0_43 = arith.constant 0 : index
    %134 = vector.load %arg6[%c0_42, %c0_43] : memref<32x32xbf16, #tpu.memory_space<vmem>>, vector<32x32xbf16>
    %cst_44 = arith.constant dense<0.000000e+00> : vector<128x32xf32>
    %135 = tpu.matmul %133, %134, %cst_44 {dimension_numbers = #tpu.dot_dimension_numbers<[1], [0], [0], [1], [0, 0, 1, 1], [], []>} : vector<128x32xbf16>, vector<32x32xbf16>, vector<128x32xf32> -> vector<128x32xf32>
    %c0_45 = arith.constant 0 : index
    %c0_46 = arith.constant 0 : index
    %136 = vector.load %arg7[%c0_45, %c0_46] : memref<1x32xf32, #tpu.memory_space<vmem>>, vector<1x32xf32>
    %137 = vector.broadcast %136 : vector<1x32xf32> to vector<128x32xf32>
    %138 = arith.addf %135, %137 : vector<128x32xf32>
    %139 = arith.addf %1, %138 : vector<128x32xf32>
    %c0_47 = arith.constant 0 : index
    %c0_48 = arith.constant 0 : index
    %140 = vector.load %arg8[%c0_47, %c0_48] : memref<1x32xf32, #tpu.memory_space<vmem>>, vector<1x32xf32>
    %141 = vector.shape_cast %140 : vector<1x32xf32> to vector<32xf32>
    %c0_49 = arith.constant 0 : index
    %c0_50 = arith.constant 0 : index
    %142 = vector.load %arg9[%c0_49, %c0_50] : memref<1x32xf32, #tpu.memory_space<vmem>>, vector<1x32xf32>
    %143 = vector.shape_cast %142 : vector<1x32xf32> to vector<32xf32>
    %cst_51 = arith.constant dense<0.000000e+00> : vector<128xf32>
    %144 = vector.multi_reduction <add>, %139, %cst_51 [1] : vector<128x32xf32> to vector<128xf32>
    %145 = vector.shape_cast %144 : vector<128xf32> to vector<128x1xf32>
    %cst_52 = arith.constant 3.200000e+01 : f32
    %146 = vector.broadcast %cst_52 : f32 to vector<128x1xf32>
    %147 = arith.divf %145, %146 : vector<128x1xf32>
    %148 = vector.broadcast %147 : vector<128x1xf32> to vector<128x32xf32>
    %149 = arith.subf %139, %148 : vector<128x32xf32>
    %150 = arith.mulf %149, %149 : vector<128x32xf32>
    %cst_53 = arith.constant dense<0.000000e+00> : vector<128xf32>
    %151 = vector.multi_reduction <add>, %150, %cst_53 [1] : vector<128x32xf32> to vector<128xf32>
    %152 = vector.shape_cast %151 : vector<128xf32> to vector<128x1xf32>
    %cst_54 = arith.constant 3.200000e+01 : f32
    %153 = vector.broadcast %cst_54 : f32 to vector<128x1xf32>
    %154 = arith.divf %152, %153 : vector<128x1xf32>
    %155 = vector.broadcast %147 : vector<128x1xf32> to vector<128x32xf32>
    %156 = arith.subf %139, %155 : vector<128x32xf32>
    %cst_55 = arith.constant 9.99999974E-6 : f32
    %157 = vector.broadcast %cst_55 : f32 to vector<128x1xf32>
    %158 = arith.addf %154, %157 : vector<128x1xf32>
    %159 = math.rsqrt %158 : vector<128x1xf32>
    %160 = vector.broadcast %159 : vector<128x1xf32> to vector<128x32xf32>
    %161 = arith.mulf %156, %160 : vector<128x32xf32>
    %162 = vector.shape_cast %141 : vector<32xf32> to vector<1x32xf32>
    %163 = vector.broadcast %162 : vector<1x32xf32> to vector<128x32xf32>
    %164 = arith.mulf %161, %163 : vector<128x32xf32>
    %165 = vector.shape_cast %143 : vector<32xf32> to vector<1x32xf32>
    %166 = vector.broadcast %165 : vector<1x32xf32> to vector<128x32xf32>
    %167 = arith.addf %164, %166 : vector<128x32xf32>
    %168 = arith.truncf %167 : vector<128x32xf32> to vector<128x32xbf16>
    %c0_56 = arith.constant 0 : index
    %c0_57 = arith.constant 0 : index
    %169 = vector.load %arg10[%c0_56, %c0_57] : memref<32x128xbf16, #tpu.memory_space<vmem>>, vector<32x128xbf16>
    %cst_58 = arith.constant dense<0.000000e+00> : vector<128x128xf32>
    %170 = tpu.matmul %168, %169, %cst_58 {dimension_numbers = #tpu.dot_dimension_numbers<[1], [0], [0], [1], [0, 0, 1, 1], [], []>} : vector<128x32xbf16>, vector<32x128xbf16>, vector<128x128xf32> -> vector<128x128xf32>
    %c0_59 = arith.constant 0 : index
    %c0_60 = arith.constant 0 : index
    %171 = vector.load %arg11[%c0_59, %c0_60] : memref<1x128xf32, #tpu.memory_space<vmem>>, vector<1x128xf32>
    %172 = vector.broadcast %171 : vector<1x128xf32> to vector<128x128xf32>
    %173 = arith.addf %170, %172 : vector<128x128xf32>
    %cst_61 = arith.constant 1.702000e+00 : f32
    %174 = vector.broadcast %cst_61 : f32 to vector<128x128xf32>
    %175 = arith.mulf %174, %173 : vector<128x128xf32>
    %176 = arith.negf %175 : vector<128x128xf32>
    %177 = math.exp %176 : vector<128x128xf32>
    %cst_62 = arith.constant 1.000000e+00 : f32
    %178 = vector.broadcast %cst_62 : f32 to vector<128x128xf32>
    %179 = arith.addf %178, %177 : vector<128x128xf32>
    %180 = arith.divf %178, %179 : vector<128x128xf32>
    %181 = arith.mulf %173, %180 : vector<128x128xf32>
    %182 = arith.truncf %181 : vector<128x128xf32> to vector<128x128xbf16>
    %c0_63 = arith.constant 0 : index
    %c0_64 = arith.constant 0 : index
    %183 = vector.load %arg12[%c0_63, %c0_64] : memref<128x32xbf16, #tpu.memory_space<vmem>>, vector<128x32xbf16>
    %cst_65 = arith.constant dense<0.000000e+00> : vector<128x32xf32>
    %184 = tpu.matmul %182, %183, %cst_65 {dimension_numbers = #tpu.dot_dimension_numbers<[1], [0], [0], [1], [0, 0, 1, 1], [], []>} : vector<128x128xbf16>, vector<128x32xbf16>, vector<128x32xf32> -> vector<128x32xf32>
    %c0_66 = arith.constant 0 : index
    %c0_67 = arith.constant 0 : index
    %185 = vector.load %arg13[%c0_66, %c0_67] : memref<1x32xf32, #tpu.memory_space<vmem>>, vector<1x32xf32>
    %186 = vector.broadcast %185 : vector<1x32xf32> to vector<128x32xf32>
    %187 = arith.addf %184, %186 : vector<128x32xf32>
    %188 = arith.addf %139, %187 : vector<128x32xf32>
    %189 = vector.shape_cast %188 : vector<128x32xf32> to vector<1x128x32xf32>
    %c0_68 = arith.constant 0 : index
    %c0_69 = arith.constant 0 : index
    %c0_70 = arith.constant 0 : index
    %190 = vector.load %arg14[%c0_68, %c0_69, %c0_70] : memref<1x128x32xf32, #tpu.memory_space<vmem>>, vector<1x128x32xf32>
    tpu.vector_store %arg14[%c0_68, %c0_69, %c0_70], %189 {strides = array<i32>} : memref<1x128x32xf32, #tpu.memory_space<vmem>>, vector<1x128x32xf32>,
    return
  }
  func.func @transform_0(%arg0: i32) -> (i32, i32, i32) {
    %c0_i32 = arith.constant 0 : i32
    %c0_i32_0 = arith.constant 0 : i32
    %c0_i32_1 = arith.constant 0 : i32
    return %arg0, %c0_i32, %c0_i32_0 : i32, i32, i32
  }
  func.func @transform_1(%arg0: i32) -> (i32, i32) {
    %c0_i32 = arith.constant 0 : i32
    %c0_i32_0 = arith.constant 0 : i32
    %c0_i32_1 = arith.constant 0 : i32
    return %c0_i32, %c0_i32_0 : i32, i32
  }
  func.func @transform_2(%arg0: i32) -> (i32, i32) {
    %c0_i32 = arith.constant 0 : i32
    %c0_i32_0 = arith.constant 0 : i32
    %c0_i32_1 = arith.constant 0 : i32
    return %c0_i32, %c0_i32_0 : i32, i32
  }
  func.func @transform_3(%arg0: i32) -> (i32, i32) {
    %c0_i32 = arith.constant 0 : i32
    %c0_i32_0 = arith.constant 0 : i32
    %c0_i32_1 = arith.constant 0 : i32
    return %c0_i32, %c0_i32_0 : i32, i32
  }
  func.func @transform_4(%arg0: i32) -> (i32, i32) {
    %c0_i32 = arith.constant 0 : i32
    %c0_i32_0 = arith.constant 0 : i32
    %c0_i32_1 = arith.constant 0 : i32
    return %c0_i32, %c0_i32_0 : i32, i32
  }
  func.func @transform_5(%arg0: i32) -> (i32, i32) {
    %c0_i32 = arith.constant 0 : i32
    %c0_i32_0 = arith.constant 0 : i32
    %c0_i32_1 = arith.constant 0 : i32
    return %c0_i32, %c0_i32_0 : i32, i32
  }
  func.func @transform_6(%arg0: i32) -> (i32, i32) {
    %c0_i32 = arith.constant 0 : i32
    %c0_i32_0 = arith.constant 0 : i32
    %c0_i32_1 = arith.constant 0 : i32
    return %c0_i32, %c0_i32_0 : i32, i32
  }
  func.func @transform_7(%arg0: i32) -> (i32, i32) {
    %c0_i32 = arith.constant 0 : i32
    %c0_i32_0 = arith.constant 0 : i32
    %c0_i32_1 = arith.constant 0 : i32
    return %c0_i32, %c0_i32_0 : i32, i32
  }
  func.func @transform_8(%arg0: i32) -> (i32, i32) {
    %c0_i32 = arith.constant 0 : i32
    %c0_i32_0 = arith.constant 0 : i32
    %c0_i32_1 = arith.constant 0 : i32
    return %c0_i32, %c0_i32_0 : i32, i32
  }
  func.func @transform_9(%arg0: i32) -> (i32, i32) {
    %c0_i32 = arith.constant 0 : i32
    %c0_i32_0 = arith.constant 0 : i32
    %c0_i32_1 = arith.constant 0 : i32
    return %c0_i32, %c0_i32_0 : i32, i32
  }
  func.func @transform_10(%arg0: i32) -> (i32, i32) {
    %c0_i32 = arith.constant 0 : i32
    %c0_i32_0 = arith.constant 0 : i32
    %c0_i32_1 = arith.constant 0 : i32
    return %c0_i32, %c0_i32_0 : i32, i32
  }
  func.func @transform_11(%arg0: i32) -> (i32, i32) {
    %c0_i32 = arith.constant 0 : i32
    %c0_i32_0 = arith.constant 0 : i32
    %c0_i32_1 = arith.constant 0 : i32
    return %c0_i32, %c0_i32_0 : i32, i32
  }
  func.func @transform_12(%arg0: i32) -> (i32, i32) {
    %c0_i32 = arith.constant 0 : i32
    %c0_i32_0 = arith.constant 0 : i32
    %c0_i32_1 = arith.constant 0 : i32
    return %c0_i32, %c0_i32_0 : i32, i32
  }
  func.func @transform_13(%arg0: i32) -> (i32, i32, i32) {
    %c0_i32 = arith.constant 0 : i32
    %c0_i32_0 = arith.constant 0 : i32
    %c0_i32_1 = arith.constant 0 : i32
    return %arg0, %c0_i32, %c0_i32_0 : i32, i32, i32
  }
}

module attributes {stable_mosaic.version = 11 : i64} {
  func.func @residual_attention_block_kernel(%arg0: i32, %arg1: memref<1x128x32xf32, #tpu.memory_space<vmem>>, %arg2: memref<1x32xf32, #tpu.memory_space<vmem>>, %arg3: memref<1x32xf32, #tpu.memory_space<vmem>>, %arg4: memref<32x96xbf16, #tpu.memory_space<vmem>>, %arg5: memref<1x96xf32, #tpu.memory_space<vmem>>, %arg6: memref<32x32xbf16, #tpu.memory_space<vmem>>, %arg7: memref<1x32xf32, #tpu.memory_space<vmem>>, %arg8: memref<1x32xf32, #tpu.memory_space<vmem>>, %arg9: memref<1x32xf32, #tpu.memory_space<vmem>>, %arg10: memref<32x128xbf16, #tpu.memory_space<vmem>>, %arg11: memref<1x128xf32, #tpu.memory_space<vmem>>, %arg12: memref<128x32xbf16, #tpu.memory_space<vmem>>, %arg13: memref<1x32xf32, #tpu.memory_space<vmem>>, %arg14: memref<1x128x32xf32, #tpu.memory_space<vmem>>, %arg15: memref<128x32xbf16, #tpu.memory_space<vmem>>) attributes {dimension_semantics = [#tpu.dimension_semantics<parallel>], iteration_bounds = array<i64: 2>, scalar_prefetch = 0 : i64, scratch_operands = 1 : i64, tpu.core_type = #tpu.core_type<tc>, window_params = [{transform_indices = @transform_0, window_bounds = array<i64: 1, 128, 32>}, {pipeline_mode = #tpu.pipeline_mode<synchronous>, transform_indices = @transform_1, window_bounds = array<i64: 1, 32>}, {pipeline_mode = #tpu.pipeline_mode<synchronous>, transform_indices = @transform_2, window_bounds = array<i64: 1, 32>}, {pipeline_mode = #tpu.pipeline_mode<synchronous>, transform_indices = @transform_3, window_bounds = array<i64: 32, 96>}, {pipeline_mode = #tpu.pipeline_mode<synchronous>, transform_indices = @transform_4, window_bounds = array<i64: 1, 96>}, {pipeline_mode = #tpu.pipeline_mode<synchronous>, transform_indices = @transform_5, window_bounds = array<i64: 32, 32>}, {pipeline_mode = #tpu.pipeline_mode<synchronous>, transform_indices = @transform_6, window_bounds = array<i64: 1, 32>}, {pipeline_mode = #tpu.pipeline_mode<synchronous>, transform_indices = @transform_7, window_bounds = array<i64: 1, 32>}, {pipeline_mode = #tpu.pipeline_mode<synchronous>, transform_indices = @transform_8, window_bounds = array<i64: 1, 32>}, {pipeline_mode = #tpu.pipeline_mode<synchronous>, transform_indices = @transform_9, window_bounds = array<i64: 32, 128>}, {pipeline_mode = #tpu.pipeline_mode<synchronous>, transform_indices = @transform_10, window_bounds = array<i64: 1, 128>}, {pipeline_mode = #tpu.pipeline_mode<synchronous>, transform_indices = @transform_11, window_bounds = array<i64: 128, 32>}, {pipeline_mode = #tpu.pipeline_mode<synchronous>, transform_indices = @transform_12, window_bounds = array<i64: 1, 32>}, {transform_indices = @transform_13, window_bounds = array<i64: 1, 128, 32>}]} {
    %c0 = arith.constant 0 : index
    %c0_0 = arith.constant 0 : index
    %c0_1 = arith.constant 0 : index
    %0 = vector.load %arg1[%c0, %c0_0, %c0_1] : memref<1x128x32xf32, #tpu.memory_space<vmem>>, vector<1x128x32xf32>
    %1 = vector.shape_cast %0 : vector<1x128x32xf32> to vector<128x32xf32>
    %c0_2 = arith.constant 0 : index
    %c0_3 = arith.constant 0 : index
    %2 = vector.load %arg2[%c0_2, %c0_3] : memref<1x32xf32, #tpu.memory_space<vmem>>, vector<1x32xf32>
    %3 = vector.shape_cast %2 : vector<1x32xf32> to vector<32xf32>
    %c0_4 = arith.constant 0 : index
    %c0_5 = arith.constant 0 : index
    %4 = vector.load %arg3[%c0_4, %c0_5] : memref<1x32xf32, #tpu.memory_space<vmem>>, vector<1x32xf32>
    %5 = vector.shape_cast %4 : vector<1x32xf32> to vector<32xf32>
    %cst = arith.constant dense<0.000000e+00> : vector<128xf32>
    %6 = vector.multi_reduction <add>, %1, %cst [1] : vector<128x32xf32> to vector<128xf32>
    %7 = vector.shape_cast %6 : vector<128xf32> to vector<128x1xf32>
    %cst_6 = arith.constant 3.200000e+01 : f32
    %8 = vector.broadcast %cst_6 : f32 to vector<128x1xf32>
    %9 = arith.divf %7, %8 : vector<128x1xf32>
    %10 = vector.broadcast %9 : vector<128x1xf32> to vector<128x32xf32>
    %11 = arith.subf %1, %10 : vector<128x32xf32>
    %12 = arith.mulf %11, %11 : vector<128x32xf32>
    %cst_7 = arith.constant dense<0.000000e+00> : vector<128xf32>
    %13 = vector.multi_reduction <add>, %12, %cst_7 [1] : vector<128x32xf32> to vector<128xf32>
    %14 = vector.shape_cast %13 : vector<128xf32> to vector<128x1xf32>
    %cst_8 = arith.constant 3.200000e+01 : f32
    %15 = vector.broadcast %cst_8 : f32 to vector<128x1xf32>
    %16 = arith.divf %14, %15 : vector<128x1xf32>
    %17 = vector.broadcast %9 : vector<128x1xf32> to vector<128x32xf32>
    %18 = arith.subf %1, %17 : vector<128x32xf32>
    %cst_9 = arith.constant 9.99999974E-6 : f32
    %19 = vector.broadcast %cst_9 : f32 to vector<128x1xf32>
    %20 = arith.addf %16, %19 : vector<128x1xf32>
    %21 = math.rsqrt %20 : vector<128x1xf32>
    %22 = vector.broadcast %21 : vector<128x1xf32> to vector<128x32xf32>
    %23 = arith.mulf %18, %22 : vector<128x32xf32>
    %24 = vector.shape_cast %3 : vector<32xf32> to vector<1x32xf32>
    %25 = vector.broadcast %24 : vector<1x32xf32> to vector<128x32xf32>
    %26 = arith.mulf %23, %25 : vector<128x32xf32>
    %27 = vector.shape_cast %5 : vector<32xf32> to vector<1x32xf32>
    %28 = vector.broadcast %27 : vector<1x32xf32> to vector<128x32xf32>
    %29 = arith.addf %26, %28 : vector<128x32xf32>
    %30 = arith.truncf %29 : vector<128x32xf32> to vector<128x32xbf16>
    %c0_10 = arith.constant 0 : index
    %c0_11 = arith.constant 0 : index
    %31 = vector.load %arg4[%c0_10, %c0_11] : memref<32x96xbf16, #tpu.memory_space<vmem>>, vector<32x96xbf16>
    %cst_12 = arith.constant dense<0.000000e+00> : vector<128x96xf32>
    %32 = tpu.matmul %30, %31, %cst_12 {dimension_numbers = #tpu.dot_dimension_numbers<[1], [0], [0], [1], [0, 0, 1, 1], [], []>} : vector<128x32xbf16>, vector<32x96xbf16>, vector<128x96xf32> -> vector<128x96xf32>
    %c0_13 = arith.constant 0 : index
    %c0_14 = arith.constant 0 : index
    %33 = vector.load %arg5[%c0_13, %c0_14] : memref<1x96xf32, #tpu.memory_space<vmem>>, vector<1x96xf32>
    %34 = vector.broadcast %33 : vector<1x96xf32> to vector<128x96xf32>
    %35 = arith.addf %32, %34 : vector<128x96xf32>
    %36 = arith.truncf %35 : vector<128x96xf32> to vector<128x96xbf16>
    %37 = vector.shape_cast %36 : vector<128x96xbf16> to vector<1x128x96xbf16>
    %38 = tpu.iota {dimensions = array<i32: 2>} : vector<1x1x128xi32>
    %c8_i32 = arith.constant 8 : i32
    %39 = vector.broadcast %c8_i32 : i32 to vector<1x1x128xi32>
    %40 = arith.cmpi slt, %38, %39 : vector<1x1x128xi32>
    %41 = vector.extract_strided_slice %37 {offsets = [0, 0, 0], sizes = [1, 128, 8], strides = [1, 1, 1]} : vector<1x128x96xbf16> to vector<1x128x8xbf16>
    %42 = vector.extract_strided_slice %37 {offsets = [0, 0, 32], sizes = [1, 128, 8], strides = [1, 1, 1]} : vector<1x128x96xbf16> to vector<1x128x8xbf16>
    %43 = vector.extract_strided_slice %37 {offsets = [0, 0, 64], sizes = [1, 128, 8], strides = [1, 1, 1]} : vector<1x128x96xbf16> to vector<1x128x8xbf16>
    "tpu.trace_start"() <{level = 10 : i32, message = "bld,bmd->blm"}> : () -> ()
    %cst_15 = arith.constant dense<0.000000e+00> : vector<1x128x128xf32>
    %44 = tpu.matmul %41, %42, %cst_15 {dimension_numbers = #tpu.dot_dimension_numbers<[2], [2], [1], [1], [0, 0, 0, 1, 1, 1], [0], [0]>} : vector<1x128x8xbf16>, vector<1x128x8xbf16>, vector<1x128x128xf32> -> vector<1x128x128xf32>
    %cst_16 = arith.constant -1.000000e+30 : f32
    "tpu.trace_stop"() : () -> ()
    %45 = vector.shape_cast %40 : vector<1x1x128xi1> to vector<1x1x128xi1>
    %46 = vector.broadcast %45 : vector<1x1x128xi1> to vector<1x128x128xi1>
    %47 = vector.broadcast %cst_16 : f32 to vector<1x128x128xf32>
    %48 = arith.select %46, %44, %47 : vector<1x128x128xi1>, vector<1x128x128xf32>
    %cst_17 = arith.constant dense<0xFF800000> : vector<1x128xf32>
    %49 = vector.multi_reduction <maximumf>, %48, %cst_17 [2] : vector<1x128x128xf32> to vector<1x128xf32>
    %50 = vector.shape_cast %49 : vector<1x128xf32> to vector<1x128x1xf32>
    %51 = vector.broadcast %50 : vector<1x128x1xf32> to vector<1x128x128xf32>
    %52 = arith.subf %48, %51 : vector<1x128x128xf32>
    %53 = math.exp %52 : vector<1x128x128xf32>
    %cst_18 = arith.constant dense<0.000000e+00> : vector<1x128xf32>
    %54 = vector.multi_reduction <add>, %53, %cst_18 [2] : vector<1x128x128xf32> to vector<1x128xf32>
    %55 = vector.shape_cast %54 : vector<1x128xf32> to vector<1x128x1xf32>
    %56 = arith.truncf %53 : vector<1x128x128xf32> to vector<1x128x128xbf16>
    "tpu.trace_start"() <{level = 10 : i32, message = "blm,bmd->bld"}> : () -> ()
    %cst_19 = arith.constant dense<0.000000e+00> : vector<1x128x8xf32>
    %57 = tpu.matmul %56, %43, %cst_19 {dimension_numbers = #tpu.dot_dimension_numbers<[2], [1], [1], [2], [0, 0, 0, 1, 1, 2], [0], [0]>} : vector<1x128x128xbf16>, vector<1x128x8xbf16>, vector<1x128x8xf32> -> vector<1x128x8xf32>
    "tpu.trace_stop"() : () -> ()
    %58 = tpu.reciprocal %55 {approx = true} : vector<1x128x1xf32> -> vector<1x128x1xf32>
    %59 = vector.broadcast %58 : vector<1x128x1xf32> to vector<1x128x8xf32>
    %60 = arith.mulf %57, %59 : vector<1x128x8xf32>
    %61 = vector.shape_cast %60 : vector<1x128x8xf32> to vector<128x8xf32>
    %62 = arith.truncf %61 : vector<128x8xf32> to vector<128x8xbf16>
    %c0_20 = arith.constant 0 : index
    %c0_21 = arith.constant 0 : index
    %63 = vector.load %arg15[%c0_20, %c0_21] : memref<128x32xbf16, #tpu.memory_space<vmem>>, vector<128x8xbf16>
    tpu.vector_store %arg15[%c0_20, %c0_21], %62 {strides = array<i32>} : memref<128x32xbf16, #tpu.memory_space<vmem>>, vector<128x8xbf16>,
    %64 = vector.extract_strided_slice %37 {offsets = [0, 0, 8], sizes = [1, 128, 8], strides = [1, 1, 1]} : vector<1x128x96xbf16> to vector<1x128x8xbf16>
    %65 = vector.extract_strided_slice %37 {offsets = [0, 0, 40], sizes = [1, 128, 8], strides = [1, 1, 1]} : vector<1x128x96xbf16> to vector<1x128x8xbf16>
    %66 = vector.extract_strided_slice %37 {offsets = [0, 0, 72], sizes = [1, 128, 8], strides = [1, 1, 1]} : vector<1x128x96xbf16> to vector<1x128x8xbf16>
    "tpu.trace_start"() <{level = 10 : i32, message = "bld,bmd->blm"}> : () -> ()
    %cst_22 = arith.constant dense<0.000000e+00> : vector<1x128x128xf32>
    %67 = tpu.matmul %64, %65, %cst_22 {dimension_numbers = #tpu.dot_dimension_numbers<[2], [2], [1], [1], [0, 0, 0, 1, 1, 1], [0], [0]>} : vector<1x128x8xbf16>, vector<1x128x8xbf16>, vector<1x128x128xf32> -> vector<1x128x128xf32>
    %cst_23 = arith.constant -1.000000e+30 : f32
    "tpu.trace_stop"() : () -> ()
    %68 = vector.shape_cast %40 : vector<1x1x128xi1> to vector<1x1x128xi1>
    %69 = vector.broadcast %68 : vector<1x1x128xi1> to vector<1x128x128xi1>
    %70 = vector.broadcast %cst_23 : f32 to vector<1x128x128xf32>
    %71 = arith.select %69, %67, %70 : vector<1x128x128xi1>, vector<1x128x128xf32>
    %cst_24 = arith.constant dense<0xFF800000> : vector<1x128xf32>
    %72 = vector.multi_reduction <maximumf>, %71, %cst_24 [2] : vector<1x128x128xf32> to vector<1x128xf32>
    %73 = vector.shape_cast %72 : vector<1x128xf32> to vector<1x128x1xf32>
    %74 = vector.broadcast %73 : vector<1x128x1xf32> to vector<1x128x128xf32>
    %75 = arith.subf %71, %74 : vector<1x128x128xf32>
    %76 = math.exp %75 : vector<1x128x128xf32>
    %cst_25 = arith.constant dense<0.000000e+00> : vector<1x128xf32>
    %77 = vector.multi_reduction <add>, %76, %cst_25 [2] : vector<1x128x128xf32> to vector<1x128xf32>
    %78 = vector.shape_cast %77 : vector<1x128xf32> to vector<1x128x1xf32>
    %79 = arith.truncf %76 : vector<1x128x128xf32> to vector<1x128x128xbf16>
    "tpu.trace_start"() <{level = 10 : i32, message = "blm,bmd->bld"}> : () -> ()
    %cst_26 = arith.constant dense<0.000000e+00> : vector<1x128x8xf32>
    %80 = tpu.matmul %79, %66, %cst_26 {dimension_numbers = #tpu.dot_dimension_numbers<[2], [1], [1], [2], [0, 0, 0, 1, 1, 2], [0], [0]>} : vector<1x128x128xbf16>, vector<1x128x8xbf16>, vector<1x128x8xf32> -> vector<1x128x8xf32>
    "tpu.trace_stop"() : () -> ()
    %81 = tpu.reciprocal %78 {approx = true} : vector<1x128x1xf32> -> vector<1x128x1xf32>
    %82 = vector.broadcast %81 : vector<1x128x1xf32> to vector<1x128x8xf32>
    %83 = arith.mulf %80, %82 : vector<1x128x8xf32>
    %84 = vector.shape_cast %83 : vector<1x128x8xf32> to vector<128x8xf32>
    %85 = arith.truncf %84 : vector<128x8xf32> to vector<128x8xbf16>
    %c0_27 = arith.constant 0 : index
    %c8 = arith.constant 8 : index
    %86 = vector.load %arg15[%c0_27, %c8] : memref<128x32xbf16, #tpu.memory_space<vmem>>, vector<128x8xbf16>
    tpu.vector_store %arg15[%c0_27, %c8], %85 {strides = array<i32>} : memref<128x32xbf16, #tpu.memory_space<vmem>>, vector<128x8xbf16>,
    %87 = vector.extract_strided_slice %37 {offsets = [0, 0, 16], sizes = [1, 128, 8], strides = [1, 1, 1]} : vector<1x128x96xbf16> to vector<1x128x8xbf16>
    %88 = vector.extract_strided_slice %37 {offsets = [0, 0, 48], sizes = [1, 128, 8], strides = [1, 1, 1]} : vector<1x128x96xbf16> to vector<1x128x8xbf16>
    %89 = vector.extract_strided_slice %37 {offsets = [0, 0, 80], sizes = [1, 128, 8], strides = [1, 1, 1]} : vector<1x128x96xbf16> to vector<1x128x8xbf16>
    "tpu.trace_start"() <{level = 10 : i32, message = "bld,bmd->blm"}> : () -> ()
    %cst_28 = arith.constant dense<0.000000e+00> : vector<1x128x128xf32>
    %90 = tpu.matmul %87, %88, %cst_28 {dimension_numbers = #tpu.dot_dimension_numbers<[2], [2], [1], [1], [0, 0, 0, 1, 1, 1], [0], [0]>} : vector<1x128x8xbf16>, vector<1x128x8xbf16>, vector<1x128x128xf32> -> vector<1x128x128xf32>
    %cst_29 = arith.constant -1.000000e+30 : f32
    "tpu.trace_stop"() : () -> ()
    %91 = vector.shape_cast %40 : vector<1x1x128xi1> to vector<1x1x128xi1>
    %92 = vector.broadcast %91 : vector<1x1x128xi1> to vector<1x128x128xi1>
    %93 = vector.broadcast %cst_29 : f32 to vector<1x128x128xf32>
    %94 = arith.select %92, %90, %93 : vector<1x128x128xi1>, vector<1x128x128xf32>
    %cst_30 = arith.constant dense<0xFF800000> : vector<1x128xf32>
    %95 = vector.multi_reduction <maximumf>, %94, %cst_30 [2] : vector<1x128x128xf32> to vector<1x128xf32>
    %96 = vector.shape_cast %95 : vector<1x128xf32> to vector<1x128x1xf32>
    %97 = vector.broadcast %96 : vector<1x128x1xf32> to vector<1x128x128xf32>
    %98 = arith.subf %94, %97 : vector<1x128x128xf32>
    %99 = math.exp %98 : vector<1x128x128xf32>
    %cst_31 = arith.constant dense<0.000000e+00> : vector<1x128xf32>
    %100 = vector.multi_reduction <add>, %99, %cst_31 [2] : vector<1x128x128xf32> to vector<1x128xf32>
    %101 = vector.shape_cast %100 : vector<1x128xf32> to vector<1x128x1xf32>
    %102 = arith.truncf %99 : vector<1x128x128xf32> to vector<1x128x128xbf16>
    "tpu.trace_start"() <{level = 10 : i32, message = "blm,bmd->bld"}> : () -> ()
    %cst_32 = arith.constant dense<0.000000e+00> : vector<1x128x8xf32>
    %103 = tpu.matmul %102, %89, %cst_32 {dimension_numbers = #tpu.dot_dimension_numbers<[2], [1], [1], [2], [0, 0, 0, 1, 1, 2], [0], [0]>} : vector<1x128x128xbf16>, vector<1x128x8xbf16>, vector<1x128x8xf32> -> vector<1x128x8xf32>
    "tpu.trace_stop"() : () -> ()
    %104 = tpu.reciprocal %101 {approx = true} : vector<1x128x1xf32> -> vector<1x128x1xf32>
    %105 = vector.broadcast %104 : vector<1x128x1xf32> to vector<1x128x8xf32>
    %106 = arith.mulf %103, %105 : vector<1x128x8xf32>
    %107 = vector.shape_cast %106 : vector<1x128x8xf32> to vector<128x8xf32>
    %108 = arith.truncf %107 : vector<128x8xf32> to vector<128x8xbf16>
    %c0_33 = arith.constant 0 : index
    %c16 = arith.constant 16 : index
    %109 = vector.load %arg15[%c0_33, %c16] : memref<128x32xbf16, #tpu.memory_space<vmem>>, vector<128x8xbf16>
    tpu.vector_store %arg15[%c0_33, %c16], %108 {strides = array<i32>} : memref<128x32xbf16, #tpu.memory_space<vmem>>, vector<128x8xbf16>,
    %110 = vector.extract_strided_slice %37 {offsets = [0, 0, 24], sizes = [1, 128, 8], strides = [1, 1, 1]} : vector<1x128x96xbf16> to vector<1x128x8xbf16>
    %111 = vector.extract_strided_slice %37 {offsets = [0, 0, 56], sizes = [1, 128, 8], strides = [1, 1, 1]} : vector<1x128x96xbf16> to vector<1x128x8xbf16>
    %112 = vector.extract_strided_slice %37 {offsets = [0, 0, 88], sizes = [1, 128, 8], strides = [1, 1, 1]} : vector<1x128x96xbf16> to vector<1x128x8xbf16>
    "tpu.trace_start"() <{level = 10 : i32, message = "bld,bmd->blm"}> : () -> ()
    %cst_34 = arith.constant dense<0.000000e+00> : vector<1x128x128xf32>
    %113 = tpu.matmul %110, %111, %cst_34 {dimension_numbers = #tpu.dot_dimension_numbers<[2], [2], [1], [1], [0, 0, 0, 1, 1, 1], [0], [0]>} : vector<1x128x8xbf16>, vector<1x128x8xbf16>, vector<1x128x128xf32> -> vector<1x128x128xf32>
    %cst_35 = arith.constant -1.000000e+30 : f32
    "tpu.trace_stop"() : () -> ()
    %114 = vector.shape_cast %40 : vector<1x1x128xi1> to vector<1x1x128xi1>
    %115 = vector.broadcast %114 : vector<1x1x128xi1> to vector<1x128x128xi1>
    %116 = vector.broadcast %cst_35 : f32 to vector<1x128x128xf32>
    %117 = arith.select %115, %113, %116 : vector<1x128x128xi1>, vector<1x128x128xf32>
    %cst_36 = arith.constant dense<0xFF800000> : vector<1x128xf32>
    %118 = vector.multi_reduction <maximumf>, %117, %cst_36 [2] : vector<1x128x128xf32> to vector<1x128xf32>
    %119 = vector.shape_cast %118 : vector<1x128xf32> to vector<1x128x1xf32>
    %120 = vector.broadcast %119 : vector<1x128x1xf32> to vector<1x128x128xf32>
    %121 = arith.subf %117, %120 : vector<1x128x128xf32>
    %122 = math.exp %121 : vector<1x128x128xf32>
    %cst_37 = arith.constant dense<0.000000e+00> : vector<1x128xf32>
    %123 = vector.multi_reduction <add>, %122, %cst_37 [2] : vector<1x128x128xf32> to vector<1x128xf32>
    %124 = vector.shape_cast %123 : vector<1x128xf32> to vector<1x128x1xf32>
    %125 = arith.truncf %122 : vector<1x128x128xf32> to vector<1x128x128xbf16>
    "tpu.trace_start"() <{level = 10 : i32, message = "blm,bmd->bld"}> : () -> ()
    %cst_38 = arith.constant dense<0.000000e+00> : vector<1x128x8xf32>
    %126 = tpu.matmul %125, %112, %cst_38 {dimension_numbers = #tpu.dot_dimension_numbers<[2], [1], [1], [2], [0, 0, 0, 1, 1, 2], [0], [0]>} : vector<1x128x128xbf16>, vector<1x128x8xbf16>, vector<1x128x8xf32> -> vector<1x128x8xf32>
    "tpu.trace_stop"() : () -> ()
    %127 = tpu.reciprocal %124 {approx = true} : vector<1x128x1xf32> -> vector<1x128x1xf32>
    %128 = vector.broadcast %127 : vector<1x128x1xf32> to vector<1x128x8xf32>
    %129 = arith.mulf %126, %128 : vector<1x128x8xf32>
    %130 = vector.shape_cast %129 : vector<1x128x8xf32> to vector<128x8xf32>
    %131 = arith.truncf %130 : vector<128x8xf32> to vector<128x8xbf16>
    %c0_39 = arith.constant 0 : index
    %c24 = arith.constant 24 : index
    %132 = vector.load %arg15[%c0_39, %c24] : memref<128x32xbf16, #tpu.memory_space<vmem>>, vector<128x8xbf16>
    tpu.vector_store %arg15[%c0_39, %c24], %131 {strides = array<i32>} : memref<128x32xbf16, #tpu.memory_space<vmem>>, vector<128x8xbf16>,
    %c0_40 = arith.constant 0 : index
    %c0_41 = arith.constant 0 : index
    %133 = vector.load %arg15[%c0_40, %c0_41] : memref<128x32xbf16, #tpu.memory_space<vmem>>, vector<128x32xbf16>
    %c0_42 = arith.constant 0 : index
    %c0_43 = arith.constant 0 : index
    %134 = vector.load %arg6[%c0_42, %c0_43] : memref<32x32xbf16, #tpu.memory_space<vmem>>, vector<32x32xbf16>
    %cst_44 = arith.constant dense<0.000000e+00> : vector<128x32xf32>
    %135 = tpu.matmul %133, %134, %cst_44 {dimension_numbers = #tpu.dot_dimension_numbers<[1], [0], [0], [1], [0, 0, 1, 1], [], []>} : vector<128x32xbf16>, vector<32x32xbf16>, vector<128x32xf32> -> vector<128x32xf32>
    %c0_45 = arith.constant 0 : index
    %c0_46 = arith.constant 0 : index
    %136 = vector.load %arg7[%c0_45, %c0_46] : memref<1x32xf32, #tpu.memory_space<vmem>>, vector<1x32xf32>
    %137 = vector.broadcast %136 : vector<1x32xf32> to vector<128x32xf32>
    %138 = arith.addf %135, %137 : vector<128x32xf32>
    %139 = arith.addf %1, %138 : vector<128x32xf32>
    %c0_47 = arith.constant 0 : index
    %c0_48 = arith.constant 0 : index
    %140 = vector.load %arg8[%c0_47, %c0_48] : memref<1x32xf32, #tpu.memory_space<vmem>>, vector<1x32xf32>
    %141 = vector.shape_cast %140 : vector<1x32xf32> to vector<32xf32>
    %c0_49 = arith.constant 0 : index
    %c0_50 = arith.constant 0 : index
    %142 = vector.load %arg9[%c0_49, %c0_50] : memref<1x32xf32, #tpu.memory_space<vmem>>, vector<1x32xf32>
    %143 = vector.shape_cast %142 : vector<1x32xf32> to vector<32xf32>
    %cst_51 = arith.constant dense<0.000000e+00> : vector<128xf32>
    %144 = vector.multi_reduction <add>, %139, %cst_51 [1] : vector<128x32xf32> to vector<128xf32>
    %145 = vector.shape_cast %144 : vector<128xf32> to vector<128x1xf32>
    %cst_52 = arith.constant 3.200000e+01 : f32
    %146 = vector.broadcast %cst_52 : f32 to vector<128x1xf32>
    %147 = arith.divf %145, %146 : vector<128x1xf32>
    %148 = vector.broadcast %147 : vector<128x1xf32> to vector<128x32xf32>
    %149 = arith.subf %139, %148 : vector<128x32xf32>
    %150 = arith.mulf %149, %149 : vector<128x32xf32>
    %cst_53 = arith.constant dense<0.000000e+00> : vector<128xf32>
    %151 = vector.multi_reduction <add>, %150, %cst_53 [1] : vector<128x32xf32> to vector<128xf32>
    %152 = vector.shape_cast %151 : vector<128xf32> to vector<128x1xf32>
    %cst_54 = arith.constant 3.200000e+01 : f32
    %153 = vector.broadcast %cst_54 : f32 to vector<128x1xf32>
    %154 = arith.divf %152, %153 : vector<128x1xf32>
    %155 = vector.broadcast %147 : vector<128x1xf32> to vector<128x32xf32>
    %156 = arith.subf %139, %155 : vector<128x32xf32>
    %cst_55 = arith.constant 9.99999974E-6 : f32
    %157 = vector.broadcast %cst_55 : f32 to vector<128x1xf32>
    %158 = arith.addf %154, %157 : vector<128x1xf32>
    %159 = math.rsqrt %158 : vector<128x1xf32>
    %160 = vector.broadcast %159 : vector<128x1xf32> to vector<128x32xf32>
    %161 = arith.mulf %156, %160 : vector<128x32xf32>
    %162 = vector.shape_cast %141 : vector<32xf32> to vector<1x32xf32>
    %163 = vector.broadcast %162 : vector<1x32xf32> to vector<128x32xf32>
    %164 = arith.mulf %161, %163 : vector<128x32xf32>
    %165 = vector.shape_cast %143 : vector<32xf32> to vector<1x32xf32>
    %166 = vector.broadcast %165 : vector<1x32xf32> to vector<128x32xf32>
    %167 = arith.addf %164, %166 : vector<128x32xf32>
    %168 = arith.truncf %167 : vector<128x32xf32> to vector<128x32xbf16>
    %c0_56 = arith.constant 0 : index
    %c0_57 = arith.constant 0 : index
    %169 = vector.load %arg10[%c0_56, %c0_57] : memref<32x128xbf16, #tpu.memory_space<vmem>>, vector<32x128xbf16>
    %cst_58 = arith.constant dense<0.000000e+00> : vector<128x128xf32>
    %170 = tpu.matmul %168, %169, %cst_58 {dimension_numbers = #tpu.dot_dimension_numbers<[1], [0], [0], [1], [0, 0, 1, 1], [], []>} : vector<128x32xbf16>, vector<32x128xbf16>, vector<128x128xf32> -> vector<128x128xf32>
    %c0_59 = arith.constant 0 : index
    %c0_60 = arith.constant 0 : index
    %171 = vector.load %arg11[%c0_59, %c0_60] : memref<1x128xf32, #tpu.memory_space<vmem>>, vector<1x128xf32>
    %172 = vector.broadcast %171 : vector<1x128xf32> to vector<128x128xf32>
    %173 = arith.addf %170, %172 : vector<128x128xf32>
    %cst_61 = arith.constant 1.702000e+00 : f32
    %174 = vector.broadcast %cst_61 : f32 to vector<128x128xf32>
    %175 = arith.mulf %174, %173 : vector<128x128xf32>
    %176 = arith.negf %175 : vector<128x128xf32>
    %177 = math.exp %176 : vector<128x128xf32>
    %cst_62 = arith.constant 1.000000e+00 : f32
    %178 = vector.broadcast %cst_62 : f32 to vector<128x128xf32>
    %179 = arith.addf %178, %177 : vector<128x128xf32>
    %180 = arith.divf %178, %179 : vector<128x128xf32>
    %181 = arith.mulf %173, %180 : vector<128x128xf32>
    %182 = arith.truncf %181 : vector<128x128xf32> to vector<128x128xbf16>
    %c0_63 = arith.constant 0 : index
    %c0_64 = arith.constant 0 : index
    %183 = vector.load %arg12[%c0_63, %c0_64] : memref<128x32xbf16, #tpu.memory_space<vmem>>, vector<128x32xbf16>
    %cst_65 = arith.constant dense<0.000000e+00> : vector<128x32xf32>
    %184 = tpu.matmul %182, %183, %cst_65 {dimension_numbers = #tpu.dot_dimension_numbers<[1], [0], [0], [1], [0, 0, 1, 1], [], []>} : vector<128x128xbf16>, vector<128x32xbf16>, vector<128x32xf32> -> vector<128x32xf32>
    %c0_66 = arith.constant 0 : index
    %c0_67 = arith.constant 0 : index
    %185 = vector.load %arg13[%c0_66, %c0_67] : memref<1x32xf32, #tpu.memory_space<vmem>>, vector<1x32xf32>
    %186 = vector.broadcast %185 : vector<1x32xf32> to vector<128x32xf32>
    %187 = arith.addf %184, %186 : vector<128x32xf32>
    %188 = arith.addf %139, %187 : vector<128x32xf32>
    %189 = vector.shape_cast %188 : vector<128x32xf32> to vector<1x128x32xf32>
    %c0_68 = arith.constant 0 : index
    %c0_69 = arith.constant 0 : index
    %c0_70 = arith.constant 0 : index
    %190 = vector.load %arg14[%c0_68, %c0_69, %c0_70] : memref<1x128x32xf32, #tpu.memory_space<vmem>>, vector<1x128x32xf32>
    tpu.vector_store %arg14[%c0_68, %c0_69, %c0_70], %189 {strides = array<i32>} : memref<1x128x32xf32, #tpu.memory_space<vmem>>, vector<1x128x32xf32>,
    return
  }
  func.func @transform_0(%arg0: i32) -> (i32, i32, i32) {
    %c0_i32 = arith.constant 0 : i32
    %c0_i32_0 = arith.constant 0 : i32
    %c0_i32_1 = arith.constant 0 : i32
    return %arg0, %c0_i32, %c0_i32_0 : i32, i32, i32
  }
  func.func @transform_1(%arg0: i32) -> (i32, i32) {
    %c0_i32 = arith.constant 0 : i32
    %c0_i32_0 = arith.constant 0 : i32
    %c0_i32_1 = arith.constant 0 : i32
    return %c0_i32, %c0_i32_0 : i32, i32
  }
  func.func @transform_2(%arg0: i32) -> (i32, i32) {
    %c0_i32 = arith.constant 0 : i32
    %c0_i32_0 = arith.constant 0 : i32
    %c0_i32_1 = arith.constant 0 : i32
    return %c0_i32, %c0_i32_0 : i32, i32
  }
  func.func @transform_3(%arg0: i32) -> (i32, i32) {
    %c0_i32 = arith.constant 0 : i32
    %c0_i32_0 = arith.constant 0 : i32
    %c0_i32_1 = arith.constant 0 : i32
    return %c0_i32, %c0_i32_0 : i32, i32
  }
  func.func @transform_4(%arg0: i32) -> (i32, i32) {
    %c0_i32 = arith.constant 0 : i32
    %c0_i32_0 = arith.constant 0 : i32
    %c0_i32_1 = arith.constant 0 : i32
    return %c0_i32, %c0_i32_0 : i32, i32
  }
  func.func @transform_5(%arg0: i32) -> (i32, i32) {
    %c0_i32 = arith.constant 0 : i32
    %c0_i32_0 = arith.constant 0 : i32
    %c0_i32_1 = arith.constant 0 : i32
    return %c0_i32, %c0_i32_0 : i32, i32
  }
  func.func @transform_6(%arg0: i32) -> (i32, i32) {
    %c0_i32 = arith.constant 0 : i32
    %c0_i32_0 = arith.constant 0 : i32
    %c0_i32_1 = arith.constant 0 : i32
    return %c0_i32, %c0_i32_0 : i32, i32
  }
  func.func @transform_7(%arg0: i32) -> (i32, i32) {
    %c0_i32 = arith.constant 0 : i32
    %c0_i32_0 = arith.constant 0 : i32
    %c0_i32_1 = arith.constant 0 : i32
    return %c0_i32, %c0_i32_0 : i32, i32
  }
  func.func @transform_8(%arg0: i32) -> (i32, i32) {
    %c0_i32 = arith.constant 0 : i32
    %c0_i32_0 = arith.constant 0 : i32
    %c0_i32_1 = arith.constant 0 : i32
    return %c0_i32, %c0_i32_0 : i32, i32
  }
  func.func @transform_9(%arg0: i32) -> (i32, i32) {
    %c0_i32 = arith.constant 0 : i32
    %c0_i32_0 = arith.constant 0 : i32
    %c0_i32_1 = arith.constant 0 : i32
    return %c0_i32, %c0_i32_0 : i32, i32
  }
  func.func @transform_10(%arg0: i32) -> (i32, i32) {
    %c0_i32 = arith.constant 0 : i32
    %c0_i32_0 = arith.constant 0 : i32
    %c0_i32_1 = arith.constant 0 : i32
    return %c0_i32, %c0_i32_0 : i32, i32
  }
  func.func @transform_11(%arg0: i32) -> (i32, i32) {
    %c0_i32 = arith.constant 0 : i32
    %c0_i32_0 = arith.constant 0 : i32
    %c0_i32_1 = arith.constant 0 : i32
    return %c0_i32, %c0_i32_0 : i32, i32
  }
  func.func @transform_12(%arg0: i32) -> (i32, i32) {
    %c0_i32 = arith.constant 0 : i32
    %c0_i32_0 = arith.constant 0 : i32
    %c0_i32_1 = arith.constant 0 : i32
    return %c0_i32, %c0_i32_0 : i32, i32
  }
  func.func @transform_13(%arg0: i32) -> (i32, i32, i32) {
    %c0_i32 = arith.constant 0 : i32
    %c0_i32_0 = arith.constant 0 : i32
    %c0_i32_1 = arith.constant 0 : i32
    return %arg0, %c0_i32, %c0_i32_0 : i32, i32, i32
  }
}

</mosaic_0001>

<bundles_post_ra>
// kernel: tpu_custom_call.1
= control target key start
LH: loop header
LB: loop body
LE: loop exit
PB: predicated region body
PF: predicated region fallthrough
CT: control target
= control target key end

     0   :  { %s5069_s25 = smov 0   ;;  %s6924_s0 = inlined_call_operand.vmem [shape: f32[2,128,32], index: 0, kind: input, shape index: {}]   ;;  %s6925_s1 = inlined_call_operand.vmem [shape: f32[1,32], index: 1, kind: input, shape index: {}]   ;;  %s6926_s2 = inlined_call_operand.vmem [shape: f32[1,32], index: 2, kind: input, shape index: {}]   ;;  %s6927_s3 = inlined_call_operand.vmem [shape: bf16[32,96], index: 3, kind: input, shape index: {}]   ;;  %s6928_s4 = inlined_call_operand.vmem [shape: f32[1,96], index: 4, kind: input, shape index: {}]   ;;  %s6929_s5 = inlined_call_operand.vmem [shape: bf16[32,32], index: 5, kind: input, shape index: {}]   ;;  %s6930_s6 = inlined_call_operand.vmem [shape: f32[1,32], index: 6, kind: input, shape index: {}]   ;;  %s6931_s7 = inlined_call_operand.vmem [shape: f32[1,32], index: 7, kind: input, shape index: {}]   ;;  %s6932_s8 = inlined_call_operand.vmem [shape: f32[1,32], index: 8, kind: input, shape index: {}]   ;;  %s6933_s9 = inlined_call_operand.vmem [shape: bf16[32,128], index: 9, kind: input, shape index: {}]   ;;  %s6934_s10 = inlined_call_operand.vmem [shape: f32[1,128], index: 10, kind: input, shape index: {}]   ;;  %s6935_s11 = inlined_call_operand.vmem [shape: bf16[128,32], index: 11, kind: input, shape index: {}]   ;;  %s6936_s12 = inlined_call_operand.vmem [shape: f32[1,32], index: 12, kind: input, shape index: {}]   ;;  %s6937_s13 = inlined_call_operand.vmem [shape: f32[2,128,32], index: 13, kind: output, shape index: {}]  }
   0x1 LB: > { %s3864_s26 = sadd.s32 4294967295, %s4983_s25   ;;  %p3868_p0 = scmp.ge.s32.totalorder %s4983_s25, 1  ;;  %s4983_s25 = sphi %s5069_s25, %s23_s25  }
   0x2   : > { %p387_p1 = scmp.lt.s32.totalorder %s4983_s25, 3 }
   0x4   : > { %p388_p2 = pnand %p3868_p0, %p387_p1 }
   0x6   : > { %391 = sbr.rel (%p388_p2) target bundleno = 3925 (0xf55), region = 72 }
   0xd   : > { %p431_p3 = scmp.lt.s32.totalorder %s3864_s26, 1  ;;  %vm460_vm0 = vcmask 261120   ;;  %vm901_vm1 = vcmask 64512   ;;  %s4985_s24 = smov 96   ;;  %vm1860_vm3 = vcmask 130112   ;;  %vm2375_vm4 = vcmask 195712  }
   0xe   : > { %s4986_s28 = smov 64   ;;  %s4987_s29 = smov 88   ;;  %vm2890_vm5 = vcmask 261312  }
   0xf   : > { %s7054_s26 = smov (!%p431_p3, %s3864_s26), 1  ;;  %s4988_s14 = smov 120  }
  0x10   : > { %s3969_s27 = sshll.u32 %s7054_s26, 7  ;;  %s4989_s15 = smov 56  }
  0x11   : > { %s5085_s30 = scalar_lea.vmem %s6924_s0, %s3969_s27  ;;  %s4990_s16 = smov 80  }
  0x12   : > { %v442_v0 = vld [vmem:[%s5085_s30] sm:$0xff]  ;;  %v444_v1 = vld [vmem:[%s5085_s30 + $0x10] sm:$0xff]  ;;  %v443_v2 = vld [vmem:[%s5085_s30 + $0x8] sm:$0xff]  ;;  %s4991_s17 = smov 112   ;;  %s4992_s18 = smov 48  }
  0x13   : > { %v461_v3 = vsel %vm460_vm0, %v442_v0, 0.0  ;;  %v467_v4 = vsel %vm460_vm0, %v444_v1, 0.0  ;;  %v445_v5 = vld [vmem:[%s5085_s30 + $0x18] sm:$0xff]  ;;  %v5094_v6 = vld [vmem:[%s5085_s30 + $0x20] sm:$0xff]  ;;  %v464_v7 = vsel %vm460_vm0, %v443_v2, 0.0  ;;  %v447_v9 = vld [vmem:[%s5085_s30 + $0x28] sm:$0xff] }
  0x14   : > { %462 = vadd.xlane.f32.xlu0 %v461_v3  ;;  %468 = vadd.xlane.f32.xlu1 %v467_v4  ;;  %v470_v8 = vsel %vm460_vm0, %v445_v5, 0.0  ;;  %v473_v10 = vsel %vm460_vm0, %v5094_v6, 0.0  ;;  %v476_v11 = vsel %vm460_vm0, %v447_v9, 0.0  ;;  %v5103_v12 = vld [vmem:[%s5085_s30 + $0x30] sm:$0xff]  ;;  %v5106_v13 = vld [vmem:[%s5085_s30 + $0x38] sm:$0xff]  ;;  %v5113_v16 = vld [vmem:[%s5085_s30 + $0x40] sm:$0xff] }
  0x15   : > { %v479_v14 = vsel %vm460_vm0, %v5103_v12, 0.0  ;;  %v482_v15 = vsel %vm460_vm0, %v5106_v13, 0.0  ;;  %v5116_v17 = vld [vmem:[%s5085_s30 + $0x48] sm:$0xff]  ;;  %v485_v18 = vsel %vm460_vm0, %v5113_v16, 0.0  ;;  %v5123_v20 = vld [vmem:[%s5085_s30 + $0x50] sm:$0xff]  ;;  %v5126_v21 = vld [vmem:[%s5085_s30 + $0x58] sm:$0xff] }
  0x16   : > { %v488_v19 = vsel %vm460_vm0, %v5116_v17, 0.0  ;;  %v491_v22 = vsel %vm460_vm0, %v5123_v20, 0.0  ;;  %v494_v23 = vsel %vm460_vm0, %v5126_v21, 0.0  ;;  %v5133_v24 = vld [vmem:[%s5085_s30 + $0x60] sm:$0xff]  ;;  %v5136_v25 = vld [vmem:[%s5085_s30 + $0x68] sm:$0xff]  ;;  %v5143_v28 = vld [vmem:[%s5085_s30 + $0x70] sm:$0xff] }
  0x17   : > { %v497_v26 = vsel %vm460_vm0, %v5133_v24, 0.0  ;;  %v500_v27 = vsel %vm460_vm0, %v5136_v25, 0.0  ;;  %v5146_v29 = vld [vmem:[%s5085_s30 + $0x78] sm:$0xff]  ;;  %v503_v30 = vsel %vm460_vm0, %v5143_v28, 0.0  ;;  %s4993_s19 = smov 72   ;;  %s4994_s20 = smov 104  }
  0x18   : > { %465 = vadd.xlane.f32.xlu0 %v464_v7  ;;  %471 = vadd.xlane.f32.xlu1 %v470_v8  ;;  %v506_v31 = vsel %vm460_vm0, %v5146_v29, 0.0  ;;  %s4995_s21 = smov 40   ;;  %s4996_s22 = smov 8  }
  0x19   : > { %s4997_s23 = smov 16  }
  0x1c   : > { %474 = vadd.xlane.f32.xlu0 %v473_v10  ;;  %477 = vadd.xlane.f32.xlu1 %v476_v11 }
  0x20   : > { %480 = vadd.xlane.f32.xlu0 %v479_v14  ;;  %483 = vadd.xlane.f32.xlu1 %v482_v15 }
  0x24   : > { %486 = vadd.xlane.f32.xlu0 %v485_v18  ;;  %489 = vadd.xlane.f32.xlu1 %v488_v19 }
  0x28   : > { %492 = vadd.xlane.f32.xlu0 %v491_v22  ;;  %495 = vadd.xlane.f32.xlu1 %v494_v23 }
  0x2c   : > { %498 = vadd.xlane.f32.xlu0 %v497_v26  ;;  %501 = vadd.xlane.f32.xlu1 %v500_v27 }
  0x30   : > { %504 = vadd.xlane.f32.xlu0 %v503_v30  ;;  %507 = vadd.xlane.f32.xlu1 %v506_v31 }
  0xa1   : > { %v463_v32 = vpop.xlane.xlu0 %462  ;;  %v469_v33 = vpop.xlane.xlu1 %468 }
  0xa2   : > { %v510_v34 = vmul.f32 0.03125, %v463_v32  ;;  %v512_v35 = vmul.f32 0.03125, %v469_v33 }
  0xa4   : > { %v5152_v36 = vsub.f32 %v442_v0, %v510_v34  ;;  %v5154_v37 = vsub.f32 %v444_v1, %v512_v35 }
  0xa5   : > { %v466_v38 = vpop.xlane.xlu0 %465  ;;  %v472_v39 = vpop.xlane.xlu1 %471 }
  0xa6   : > { %v511_v40 = vmul.f32 0.03125, %v466_v38  ;;  %v513_v41 = vmul.f32 0.03125, %v472_v39  ;;  %v542_v42 = vmul.f32 %v5152_v36, %v5152_v36  ;;  %v544_v43 = vmul.f32 %v5154_v37, %v5154_v37 }
  0xa8   : > { %v5160_v44 = vsub.f32 %v443_v2, %v511_v40  ;;  %v5162_v45 = vsub.f32 %v445_v5, %v513_v41  ;;  %v558_v46 = vsel %vm460_vm0, %v542_v42, 0.0  ;;  %v564_v49 = vsel %vm460_vm0, %v544_v43, 0.0 }
  0xa9   : > { %559 = vadd.xlane.f32.xlu0 %v558_v46  ;;  %v475_v47 = vpop.xlane.xlu0 %474  ;;  %v478_v48 = vpop.xlane.xlu1 %477 }
  0xaa   : > { %v514_v50 = vmul.f32 0.03125, %v475_v47  ;;  %v515_v51 = vmul.f32 0.03125, %v478_v48  ;;  %v543_v52 = vmul.f32 %v5160_v44, %v5160_v44  ;;  %v545_v53 = vmul.f32 %v5162_v45, %v5162_v45 }
  0xac   : > { %v5171_v54 = vsub.f32 %v5094_v6, %v514_v50  ;;  %v5173_v55 = vsub.f32 %v447_v9, %v515_v51  ;;  %v561_v56 = vsel %vm460_vm0, %v543_v52, 0.0  ;;  %v567_v59 = vsel %vm460_vm0, %v545_v53, 0.0  ;;  %v4564_v53 = vld [vmem:[%s6927_s3 + $0x8] sm:$0xff]  }
  0xad   : > { %565 = vadd.xlane.f32.xlu0 %v564_v49  ;;  %562 = vadd.xlane.f32.xlu1 %v561_v56  ;;  %v481_v57 = vpop.xlane.xlu0 %480  ;;  %v484_v58 = vpop.xlane.xlu1 %483 }
  0xae   : > { %v516_v60 = vmul.f32 0.03125, %v481_v57  ;;  %v517_v61 = vmul.f32 0.03125, %v484_v58  ;;  %v546_v62 = vmul.f32 %v5171_v54, %v5171_v54  ;;  %v547_v63 = vmul.f32 %v5173_v55, %v5173_v55 }
  0xb0   : > { %v5182_v0 = vsub.f32 %v5103_v12, %v516_v60  ;;  %v5185_v1 = vsub.f32 %v5106_v13, %v517_v61  ;;  %v570_v2 = vsel %vm460_vm0, %v546_v62, 0.0  ;;  %v573_v5 = vsel %vm460_vm0, %v547_v63, 0.0 }
  0xb1   : > { %568 = vadd.xlane.f32.xlu1 %v567_v59  ;;  %571 = vadd.xlane.f32.xlu0 %v570_v2  ;;  %v487_v3 = vpop.xlane.xlu0 %486  ;;  %v490_v4 = vpop.xlane.xlu1 %489 }
  0xb2   : > { %v518_v6 = vmul.f32 0.03125, %v487_v3  ;;  %v519_v7 = vmul.f32 0.03125, %v490_v4  ;;  %v548_v8 = vmul.f32 %v5182_v0, %v5182_v0  ;;  %v549_v9 = vmul.f32 %v5185_v1, %v5185_v1 }
  0xb4   : > { %v5194_v10 = vsub.f32 %v5113_v16, %v518_v6  ;;  %v5197_v11 = vsub.f32 %v5116_v17, %v519_v7  ;;  %v576_v12 = vsel %vm460_vm0, %v548_v8, 0.0  ;;  %v579_v15 = vsel %vm460_vm0, %v549_v9, 0.0 }
  0xb5   : > { %574 = vadd.xlane.f32.xlu1 %v573_v5  ;;  %577 = vadd.xlane.f32.xlu0 %v576_v12  ;;  %v493_v13 = vpop.xlane.xlu0 %492  ;;  %v496_v14 = vpop.xlane.xlu1 %495 }
  0xb6   : > { %v520_v18 = vmul.f32 0.03125, %v493_v13  ;;  %v521_v19 = vmul.f32 0.03125, %v496_v14  ;;  %v550_v22 = vmul.f32 %v5194_v10, %v5194_v10  ;;  %v551_v16 = vmul.f32 %v5197_v11, %v5197_v11 }
  0xb8   : > { %v5206_v23 = vsub.f32 %v5123_v20, %v520_v18  ;;  %v5209_v17 = vsub.f32 %v5126_v21, %v521_v19  ;;  %v582_v26 = vsel %vm460_vm0, %v550_v22, 0.0  ;;  %v585_v31 = vsel %vm460_vm0, %v551_v16, 0.0 }
  0xb9   : > { %580 = vadd.xlane.f32.xlu1 %v579_v15  ;;  %583 = vadd.xlane.f32.xlu0 %v582_v26  ;;  %v499_v27 = vpop.xlane.xlu0 %498  ;;  %v502_v30 = vpop.xlane.xlu1 %501 }
  0xba   : > { %v522_v32 = vmul.f32 0.03125, %v499_v27  ;;  %v523_v33 = vmul.f32 0.03125, %v502_v30  ;;  %v552_v34 = vmul.f32 %v5206_v23, %v5206_v23  ;;  %v553_v20 = vmul.f32 %v5209_v17, %v5209_v17 }
  0xbc   : > { %v5218_v35 = vsub.f32 %v5133_v24, %v522_v32  ;;  %v5221_v21 = vsub.f32 %v5136_v25, %v523_v33  ;;  %v588_v38 = vsel %vm460_vm0, %v552_v34, 0.0  ;;  %v591_v41 = vsel %vm460_vm0, %v553_v20, 0.0 }
  0xbd   : > { %586 = vadd.xlane.f32.xlu1 %v585_v31  ;;  %589 = vadd.xlane.f32.xlu0 %v588_v38  ;;  %v505_v39 = vpop.xlane.xlu0 %504  ;;  %v508_v40 = vpop.xlane.xlu1 %507  ;;  %v5253_v31 = vld [vmem:[%s6925_s1] ss:$0 sm:$0xff] }
  0xbe   : > { %v524_v42 = vmul.f32 0.03125, %v505_v39  ;;  %v525_v43 = vmul.f32 0.03125, %v508_v40  ;;  %v554_v46 = vmul.f32 %v5218_v35, %v5218_v35  ;;  %v555_v24 = vmul.f32 %v5221_v21, %v5221_v21 }
  0xc0   : > { %v5230_v47 = vsub.f32 %v5143_v28, %v524_v42  ;;  %v5233_v25 = vsub.f32 %v5146_v29, %v525_v43  ;;  %v594_v48 = vsel %vm460_vm0, %v554_v46, 0.0  ;;  %v597_v49 = vsel %vm460_vm0, %v555_v24, 0.0  ;;  %v4563_v29 = vld [vmem:[%s6927_s3] sm:$0xff]  }
  0xc1   : > { %592 = vadd.xlane.f32.xlu1 %v591_v41  ;;  %595 = vadd.xlane.f32.xlu0 %v594_v48  ;;  %v5260_v43 = vld [vmem:[%s6926_s2] ss:$0 sm:$0xff] }
  0xc2   : > { %v556_v50 = vmul.f32 %v5230_v47, %v5230_v47  ;;  %v557_v51 = vmul.f32 %v5233_v25, %v5233_v25  ;;  %4145 = vmatprep.subr.bf16.mxu0 %v4563_v29 }
  0xc3   : > { %4146 = vmatpush3.bf16.msra.mxu0 %v4563_v29 }
  0xc4   : > { %v600_v52 = vsel %vm460_vm0, %v556_v50, 0.0  ;;  %v603_v28 = vsel %vm460_vm0, %v557_v51, 0.0  ;;  %4147 = vmatprep.subr.bf16.mxu0 %v4564_v53 }
  0xc5   : > { %598 = vadd.xlane.f32.xlu1 %v597_v49  ;;  %601 = vadd.xlane.f32.xlu0 %v600_v52 }
  0xc7   : > { %4148 = vmatpush3.bf16.msra.mxu0 %v4564_v53 }
  0xc9   : > { %604 = vadd.xlane.f32.xlu1 %v603_v28 }
 0x136   : > { %v560_v56 = vpop.xlane.xlu0 %559 }
 0x137   : > { %v606_v57 = vmul.f32 0.03125, %v560_v56 }
 0x139   : > { %v622_v58 = vadd.f32 1e-05, %v606_v57 }
 0x13a   : > { %v563_v59 = vpop.xlane.xlu1 %562  ;;  %v566_v60 = vpop.xlane.xlu0 %565 }
 0x13b   : > { %4577 = vrsqrt.f32 %v622_v58  ;;  %v607_v61 = vmul.f32 0.03125, %v563_v59  ;;  %v608_v62 = vmul.f32 0.03125, %v566_v60 }
 0x13d   : > { %v623_v63 = vadd.f32 1e-05, %v607_v61  ;;  %v624_v2 = vadd.f32 1e-05, %v608_v62 }
 0x13e   : > { %v569_v3 = vpop.xlane.xlu1 %568  ;;  %v572_v4 = vpop.xlane.xlu0 %571 }
 0x13f   : > { %4579 = vrsqrt.f32 %v623_v63  ;;  %v609_v5 = vmul.f32 0.03125, %v569_v3  ;;  %v610_v6 = vmul.f32 0.03125, %v572_v4 }
 0x140   : > { %4581 = vrsqrt.f32 %v624_v2 }
 0x141   : > { %v625_v7 = vadd.f32 1e-05, %v609_v5  ;;  %v626_v8 = vadd.f32 1e-05, %v610_v6 }
 0x142   : > { %v575_v9 = vpop.xlane.xlu1 %574  ;;  %v578_v12 = vpop.xlane.xlu0 %577 }
 0x143   : > { %4583 = vrsqrt.f32 %v625_v7  ;;  %v611_v13 = vmul.f32 0.03125, %v575_v9  ;;  %v612_v14 = vmul.f32 0.03125, %v578_v12 }
 0x144   : > { %4585 = vrsqrt.f32 %v626_v8 }
 0x145   : > { %v4578_v15 = vpop.eup %4577  ;;  %v627_v18 = vadd.f32 1e-05, %v611_v13  ;;  %v628_v19 = vadd.f32 1e-05, %v612_v14 }
 0x146   : > { %v581_v22 = vpop.xlane.xlu1 %580  ;;  %v584_v16 = vpop.xlane.xlu0 %583  ;;  %v654_v26 = vmul.f32 %v4578_v15, %v5152_v36 }
 0x147   : > { %4587 = vrsqrt.f32 %v627_v18  ;;  %v613_v27 = vmul.f32 0.03125, %v581_v22  ;;  %v614_v30 = vmul.f32 0.03125, %v584_v16 }
 0x148   : > { %4589 = vrsqrt.f32 %v628_v19  ;;  %v676_v41 = vmul.f32 %v5253_v31, %v654_v26 }
 0x149   : > { %v4580_v32 = vpop.eup %4579  ;;  %v629_v33 = vadd.f32 1e-05, %v613_v27  ;;  %v630_v34 = vadd.f32 1e-05, %v614_v30 }
 0x14a   : > { %v4582_v20 = vpop.eup %4581  ;;  %v587_v38 = vpop.xlane.xlu1 %586  ;;  %v655_v40 = vmul.f32 %v4580_v32, %v5160_v44  ;;  %v698_v28 = vadd.f32 %v5260_v43, %v676_v41 }
 0x14b   : > { %v590_v39 = vpop.xlane.xlu0 %589  ;;  %4591 = vrsqrt.f32 %v629_v33  ;;  %v615_v36 = vmul.f32 0.03125, %v587_v38  ;;  %v656_v46 = vmul.f32 %v4582_v20, %v5154_v37 }
 0x14c   : > { %v616_v42 = vmul.f32 0.03125, %v590_v39  ;;  %4593 = vrsqrt.f32 %v630_v34  ;;  %v677_v24 = vmul.f32 %v5253_v31, %v655_v40 }
 0x14d   : > { %v4584_v48 = vpop.eup %4583  ;;  %v631_v49 = vadd.f32 1e-05, %v615_v36  ;;  %v678_v56 = vmul.f32 %v5253_v31, %v656_v46 }
 0x14e   : > { %v632_v50 = vadd.f32 1e-05, %v616_v42  ;;  %v4586_v51 = vpop.eup %4585  ;;  %v593_v44 = vpop.xlane.xlu1 %592  ;;  %v699_v29 = vadd.f32 %v5260_v43, %v677_v24  ;;  %v657_v53 = vmul.f32 %v4584_v48, %v5162_v45 }
 0x14f   : > { %v596_v52 = vpop.xlane.xlu0 %595  ;;  %4595 = vrsqrt.f32 %v631_v49  ;;  %v617_v57 = vmul.f32 0.03125, %v593_v44  ;;  %v658_v60 = vmul.f32 %v4586_v51, %v5171_v54  ;;  %v700_v45 = vadd.f32 %v5260_v43, %v678_v56 }
 0x150   : > { %v618_v37 = vmul.f32 0.03125, %v596_v52  ;;  %4597 = vrsqrt.f32 %v632_v50  ;;  %v714_v58 = vpack.c.bf16 %v699_v29, %v698_v28  ;;  %v679_v59 = vmul.f32 %v5253_v31, %v657_v53 }
 0x151   : > { %v4588_v61 = vpop.eup %4587  ;;  %v633_v62 = vadd.f32 1e-05, %v617_v57  ;;  %v680_v7 = vmul.f32 %v5253_v31, %v658_v60 }
 0x152   : > { %v634_v63 = vadd.f32 1e-05, %v618_v37  ;;  %v4590_v2 = vpop.eup %4589  ;;  %v599_v3 = vpop.xlane.xlu1 %598  ;;  %4149 = vmatprep.mubr.msk.bf16.mxu0 %vm460_vm0, %v714_v58  ;;  %v701_v5 = vadd.f32 %v5260_v43, %v679_v59  ;;  %v659_v6 = vmul.f32 %v4588_v61, %v5173_v55 }
 0x153   : > { %v602_v4 = vpop.xlane.xlu0 %601  ;;  %4599 = vrsqrt.f32 %v633_v62  ;;  %v619_v8 = vmul.f32 0.03125, %v599_v3  ;;  %v660_v54 = vmul.f32 %v4590_v2, %v5182_v0  ;;  %v702_v55 = vadd.f32 %v5260_v43, %v680_v7 }
 0x154   : > { %v620_v9 = vmul.f32 0.03125, %v602_v4  ;;  %4601 = vrsqrt.f32 %v634_v63  ;;  %v715_v12 = vpack.c.bf16 %v701_v5, %v700_v45  ;;  %v681_v13 = vmul.f32 %v5253_v31, %v659_v6  ;;  %v3875_v45 = vld [vmem:[%s6928_s4] ss:$0 sm:$0xff] }
 0x155   : > { %v4592_v14 = vpop.eup %4591  ;;  %v635_v15 = vadd.f32 1e-05, %v619_v8  ;;  %v682_v27 = vmul.f32 %v5253_v31, %v660_v54 }
 0x156   : > { %v636_v18 = vadd.f32 1e-05, %v620_v9  ;;  %v4594_v19 = vpop.eup %4593  ;;  %v605_v22 = vpop.xlane.xlu1 %604  ;;  %4150 = vmatmul.mubr.msk.bf16.vlgmr.msra.gmra.mrb[0].mxu0 %vm460_vm0, %v715_v12  ;;  %v703_v16 = vadd.f32 %v5260_v43, %v681_v13  ;;  %v661_v26 = vmul.f32 %v4592_v14, %v5185_v1 }
 0x157   : > { %4603 = vrsqrt.f32 %v635_v15  ;;  %v621_v0 = vmul.f32 0.03125, %v605_v22  ;;  %v662_v30 = vmul.f32 %v4594_v19, %v5194_v10  ;;  %v704_v39 = vadd.f32 %v5260_v43, %v682_v27 }
 0x158   : > { %4605 = vrsqrt.f32 %v636_v18  ;;  %v716_v32 = vpack.c.bf16 %v703_v16, %v702_v55  ;;  %v683_v33 = vmul.f32 %v5253_v31, %v661_v26 }
 0x159   : > { %v4596_v34 = vpop.eup %4595  ;;  %v637_v20 = vadd.f32 1e-05, %v621_v0  ;;  %v684_v41 = vmul.f32 %v5253_v31, %v662_v30 }
 0x15a   : > { %v4598_v38 = vpop.eup %4597  ;;  %4153 = vmatprep.mubr.msk.bf16.mxu0 %vm460_vm0, %v716_v32  ;;  %v705_v40 = vadd.f32 %v5260_v43, %v683_v33  ;;  %v663_v1 = vmul.f32 %v4596_v34, %v5197_v11 }
 0x15b   : > { %4607 = vrsqrt.f32 %v637_v20  ;;  %v664_v10 = vmul.f32 %v4598_v38, %v5206_v23  ;;  %v706_v48 = vadd.f32 %v5260_v43, %v684_v41 }
 0x15c   : > { %v717_v36 = vpack.c.bf16 %v705_v40, %v704_v39  ;;  %v685_v42 = vmul.f32 %v5253_v31, %v663_v1 }
 0x15d   : > { %v4600_v46 = vpop.eup %4599  ;;  %v686_v11 = vmul.f32 %v5253_v31, %v664_v10 }
 0x15e   : > { %v4602_v24 = vpop.eup %4601  ;;  %4154 = vmatmul.mubr.msk.bf16.gmra.mrb[4].mxu0 %vm460_vm0, %v717_v36  ;;  %v707_v49 = vadd.f32 %v5260_v43, %v685_v42  ;;  %v665_v50 = vmul.f32 %v4600_v46, %v5209_v17 }
 0x15f   : > { %v666_v51 = vmul.f32 %v4602_v24, %v5218_v35  ;;  %v708_v29 = vadd.f32 %v5260_v43, %v686_v11 }
 0x160   : > { %v718_v44 = vpack.c.bf16 %v707_v49, %v706_v48  ;;  %v687_v23 = vmul.f32 %v5253_v31, %v665_v50 }
 0x161   : > { %v4604_v52 = vpop.eup %4603  ;;  %v688_v57 = vmul.f32 %v5253_v31, %v666_v51 }
 0x162   : > { %v4606_v28 = vpop.eup %4605  ;;  %4157 = vmatprep.mubr.msk.bf16.mxu0 %vm460_vm0, %v718_v44  ;;  %v709_v53 = vadd.f32 %v5260_v43, %v687_v23  ;;  %v667_v56 = vmul.f32 %v4604_v52, %v5221_v21 }
 0x163   : > { %v668_v17 = vmul.f32 %v4606_v28, %v5230_v47  ;;  %v710_v59 = vadd.f32 %v5260_v43, %v688_v57 }
 0x164   : > { %v719_v37 = vpack.c.bf16 %v709_v53, %v708_v29  ;;  %v689_v35 = vmul.f32 %v5253_v31, %v667_v56 }
 0x165   : > { %v4608_v58 = vpop.eup %4607  ;;  %v690_v62 = vmul.f32 %v5253_v31, %v668_v17 }
 0x166   : > { %4158 = vmatmul.mubr.msk.bf16.gmra.mrb[8].mxu0 %vm460_vm0, %v719_v37  ;;  %v711_v60 = vadd.f32 %v5260_v43, %v689_v35  ;;  %v669_v61 = vmul.f32 %v4608_v58, %v5233_v25 }
 0x167   : > { %v712_v47 = vadd.f32 %v5260_v43, %v690_v62 }
 0x168   : > { %v720_v63 = vpack.c.bf16 %v711_v60, %v710_v59  ;;  %v691_v21 = vmul.f32 %v5253_v31, %v669_v61 }
 0x16a   : > { %4161 = vmatprep.mubr.msk.bf16.mxu0 %vm460_vm0, %v720_v63  ;;  %v713_v2 = vadd.f32 %v5260_v43, %v691_v21 }
 0x16c   : > { %v721_v3 = vpack.c.bf16 %v713_v2, %v712_v47 }
 0x16e   : > { %4162 = vmatmul.mubr.msk.bf16.gmra.mrb[12].mxu0 %vm460_vm0, %v721_v3 }
 0x229   : > { %v4151_v4 = vpop.f32.mrb[0].mxu0 }
 0x22a   : > { %v803_v25 = vpop.f32.mrb[1].mxu0  ;;  %v812_v6 = vadd.f32 %v4151_v4, %v3875_v45 }
 0x22b   : > { %v4152_v5 = vpop.f32.mrb[2].mxu0  ;;  %v804_v31 = vadd.f32 %v3875_v45, %v803_v25 }
 0x22c   : > { %v815_v7 = vadd.f32 %v4152_v5, %v3875_v45  ;;  %v806_v8 = vpop.f32.mrb[3].mxu0 }
 0x22d   : > { %v807_v9 = vadd.f32 %v3875_v45, %v806_v8 }
 0x22e   : > { %v5318_v54 = vpack.c.bf16 %v815_v7, %v812_v6  ;;  %v874_v6 = vlaneseq }
 0x22f   : > { %v5320_v12 = vpack.c.bf16 %v807_v9, %v804_v31 }
 0x230   : > { %887 = vrot.lane.b32.xlu1 %v5318_v54, %s4985_s24  ;;  %v5406_v7 = vand.u32 127, %v874_v6 }
 0x231   : > { %885 = vrot.lane.b32.xlu0 %v5320_v12, %s4985_s24  ;;  %v4155_v43 = vpop.f32.mrb[4].mxu0  ;;  %4181 = vmatprep.mubr.msk.bf16.mxu1 %vm901_vm1, %v5320_v12 }
 0x232   : > { %v819_v13 = vpop.f32.mrb[5].mxu0  ;;  %v828_v15 = vadd.f32 %v4155_v43, %v3875_v45  ;;  %vm876_vm2 = vcmp.lt.s32.totalorder %v5406_v7, 8 }
 0x233   : > { %v4156_v14 = vpop.f32.mrb[6].mxu0  ;;  %v820_v22 = vadd.f32 %v3875_v45, %v819_v13 }
 0x234   : > { %v831_v18 = vadd.f32 %v4156_v14, %v3875_v45  ;;  %v822_v19 = vpop.f32.mrb[7].mxu0 }
 0x235   : > { %v823_v55 = vadd.f32 %v3875_v45, %v822_v19 }
 0x236   : > { %v5328_v16 = vpack.c.bf16 %v831_v18, %v828_v15 }
 0x237   : > { %v5330_v26 = vpack.c.bf16 %v823_v55, %v820_v22 }
 0x239   : > { %889 = vrot.lane.b32.xlu1 %v5330_v26, %s4985_s24  ;;  %v4159_v27 = vpop.f32.mrb[8].mxu0 }
 0x23a   : > { %v835_v0 = vpop.f32.mrb[9].mxu0  ;;  %v844_v32 = vadd.f32 %v4159_v27, %v3875_v45 }
 0x23b   : > { %v4160_v30 = vpop.f32.mrb[10].mxu0  ;;  %v836_v20 = vadd.f32 %v3875_v45, %v835_v0 }
 0x23c   : > { %v847_v33 = vadd.f32 %v4160_v30, %v3875_v45  ;;  %v838_v34 = vpop.f32.mrb[11].mxu0 }
 0x23d   : > { %v839_v38 = vadd.f32 %v3875_v45, %v838_v34  ;;  %891 = vrot.lane.b32.xlu1 %v5328_v16, %s4985_s24 }
 0x23e   : > { %v5336_v39 = vpack.c.bf16 %v847_v33, %v844_v32 }
 0x23f   : > { %v5338_v40 = vpack.c.bf16 %v839_v38, %v836_v20 }
 0x241   : > { %895 = vrot.lane.b32.xlu1 %v5336_v39, %s4985_s24  ;;  %893 = vrot.lane.b32.xlu0 %v5338_v40, %s4985_s24  ;;  %v4163_v1 = vpop.f32.mrb[12].mxu0 }
 0x242   : > { %v851_v41 = vpop.f32.mrb[13].mxu0  ;;  %v860_v36 = vadd.f32 %v4163_v1, %v3875_v45 }
 0x243   : > { %v4164_v10 = vpop.f32.mrb[14].mxu0  ;;  %v852_v24 = vadd.f32 %v3875_v45, %v851_v41 }
 0x244   : > { %v863_v42 = vadd.f32 %v4164_v10, %v3875_v45  ;;  %v854_v46 = vpop.f32.mrb[15].mxu0 }
 0x245   : > { %v855_v48 = vadd.f32 %v3875_v45, %v854_v46 }
 0x246   : > { %v5344_v49 = vpack.c.bf16 %v863_v42, %v860_v36 }
 0x247   : > { %v5346_v50 = vpack.c.bf16 %v855_v48, %v852_v24 }
 0x248   : > { %899 = vrot.lane.b32.xlu1 %v5344_v49, %s4985_s24 }
 0x249   : > { %897 = vrot.lane.b32.xlu0 %v5346_v50, %s4985_s24 }
 0x24c   : > { %1187 = vrot.lane.b32.xlu1 %v5318_v54, %s4986_s28 }
 0x24d   : > { %1185 = vrot.lane.b32.xlu0 %v5320_v12, %s4986_s28 }
 0x250   : > { %1191 = vrot.lane.b32.xlu1 %v5328_v16, %s4986_s28 }
 0x251   : > { %1189 = vrot.lane.b32.xlu0 %v5330_v26, %s4986_s28 }
 0x254   : > { %1193 = vrot.lane.b32.xlu1 %v5338_v40, %s4986_s28 }
 0x255   : > { %1370 = vrot.lane.b32.xlu0 %v5320_v12, %s4987_s29 }
 0x258   : > { %1195 = vrot.lane.b32.xlu1 %v5336_v39, %s4986_s28 }
 0x259   : > { %1372 = vrot.lane.b32.xlu0 %v5318_v54, %s4987_s29 }
 0x25c   : > { %1199 = vrot.lane.b32.xlu1 %v5344_v49, %s4986_s28 }
 0x25d   : > { %1376 = vrot.lane.b32.xlu0 %v5328_v16, %s4987_s29 }
 0x260   : > { %1374 = vrot.lane.b32.xlu1 %v5330_v26, %s4987_s29 }
 0x261   : > { %1197 = vrot.lane.b32.xlu0 %v5346_v50, %s4986_s28 }
 0x2a2   : > { %v888_v44 = vpop.permute.xlu1 %887 }
 0x2a3   : > { %v886_v11 = vpop.permute.xlu0 %885  ;;  %v930_v52 = vsel %vm901_vm1, %v888_v44, 0 }
 0x2a4   : > { %4509 = vmatprep.subr.msk.bf16.mxu1 %vm901_vm1, %v886_v11  ;;  %v927_v51 = vsel %vm901_vm1, %v886_v11, 0 }
 0x2a5   : > { %4166 = vmatpush3.bf16.xpose.msra.mxu1 %v927_v51 }
 0x2a6   : > { %4510 = vmatprep.subr.msk.bf16.mxu1 %vm901_vm1, %v888_v44 }
 0x2ab   : > { %v890_v23 = vpop.permute.xlu1 %889 }
 0x2ac   : > { %v933_v29 = vsel %vm901_vm1, %v890_v23, 0 }
 0x2ad   : > { %4168 = vmatpush3.bf16.xpose.msra.mxu1 %v930_v52 }
 0x2ae   : > { %4511 = vmatprep.subr.msk.bf16.mxu1 %vm901_vm1, %v890_v23 }
 0x2af   : > { %v892_v28 = vpop.permute.xlu1 %891 }
 0x2b0   : > { %v936_v37 = vsel %vm901_vm1, %v892_v28, 0 }
 0x2b3   : > { %v896_v53 = vpop.permute.xlu1 %895  ;;  %v894_v56 = vpop.permute.xlu0 %893 }
 0x2b4   : > { %v939_v60 = vsel %vm901_vm1, %v894_v56, 0  ;;  %v942_v47 = vsel %vm901_vm1, %v896_v53, 0 }
 0x2b5   : > { %4170 = vmatpush3.bf16.xpose.msra.mxu1 %v933_v29 }
 0x2b6   : > { %4512 = vmatprep.subr.msk.bf16.mxu1 %vm901_vm1, %v892_v28 }
 0x2ba   : > { %v900_v57 = vpop.permute.xlu1 %899 }
 0x2bb   : > { %v898_v17 = vpop.permute.xlu0 %897  ;;  %v948_v5 = vsel %vm901_vm1, %v900_v57, 0 }
 0x2bc   : > { %v945_v4 = vsel %vm901_vm1, %v898_v17, 0 }
 0x2bd   : > { %4172 = vmatpush3.bf16.xpose.msra.mxu1 %v936_v37 }
 0x2be   : > { %4513 = vmatprep.subr.msk.bf16.mxu1 %vm901_vm1, %v894_v56  ;;  %v1188_v35 = vpop.permute.xlu1 %1187 }
 0x2bf   : > { %v1186_v58 = vpop.permute.xlu0 %1185 }
 0x2c0   : > { %4197 = vmatprep.subr.bf16.mxu0 %v1186_v58 }
 0x2c1   : > { %4198 = vmatpush3.bf16.msra.mxu0 %v1186_v58 }
 0x2c2   : > { %4199 = vmatprep.subr.bf16.mxu0 %v1188_v35  ;;  %v1192_v61 = vpop.permute.xlu1 %1191 }
 0x2c3   : > { %v1190_v59 = vpop.permute.xlu0 %1189 }
 0x2c5   : > { %4174 = vmatpush3.bf16.xpose.msra.mxu1 %v939_v60  ;;  %4200 = vmatpush3.bf16.msra.mxu0 %v1188_v35 }
 0x2c6   : > { %4514 = vmatprep.subr.msk.bf16.mxu1 %vm901_vm1, %v896_v53  ;;  %4201 = vmatprep.subr.bf16.mxu0 %v1190_v59  ;;  %v1194_v63 = vpop.permute.xlu1 %1193 }
 0x2c7   : > { %v5379_v62 = vpop.permute.xlu0 %1370 }
 0x2c9   : > { %4202 = vmatpush3.bf16.msra.mxu0 %v1190_v59 }
 0x2ca   : > { %4203 = vmatprep.subr.bf16.mxu0 %v1192_v61  ;;  %v1196_v3 = vpop.permute.xlu1 %1195 }
 0x2cb   : > { %v5381_v21 = vpop.permute.xlu0 %1372 }
 0x2cd   : > { %4176 = vmatpush3.bf16.xpose.msra.mxu1 %v942_v47  ;;  %4204 = vmatpush3.bf16.msra.mxu0 %v1192_v61 }
 0x2ce   : > { %4515 = vmatprep.subr.msk.bf16.mxu1 %vm901_vm1, %v898_v17  ;;  %4205 = vmatprep.subr.bf16.mxu0 %v1194_v63  ;;  %v1200_v25 = vpop.permute.xlu1 %1199 }
 0x2cf   : > { %v5385_v2 = vpop.permute.xlu0 %1376 }
 0x2d1   : > { %4206 = vmatpush3.bf16.msra.mxu0 %v1194_v63 }
 0x2d2   : > { %4207 = vmatprep.subr.bf16.mxu0 %v1196_v3  ;;  %v5517_v28 = vpop.permute.xlu1 %1374 }
 0x2d3   : > { %v1198_v45 = vpop.permute.xlu0 %1197 }
 0x2d5   : > { %4178 = vmatpush3.bf16.xpose.msra.mxu1 %v945_v4  ;;  %4208 = vmatpush3.bf16.msra.mxu0 %v1196_v3 }
 0x2d6   : > { %4516 = vmatprep.subr.msk.bf16.mxu1 %vm901_vm1, %v900_v57  ;;  %4209 = vmatprep.subr.bf16.mxu0 %v1198_v45 }
 0x2d9   : > { %4210 = vmatpush3.bf16.msra.mxu0 %v1198_v45 }
 0x2da   : > { %4211 = vmatprep.subr.bf16.mxu0 %v1200_v25 }
 0x2dd   : > { %4180 = vmatpush3.bf16.xpose.msra.mxu1 %v948_v5  ;;  %4212 = vmatpush3.bf16.msra.mxu0 %v1200_v25 }
 0x2de   : > { %4517 = vmatprep.subr.msk.bf16.mxu0 %vm901_vm1, %v5379_v62 }
 0x2e4   : > { %4182 = vmatmul.mubr.msk.bf16.vlgmr.msra.gmra.mrb[0].mxu1 %vm901_vm1, %v5318_v54 }
 0x2e5   : > { %4185 = vmatprep.mubr.msk.bf16.mxu1 %vm901_vm1, %v5330_v26 }
 0x2ec   : > { %4186 = vmatmul.mubr.msk.bf16.gmra.mrb[4].mxu1 %vm901_vm1, %v5328_v16 }
 0x2ed   : > { %4189 = vmatprep.mubr.msk.bf16.mxu1 %vm901_vm1, %v5338_v40 }
 0x2f4   : > { %4190 = vmatmul.mubr.msk.bf16.gmra.mrb[8].mxu1 %vm901_vm1, %v5336_v39 }
 0x2f5   : > { %4193 = vmatprep.mubr.msk.bf16.mxu1 %vm901_vm1, %v5346_v50 }
 0x2fc   : > { %4194 = vmatmul.mubr.msk.bf16.gmra.mrb[12].mxu1 %vm901_vm1, %v5344_v49 }
 0x3b7   : > { %v4183_v8 = vpop.f32.mrb[0].mxu1 }
 0x3b8   : > { %v984_v31 = vpop.f32.mrb[1].mxu1  ;;  %v5411_v9 = vsel %vm876_vm2, %v4183_v8, -1e+30 }
 0x3b9   : > { %1069 = vmax.xlane.f32.xlu0 %v5411_v9  ;;  %v4184_v43 = vpop.f32.mrb[2].mxu1  ;;  %v5421_v15 = vsel %vm876_vm2, %v984_v31, -1e+30 }
 0x3ba   : > { %v987_v13 = vpop.f32.mrb[3].mxu1  ;;  %v5426_v22 = vsel %vm876_vm2, %v4184_v43, -1e+30 }
 0x3bb   : > { %v5416_v14 = vsel %vm876_vm2, %v987_v13, -1e+30 }
 0x3bc   : > { %1067 = vmax.xlane.f32.xlu1 %v5416_v14 }
 0x3bd   : > { %1065 = vmax.xlane.f32.xlu0 %v5421_v15 }
 0x3bf   : > { %v4187_v18 = vpop.f32.mrb[4].mxu1 }
 0x3c0   : > { %v1000_v19 = vpop.f32.mrb[5].mxu1  ;;  %v5430_v55 = vsel %vm876_vm2, %v4187_v18, -1e+30 }
 0x3c1   : > { %1071 = vmax.xlane.f32.xlu0 %v5426_v22  ;;  %1077 = vmax.xlane.f32.xlu1 %v5430_v55  ;;  %v4188_v27 = vpop.f32.mrb[6].mxu1  ;;  %v5440_v32 = vsel %vm876_vm2, %v1000_v19, -1e+30 }
 0x3c2   : > { %v1003_v0 = vpop.f32.mrb[7].mxu1  ;;  %v5446_v20 = vsel %vm876_vm2, %v4188_v27, -1e+30 }
 0x3c3   : > { %v5436_v30 = vsel %vm876_vm2, %v1003_v0, -1e+30 }
 0x3c5   : > { %1073 = vmax.xlane.f32.xlu1 %v5440_v32  ;;  %1075 = vmax.xlane.f32.xlu0 %v5436_v30 }
 0x3c7   : > { %v4191_v33 = vpop.f32.mrb[8].mxu1 }
 0x3c8   : > { %v1016_v34 = vpop.f32.mrb[9].mxu1  ;;  %v5450_v38 = vsel %vm876_vm2, %v4191_v33, -1e+30 }
 0x3c9   : > { %1079 = vmax.xlane.f32.xlu1 %v5446_v20  ;;  %1085 = vmax.xlane.f32.xlu0 %v5450_v38  ;;  %v4192_v1 = vpop.f32.mrb[10].mxu1  ;;  %v5456_v10 = vsel %vm876_vm2, %v1016_v34, -1e+30 }
 0x3ca   : > { %v1019_v41 = vpop.f32.mrb[11].mxu1  ;;  %v5461_v46 = vsel %vm876_vm2, %v4192_v1, -1e+30 }
 0x3cb   : > { %v5471_v51 = vsel %vm876_vm2, %v1019_v41, -1e+30  ;;  %v1411_v41 = vsel %vm901_vm1, %v5379_v62, 0 }
 0x3cd   : > { %1081 = vmax.xlane.f32.xlu1 %v5456_v10 }
 0x3cf   : > { %v4195_v36 = vpop.f32.mrb[12].mxu1 }
 0x3d0   : > { %v1032_v42 = vpop.f32.mrb[13].mxu1  ;;  %v5476_v44 = vsel %vm876_vm2, %v4195_v36, -1e+30 }
 0x3d1   : > { %1087 = vmax.xlane.f32.xlu1 %v5461_v46  ;;  %v4196_v24 = vpop.f32.mrb[14].mxu1  ;;  %v5466_v48 = vsel %vm876_vm2, %v1032_v42, -1e+30 }
 0x3d2   : > { %1089 = vmax.xlane.f32.xlu0 %v5466_v48  ;;  %v1035_v11 = vpop.f32.mrb[15].mxu1  ;;  %v5481_v23 = vsel %vm876_vm2, %v4196_v24, -1e+30 }
 0x3d3   : > { %v5496_v52 = vsel %vm876_vm2, %v1035_v11, -1e+30 }
 0x3d5   : > { %1083 = vmax.xlane.f32.xlu1 %v5471_v51 }
 0x3d9   : > { %1093 = vmax.xlane.f32.xlu1 %v5476_v44 }
 0x3dd   : > { %1095 = vmax.xlane.f32.xlu1 %v5481_v23 }
 0x3e8   : > { %1380 = vrot.lane.b32.xlu0 %v5336_v39, %s4987_s29 }
 0x3ee   : > { %1378 = vrot.lane.b32.xlu1 %v5338_v40, %s4987_s29 }
 0x3f2   : > { %1356 = vrot.lane.b32.xlu1 %v5318_v54, %s4988_s14 }
 0x3f6   : > { %1360 = vrot.lane.b32.xlu1 %v5328_v16, %s4988_s14 }
 0x3fa   : > { %1364 = vrot.lane.b32.xlu1 %v5336_v39, %s4988_s14 }
 0x3fe   : > { %1368 = vrot.lane.b32.xlu1 %v5344_v49, %s4988_s14 }
 0x402   : > { %1669 = vrot.lane.b32.xlu1 %v5318_v54, %s4989_s15 }
 0x406   : > { %1673 = vrot.lane.b32.xlu1 %v5328_v16, %s4989_s15 }
 0x407   : > { %1091 = vmax.xlane.f32.xlu0 %v5496_v52 }
 0x40a   : > { %1675 = vrot.lane.b32.xlu1 %v5338_v40, %s4989_s15 }
 0x40e   : > { %1677 = vrot.lane.b32.xlu1 %v5336_v39, %s4989_s15 }
 0x412   : > { %1681 = vrot.lane.b32.xlu1 %v5344_v49, %s4989_s15 }
 0x416   : > { %1889 = vrot.lane.b32.xlu1 %v5330_v26, %s4990_s16 }
 0x41d   : > { %1382 = vrot.lane.b32.xlu0 %v5346_v50, %s4987_s29 }
 0x421   : > { %1384 = vrot.lane.b32.xlu0 %v5344_v49, %s4987_s29 }
 0x425   : > { %1354 = vrot.lane.b32.xlu0 %v5320_v12, %s4988_s14 }
 0x429   : > { %1358 = vrot.lane.b32.xlu0 %v5330_v26, %s4988_s14 }
 0x42d   : > { %1362 = vrot.lane.b32.xlu0 %v5338_v40, %s4988_s14 }
 0x431   : > { %1366 = vrot.lane.b32.xlu0 %v5346_v50, %s4988_s14 }
 0x435   : > { %1667 = vrot.lane.b32.xlu0 %v5320_v12, %s4989_s15 }
 0x439   : > { %1671 = vrot.lane.b32.xlu0 %v5330_v26, %s4989_s15 }
 0x43d   : > { %1679 = vrot.lane.b32.xlu0 %v5346_v50, %s4989_s15  ;;  %s4998_s15 = smov 24  }
 0x441   : > { %1885 = vrot.lane.b32.xlu0 %v5320_v12, %s4990_s16 }
 0x445   : > { %1887 = vrot.lane.b32.xlu0 %v5318_v54, %s4990_s16 }
 0x446   : > { %v1070_v29 = vpop.xlane.xlu0 %1069 }
 0x447   : > { %v1099_v17 = vsub.f32 %v5411_v9, %v1070_v29 }
 0x449   : > { %v1068_v53 = vpop.xlane.xlu1 %1067  ;;  %1891 = vrot.lane.b32.xlu0 %v5328_v16, %s4990_s16  ;;  %v1117_v61 = vmul.f32 1.442695, %v1099_v17 }
 0x44a   : > { %v1098_v56 = vsub.f32 %v5416_v14, %v1068_v53  ;;  %v1066_v57 = vpop.xlane.xlu0 %1065 }
 0x44b   : > { %v1097_v37 = vsub.f32 %v5421_v15, %v1066_v57 }
 0x44c   : > { %v1115_v35 = vmul.f32 1.442695, %v1098_v56 }
 0x44d   : > { %v1113_v58 = vmul.f32 1.442695, %v1097_v37 }
 0x44e   : > { %4609 = vpow2.f32 %v1115_v35  ;;  %v1078_v59 = vpop.xlane.xlu1 %1077  ;;  %v1072_v60 = vpop.xlane.xlu0 %1071  ;;  %v1417_v35 = vsel %vm901_vm1, %v5517_v28, 0 }
 0x44f   : > { %4611 = vpow2.f32 %v1113_v58  ;;  %v1100_v63 = vsub.f32 %v5426_v22, %v1072_v60  ;;  %v1103_v3 = vsub.f32 %v5430_v55, %v1078_v59 }
 0x450   : > { %4613 = vpow2.f32 %v1117_v61  ;;  %v1420_v61 = vsel %vm901_vm1, %v5385_v2, 0 }
 0x451   : > { %v1119_v47 = vmul.f32 1.442695, %v1100_v63  ;;  %v1125_v31 = vmul.f32 1.442695, %v1103_v3 }
 0x452   : > { %v1074_v4 = vpop.xlane.xlu1 %1073  ;;  %v1076_v45 = vpop.xlane.xlu0 %1075 }
 0x453   : > { %v1101_v25 = vsub.f32 %v5440_v32, %v1074_v4  ;;  %v1102_v5 = vsub.f32 %v5436_v30, %v1076_v45  ;;  %4615 = vpow2.f32 %v1119_v47 }
 0x455   : > { %v1121_v6 = vmul.f32 1.442695, %v1101_v25  ;;  %v1123_v8 = vmul.f32 1.442695, %v1102_v5 }
 0x456   : > { %v1080_v9 = vpop.xlane.xlu1 %1079  ;;  %v1086_v55 = vpop.xlane.xlu0 %1085 }
 0x457   : > { %4617 = vpow2.f32 %v1121_v6  ;;  %v1104_v43 = vsub.f32 %v5446_v20, %v1080_v9  ;;  %v1107_v34 = vsub.f32 %v5450_v38, %v1086_v55 }
 0x458   : > { %v5531_v13 = vpop.eup %4609  ;;  %4619 = vpow2.f32 %v1123_v8 }
 0x459   : > { %v5533_v14 = vpop.eup %4611  ;;  %v1127_v15 = vmul.f32 1.442695, %v1104_v43  ;;  %4621 = vpow2.f32 %v1125_v31  ;;  %v1133_v11 = vmul.f32 1.442695, %v1107_v34 }
 0x45a   : > { %v1082_v18 = vpop.xlane.xlu1 %1081  ;;  %v1177_v19 = vpack.c.bf16 %v5531_v13, %v5533_v14  ;;  %v5537_v22 = vpop.eup %4613 }
 0x45b   : > { %4623 = vpow2.f32 %v1127_v15  ;;  %v1105_v27 = vsub.f32 %v5456_v10, %v1082_v18 }
 0x45c   : > { %4213 = vmatprep.mubr.bf16.mxu0 %v1177_v19 }
 0x45d   : > { %v5540_v0 = vpop.eup %4615  ;;  %v1129_v1 = vmul.f32 1.442695, %v1105_v27 }
 0x45e   : > { %v1088_v30 = vpop.xlane.xlu1 %1087  ;;  %v1178_v33 = vpack.c.bf16 %v5540_v0, %v5537_v22 }
 0x45f   : > { %v1108_v32 = vsub.f32 %v5461_v46, %v1088_v30  ;;  %4625 = vpow2.f32 %v1129_v1 }
 0x460   : > { %4214 = vmatmul.mubr.bf16.vlgmr.msra.gmra.mrb[16].mxu0 %v1178_v33 }
 0x461   : > { %v5546_v20 = vpop.eup %4617  ;;  %v1135_v10 = vmul.f32 1.442695, %v1108_v32  ;;  %4230 = vmatpush3.bf16.xpose.msra.mxu0 %v1411_v41 }
 0x462   : > { %v5550_v36 = vpop.eup %4619  ;;  %v1084_v42 = vpop.xlane.xlu1 %1083  ;;  %4518 = vmatprep.subr.msk.bf16.mxu0 %vm901_vm1, %v5381_v21 }
 0x463   : > { %v1106_v46 = vsub.f32 %v5471_v51, %v1084_v42  ;;  %v1179_v38 = vpack.c.bf16 %v5550_v36, %v5546_v20  ;;  %v5557_v24 = vpop.eup %4621  ;;  %4627 = vpow2.f32 %v1135_v10  ;;  %v1414_v51 = vsel %vm901_vm1, %v5381_v21, 0 }
 0x465   : > { %v5559_v29 = vpop.eup %4623  ;;  %v1131_v62 = vmul.f32 1.442695, %v1106_v46  ;;  %4217 = vmatprep.mubr.bf16.mxu0 %v1179_v38 }
 0x466   : > { %v1180_v53 = vpack.c.bf16 %v5559_v29, %v5557_v24  ;;  %v1094_v56 = vpop.xlane.xlu1 %1093 }
 0x467   : > { %4629 = vpow2.f32 %v1131_v62 }
 0x468   : > { %4631 = vpow2.f32 %v1133_v11  ;;  %4218 = vmatmul.mubr.bf16.gmra.mrb[20].mxu0 %v1180_v53 }
 0x469   : > { %4232 = vmatpush3.bf16.xpose.msra.mxu0 %v1414_v51  ;;  %v5567_v57 = vpop.eup %4625 }
 0x46a   : > { %4519 = vmatprep.subr.msk.bf16.mxu0 %vm901_vm1, %v5517_v28  ;;  %6945 = vst [vmem:[#allocation3_spill] sm:$0xff] %v5567_v57  ;;  %v1096_v60 = vpop.xlane.xlu1 %1095  ;;  %v1090_v28 = vpop.xlane.xlu0 %1089 }
 0x46b   : > { %v1109_v45 = vsub.f32 %v5466_v48, %v1090_v28  ;;  %v1112_v25 = vsub.f32 %v5481_v23, %v1096_v60 }
 0x46d   : > { %v5569_v17 = vpop.eup %4627  ;;  %v1137_v5 = vmul.f32 1.442695, %v1109_v45  ;;  %v1143_v6 = vmul.f32 1.442695, %v1112_v25 }
 0x46e   : > { %6946 = vst [vmem:[#allocation4_spill] sm:$0xff] %v5569_v17  ;;  %v1379_v63 = vpop.permute.xlu1 %1378  ;;  %v1381_v3 = vpop.permute.xlu0 %1380 }
 0x46f   : > { %v1423_v47 = vsel %vm901_vm1, %v1379_v63, 0  ;;  %v1426_v4 = vsel %vm901_vm1, %v1381_v3, 0  ;;  %4633 = vpow2.f32 %v1137_v5 }
 0x470   : > { %4635 = vpow2.f32 %v1143_v6 }
 0x471   : > { %v5571_v37 = vpop.eup %4629  ;;  %4234 = vmatpush3.bf16.xpose.msra.mxu0 %v1417_v35 }
 0x472   : > { %v5575_v58 = vpop.eup %4631  ;;  %v1181_v21 = vpack.c.bf16 %v5571_v37, %v5567_v57  ;;  %4520 = vmatprep.subr.msk.bf16.mxu0 %vm901_vm1, %v5385_v2  ;;  %v1111_v2 = vsub.f32 %v5476_v44, %v1094_v56  ;;  %v1357_v15 = vpop.permute.xlu1 %1356 }
 0x473   : > { %6947 = vst [vmem:[#allocation5_spill] sm:$0xff] %v5575_v58  ;;  %v1182_v59 = vpack.c.bf16 %v5569_v17, %v5575_v58 }
 0x474   : > { %4221 = vmatprep.mubr.bf16.mxu0 %v1181_v21  ;;  %v1141_v9 = vmul.f32 1.442695, %v1111_v2 }
 0x475   : > { %4222 = vmatmul.mubr.bf16.gmra.mrb[24].mxu0 %v1182_v59 }
 0x476   : > { %v1361_v44 = vpop.permute.xlu1 %1360 }
 0x479   : > { %4236 = vmatpush3.bf16.xpose.msra.mxu0 %v1420_v61  ;;  %v5596_v55 = vpop.eup %4633 }
 0x47a   : > { %4521 = vmatprep.subr.msk.bf16.mxu0 %vm901_vm1, %v1379_v63  ;;  %6948 = vst [vmem:[#allocation6_spill] sm:$0xff] %v5596_v55  ;;  %v5599_v27 = vpop.eup %4635  ;;  %v1365_v33 = vpop.permute.xlu1 %1364 }
 0x47b   : > { %6949 = vst [vmem:[#allocation7_spill] sm:$0xff] %v5599_v27 }
 0x47e   : > { %v1369_v42 = vpop.permute.xlu1 %1368 }
 0x481   : > { %4238 = vmatpush3.bf16.xpose.msra.mxu0 %v1423_v47 }
 0x482   : > { %4522 = vmatprep.subr.msk.bf16.mxu0 %vm901_vm1, %v1381_v3  ;;  %v1670_v38 = vpop.permute.xlu1 %1669 }
 0x486   : > { %v1674_v62 = vpop.permute.xlu1 %1673 }
 0x489   : > { %4240 = vmatpush3.bf16.xpose.msra.mxu0 %v1426_v4 }
 0x48a   : > { %v1676_v51 = vpop.permute.xlu1 %1675 }
 0x48e   : > { %v1678_v56 = vpop.permute.xlu1 %1677 }
 0x492   : > { %v1682_v21 = vpop.permute.xlu1 %1681 }
 0x494   : > { %v1092_v8 = vpop.xlane.xlu0 %1091 }
 0x495   : > { %v1110_v31 = vsub.f32 %v5496_v52, %v1092_v8 }
 0x497   : > { %v1139_v43 = vmul.f32 1.442695, %v1110_v31 }
 0x498   : > { %v1383_v18 = vpop.permute.xlu0 %1382 }
 0x499   : > { %4637 = vpow2.f32 %v1139_v43  ;;  %4523 = vmatprep.subr.msk.bf16.mxu0 %vm901_vm1, %v1383_v18  ;;  %v1429_v48 = vsel %vm901_vm1, %v1383_v18, 0 }
 0x49a   : > { %4639 = vpow2.f32 %v1141_v9  ;;  %4242 = vmatpush3.bf16.xpose.msra.mxu0 %v1429_v48 }
 0x49c   : > { %v1385_v23 = vpop.permute.xlu0 %1384 }
 0x49d   : > { %4524 = vmatprep.subr.msk.bf16.mxu0 %vm901_vm1, %v1385_v23  ;;  %v1432_v52 = vsel %vm901_vm1, %v1385_v23, 0 }
 0x4a0   : > { %v1355_v19 = vpop.permute.xlu0 %1354 }
 0x4a2   : > { %4244 = vmatpush3.bf16.xpose.msra.mxu0 %v1432_v52 }
 0x4a3   : > { %v5601_v30 = vpop.eup %4637 }
 0x4a4   : > { %6950 = vst [vmem:[#allocation8_spill] sm:$0xff] %v5601_v30  ;;  %v5603_v32 = vpop.eup %4639  ;;  %v1359_v34 = vpop.permute.xlu0 %1358  ;;  %v1183_v1 = vpack.c.bf16 %v5601_v30, %v5596_v55 }
 0x4a5   : > { %6951 = vst [vmem:[#allocation9_spill] sm:$0xff] %v5603_v32  ;;  %v1184_v41 = vpack.c.bf16 %v5599_v27, %v5603_v32 }
 0x4a6   : > { %4225 = vmatprep.mubr.bf16.mxu0 %v1183_v1 }
 0x4a7   : > { %4226 = vmatmul.mubr.bf16.gmra.mrb[28].mxu0 %v1184_v41 }
 0x4a8   : > { %4245 = vmatprep.mubr.msk.bf16.mxu0 %vm901_vm1, %v1355_v19  ;;  %v1363_v10 = vpop.permute.xlu0 %1362 }
 0x4ac   : > { %v1367_v46 = vpop.permute.xlu0 %1366 }
 0x4af   : > { %4246 = vmatmul.mubr.msk.bf16.vlgmr.msra.gmra.mrb[32].mxu0 %vm901_vm1, %v1357_v15 }
 0x4b0   : > { %4249 = vmatprep.mubr.msk.bf16.mxu0 %vm901_vm1, %v1359_v34  ;;  %v1668_v11 = vpop.permute.xlu0 %1667 }
 0x4b1   : > { %4261 = vmatprep.subr.bf16.mxu1 %v1668_v11 }
 0x4b2   : > { %4262 = vmatpush3.bf16.msra.mxu1 %v1668_v11 }
 0x4b3   : > { %4263 = vmatprep.subr.bf16.mxu1 %v1670_v38 }
 0x4b4   : > { %v1672_v53 = vpop.permute.xlu0 %1671 }
 0x4b6   : > { %4264 = vmatpush3.bf16.msra.mxu1 %v1670_v38 }
 0x4b7   : > { %4250 = vmatmul.mubr.msk.bf16.gmra.mrb[36].mxu0 %vm901_vm1, %v1361_v44  ;;  %4265 = vmatprep.subr.bf16.mxu1 %v1672_v53 }
 0x4b8   : > { %4253 = vmatprep.mubr.msk.bf16.mxu0 %vm901_vm1, %v1363_v10  ;;  %v1680_v35 = vpop.permute.xlu0 %1679 }
 0x4ba   : > { %4266 = vmatpush3.bf16.msra.mxu1 %v1672_v53 }
 0x4bb   : > { %4267 = vmatprep.subr.bf16.mxu1 %v1674_v62 }
 0x4bc   : > { %v5617_v59 = vpop.permute.xlu0 %1885 }
 0x4be   : > { %4268 = vmatpush3.bf16.msra.mxu1 %v1674_v62 }
 0x4bf   : > { %4254 = vmatmul.mubr.msk.bf16.gmra.mrb[40].mxu0 %vm901_vm1, %v1365_v33  ;;  %4269 = vmatprep.subr.bf16.mxu1 %v1676_v51 }
 0x4c0   : > { %4257 = vmatprep.mubr.msk.bf16.mxu0 %vm901_vm1, %v1367_v46 }
 0x4c2   : > { %4270 = vmatpush3.bf16.msra.mxu1 %v1676_v51 }
 0x4c3   : > { %4271 = vmatprep.subr.bf16.mxu1 %v1678_v56 }
 0x4c6   : > { %4272 = vmatpush3.bf16.msra.mxu1 %v1678_v56 }
 0x4c7   : > { %4258 = vmatmul.mubr.msk.bf16.gmra.mrb[44].mxu0 %vm901_vm1, %v1369_v42  ;;  %4273 = vmatprep.subr.bf16.mxu1 %v1680_v35 }
 0x4ca   : > { %4274 = vmatpush3.bf16.msra.mxu1 %v1680_v35 }
 0x4cb   : > { %4275 = vmatprep.subr.bf16.mxu1 %v1682_v21 }
 0x4ce   : > { %4276 = vmatpush3.bf16.msra.mxu1 %v1682_v21 }
 0x4cf   : > { %4525 = vmatprep.subr.msk.bf16.mxu1 %vm901_vm1, %v5617_v59 }
 0x533   : > { %v5621_v60 = vpop.f32.mrb[16].mxu0 }
 0x534   : > { %6952 = vst [vmem:[#allocation10_spill] sm:$0xff] %v5621_v60  ;;  %v5623_v61 = vpop.f32.mrb[17].mxu0 }
 0x535   : > { %6953 = vst [vmem:[#allocation11_spill] sm:$0xff] %v5623_v61  ;;  %v5625_v63 = vpop.f32.mrb[18].mxu0 }
 0x536   : > { %6954 = vst [vmem:[#allocation12_spill] sm:$0xff] %v5625_v63  ;;  %v5627_v28 = vpop.f32.mrb[19].mxu0 }
 0x537   : > { %6955 = vst [vmem:[#allocation13_spill] sm:$0xff] %v5627_v28 }
 0x53b   : > { %v5629_v47 = vpop.f32.mrb[20].mxu0 }
 0x53c   : > { %6956 = vst [vmem:[#allocation14_spill] sm:$0xff] %v5629_v47  ;;  %v5631_v3 = vpop.f32.mrb[21].mxu0 }
 0x53d   : > { %6957 = vst [vmem:[#allocation15_spill] sm:$0xff] %v5631_v3  ;;  %v5633_v4 = vpop.f32.mrb[22].mxu0 }
 0x53e   : > { %6958 = vst [vmem:[#allocation16_spill] sm:$0xff] %v5633_v4  ;;  %v5635_v45 = vpop.f32.mrb[23].mxu0 }
 0x53f   : > { %6959 = vst [vmem:[#allocation17_spill] sm:$0xff] %v5635_v45 }
 0x548   : > { %v5637_v25 = vpop.f32.mrb[24].mxu0 }
 0x549   : > { %6960 = vst [vmem:[#allocation18_spill] sm:$0xff] %v5637_v25  ;;  %v5639_v2 = vpop.f32.mrb[25].mxu0 }
 0x54a   : > { %6961 = vst [vmem:[#allocation19_spill] sm:$0xff] %v5639_v2  ;;  %v5641_v5 = vpop.f32.mrb[26].mxu0 }
 0x54b   : > { %6962 = vst [vmem:[#allocation20_spill] sm:$0xff] %v5641_v5  ;;  %v5643_v6 = vpop.f32.mrb[27].mxu0 }
 0x54c   : > { %6963 = vst [vmem:[#allocation21_spill] sm:$0xff] %v5643_v6 }
 0x57a   : > { %v5645_v8 = vpop.f32.mrb[28].mxu0 }
 0x57b   : > { %6964 = vst [vmem:[#allocation22_spill] sm:$0xff] %v5645_v8  ;;  %v5647_v31 = vpop.f32.mrb[29].mxu0 }
 0x57c   : > { %6965 = vst [vmem:[#allocation23_spill] sm:$0xff] %v5647_v31  ;;  %v5649_v9 = vpop.f32.mrb[30].mxu0 }
 0x57d   : > { %6966 = vst [vmem:[#allocation24_spill] sm:$0xff] %v5649_v9  ;;  %v5651_v43 = vpop.f32.mrb[31].mxu0 }
 0x57e   : > { %6967 = vst [vmem:[#allocation25_spill] sm:$0xff] %v5651_v43 }
 0x582   : > { %v4247_v15 = vpop.f32.mrb[32].mxu0 }
 0x583   : > { %v1468_v18 = vpop.f32.mrb[33].mxu0  ;;  %v5655_v48 = vsel %vm876_vm2, %v4247_v15, -1e+30 }
 0x584   : > { %1551 = vmax.xlane.f32.xlu0 %v5655_v48  ;;  %v4248_v23 = vpop.f32.mrb[34].mxu0  ;;  %v5665_v52 = vsel %vm876_vm2, %v1468_v18, -1e+30 }
 0x585   : > { %v1471_v44 = vpop.f32.mrb[35].mxu0  ;;  %v5670_v1 = vsel %vm876_vm2, %v4248_v23, -1e+30 }
 0x586   : > { %v5660_v19 = vsel %vm876_vm2, %v1471_v44, -1e+30 }
 0x587   : > { %1549 = vmax.xlane.f32.xlu1 %v5660_v19 }
 0x588   : > { %1547 = vmax.xlane.f32.xlu0 %v5665_v52 }
 0x58a   : > { %v4251_v33 = vpop.f32.mrb[36].mxu0 }
 0x58b   : > { %v1484_v34 = vpop.f32.mrb[37].mxu0  ;;  %v5674_v41 = vsel %vm876_vm2, %v4251_v33, -1e+30 }
 0x58c   : > { %1553 = vmax.xlane.f32.xlu0 %v5670_v1  ;;  %1559 = vmax.xlane.f32.xlu1 %v5674_v41  ;;  %v4252_v10 = vpop.f32.mrb[38].mxu0  ;;  %v5684_v38 = vsel %vm876_vm2, %v1484_v34, -1e+30 }
 0x58d   : > { %v1487_v42 = vpop.f32.mrb[39].mxu0  ;;  %v5690_v62 = vsel %vm876_vm2, %v4252_v10, -1e+30 }
 0x58e   : > { %v5680_v46 = vsel %vm876_vm2, %v1487_v42, -1e+30 }
 0x590   : > { %1555 = vmax.xlane.f32.xlu1 %v5684_v38  ;;  %1557 = vmax.xlane.f32.xlu0 %v5680_v46 }
 0x592   : > { %v4255_v11 = vpop.f32.mrb[40].mxu0 }
 0x593   : > { %v5694_v53 = vsel %vm876_vm2, %v4255_v11, -1e+30  ;;  %v1500_v51 = vpop.f32.mrb[41].mxu0 }
 0x594   : > { %1561 = vmax.xlane.f32.xlu1 %v5690_v62  ;;  %1567 = vmax.xlane.f32.xlu0 %v5694_v53  ;;  %v4256_v56 = vpop.f32.mrb[42].mxu0  ;;  %v5700_v21 = vsel %vm876_vm2, %v1500_v51, -1e+30 }
 0x595   : > { %v1503_v35 = vpop.f32.mrb[43].mxu0  ;;  %v5705_v18 = vsel %vm876_vm2, %v4256_v56, -1e+30  ;;  %v5758_v56 = vpop.permute.xlu0 %1887 }
 0x596   : > { %v5715_v10 = vsel %vm876_vm2, %v1503_v35, -1e+30 }
 0x598   : > { %1563 = vmax.xlane.f32.xlu1 %v5700_v21 }
 0x599   : > { %v5763_v35 = vpop.permute.xlu0 %1891 }
 0x59a   : > { %v4259_v15 = vpop.f32.mrb[44].mxu0 }
 0x59b   : > { %v1516_v23 = vpop.f32.mrb[45].mxu0  ;;  %v5720_v42 = vsel %vm876_vm2, %v4259_v15, -1e+30  ;;  %v5765_v15 = vpop.permute.xlu1 %1889 }
 0x59c   : > { %v5709_v44 = vsel %vm876_vm2, %v1516_v23, -1e+30  ;;  %1569 = vmax.xlane.f32.xlu1 %v5705_v18  ;;  %v4260_v33 = vpop.f32.mrb[46].mxu0 }
 0x59d   : > { %1571 = vmax.xlane.f32.xlu0 %v5709_v44  ;;  %v1519_v34 = vpop.f32.mrb[47].mxu0  ;;  %v5725_v11 = vsel %vm876_vm2, %v4260_v33, -1e+30 }
 0x59e   : > { %v5739_v51 = vsel %vm876_vm2, %v1519_v34, -1e+30 }
 0x5a0   : > { %1565 = vmax.xlane.f32.xlu1 %v5715_v10 }
 0x5a4   : > { %1575 = vmax.xlane.f32.xlu1 %v5720_v42 }
 0x5a8   : > { %1577 = vmax.xlane.f32.xlu1 %v5725_v11 }
 0x5b3   : > { %1895 = vrot.lane.b32.xlu0 %v5336_v39, %s4990_s16 }
 0x5b9   : > { %1893 = vrot.lane.b32.xlu1 %v5338_v40, %s4990_s16 }
 0x5bd   : > { %1871 = vrot.lane.b32.xlu1 %v5318_v54, %s4991_s17 }
 0x5c1   : > { %1875 = vrot.lane.b32.xlu1 %v5328_v16, %s4991_s17 }
 0x5c5   : > { %1879 = vrot.lane.b32.xlu1 %v5336_v39, %s4991_s17 }
 0x5c9   : > { %1883 = vrot.lane.b32.xlu1 %v5344_v49, %s4991_s17 }
 0x5cd   : > { %2184 = vrot.lane.b32.xlu1 %v5318_v54, %s4992_s18 }
 0x5d1   : > { %2188 = vrot.lane.b32.xlu1 %v5328_v16, %s4992_s18 }
 0x5d2   : > { %1573 = vmax.xlane.f32.xlu0 %v5739_v51 }
 0x5d5   : > { %2190 = vrot.lane.b32.xlu1 %v5338_v40, %s4992_s18 }
 0x5d9   : > { %2192 = vrot.lane.b32.xlu1 %v5336_v39, %s4992_s18 }
 0x5dd   : > { %2196 = vrot.lane.b32.xlu1 %v5344_v49, %s4992_s18 }
 0x5e1   : > { %2404 = vrot.lane.b32.xlu1 %v5330_v26, %s4993_s19 }
 0x5e8   : > { %1897 = vrot.lane.b32.xlu0 %v5346_v50, %s4990_s16 }
 0x5ec   : > { %1899 = vrot.lane.b32.xlu0 %v5344_v49, %s4990_s16 }
 0x5f0   : > { %1869 = vrot.lane.b32.xlu0 %v5320_v12, %s4991_s17 }
 0x5f4   : > { %1873 = vrot.lane.b32.xlu0 %v5330_v26, %s4991_s17 }
 0x5f8   : > { %1877 = vrot.lane.b32.xlu0 %v5338_v40, %s4991_s17 }
 0x5fc   : > { %1881 = vrot.lane.b32.xlu0 %v5346_v50, %s4991_s17 }
 0x600   : > { %2182 = vrot.lane.b32.xlu0 %v5320_v12, %s4992_s18 }
 0x604   : > { %2186 = vrot.lane.b32.xlu0 %v5330_v26, %s4992_s18 }
 0x608   : > { %2194 = vrot.lane.b32.xlu0 %v5346_v50, %s4992_s18 }
 0x60c   : > { %2400 = vrot.lane.b32.xlu0 %v5320_v12, %s4993_s19 }
 0x610   : > { %2402 = vrot.lane.b32.xlu0 %v5318_v54, %s4993_s19 }
 0x611   : > { %v1552_v23 = vpop.xlane.xlu0 %1551 }
 0x612   : > { %v1581_v8 = vsub.f32 %v5655_v48, %v1552_v23 }
 0x614   : > { %v1550_v33 = vpop.xlane.xlu1 %1549  ;;  %2406 = vrot.lane.b32.xlu0 %v5328_v16, %s4993_s19  ;;  %v1599_v6 = vmul.f32 1.442695, %v1581_v8 }
 0x615   : > { %v1580_v34 = vsub.f32 %v5660_v19, %v1550_v33  ;;  %v1548_v9 = vpop.xlane.xlu0 %1547  ;;  %v1926_v33 = vsel %vm901_vm1, %v5617_v59, 0 }
 0x616   : > { %v1579_v31 = vsub.f32 %v5665_v52, %v1548_v9 }
 0x617   : > { %v1597_v43 = vmul.f32 1.442695, %v1580_v34 }
 0x618   : > { %v1595_v5 = vmul.f32 1.442695, %v1579_v31 }
 0x619   : > { %4641 = vpow2.f32 %v1597_v43  ;;  %v1560_v25 = vpop.xlane.xlu1 %1559  ;;  %v1554_v2 = vpop.xlane.xlu0 %1553 }
 0x61a   : > { %4643 = vpow2.f32 %v1595_v5  ;;  %v1582_v4 = vsub.f32 %v5670_v1, %v1554_v2  ;;  %v1585_v3 = vsub.f32 %v5674_v41, %v1560_v25 }
 0x61b   : > { %4645 = vpow2.f32 %v1599_v6 }
 0x61c   : > { %v1601_v47 = vmul.f32 1.442695, %v1582_v4  ;;  %v1607_v43 = vmul.f32 1.442695, %v1585_v3 }
 0x61d   : > { %v1556_v45 = vpop.xlane.xlu1 %1555  ;;  %v1558_v60 = vpop.xlane.xlu0 %1557 }
 0x61e   : > { %v1583_v19 = vsub.f32 %v5684_v38, %v1556_v45  ;;  %v1584_v48 = vsub.f32 %v5680_v46, %v1558_v60  ;;  %4647 = vpow2.f32 %v1601_v47 }
 0x620   : > { %v1603_v9 = vmul.f32 1.442695, %v1583_v19  ;;  %v1605_v31 = vmul.f32 1.442695, %v1584_v48 }
 0x621   : > { %v1562_v52 = vpop.xlane.xlu1 %1561  ;;  %v1568_v47 = vpop.xlane.xlu0 %1567 }
 0x622   : > { %4649 = vpow2.f32 %v1603_v9  ;;  %v1586_v5 = vsub.f32 %v5690_v62, %v1562_v52  ;;  %v1589_v38 = vsub.f32 %v5694_v53, %v1568_v47 }
 0x623   : > { %v5779_v8 = vpop.eup %4641  ;;  %4651 = vpow2.f32 %v1605_v31 }
 0x624   : > { %v5781_v4 = vpop.eup %4643  ;;  %v1609_v25 = vmul.f32 1.442695, %v1586_v5  ;;  %4653 = vpow2.f32 %v1607_v43  ;;  %v1615_v9 = vmul.f32 1.442695, %v1589_v38 }
 0x625   : > { %v1564_v2 = vpop.xlane.xlu1 %1563  ;;  %v1659_v45 = vpack.c.bf16 %v5779_v8, %v5781_v4  ;;  %v5785_v60 = vpop.eup %4645 }
 0x626   : > { %4655 = vpow2.f32 %v1609_v25  ;;  %v1587_v3 = vsub.f32 %v5700_v21, %v1564_v2 }
 0x627   : > { %4277 = vmatprep.mubr.bf16.mxu1 %v1659_v45  ;;  %v1932_v45 = vsel %vm901_vm1, %v5765_v15, 0 }
 0x628   : > { %v5788_v6 = vpop.eup %4647  ;;  %v1611_v23 = vmul.f32 1.442695, %v1587_v3 }
 0x629   : > { %v1570_v1 = vpop.xlane.xlu1 %1569  ;;  %v1660_v46 = vpack.c.bf16 %v5788_v6, %v5785_v60 }
 0x62a   : > { %v1590_v41 = vsub.f32 %v5705_v18, %v1570_v1  ;;  %4657 = vpow2.f32 %v1611_v23 }
 0x62b   : > { %4278 = vmatmul.mubr.bf16.vlgmr.msra.gmra.mrb[16].mxu1 %v1660_v46 }
 0x62c   : > { %v5794_v62 = vpop.eup %4649  ;;  %v1617_v21 = vmul.f32 1.442695, %v1590_v41  ;;  %4294 = vmatpush3.bf16.xpose.msra.mxu1 %v1926_v33  ;;  %v1935_v41 = vsel %vm901_vm1, %v5763_v35, 0 }
 0x62d   : > { %v5798_v34 = vpop.eup %4651  ;;  %v1566_v19 = vpop.xlane.xlu1 %1565  ;;  %4526 = vmatprep.subr.msk.bf16.mxu1 %vm901_vm1, %v5758_v56 }
 0x62e   : > { %v1588_v18 = vsub.f32 %v5715_v10, %v1566_v19  ;;  %v1661_v53 = vpack.c.bf16 %v5798_v34, %v5794_v62  ;;  %v5805_v48 = vpop.eup %4653  ;;  %4659 = vpow2.f32 %v1617_v21  ;;  %v1929_v10 = vsel %vm901_vm1, %v5758_v56, 0 }
 0x630   : > { %v5807_v31 = vpop.eup %4655  ;;  %v1613_v59 = vmul.f32 1.442695, %v1588_v18  ;;  %4281 = vmatprep.mubr.bf16.mxu1 %v1661_v53 }
 0x631   : > { %v1662_v43 = vpack.c.bf16 %v5807_v31, %v5805_v48  ;;  %v1576_v52 = vpop.xlane.xlu1 %1575 }
 0x632   : > { %4661 = vpow2.f32 %v1613_v59 }
 0x633   : > { %4663 = vpow2.f32 %v1615_v9  ;;  %4282 = vmatmul.mubr.bf16.gmra.mrb[20].mxu1 %v1662_v43 }
 0x634   : > { %4296 = vmatpush3.bf16.xpose.msra.mxu1 %v1929_v10  ;;  %v5815_v5 = vpop.eup %4657 }
 0x635   : > { %4527 = vmatprep.subr.msk.bf16.mxu1 %vm901_vm1, %v5765_v15  ;;  %v1578_v1 = vpop.xlane.xlu1 %1577  ;;  %v1572_v15 = vpop.xlane.xlu0 %1571 }
 0x636   : > { %v1591_v21 = vsub.f32 %v5709_v44, %v1572_v15  ;;  %v1594_v19 = vsub.f32 %v5725_v11, %v1578_v1 }
 0x638   : > { %v5817_v25 = vpop.eup %4659  ;;  %v1619_v18 = vmul.f32 1.442695, %v1591_v21  ;;  %v1625_v53 = vmul.f32 1.442695, %v1594_v19 }
 0x639   : > { %v1894_v46 = vpop.permute.xlu1 %1893  ;;  %v1896_v23 = vpop.permute.xlu0 %1895 }
 0x63a   : > { %v1938_v38 = vsel %vm901_vm1, %v1894_v46, 0  ;;  %v1941_v33 = vsel %vm901_vm1, %v1896_v23, 0  ;;  %4665 = vpow2.f32 %v1619_v18 }
 0x63b   : > { %4667 = vpow2.f32 %v1625_v53 }
 0x63c   : > { %v5819_v2 = vpop.eup %4661  ;;  %4298 = vmatpush3.bf16.xpose.msra.mxu1 %v1932_v45 }
 0x63d   : > { %v5823_v47 = vpop.eup %4663  ;;  %v1663_v56 = vpack.c.bf16 %v5819_v2, %v5815_v5  ;;  %4528 = vmatprep.subr.msk.bf16.mxu1 %vm901_vm1, %v5763_v35  ;;  %v1593_v35 = vsub.f32 %v5720_v42, %v1576_v52  ;;  %v1872_v45 = vpop.permute.xlu1 %1871 }
 0x63e   : > { %v1664_v3 = vpack.c.bf16 %v5817_v25, %v5823_v47 }
 0x63f   : > { %4285 = vmatprep.mubr.bf16.mxu1 %v1663_v56  ;;  %v1623_v43 = vmul.f32 1.442695, %v1593_v35 }
 0x640   : > { %4286 = vmatmul.mubr.bf16.gmra.mrb[24].mxu1 %v1664_v3 }
 0x641   : > { %v1876_v42 = vpop.permute.xlu1 %1875 }
 0x644   : > { %4300 = vmatpush3.bf16.xpose.msra.mxu1 %v1935_v41  ;;  %v5844_v3 = vpop.eup %4665 }
 0x645   : > { %4529 = vmatprep.subr.msk.bf16.mxu1 %vm901_vm1, %v1894_v46  ;;  %v5847_v1 = vpop.eup %4667  ;;  %v1880_v15 = vpop.permute.xlu1 %1879 }
 0x649   : > { %v1884_v19 = vpop.permute.xlu1 %1883 }
 0x64c   : > { %4302 = vmatpush3.bf16.xpose.msra.mxu1 %v1938_v38 }
 0x64d   : > { %4530 = vmatprep.subr.msk.bf16.mxu1 %vm901_vm1, %v1896_v23  ;;  %v2185_v18 = vpop.permute.xlu1 %2184 }
 0x654   : > { %4304 = vmatpush3.bf16.xpose.msra.mxu1 %v1941_v33 }
 0x65f   : > { %v1574_v9 = vpop.xlane.xlu0 %1573 }
 0x660   : > { %v1592_v59 = vsub.f32 %v5739_v51, %v1574_v9  ;;  %v2189_v9 = vpop.permute.xlu1 %2188 }
 0x662   : > { %v1621_v10 = vmul.f32 1.442695, %v1592_v59 }
 0x663   : > { %v1898_v56 = vpop.permute.xlu0 %1897 }
 0x664   : > { %4669 = vpow2.f32 %v1621_v10  ;;  %4531 = vmatprep.subr.msk.bf16.mxu1 %vm901_vm1, %v1898_v56  ;;  %v1944_v44 = vsel %vm901_vm1, %v1898_v56, 0 }
 0x665   : > { %4671 = vpow2.f32 %v1623_v43  ;;  %4306 = vmatpush3.bf16.xpose.msra.mxu1 %v1944_v44  ;;  %v2191_v43 = vpop.permute.xlu1 %2190 }
 0x667   : > { %v1900_v11 = vpop.permute.xlu0 %1899 }
 0x668   : > { %4532 = vmatprep.subr.msk.bf16.mxu1 %vm901_vm1, %v1900_v11  ;;  %v1947_v51 = vsel %vm901_vm1, %v1900_v11, 0 }
 0x669   : > { %v2193_v10 = vpop.permute.xlu1 %2192 }
 0x66b   : > { %v1870_v52 = vpop.permute.xlu0 %1869 }
 0x66d   : > { %4308 = vmatpush3.bf16.xpose.msra.mxu1 %v1947_v51  ;;  %v2197_v56 = vpop.permute.xlu1 %2196 }
 0x66e   : > { %v5849_v41 = vpop.eup %4669 }
 0x66f   : > { %v5851_v46 = vpop.eup %4671  ;;  %v1874_v38 = vpop.permute.xlu0 %1873  ;;  %v1665_v23 = vpack.c.bf16 %v5849_v41, %v5844_v3 }
 0x670   : > { %v1666_v33 = vpack.c.bf16 %v5847_v1, %v5851_v46 }
 0x671   : > { %4289 = vmatprep.mubr.bf16.mxu1 %v1665_v23 }
 0x672   : > { %4290 = vmatmul.mubr.bf16.gmra.mrb[28].mxu1 %v1666_v33 }
 0x673   : > { %4309 = vmatprep.mubr.msk.bf16.mxu1 %vm901_vm1, %v1870_v52  ;;  %v1878_v21 = vpop.permute.xlu0 %1877 }
 0x677   : > { %v1882_v35 = vpop.permute.xlu0 %1881 }
 0x67a   : > { %4310 = vmatmul.mubr.msk.bf16.vlgmr.msra.gmra.mrb[32].mxu1 %vm901_vm1, %v1872_v45 }
 0x67b   : > { %4313 = vmatprep.mubr.msk.bf16.mxu1 %vm901_vm1, %v1874_v38  ;;  %v2183_v53 = vpop.permute.xlu0 %2182 }
 0x67c   : > { %4325 = vmatprep.subr.bf16.mxu0 %v2183_v53 }
 0x67d   : > { %4326 = vmatpush3.bf16.msra.mxu0 %v2183_v53 }
 0x67e   : > { %4327 = vmatprep.subr.bf16.mxu0 %v2185_v18 }
 0x67f   : > { %v2187_v59 = vpop.permute.xlu0 %2186 }
 0x681   : > { %4328 = vmatpush3.bf16.msra.mxu0 %v2185_v18 }
 0x682   : > { %4314 = vmatmul.mubr.msk.bf16.gmra.mrb[36].mxu1 %vm901_vm1, %v1876_v42  ;;  %4329 = vmatprep.subr.bf16.mxu0 %v2187_v59 }
 0x683   : > { %4317 = vmatprep.mubr.msk.bf16.mxu1 %vm901_vm1, %v1878_v21  ;;  %v2195_v45 = vpop.permute.xlu0 %2194 }
 0x685   : > { %4330 = vmatpush3.bf16.msra.mxu0 %v2187_v59 }
 0x686   : > { %4331 = vmatprep.subr.bf16.mxu0 %v2189_v9 }
 0x687   : > { %v5865_v44 = vpop.permute.xlu0 %2400 }
 0x689   : > { %4332 = vmatpush3.bf16.msra.mxu0 %v2189_v9 }
 0x68a   : > { %4318 = vmatmul.mubr.msk.bf16.gmra.mrb[40].mxu1 %vm901_vm1, %v1880_v15  ;;  %4333 = vmatprep.subr.bf16.mxu0 %v2191_v43 }
 0x68b   : > { %4321 = vmatprep.mubr.msk.bf16.mxu1 %vm901_vm1, %v1882_v35 }
 0x68d   : > { %4334 = vmatpush3.bf16.msra.mxu0 %v2191_v43 }
 0x68e   : > { %4335 = vmatprep.subr.bf16.mxu0 %v2193_v10 }
 0x691   : > { %4336 = vmatpush3.bf16.msra.mxu0 %v2193_v10 }
 0x692   : > { %4322 = vmatmul.mubr.msk.bf16.gmra.mrb[44].mxu1 %vm901_vm1, %v1884_v19  ;;  %4337 = vmatprep.subr.bf16.mxu0 %v2195_v45 }
 0x695   : > { %4338 = vmatpush3.bf16.msra.mxu0 %v2195_v45 }
 0x696   : > { %4339 = vmatprep.subr.bf16.mxu0 %v2197_v56 }
 0x699   : > { %4340 = vmatpush3.bf16.msra.mxu0 %v2197_v56 }
 0x69a   : > { %4533 = vmatprep.subr.msk.bf16.mxu0 %vm901_vm1, %v5865_v44 }
 0x6fe   : > { %v5869_v11 = vpop.f32.mrb[16].mxu1 }
 0x6ff   : > { %6968 = vst [vmem:[#allocation26_spill] sm:$0xff] %v5869_v11  ;;  %v5871_v42 = vpop.f32.mrb[17].mxu1 }
 0x700   : > { %6969 = vst [vmem:[#allocation27_spill] sm:$0xff] %v5871_v42  ;;  %v5873_v52 = vpop.f32.mrb[18].mxu1 }
 0x701   : > { %6970 = vst [vmem:[#allocation28_spill] sm:$0xff] %v5873_v52  ;;  %v5875_v51 = vpop.f32.mrb[19].mxu1 }
 0x702   : > { %6971 = vst [vmem:[#allocation29_spill] sm:$0xff] %v5875_v51 }
 0x706   : > { %v5877_v15 = vpop.f32.mrb[20].mxu1 }
 0x707   : > { %6972 = vst [vmem:[#allocation30_spill] sm:$0xff] %v5877_v15  ;;  %v5879_v38 = vpop.f32.mrb[21].mxu1 }
 0x708   : > { %6973 = vst [vmem:[#allocation31_spill] sm:$0xff] %v5879_v38  ;;  %v5881_v23 = vpop.f32.mrb[22].mxu1 }
 0x709   : > { %6974 = vst [vmem:[#allocation32_spill] sm:$0xff] %v5881_v23  ;;  %v5883_v33 = vpop.f32.mrb[23].mxu1 }
 0x70a   : > { %6975 = vst [vmem:[#allocation33_spill] sm:$0xff] %v5883_v33 }
 0x713   : > { %v5885_v21 = vpop.f32.mrb[24].mxu1 }
 0x714   : > { %6976 = vst [vmem:[#allocation34_spill] sm:$0xff] %v5885_v21  ;;  %v5887_v19 = vpop.f32.mrb[25].mxu1 }
 0x715   : > { %6977 = vst [vmem:[#allocation35_spill] sm:$0xff] %v5887_v19  ;;  %v5889_v35 = vpop.f32.mrb[26].mxu1 }
 0x716   : > { %6978 = vst [vmem:[#allocation36_spill] sm:$0xff] %v5889_v35  ;;  %v5891_v18 = vpop.f32.mrb[27].mxu1 }
 0x717   : > { %6979 = vst [vmem:[#allocation37_spill] sm:$0xff] %v5891_v18 }
 0x745   : > { %v5893_v53 = vpop.f32.mrb[28].mxu1 }
 0x746   : > { %6980 = vst [vmem:[#allocation38_spill] sm:$0xff] %v5893_v53  ;;  %v5895_v9 = vpop.f32.mrb[29].mxu1 }
 0x747   : > { %6981 = vst [vmem:[#allocation39_spill] sm:$0xff] %v5895_v9  ;;  %v5897_v59 = vpop.f32.mrb[30].mxu1 }
 0x748   : > { %6982 = vst [vmem:[#allocation40_spill] sm:$0xff] %v5897_v59  ;;  %v5899_v43 = vpop.f32.mrb[31].mxu1 }
 0x749   : > { %6983 = vst [vmem:[#allocation41_spill] sm:$0xff] %v5899_v43 }
 0x74d   : > { %v4311_v10 = vpop.f32.mrb[32].mxu1 }
 0x74e   : > { %v5903_v45 = vsel %vm876_vm2, %v4311_v10, -1e+30  ;;  %v1983_v56 = vpop.f32.mrb[33].mxu1 }
 0x74f   : > { %2066 = vmax.xlane.f32.xlu0 %v5903_v45  ;;  %v4312_v63 = vpop.f32.mrb[34].mxu1  ;;  %v5912_v35 = vsel %vm876_vm2, %v1983_v56, -1e+30 }
 0x750   : > { %v1986_v28 = vpop.f32.mrb[35].mxu1  ;;  %v5918_v10 = vsel %vm876_vm2, %v4312_v63, -1e+30 }
 0x751   : > { %v5908_v61 = vsel %vm876_vm2, %v1986_v28, -1e+30 }
 0x752   : > { %2064 = vmax.xlane.f32.xlu1 %v5908_v61 }
 0x753   : > { %2062 = vmax.xlane.f32.xlu0 %v5912_v35 }
 0x755   : > { %v4315_v59 = vpop.f32.mrb[36].mxu1 }
 0x756   : > { %v5922_v43 = vsel %vm876_vm2, %v4315_v59, -1e+30  ;;  %v1999_v21 = vpop.f32.mrb[37].mxu1 }
 0x757   : > { %2068 = vmax.xlane.f32.xlu0 %v5918_v10  ;;  %2074 = vmax.xlane.f32.xlu1 %v5922_v43  ;;  %v4316_v28 = vpop.f32.mrb[38].mxu1  ;;  %v5932_v19 = vsel %vm876_vm2, %v1999_v21, -1e+30 }
 0x758   : > { %v2002_v56 = vpop.f32.mrb[39].mxu1  ;;  %v5938_v59 = vsel %vm876_vm2, %v4316_v28, -1e+30 }
 0x759   : > { %v5928_v18 = vsel %vm876_vm2, %v2002_v56, -1e+30 }
 0x75b   : > { %2070 = vmax.xlane.f32.xlu1 %v5932_v19  ;;  %2072 = vmax.xlane.f32.xlu0 %v5928_v18 }
 0x75d   : > { %v4319_v63 = vpop.f32.mrb[40].mxu1 }
 0x75e   : > { %v5942_v53 = vsel %vm876_vm2, %v4319_v63, -1e+30  ;;  %v2015_v23 = vpop.f32.mrb[41].mxu1 }
 0x75f   : > { %2076 = vmax.xlane.f32.xlu1 %v5938_v59  ;;  %2082 = vmax.xlane.f32.xlu0 %v5942_v53  ;;  %v4320_v21 = vpop.f32.mrb[42].mxu1  ;;  %v5948_v15 = vsel %vm876_vm2, %v2015_v23, -1e+30 }
 0x760   : > { %v2018_v56 = vpop.f32.mrb[43].mxu1  ;;  %v5953_v28 = vsel %vm876_vm2, %v4320_v21, -1e+30 }
 0x761   : > { %v5963_v23 = vsel %vm876_vm2, %v2018_v56, -1e+30 }
 0x763   : > { %2078 = vmax.xlane.f32.xlu1 %v5948_v15 }
 0x765   : > { %v4323_v9 = vpop.f32.mrb[44].mxu1 }
 0x766   : > { %v2031_v63 = vpop.f32.mrb[45].mxu1  ;;  %v5968_v21 = vsel %vm876_vm2, %v4323_v9, -1e+30  ;;  %v6013_v9 = vpop.permute.xlu1 %2404 }
 0x767   : > { %v5957_v33 = vsel %vm876_vm2, %v2031_v63, -1e+30  ;;  %2084 = vmax.xlane.f32.xlu1 %v5953_v28  ;;  %v4324_v38 = vpop.f32.mrb[46].mxu1 }
 0x768   : > { %2086 = vmax.xlane.f32.xlu0 %v5957_v33  ;;  %v2034_v32 = vpop.f32.mrb[47].mxu1  ;;  %v5973_v63 = vsel %vm876_vm2, %v4324_v38, -1e+30 }
 0x769   : > { %v5988_v38 = vsel %vm876_vm2, %v2034_v32, -1e+30 }
 0x76b   : > { %2080 = vmax.xlane.f32.xlu1 %v5963_v23 }
 0x76f   : > { %2090 = vmax.xlane.f32.xlu1 %v5968_v21 }
 0x773   : > { %2092 = vmax.xlane.f32.xlu1 %v5973_v63 }
 0x77e   : > { %2410 = vrot.lane.b32.xlu0 %v5336_v39, %s4993_s19 }
 0x784   : > { %2408 = vrot.lane.b32.xlu1 %v5338_v40, %s4993_s19 }
 0x788   : > { %2386 = vrot.lane.b32.xlu1 %v5318_v54, %s4994_s20 }
 0x78c   : > { %2390 = vrot.lane.b32.xlu1 %v5328_v16, %s4994_s20 }
 0x790   : > { %2394 = vrot.lane.b32.xlu1 %v5336_v39, %s4994_s20 }
 0x794   : > { %2398 = vrot.lane.b32.xlu1 %v5344_v49, %s4994_s20 }
 0x798   : > { %2699 = vrot.lane.b32.xlu1 %v5318_v54, %s4995_s21  ;;  %v6005_v54 = vpop.permute.xlu0 %2402 }
 0x79c   : > { %2705 = vrot.lane.b32.xlu1 %v5338_v40, %s4995_s21  ;;  %v6011_v32 = vpop.permute.xlu0 %2406 }
 0x79d   : > { %2088 = vmax.xlane.f32.xlu0 %v5988_v38 }
 0x7b3   : > { %2412 = vrot.lane.b32.xlu0 %v5346_v50, %s4993_s19 }
 0x7b7   : > { %2414 = vrot.lane.b32.xlu0 %v5344_v49, %s4993_s19  ;;  %s6871_s19 = scalar_lea.vmem %s6937_s13, %s3969_s27 }
 0x7bb   : > { %2384 = vrot.lane.b32.xlu0 %v5320_v12, %s4994_s20 }
 0x7bf   : > { %2388 = vrot.lane.b32.xlu0 %v5330_v26, %s4994_s20 }
 0x7c3   : > { %2392 = vrot.lane.b32.xlu0 %v5338_v40, %s4994_s20 }
 0x7c7   : > { %2396 = vrot.lane.b32.xlu0 %v5346_v50, %s4994_s20 }
 0x7cb   : > { %2697 = vrot.lane.b32.xlu0 %v5320_v12, %s4995_s21 }
 0x7cf   : > { %2701 = vrot.lane.b32.xlu0 %v5330_v26, %s4995_s21 }
 0x7d3   : > { %2703 = vrot.lane.b32.xlu0 %v5328_v16, %s4995_s21 }
 0x7d7   : > { %2707 = vrot.lane.b32.xlu0 %v5336_v39, %s4995_s21 }
 0x7dc   : > { %v2067_v40 = vpop.xlane.xlu0 %2066 }
 0x7dd   : > { %v2096_v58 = vsub.f32 %v5903_v45, %v2067_v40 }
 0x7df   : > { %v2065_v56 = vpop.xlane.xlu1 %2064  ;;  %v2114_v51 = vmul.f32 1.442695, %v2096_v58 }
 0x7e0   : > { %v2095_v55 = vsub.f32 %v5908_v61, %v2065_v56  ;;  %v2063_v12 = vpop.xlane.xlu0 %2062 }
 0x7e1   : > { %v2094_v26 = vsub.f32 %v5912_v35, %v2063_v12 }
 0x7e2   : > { %v2112_v52 = vmul.f32 1.442695, %v2095_v55 }
 0x7e3   : > { %v2110_v11 = vmul.f32 1.442695, %v2094_v26 }
 0x7e4   : > { %4673 = vpow2.f32 %v2112_v52  ;;  %v2075_v16 = vpop.xlane.xlu1 %2074  ;;  %v2069_v57 = vpop.xlane.xlu0 %2068 }
 0x7e5   : > { %4675 = vpow2.f32 %v2110_v11  ;;  %v2097_v39 = vsub.f32 %v5918_v10, %v2069_v57  ;;  %v2100_v27 = vsub.f32 %v5922_v43, %v2075_v16  ;;  %v2441_v16 = vsel %vm901_vm1, %v5865_v44, 0 }
 0x7e6   : > { %4677 = vpow2.f32 %v2114_v51 }
 0x7e7   : > { %v2116_v42 = vmul.f32 1.442695, %v2097_v39  ;;  %v2122_v52 = vmul.f32 1.442695, %v2100_v27 }
 0x7e8   : > { %v2071_v30 = vpop.xlane.xlu1 %2070  ;;  %v2073_v17 = vpop.xlane.xlu0 %2072 }
 0x7e9   : > { %v2098_v61 = vsub.f32 %v5932_v19, %v2071_v30  ;;  %v2099_v45 = vsub.f32 %v5928_v18, %v2073_v17  ;;  %4679 = vpow2.f32 %v2116_v42 }
 0x7eb   : > { %v2118_v55 = vmul.f32 1.442695, %v2098_v61  ;;  %v2120_v35 = vmul.f32 1.442695, %v2099_v45 }
 0x7ec   : > { %v2077_v40 = vpop.xlane.xlu1 %2076  ;;  %v2083_v27 = vpop.xlane.xlu0 %2082 }
 0x7ed   : > { %4681 = vpow2.f32 %v2118_v55  ;;  %v2101_v58 = vsub.f32 %v5938_v59, %v2077_v40  ;;  %v2104_v56 = vsub.f32 %v5942_v53, %v2083_v27 }
 0x7ee   : > { %v6023_v11 = vpop.eup %4673  ;;  %4683 = vpow2.f32 %v2120_v35 }
 0x7ef   : > { %v6025_v57 = vpop.eup %4675  ;;  %v2124_v43 = vmul.f32 1.442695, %v2101_v58  ;;  %4685 = vpow2.f32 %v2122_v52  ;;  %v2130_v55 = vmul.f32 1.442695, %v2104_v56 }
 0x7f0   : > { %v2079_v51 = vpop.xlane.xlu1 %2078  ;;  %v2174_v30 = vpack.c.bf16 %v6023_v11, %v6025_v57  ;;  %v6029_v17 = vpop.eup %4677 }
 0x7f1   : > { %4687 = vpow2.f32 %v2124_v43  ;;  %v2102_v42 = vsub.f32 %v5948_v15, %v2079_v51 }
 0x7f2   : > { %4341 = vmatprep.mubr.bf16.mxu0 %v2174_v30  ;;  %v2447_v30 = vsel %vm901_vm1, %v6013_v9, 0 }
 0x7f3   : > { %v6032_v19 = vpop.eup %4679  ;;  %v2126_v26 = vmul.f32 1.442695, %v2102_v42 }
 0x7f4   : > { %v2085_v18 = vpop.xlane.xlu1 %2084  ;;  %v2175_v59 = vpack.c.bf16 %v6032_v19, %v6029_v17 }
 0x7f5   : > { %v2105_v10 = vsub.f32 %v5953_v28, %v2085_v18  ;;  %4689 = vpow2.f32 %v2126_v26 }
 0x7f6   : > { %4342 = vmatmul.mubr.bf16.vlgmr.msra.gmra.mrb[48].mxu0 %v2175_v59 }
 0x7f7   : > { %v6038_v12 = vpop.eup %4681  ;;  %v2132_v15 = vmul.f32 1.442695, %v2105_v10  ;;  %4358 = vmatpush3.bf16.xpose.msra.mxu0 %v2441_v16  ;;  %v2450_v10 = vsel %vm901_vm1, %v6011_v32, 0 }
 0x7f8   : > { %v6042_v39 = vpop.eup %4683  ;;  %v2081_v61 = vpop.xlane.xlu1 %2080  ;;  %4534 = vmatprep.subr.msk.bf16.mxu0 %vm901_vm1, %v6005_v54 }
 0x7f9   : > { %v2103_v28 = vsub.f32 %v5963_v23, %v2081_v61  ;;  %v2176_v53 = vpack.c.bf16 %v6042_v39, %v6038_v12  ;;  %v6049_v45 = vpop.eup %4685  ;;  %4691 = vpow2.f32 %v2132_v15  ;;  %v2444_v23 = vsel %vm901_vm1, %v6005_v54, 0 }
 0x7fb   : > { %v6051_v35 = vpop.eup %4687  ;;  %v2128_v44 = vmul.f32 1.442695, %v2103_v28  ;;  %4345 = vmatprep.mubr.bf16.mxu0 %v2176_v53 }
 0x7fc   : > { %v2177_v52 = vpack.c.bf16 %v6051_v35, %v6049_v45  ;;  %v2091_v40 = vpop.xlane.xlu1 %2090 }
 0x7fd   : > { %4693 = vpow2.f32 %v2128_v44 }
 0x7fe   : > { %4695 = vpow2.f32 %v2130_v55  ;;  %4346 = vmatmul.mubr.bf16.gmra.mrb[52].mxu0 %v2177_v52 }
 0x7ff   : > { %4360 = vmatpush3.bf16.xpose.msra.mxu0 %v2444_v23  ;;  %v6059_v58 = vpop.eup %4689 }
 0x800   : > { %4535 = vmatprep.subr.msk.bf16.mxu0 %vm901_vm1, %v6013_v9  ;;  %v2093_v18 = vpop.xlane.xlu1 %2092  ;;  %v2087_v9 = vpop.xlane.xlu0 %2086 }
 0x801   : > { %v2106_v15 = vsub.f32 %v5957_v33, %v2087_v9  ;;  %v2109_v61 = vsub.f32 %v5973_v63, %v2093_v18 }
 0x803   : > { %v6061_v43 = vpop.eup %4691  ;;  %v2134_v28 = vmul.f32 1.442695, %v2106_v15  ;;  %v2140_v53 = vmul.f32 1.442695, %v2109_v61 }
 0x804   : > { %v2409_v59 = vpop.permute.xlu1 %2408  ;;  %v2411_v26 = vpop.permute.xlu0 %2410 }
 0x805   : > { %v2453_v56 = vsel %vm901_vm1, %v2409_v59, 0  ;;  %v2456_v16 = vsel %vm901_vm1, %v2411_v26, 0  ;;  %4697 = vpow2.f32 %v2134_v28 }
 0x806   : > { %4699 = vpow2.f32 %v2140_v53 }
 0x807   : > { %v6063_v51 = vpop.eup %4693  ;;  %4362 = vmatpush3.bf16.xpose.msra.mxu0 %v2447_v30 }
 0x808   : > { %v6067_v27 = vpop.eup %4695  ;;  %v2178_v54 = vpack.c.bf16 %v6063_v51, %v6059_v58  ;;  %4536 = vmatprep.subr.msk.bf16.mxu0 %vm901_vm1, %v6011_v32  ;;  %v2108_v32 = vsub.f32 %v5968_v21, %v2091_v40  ;;  %v2387_v33 = vpop.permute.xlu1 %2386 }
 0x809   : > { %v2179_v42 = vpack.c.bf16 %v6061_v43, %v6067_v27 }
 0x80a   : > { %4349 = vmatprep.mubr.bf16.mxu0 %v2178_v54  ;;  %v2138_v52 = vmul.f32 1.442695, %v2108_v32 }
 0x80b   : > { %4350 = vmatmul.mubr.bf16.gmra.mrb[56].mxu0 %v2179_v42 }
 0x80c   : > { %v2391_v21 = vpop.permute.xlu1 %2390 }
 0x80f   : > { %4364 = vmatpush3.bf16.xpose.msra.mxu0 %v2450_v10  ;;  %v6088_v42 = vpop.eup %4697 }
 0x810   : > { %4537 = vmatprep.subr.msk.bf16.mxu0 %vm901_vm1, %v2409_v59  ;;  %v6091_v18 = vpop.eup %4699 }
 0x817   : > { %4366 = vmatpush3.bf16.xpose.msra.mxu0 %v2453_v56 }
 0x818   : > { %4538 = vmatprep.subr.msk.bf16.mxu0 %vm901_vm1, %v2411_v26 }
 0x81f   : > { %4368 = vmatpush3.bf16.xpose.msra.mxu0 %v2456_v16  ;;  %v2395_v16 = vpop.permute.xlu1 %2394 }
 0x823   : > { %v2399_v61 = vpop.permute.xlu1 %2398 }
 0x827   : > { %v2700_v53 = vpop.permute.xlu1 %2699 }
 0x82a   : > { %v2089_v55 = vpop.xlane.xlu0 %2088 }
 0x82b   : > { %v2107_v44 = vsub.f32 %v5988_v38, %v2089_v55 }
 0x82d   : > { %v2136_v23 = vmul.f32 1.442695, %v2107_v44 }
 0x82e   : > { %v2413_v30 = vpop.permute.xlu0 %2412 }
 0x82f   : > { %4701 = vpow2.f32 %v2136_v23  ;;  %4539 = vmatprep.subr.msk.bf16.mxu0 %vm901_vm1, %v2413_v30  ;;  %v2459_v54 = vsel %vm901_vm1, %v2413_v30, 0 }
 0x830   : > { %4703 = vpow2.f32 %v2138_v52  ;;  %4370 = vmatpush3.bf16.xpose.msra.mxu0 %v2459_v54  ;;  %v2706_v52 = vpop.permute.xlu1 %2705 }
 0x832   : > { %v2415_v63 = vpop.permute.xlu0 %2414 }
 0x833   : > { %4540 = vmatprep.subr.msk.bf16.mxu0 %vm901_vm1, %v2415_v63  ;;  %v2462_v38 = vsel %vm901_vm1, %v2415_v63, 0 }
 0x836   : > { %v2385_v40 = vpop.permute.xlu0 %2384 }
 0x838   : > { %4372 = vmatpush3.bf16.xpose.msra.mxu0 %v2462_v38 }
 0x839   : > { %v6093_v10 = vpop.eup %4701 }
 0x83a   : > { %v6095_v59 = vpop.eup %4703  ;;  %v2389_v9 = vpop.permute.xlu0 %2388  ;;  %v2180_v56 = vpack.c.bf16 %v6093_v10, %v6088_v42 }
 0x83b   : > { %v2181_v26 = vpack.c.bf16 %v6091_v18, %v6095_v59 }
 0x83c   : > { %4353 = vmatprep.mubr.bf16.mxu0 %v2180_v56 }
 0x83d   : > { %4354 = vmatmul.mubr.bf16.gmra.mrb[60].mxu0 %v2181_v26 }
 0x83e   : > { %4373 = vmatprep.mubr.msk.bf16.mxu0 %vm901_vm1, %v2385_v40  ;;  %v2393_v15 = vpop.permute.xlu0 %2392 }
 0x842   : > { %v2397_v32 = vpop.permute.xlu0 %2396 }
 0x845   : > { %4374 = vmatmul.mubr.msk.bf16.vlgmr.msra.gmra.mrb[64].mxu0 %vm901_vm1, %v2387_v33 }
 0x846   : > { %4377 = vmatprep.mubr.msk.bf16.mxu0 %vm901_vm1, %v2389_v9  ;;  %v2698_v28 = vpop.permute.xlu0 %2697 }
 0x847   : > { %4389 = vmatprep.subr.bf16.mxu0 %v2698_v28  ;;  %4493 = vmatprep.subr.bf16.mxu1 %v2698_v28 }
 0x848   : > { %4390 = vmatpush3.bf16.msra.mxu0 %v2698_v28  ;;  %4501 = vmatpush3.bf16.msra.mxu1 %v2698_v28 }
 0x849   : > { %4391 = vmatprep.subr.bf16.mxu0 %v2700_v53  ;;  %4494 = vmatprep.subr.bf16.mxu1 %v2700_v53 }
 0x84a   : > { %v2702_v55 = vpop.permute.xlu0 %2701 }
 0x84c   : > { %4392 = vmatpush3.bf16.msra.mxu0 %v2700_v53  ;;  %4502 = vmatpush3.bf16.msra.mxu1 %v2700_v53 }
 0x84d   : > { %4378 = vmatmul.mubr.msk.bf16.gmra.mrb[68].mxu0 %vm901_vm1, %v2391_v21  ;;  %4393 = vmatprep.subr.bf16.mxu0 %v2702_v55 }
 0x84e   : > { %4495 = vmatprep.subr.bf16.mxu1 %v2702_v55  ;;  %4381 = vmatprep.mubr.msk.bf16.mxu0 %vm901_vm1, %v2393_v15  ;;  %v2704_v44 = vpop.permute.xlu0 %2703 }
 0x850   : > { %4394 = vmatpush3.bf16.msra.mxu0 %v2702_v55  ;;  %4503 = vmatpush3.bf16.msra.mxu1 %v2702_v55 }
 0x851   : > { %4395 = vmatprep.subr.bf16.mxu0 %v2704_v44  ;;  %4496 = vmatprep.subr.bf16.mxu1 %v2704_v44 }
 0x852   : > { %v2708_v23 = vpop.permute.xlu0 %2707 }
 0x854   : > { %4396 = vmatpush3.bf16.msra.mxu0 %v2704_v44  ;;  %4504 = vmatpush3.bf16.msra.mxu1 %v2704_v44 }
 0x855   : > { %4382 = vmatmul.mubr.msk.bf16.gmra.mrb[72].mxu0 %vm901_vm1, %v2395_v16  ;;  %4397 = vmatprep.subr.bf16.mxu0 %v2706_v52 }
 0x856   : > { %4497 = vmatprep.subr.bf16.mxu1 %v2706_v52  ;;  %4385 = vmatprep.mubr.msk.bf16.mxu0 %vm901_vm1, %v2397_v32 }
 0x858   : > { %4398 = vmatpush3.bf16.msra.mxu0 %v2706_v52  ;;  %4505 = vmatpush3.bf16.msra.mxu1 %v2706_v52 }
 0x859   : > { %4399 = vmatprep.subr.bf16.mxu0 %v2708_v23  ;;  %4498 = vmatprep.subr.bf16.mxu1 %v2708_v23 }
 0x85c   : > { %4400 = vmatpush3.bf16.msra.mxu0 %v2708_v23  ;;  %4506 = vmatpush3.bf16.msra.mxu1 %v2708_v23 }
 0x85d   : > { %4386 = vmatmul.mubr.msk.bf16.gmra.mrb[76].mxu0 %vm901_vm1, %v2399_v61 }
 0x8c9   : > { %v6109_v30 = vpop.f32.mrb[48].mxu0 }
 0x8ca   : > { %6984 = vst [vmem:[#allocation42_spill] sm:$0xff] %v6109_v30  ;;  %v6111_v54 = vpop.f32.mrb[49].mxu0 }
 0x8cb   : > { %v6113_v33 = vpop.f32.mrb[50].mxu0 }
 0x8cc   : > { %6985 = vst [vmem:[#allocation43_spill] sm:$0xff] %v6113_v33  ;;  %v6115_v63 = vpop.f32.mrb[51].mxu0 }
 0x8cd   : > { %6986 = vst [vmem:[#allocation44_spill] sm:$0xff] %v6115_v63 }
 0x8d1   : > { %v6117_v21 = vpop.f32.mrb[52].mxu0 }
 0x8d2   : > { %6987 = vst [vmem:[#allocation45_spill] sm:$0xff] %v6117_v21  ;;  %v6119_v40 = vpop.f32.mrb[53].mxu0 }
 0x8d3   : > { %6988 = vst [vmem:[#allocation46_spill] sm:$0xff] %v6119_v40  ;;  %v6121_v38 = vpop.f32.mrb[54].mxu0 }
 0x8d4   : > { %6989 = vst [vmem:[#allocation47_spill] sm:$0xff] %v6121_v38  ;;  %v6123_v9 = vpop.f32.mrb[55].mxu0 }
 0x8d5   : > { %6990 = vst [vmem:[#allocation48_spill] sm:$0xff] %v6123_v9 }
 0x8de   : > { %v6125_v56 = vpop.f32.mrb[56].mxu0 }
 0x8df   : > { %6991 = vst [vmem:[#allocation49_spill] sm:$0xff] %v6125_v56  ;;  %v6127_v26 = vpop.f32.mrb[57].mxu0 }
 0x8e0   : > { %6992 = vst [vmem:[#allocation50_spill] sm:$0xff] %v6127_v26  ;;  %v6129_v16 = vpop.f32.mrb[58].mxu0 }
 0x8e1   : > { %6993 = vst [vmem:[#allocation51_spill] sm:$0xff] %v6129_v16  ;;  %v6131_v15 = vpop.f32.mrb[59].mxu0 }
 0x8e2   : > { %6994 = vst [vmem:[#allocation52_spill] sm:$0xff] %v6131_v15 }
 0x910   : > { %v6133_v61 = vpop.f32.mrb[60].mxu0 }
 0x911   : > { %6995 = vst [vmem:[#allocation53_spill] sm:$0xff] %v6133_v61  ;;  %v6135_v32 = vpop.f32.mrb[61].mxu0 }
 0x912   : > { %6996 = vst [vmem:[#allocation54_spill] sm:$0xff] %v6135_v32  ;;  %v6137_v28 = vpop.f32.mrb[62].mxu0 }
 0x913   : > { %6997 = vst [vmem:[#allocation55_spill] sm:$0xff] %v6137_v28  ;;  %v6139_v53 = vpop.f32.mrb[63].mxu0 }
 0x914   : > { %6998 = vst [vmem:[#allocation56_spill] sm:$0xff] %v6139_v53 }
 0x918   : > { %v4375_v55 = vpop.f32.mrb[64].mxu0 }
 0x919   : > { %v6143_v44 = vsel %vm876_vm2, %v4375_v55, -1e+30  ;;  %v2498_v52 = vpop.f32.mrb[65].mxu0 }
 0x91a   : > { %v6147_v23 = vsel %vm876_vm2, %v2498_v52, -1e+30  ;;  %2581 = vmax.xlane.f32.xlu1 %v6143_v44  ;;  %v4376_v16 = vpop.f32.mrb[66].mxu0 }
 0x91b   : > { %2577 = vmax.xlane.f32.xlu0 %v6147_v23  ;;  %v2501_v15 = vpop.f32.mrb[67].mxu0  ;;  %v6153_v28 = vsel %vm876_vm2, %v4376_v16, -1e+30 }
 0x91c   : > { %v6158_v55 = vsel %vm876_vm2, %v2501_v15, -1e+30 }
 0x91e   : > { %2583 = vmax.xlane.f32.xlu1 %v6153_v28 }
 0x920   : > { %v4379_v53 = vpop.f32.mrb[68].mxu0 }
 0x921   : > { %v2514_v61 = vpop.f32.mrb[69].mxu0  ;;  %v6168_v16 = vsel %vm876_vm2, %v4379_v53, -1e+30 }
 0x922   : > { %v6162_v52 = vsel %vm876_vm2, %v2514_v61, -1e+30  ;;  %2579 = vmax.xlane.f32.xlu1 %v6158_v55  ;;  %v4380_v38 = vpop.f32.mrb[70].mxu0 }
 0x923   : > { %2585 = vmax.xlane.f32.xlu0 %v6162_v52  ;;  %v2517_v21 = vpop.f32.mrb[71].mxu0  ;;  %v6173_v15 = vsel %vm876_vm2, %v4380_v38, -1e+30 }
 0x924   : > { %v6183_v53 = vsel %vm876_vm2, %v2517_v21, -1e+30 }
 0x926   : > { %2589 = vmax.xlane.f32.xlu1 %v6168_v16 }
 0x928   : > { %v4383_v32 = vpop.f32.mrb[72].mxu0 }
 0x929   : > { %v2530_v9 = vpop.f32.mrb[73].mxu0 }
 0x92a   : > { %2591 = vmax.xlane.f32.xlu1 %v6173_v15  ;;  %v4384_v61 = vpop.f32.mrb[74].mxu0 }
 0x92b   : > { %v6178_v40 = vsel %vm876_vm2, %v4384_v61, -1e+30  ;;  %v2533_v56 = vpop.f32.mrb[75].mxu0  ;;  %v6193_v61 = vsel %vm876_vm2, %v4383_v32, -1e+30 }
 0x92c   : > { %2599 = vmax.xlane.f32.xlu0 %v6178_v40  ;;  %v6188_v38 = vsel %vm876_vm2, %v2533_v56, -1e+30  ;;  %v6203_v56 = vsel %vm876_vm2, %v2530_v9, -1e+30 }
 0x92e   : > { %2587 = vmax.xlane.f32.xlu1 %v6183_v53 }
 0x930   : > { %2595 = vmax.xlane.f32.xlu0 %v6188_v38  ;;  %v4387_v33 = vpop.f32.mrb[76].mxu0 }
 0x931   : > { %v2546_v30 = vpop.f32.mrb[77].mxu0 }
 0x932   : > { %2597 = vmax.xlane.f32.xlu1 %v6193_v61  ;;  %v4388_v26 = vpop.f32.mrb[78].mxu0 }
 0x933   : > { %v6198_v21 = vsel %vm876_vm2, %v4388_v26, -1e+30  ;;  %v2549_v63 = vpop.f32.mrb[79].mxu0  ;;  %v6217_v26 = vsel %vm876_vm2, %v2546_v30, -1e+30 }
 0x934   : > { %2607 = vmax.xlane.f32.xlu0 %v6198_v21  ;;  %v6208_v32 = vsel %vm876_vm2, %v2549_v63, -1e+30  ;;  %v6223_v63 = vsel %vm876_vm2, %v4387_v33, -1e+30 }
 0x936   : > { %2593 = vmax.xlane.f32.xlu1 %v6203_v56 }
 0x938   : > { %2603 = vmax.xlane.f32.xlu0 %v6208_v32 }
 0x947   : > { %2709 = vrot.lane.b32.xlu1 %v5346_v50, %s4995_s21 }
 0x94e   : > { %2711 = vrot.lane.b32.xlu0 %v5344_v49, %s4995_s21 }
 0x96b   : > { %2601 = vmax.xlane.f32.xlu1 %v6217_v26 }
 0x96d   : > { %1629 = vadd.xlane.f32.xlu0 %v5779_v8 }
 0x96f   : > { %2605 = vmax.xlane.f32.xlu1 %v6223_v63 }
 0x971   : > { %1635 = vadd.xlane.f32.xlu0 %v5794_v62 }
 0x973   : > { %1627 = vadd.xlane.f32.xlu1 %v5781_v4 }
 0x975   : > { %1639 = vadd.xlane.f32.xlu0 %v5805_v48 }
 0x977   : > { %1631 = vadd.xlane.f32.xlu1 %v5785_v60 }
 0x979   : > { %2150 = vadd.xlane.f32.xlu0 %v6038_v12 }
 0x97b   : > { %1633 = vadd.xlane.f32.xlu1 %v5788_v6 }
 0x97d   : > { %2154 = vadd.xlane.f32.xlu0 %v6049_v45 }
 0x97f   : > { %2142 = vadd.xlane.f32.xlu1 %v6025_v57 }
 0x981   : > { %1643 = vadd.xlane.f32.xlu0 %v5815_v5 }
 0x983   : > { %2144 = vadd.xlane.f32.xlu1 %v6023_v11 }
 0x985   : > { %1647 = vadd.xlane.f32.xlu0 %v5823_v47 }
 0x987   : > { %2146 = vadd.xlane.f32.xlu1 %v6029_v17 }
 0x989   : > { %2158 = vadd.xlane.f32.xlu0 %v6059_v58 }
 0x98b   : > { %2148 = vadd.xlane.f32.xlu1 %v6032_v19 }
 0x98d   : > { %2162 = vadd.xlane.f32.xlu0 %v6067_v27 }
 0x98f   : > { %1637 = vadd.xlane.f32.xlu1 %v5798_v34 }
 0x991   : > { %1651 = vadd.xlane.f32.xlu0 %v5844_v3 }
 0x993   : > { %1641 = vadd.xlane.f32.xlu1 %v5807_v31 }
 0x995   : > { %1655 = vadd.xlane.f32.xlu0 %v5851_v46 }
 0x997   : > { %2152 = vadd.xlane.f32.xlu1 %v6042_v39 }
 0x999   : > { %2166 = vadd.xlane.f32.xlu0 %v6088_v42 }
 0x99b   : > { %2156 = vadd.xlane.f32.xlu1 %v6051_v35 }
 0x99d   : > { %2170 = vadd.xlane.f32.xlu0 %v6095_v59 }
 0x99f   : > { %1645 = vadd.xlane.f32.xlu1 %v5819_v2 }
 0x9a1   : > { %1145 = vadd.xlane.f32.xlu0 %v5533_v14 }
 0x9a3   : > { %1649 = vadd.xlane.f32.xlu1 %v5817_v25 }
 0x9a5   : > { %1149 = vadd.xlane.f32.xlu0 %v5537_v22 }
 0x9a7   : > { %v2582_v49 = vpop.xlane.xlu1 %2581  ;;  %2160 = vadd.xlane.f32.xlu1 %v6063_v51 }
 0x9a8   : > { %v2611_v50 = vsub.f32 %v6143_v44, %v2582_v49  ;;  %v2578_v7 = vpop.xlane.xlu0 %2577 }
 0x9a9   : > { %1153 = vadd.xlane.f32.xlu0 %v5546_v20  ;;  %v2609_v4 = vsub.f32 %v6147_v23, %v2578_v7 }
 0x9aa   : > { %v2629_v8 = vmul.f32 1.442695, %v2611_v50 }
 0x9ab   : > { %v2584_v60 = vpop.xlane.xlu1 %2583  ;;  %2164 = vadd.xlane.f32.xlu1 %v6061_v43  ;;  %v2625_v14 = vmul.f32 1.442695, %v2609_v4  ;;  %v6999_v4 = vld [vmem:[#allocation4_spill] sm:$0xff] }
 0x9ac   : > { %4705 = vpow2.f32 %v2629_v8  ;;  %v2612_v25 = vsub.f32 %v6153_v28, %v2584_v60 }
 0x9ad   : > { %1157 = vadd.xlane.f32.xlu0 %v5557_v24  ;;  %4707 = vpow2.f32 %v2625_v14 }
 0x9af   : > { %v2580_v6 = vpop.xlane.xlu1 %2579  ;;  %1653 = vadd.xlane.f32.xlu1 %v5849_v41  ;;  %v2631_v41 = vmul.f32 1.442695, %v2612_v25 }
 0x9b0   : > { %v2610_v22 = vsub.f32 %v6158_v55, %v2580_v6  ;;  %v2586_v62 = vpop.xlane.xlu0 %2585 }
 0x9b1   : > { %v2613_v20 = vsub.f32 %v6162_v52, %v2586_v62 }
 0x9b2   : > { %v2627_v34 = vmul.f32 1.442695, %v2610_v22 }
 0x9b3   : > { %v2590_v48 = vpop.xlane.xlu1 %2589  ;;  %1657 = vadd.xlane.f32.xlu1 %v5847_v1  ;;  %v2633_v47 = vmul.f32 1.442695, %v2613_v20 }
 0x9b4   : > { %4709 = vpow2.f32 %v2627_v34  ;;  %v2615_v31 = vsub.f32 %v6168_v16, %v2590_v48  ;;  %v7000_v34 = vld [vmem:[#allocation8_spill] sm:$0xff] }
 0x9b6   : > { %v6264_v5 = vpop.eup %4705  ;;  %v2637_v24 = vmul.f32 1.442695, %v2615_v31  ;;  %v7001_v31 = vld [vmem:[#allocation7_spill] sm:$0xff] }
 0x9b7   : > { %v2592_v2 = vpop.xlane.xlu1 %2591  ;;  %2168 = vadd.xlane.f32.xlu1 %v6093_v10  ;;  %2661 = vadd.xlane.f32.xlu0 %v6264_v5  ;;  %v4708_v57 = vpop.eup %4707 }
 0x9b8   : > { %4711 = vpow2.f32 %v2637_v24  ;;  %v2616_v3 = vsub.f32 %v6173_v15, %v2592_v2 }
 0x9b9   : > { %v2600_v1 = vpop.xlane.xlu0 %2599  ;;  %4713 = vpow2.f32 %v2633_v47 }
 0x9ba   : > { %v2639_v17 = vmul.f32 1.442695, %v2616_v3  ;;  %4715 = vpow2.f32 %v2631_v41 }
 0x9bb   : > { %v2588_v46 = vpop.xlane.xlu1 %2587  ;;  %2172 = vadd.xlane.f32.xlu1 %v6091_v18  ;;  %v2620_v18 = vsub.f32 %v6178_v40, %v2600_v1 }
 0x9bc   : > { %v2614_v11 = vsub.f32 %v6183_v53, %v2588_v46 }
 0x9bd   : > { %v2596_v19 = vpop.xlane.xlu0 %2595  ;;  %v2647_v28 = vmul.f32 1.442695, %v2620_v18  ;;  %v7004_v18 = vld [vmem:[#allocation3_spill] sm:$0xff] }
 0x9be   : > { %v4710_v12 = vpop.eup %4709  ;;  %v2635_v39 = vmul.f32 1.442695, %v2614_v11  ;;  %v2618_v45 = vsub.f32 %v6188_v38, %v2596_v19 }
 0x9bf   : > { %v2598_v35 = vpop.xlane.xlu1 %2597  ;;  %1147 = vadd.xlane.f32.xlu1 %v5531_v13  ;;  %v2689_v58 = vpack.c.bf16 %v4710_v12, %v4708_v57 }
 0x9c0   : > { %4717 = vpow2.f32 %v2635_v39  ;;  %v2619_v43 = vsub.f32 %v6193_v61, %v2598_v35  ;;  %v2643_v10 = vmul.f32 1.442695, %v2618_v45 }
 0x9c1   : > { %4719 = vpow2.f32 %v2639_v17  ;;  %4405 = vmatprep.mubr.bf16.mxu0 %v2689_v58  ;;  %v2608_v51 = vpop.xlane.xlu0 %2607  ;;  %v7002_v17 = vld [vmem:[#allocation27_spill] sm:$0xff] }
 0x9c2   : > { %v4712_v27 = vpop.eup %4711  ;;  %v2645_v42 = vmul.f32 1.442695, %v2619_v43  ;;  %v2624_v49 = vsub.f32 %v6198_v21, %v2608_v51 }
 0x9c3   : > { %v2594_v59 = vpop.xlane.xlu1 %2593  ;;  %1151 = vadd.xlane.f32.xlu1 %v5540_v0  ;;  %2669 = vadd.xlane.f32.xlu0 %v4712_v27  ;;  %v4714_v33 = vpop.eup %4713 }
 0x9c4   : > { %4721 = vpow2.f32 %v2645_v42  ;;  %v2617_v30 = vsub.f32 %v6203_v56, %v2594_v59  ;;  %v4716_v40 = vpop.eup %4715  ;;  %v2655_v50 = vmul.f32 1.442695, %v2624_v49 }
 0x9c5   : > { %v2604_v13 = vpop.xlane.xlu0 %2603  ;;  %4723 = vpow2.f32 %v2643_v10  ;;  %v7005_v10 = vld [vmem:[#allocation26_spill] sm:$0xff] }
 0x9c6   : > { %v2641_v9 = vmul.f32 1.442695, %v2617_v30  ;;  %v2622_v7 = vsub.f32 %v6208_v32, %v2604_v13  ;;  %v7006_v30 = vld [vmem:[#allocation28_spill] sm:$0xff] }
 0x9c7   : > { %v2710_v44 = vpop.permute.xlu1 %2709  ;;  %1155 = vadd.xlane.f32.xlu1 %v5550_v36  ;;  %2665 = vadd.xlane.f32.xlu0 %v4714_v33  ;;  %v2690_v36 = vpack.c.bf16 %v4716_v40, %v6264_v5 }
 0x9c8   : > { %4725 = vpow2.f32 %v2641_v9  ;;  %4401 = vmatprep.subr.bf16.mxu0 %v2710_v44  ;;  %4499 = vmatprep.subr.bf16.mxu1 %v2710_v44  ;;  %v2651_v8 = vmul.f32 1.442695, %v2622_v7  ;;  %v7011_v7 = vld [vmem:[#allocation50_spill] sm:$0xff] }
 0x9c9   : > { %4402 = vmatpush3.bf16.msra.mxu0 %v2710_v44  ;;  %4507 = vmatpush3.bf16.msra.mxu1 %v2710_v44  ;;  %v2712_v0 = vpop.permute.xlu0 %2711  ;;  %4727 = vpow2.f32 %v2647_v28  ;;  %v7007_v44 = vld [vmem:[#allocation5_spill] sm:$0xff] }
 0x9ca   : > { %v4718_v23 = vpop.eup %4717  ;;  %4403 = vmatprep.subr.bf16.mxu0 %v2712_v0  ;;  %4500 = vmatprep.subr.bf16.mxu1 %v2712_v0  ;;  %4729 = vpow2.f32 %v2655_v50 }
 0x9cb   : > { %v4720_v55 = vpop.eup %4719  ;;  %1159 = vadd.xlane.f32.xlu1 %v5559_v29  ;;  %v2691_v52 = vpack.c.bf16 %v4718_v23, %v4714_v33  ;;  %4731 = vpow2.f32 %v2651_v8 }
 0x9cc   : > { %v2692_v15 = vpack.c.bf16 %v4720_v55, %v4712_v27 }
 0x9cd   : > { %4404 = vmatpush3.bf16.msra.mxu0 %v2712_v0  ;;  %4508 = vmatpush3.bf16.msra.mxu1 %v2712_v0 }
 0x9ce   : > { %v4722_v16 = vpop.eup %4721  ;;  %4409 = vmatprep.mubr.bf16.mxu1 %v2691_v52  ;;  %v7008_v52 = vld [vmem:[#allocation6_spill] sm:$0xff] }
 0x9cf   : > { %2657 = vadd.xlane.f32.xlu1 %v4708_v57  ;;  %2677 = vadd.xlane.f32.xlu0 %v4722_v16  ;;  %v4724_v53 = vpop.eup %4723 }
 0x9d0   : > { %4406 = vmatmul.mubr.bf16.vlgmr.msra.gmra.mrb[80].mxu0 %v2690_v36  ;;  %4410 = vmatmul.mubr.bf16.vlgmr.msra.gmra.mrb[48].mxu1 %v2692_v15  ;;  %v7009_v36 = vld [vmem:[#allocation44_spill] sm:$0xff] }
 0x9d2   : > { %v4726_v38 = vpop.eup %4725 }
 0x9d3   : > { %2663 = vadd.xlane.f32.xlu1 %v4716_v40  ;;  %2673 = vadd.xlane.f32.xlu0 %v4726_v38  ;;  %v2693_v61 = vpack.c.bf16 %v4724_v53, %v4726_v38  ;;  %v4728_v56 = vpop.eup %4727 }
 0x9d4   : > { %v2694_v29 = vpack.c.bf16 %v4728_v56, %v4722_v16  ;;  %v4730_v60 = vpop.eup %4729 }
 0x9d5   : > { %4413 = vmatprep.mubr.bf16.mxu1 %v2693_v61  ;;  %v4732_v14 = vpop.eup %4731 }
 0x9d7   : > { %2659 = vadd.xlane.f32.xlu1 %v4710_v12  ;;  %v7003_v12 = vld [vmem:[#allocation29_spill] sm:$0xff] }
 0x9d8   : > { %4414 = vmatmul.mubr.bf16.gmra.mrb[52].mxu1 %v2694_v29  ;;  %v7010_v29 = vld [vmem:[#allocation9_spill] sm:$0xff] }
 0x9db   : > { %2671 = vadd.xlane.f32.xlu1 %v4720_v55 }
 0x9df   : > { %2667 = vadd.xlane.f32.xlu1 %v4718_v23 }
 0x9e3   : > { %2679 = vadd.xlane.f32.xlu1 %v4728_v56 }
 0x9e7   : > { %2675 = vadd.xlane.f32.xlu1 %v4724_v53 }
 0x9eb   : > { %1163 = vadd.xlane.f32.xlu1 %v5571_v37 }
 0x9ef   : > { %1167 = vadd.xlane.f32.xlu1 %v6999_v4 }
 0x9f3   : > { %2687 = vadd.xlane.f32.xlu1 %v4730_v60 }
 0x9f7   : > { %2683 = vadd.xlane.f32.xlu1 %v4732_v14 }
 0x9f8   : > { %v2602_v6 = vpop.xlane.xlu1 %2601 }
 0x9f9   : > { %v2621_v22 = vsub.f32 %v6217_v26, %v2602_v6 }
 0x9fa   : > { %v1630_v21 = vpop.xlane.xlu0 %1629 }
 0x9fb   : > { %v2649_v62 = vmul.f32 1.442695, %v2621_v22  ;;  %1171 = vadd.xlane.f32.xlu1 %v7000_v34  ;;  %v7013_v22 = vld [vmem:[#allocation43_spill] sm:$0xff] }
 0x9fc   : > { %v2606_v32 = vpop.xlane.xlu1 %2605 }
 0x9fd   : > { %4733 = vpow2.f32 %v2649_v62  ;;  %v2623_v48 = vsub.f32 %v6223_v63, %v2606_v32 }
 0x9fe   : > { %v1636_v20 = vpop.xlane.xlu0 %1635  ;;  %4735 = vrcp.f32 %v1630_v21 }
 0x9ff   : > { %v2653_v37 = vmul.f32 1.442695, %v2623_v48  ;;  %1175 = vadd.xlane.f32.xlu1 %v7001_v31  ;;  %v7014_v48 = vld [vmem:[#allocation49_spill] sm:$0xff] }
 0xa00   : > { %v1628_v5 = vpop.xlane.xlu1 %1627 }
 0xa01   : > { %4737 = vpow2.f32 %v2653_v37 }
 0xa02   : > { %4739 = vrcp.f32 %v1628_v5  ;;  %v1640_v24 = vpop.xlane.xlu0 %1639 }
 0xa04   : > { %v1632_v25 = vpop.xlane.xlu1 %1631 }
 0xa05   : > { %4741 = vrcp.f32 %v1632_v25 }
 0xa06   : > { %v2151_v2 = vpop.xlane.xlu0 %2150 }
 0xa07   : > { %v4734_v26 = vpop.eup %4733 }
 0xa08   : > { %v1634_v47 = vpop.xlane.xlu1 %1633  ;;  %v2695_v3 = vpack.c.bf16 %v4732_v14, %v4734_v26  ;;  %v4736_v1 = vpop.eup %4735  ;;  %v7012_v14 = vld [vmem:[#allocation42_spill] sm:$0xff] }
 0xa09   : > { %4743 = vrcp.f32 %v1634_v47  ;;  %v6293_v39 = vmul.f32 %v4736_v1, %v7003_v12 }
 0xa0a   : > { %4417 = vmatprep.mubr.bf16.mxu1 %v2695_v3  ;;  %v2155_v41 = vpop.xlane.xlu0 %2154 }
 0xa0b   : > { %v4738_v63 = vpop.eup %4737 }
 0xa0c   : > { %v4740_v46 = vpop.eup %4739  ;;  %v2143_v11 = vpop.xlane.xlu1 %2142  ;;  %2685 = vadd.xlane.f32.xlu0 %v4738_v63  ;;  %v2696_v57 = vpack.c.bf16 %v4730_v60, %v4738_v63 }
 0xa0d   : > { %v6290_v19 = vmul.f32 %v4740_v46, %v7002_v17  ;;  %4745 = vrcp.f32 %v2143_v11  ;;  %v7018_v17 = vld [vmem:[#allocation30_spill] sm:$0xff] }
 0xa0e   : > { %4418 = vmatmul.mubr.bf16.gmra.mrb[56].mxu1 %v2696_v57  ;;  %v6295_v45 = vpop.xlane.xlu0 %1643 }
 0xa0f   : > { %v1820_v35 = vpack.c.bf16 %v6293_v39, %v6290_v19  ;;  %v4742_v43 = vpop.eup %4741  ;;  %v7029_v19 = vld [vmem:[#allocation34_spill] sm:$0xff] }
 0xa10   : > { %v2145_v58 = vpop.xlane.xlu1 %2144  ;;  %2681 = vadd.xlane.f32.xlu0 %v4734_v26  ;;  %v1806_v59 = vmul.f32 %v4742_v43, %v7005_v10 }
 0xa11   : > { %4747 = vrcp.f32 %v2145_v58  ;;  %v7019_v58 = vld [vmem:[#allocation32_spill] sm:$0xff] }
 0xa12   : > { %v6299_v51 = vpop.xlane.xlu0 %1647 }
 0xa13   : > { %v4744_v27 = vpop.eup %4743 }
 0xa14   : > { %v2147_v42 = vpop.xlane.xlu1 %2146  ;;  %1161 = vadd.xlane.f32.xlu0 %v7004_v18  ;;  %v1807_v13 = vmul.f32 %v4744_v27, %v7006_v30  ;;  %v7020_v18 = vld [vmem:[#allocation38_spill] sm:$0xff] }
 0xa15   : > { %4749 = vrcp.f32 %v2147_v42 }
 0xa16   : > { %v2159_v33 = vpop.xlane.xlu0 %2158  ;;  %v1821_v9 = vpack.c.bf16 %v1807_v13, %v1806_v59  ;;  %v7021_v13 = vld [vmem:[#allocation46_spill] sm:$0xff] }
 0xa17   : > { %4751 = vrcp.f32 %v2159_v33  ;;  %v4746_v40 = vpop.eup %4745 }
 0xa18   : > { %v2149_v28 = vpop.xlane.xlu1 %2148  ;;  %1165 = vadd.xlane.f32.xlu0 %v7007_v44  ;;  %1838 = vrot.lane.b32.xlu1 %v1821_v9, %s4996_s22  ;;  %v2319_v16 = vmul.f32 %v4746_v40, %v6111_v54  ;;  %v7022_v9 = vld [vmem:[#allocation48_spill] sm:$0xff] }
 0xa19   : > { %4753 = vrcp.f32 %v2149_v28 }
 0xa1a   : > { %4755 = vrcp.f32 %v1636_v20  ;;  %v2163_v0 = vpop.xlane.xlu0 %2162 }
 0xa1b   : > { %v4748_v23 = vpop.eup %4747  ;;  %4757 = vrcp.f32 %v2163_v0  ;;  %v7023_v0 = vld [vmem:[#allocation54_spill] sm:$0xff] }
 0xa1c   : > { %v1638_v55 = vpop.xlane.xlu1 %1637  ;;  %1169 = vadd.xlane.f32.xlu0 %v7008_v52  ;;  %v2320_v15 = vmul.f32 %v4748_v23, %v7009_v36  ;;  %v7024_v36 = vld [vmem:[#allocation45_spill] sm:$0xff] }
 0xa1d   : > { %4759 = vrcp.f32 %v1638_v55 }
 0xa1e   : > { %4761 = vrcp.f32 %v1640_v24  ;;  %v1652_v53 = vpop.xlane.xlu0 %1651  ;;  %v2335_v38 = vpack.c.bf16 %v2320_v15, %v2319_v16  ;;  %v7015_v24 = vld [vmem:[#allocation31_spill] sm:$0xff] }
 0xa1f   : > { %4763 = vrcp.f32 %v1652_v53  ;;  %v4750_v61 = vpop.eup %4749 }
 0xa20   : > { %v1642_v56 = vpop.xlane.xlu1 %1641  ;;  %1173 = vadd.xlane.f32.xlu0 %v7010_v29  ;;  %2351 = vrot.lane.b32.xlu1 %v2335_v38, %s4997_s23  ;;  %v2321_v6 = vmul.f32 %v4750_v61, %v7012_v14 }
 0xa21   : > { %v4752_v49 = vpop.eup %4751  ;;  %4765 = vrcp.f32 %v1642_v56  ;;  %v7026_v56 = vld [vmem:[#allocation53_spill] sm:$0xff] }
 0xa22   : > { %4767 = vrcp.f32 %v2151_v2  ;;  %v1656_v50 = vpop.xlane.xlu0 %1655  ;;  %v6312_v54 = vmul.f32 %v4752_v49, %v7011_v7  ;;  %v7016_v2 = vld [vmem:[#allocation33_spill] sm:$0xff]  ;;  %v7027_v7 = vld [vmem:[#allocation35_spill] sm:$0xff] }
 0xa23   : > { %v4754_v8 = vpop.eup %4753  ;;  %4769 = vrcp.f32 %v1656_v50 }
 0xa24   : > { %v4756_v4 = vpop.eup %4755  ;;  %v2153_v60 = vpop.xlane.xlu1 %2152  ;;  %v2322_v21 = vmul.f32 %v4754_v8, %v7013_v22 }
 0xa25   : > { %v4758_v62 = vpop.eup %4757  ;;  %4771 = vrcp.f32 %v2153_v60  ;;  %v1808_v25 = vmul.f32 %v4756_v4, %v7015_v24  ;;  %v7028_v4 = vld [vmem:[#allocation37_spill] sm:$0xff] }
 0xa26   : > { %4773 = vrcp.f32 %v2155_v41  ;;  %v2167_v34 = vpop.xlane.xlu0 %2166  ;;  %v2336_v32 = vpack.c.bf16 %v2322_v21, %v2321_v6  ;;  %v6317_v20 = vmul.f32 %v4758_v62, %v7014_v48  ;;  %v7017_v41 = vld [vmem:[#allocation39_spill] sm:$0xff] }
 0xa27   : > { %v4760_v37 = vpop.eup %4759  ;;  %4775 = vrcp.f32 %v2167_v34 }
 0xa28   : > { %v4762_v31 = vpop.eup %4761  ;;  %v2157_v5 = vpop.xlane.xlu1 %2156  ;;  %v1809_v26 = vmul.f32 %v4760_v37, %v7016_v2 }
 0xa29   : > { %v4764_v47 = vpop.eup %4763  ;;  %4777 = vrcp.f32 %v2157_v5  ;;  %v1810_v12 = vmul.f32 %v4762_v31, %v7018_v17  ;;  %v7031_v31 = vld [vmem:[#allocation52_spill] sm:$0xff] }
 0xa2a   : > { %4779 = vrcp.f32 %v6295_v45  ;;  %v2171_v3 = vpop.xlane.xlu0 %2170  ;;  %v1822_v1 = vpack.c.bf16 %v1809_v26, %v1808_v25  ;;  %v6323_v63 = vmul.f32 %v4764_v47, %v7017_v41  ;;  %v7032_v26 = vld [vmem:[#allocation51_spill] sm:$0xff] }
 0xa2b   : > { %v4766_v46 = vpop.eup %4765  ;;  %4781 = vrcp.f32 %v2171_v3 }
 0xa2c   : > { %v4768_v11 = vpop.eup %4767  ;;  %v1646_v57 = vpop.xlane.xlu1 %1645  ;;  %1840 = vrot.lane.b32.xlu1 %v1822_v1, %s4996_s22  ;;  %v1811_v43 = vmul.f32 %v4766_v46, %v7019_v58 }
 0xa2d   : > { %v4770_v27 = vpop.eup %4769  ;;  %4783 = vrcp.f32 %v1646_v57  ;;  %v2323_v33 = vmul.f32 %v4768_v11, %v7021_v13  ;;  %v7033_v11 = vld [vmem:[#allocation41_spill] sm:$0xff] }
 0xa2e   : > { %v1823_v42 = vpack.c.bf16 %v1811_v43, %v1810_v12  ;;  %v6329_v45 = vmul.f32 %v4770_v27, %v7020_v18  ;;  %4785 = vrcp.f32 %v6299_v51  ;;  %v7025_v51 = vld [vmem:[#allocation47_spill] sm:$0xff]  ;;  %v7034_v43 = vld [vmem:[#allocation40_spill] sm:$0xff] }
 0xa2f   : > { %v4772_v10 = vpop.eup %4771 }
 0xa30   : > { %v4774_v59 = vpop.eup %4773  ;;  %v1650_v30 = vpop.xlane.xlu1 %1649  ;;  %v2324_v28 = vmul.f32 %v4772_v10, %v7022_v9 }
 0xa31   : > { %v4776_v44 = vpop.eup %4775  ;;  %4787 = vrcp.f32 %v1650_v30  ;;  %v2325_v15 = vmul.f32 %v4774_v59, %v7024_v36  ;;  %v7035_v30 = vld [vmem:[#allocation56_spill] sm:$0xff] }
 0xa32   : > { %v2337_v40 = vpack.c.bf16 %v2324_v28, %v2323_v33  ;;  %v6335_v23 = vmul.f32 %v4776_v44, %v7023_v0 }
 0xa33   : > { %v4778_v55 = vpop.eup %4777 }
 0xa34   : > { %v4780_v52 = vpop.eup %4779  ;;  %v2161_v16 = vpop.xlane.xlu1 %2160  ;;  %2355 = vrot.lane.b32.xlu1 %v2337_v40, %s4997_s23  ;;  %v2326_v53 = vmul.f32 %v4778_v55, %v7025_v51  ;;  %v7036_v40 = vld [vmem:[#allocation55_spill] sm:$0xff] }
 0xa35   : > { %v4782_v38 = vpop.eup %4781  ;;  %4789 = vrcp.f32 %v2161_v16  ;;  %v1812_v8 = vmul.f32 %v4780_v52, %v7027_v7  ;;  %v7039_v7 = vld [vmem:[#allocation12_spill] sm:$0xff] }
 0xa36   : > { %1836 = vrot.lane.b32.xlu0 %v1820_v35, %s4996_s22  ;;  %v2338_v61 = vpack.c.bf16 %v2326_v53, %v2325_v15  ;;  %v6345_v29 = vmul.f32 %v4782_v38, %v7026_v56  ;;  %v7030_v35 = vld [vmem:[#allocation36_spill] sm:$0xff]  ;;  %v7037_v15 = vld [vmem:[#allocation11_spill] sm:$0xff]  ;;  %v7038_v53 = vld [vmem:[#allocation13_spill] sm:$0xff] }
 0xa37   : > { %v4784_v49 = vpop.eup %4783 }
 0xa38   : > { %v2165_v50 = vpop.xlane.xlu1 %2164  ;;  %v1813_v60 = vmul.f32 %v4784_v49, %v7028_v4  ;;  %v4786_v14 = vpop.eup %4785  ;;  %v7040_v4 = vld [vmem:[#allocation10_spill] sm:$0xff] }
 0xa39   : > { %4791 = vrcp.f32 %v2165_v50  ;;  %v1814_v39 = vmul.f32 %v4786_v14, %v7029_v19  ;;  %v7041_v19 = vld [vmem:[#allocation17_spill] sm:$0xff] }
 0xa3a   : > { %2353 = vrot.lane.b32.xlu0 %v2336_v32, %s4997_s23  ;;  %v1824_v6 = vpack.c.bf16 %v1813_v60, %v1812_v8  ;;  %v1146_v32 = vpop.xlane.xlu0 %1145 }
 0xa3b   : > { %v4788_v22 = vpop.eup %4787 }
 0xa3c   : > { %v1654_v21 = vpop.xlane.xlu1 %1653  ;;  %1844 = vrot.lane.b32.xlu1 %v1824_v6, %s4996_s22  ;;  %v1815_v62 = vmul.f32 %v4788_v22, %v7030_v35  ;;  %v7042_v35 = vld [vmem:[#allocation15_spill] sm:$0xff] }
 0xa3d   : > { %4793 = vrcp.f32 %v1654_v21 }
 0xa3e   : > { %1842 = vrot.lane.b32.xlu0 %v1823_v42, %s4996_s22  ;;  %v1825_v34 = vpack.c.bf16 %v1815_v62, %v1814_v39  ;;  %v1150_v41 = vpop.xlane.xlu0 %1149 }
 0xa3f   : > { %v4790_v48 = vpop.eup %4789 }
 0xa40   : > { %v1658_v37 = vpop.xlane.xlu1 %1657  ;;  %v6355_v5 = vmul.f32 %v4790_v48, %v7031_v31 }
 0xa41   : > { %4795 = vrcp.f32 %v1658_v37 }
 0xa42   : > { %2357 = vrot.lane.b32.xlu0 %v2338_v61, %s4997_s23  ;;  %v2339_v24 = vpack.c.bf16 %v6355_v5, %v6312_v54  ;;  %v1154_v42 = vpop.xlane.xlu0 %1153 }
 0xa43   : > { %v4792_v25 = vpop.eup %4791 }
 0xa44   : > { %v2169_v2 = vpop.xlane.xlu1 %2168  ;;  %v6361_v47 = vmul.f32 %v4792_v25, %v7032_v26 }
 0xa45   : > { %4797 = vrcp.f32 %v2169_v2  ;;  %v7044_v2 = vld [vmem:[#allocation16_spill] sm:$0xff] }
 0xa46   : > { %1846 = vrot.lane.b32.xlu0 %v1825_v34, %s4996_s22  ;;  %v2340_v3 = vpack.c.bf16 %v6361_v47, %v6317_v20  ;;  %v1158_v28 = vpop.xlane.xlu0 %1157  ;;  %v7047_v47 = vld [vmem:[#allocation18_spill] sm:$0xff] }
 0xa47   : > { %v4794_v1 = vpop.eup %4793 }
 0xa48   : > { %v2173_v46 = vpop.xlane.xlu1 %2172  ;;  %v6367_v57 = vmul.f32 %v4794_v1, %v7033_v11 }
 0xa49   : > { %4799 = vrcp.f32 %v2173_v46 }
 0xa4a   : > { %v1826_v17 = vpack.c.bf16 %v6367_v57, %v6323_v63  ;;  %4801 = vrcp.f32 %v1146_v32  ;;  %v7043_v32 = vld [vmem:[#allocation14_spill] sm:$0xff] }
 0xa4b   : > { %v4796_v12 = vpop.eup %4795 }
 0xa4c   : > { %v1148_v58 = vpop.xlane.xlu1 %1147  ;;  %v6372_v27 = vmul.f32 %v4796_v12, %v7034_v43 }
 0xa4d   : > { %4803 = vrcp.f32 %v1148_v58 }
 0xa4e   : > { %v1827_v18 = vpack.c.bf16 %v6372_v27, %v6329_v45  ;;  %4805 = vrcp.f32 %v1150_v41  ;;  %v7051_v45 = vld [vmem:[#allocation22_spill] sm:$0xff] }
 0xa4f   : > { %v4798_v10 = vpop.eup %4797 }
 0xa50   : > { %v1152_v59 = vpop.xlane.xlu1 %1151  ;;  %v6377_v13 = vmul.f32 %v4798_v10, %v7035_v30  ;;  %v2662_v10 = vpop.xlane.xlu0 %2661 }
 0xa51   : > { %4807 = vrcp.f32 %v1152_v59 }
 0xa52   : > { %v2341_v33 = vpack.c.bf16 %v6377_v13, %v6335_v23  ;;  %4809 = vrcp.f32 %v1154_v42 }
 0xa53   : > { %v4800_v9 = vpop.eup %4799 }
 0xa54   : > { %v1156_v44 = vpop.xlane.xlu1 %1155  ;;  %v6382_v0 = vmul.f32 %v4800_v9, %v7036_v40  ;;  %v4802_v55 = vpop.eup %4801 }
 0xa55   : > { %4811 = vrcp.f32 %v1156_v44  ;;  %v1322_v51 = vmul.f32 %v4802_v55, %v7037_v15  ;;  %v2670_v30 = vpop.xlane.xlu0 %2669 }
 0xa56   : > { %v2342_v52 = vpack.c.bf16 %v6382_v0, %v6345_v29  ;;  %4813 = vrcp.f32 %v1158_v28 }
 0xa57   : > { %v4804_v16 = vpop.eup %4803 }
 0xa58   : > { %v1160_v36 = vpop.xlane.xlu1 %1159  ;;  %v1323_v38 = vmul.f32 %v4804_v16, %v7038_v53  ;;  %v4806_v61 = vpop.eup %4805 }
 0xa59   : > { %4815 = vrcp.f32 %v1160_v36  ;;  %v1324_v60 = vmul.f32 %v4806_v61, %v7040_v4  ;;  %v2666_v28 = vpop.xlane.xlu0 %2665 }
 0xa5a   : > { %v1338_v56 = vpack.c.bf16 %v1323_v38, %v1322_v51  ;;  %4817 = vrcp.f32 %v2662_v10  ;;  %v4565_v38 = vld [vmem:[%s6929_s5] sm:$0xff]  }
 0xa5b   : > { %v4808_v49 = vpop.eup %4807  ;;  %4819 = vrcp.f32 %v2670_v30  ;;  %4421 = vmatprep.subr.bf16.mxu1 %v4565_v38 }
 0xa5c   : > { %v2658_v50 = vpop.xlane.xlu1 %2657  ;;  %v1325_v8 = vmul.f32 %v4808_v49, %v7039_v7  ;;  %1346 = vst.msk [vmem:[#allocation2] sm:$0xff] %vm901_vm1, %v1338_v56  ;;  %v4810_v14 = vpop.eup %4809  ;;  %4821 = vrcp.f32 %v2666_v28  ;;  %4422 = vmatpush3.bf16.msra.mxu1 %v4565_v38  ;;  %v4566_v7 = vld [vmem:[%s6929_s5 + $0x8] sm:$0xff]  }
 0xa5d   : > { %v1326_v62 = vmul.f32 %v4810_v14, %v7042_v35  ;;  %v2678_v40 = vpop.xlane.xlu0 %2677  ;;  %4823 = vrcp.f32 %v2658_v50  ;;  %4423 = vmatprep.subr.bf16.mxu1 %v4566_v7 }
 0xa5e   : > { %v1339_v6 = vpack.c.bf16 %v1325_v8, %v1324_v60 }
 0xa5f   : > { %v4812_v22 = vpop.eup %4811 }
 0xa60   : > { %v2664_v21 = vpop.xlane.xlu1 %2663  ;;  %1347 = vst.msk [vmem:[#allocation2 + $0x8] sm:$0xff] %vm901_vm1, %v1339_v6  ;;  %v1327_v39 = vmul.f32 %v4812_v22, %v7041_v19  ;;  %v4814_v34 = vpop.eup %4813  ;;  %4424 = vmatpush3.bf16.msra.mxu1 %v4566_v7 }
 0xa61   : > { %v1328_v25 = vmul.f32 %v4814_v34, %v7043_v32  ;;  %v2674_v16 = vpop.xlane.xlu0 %2673  ;;  %4825 = vrcp.f32 %v2664_v21 }
 0xa62   : > { %v1340_v48 = vpack.c.bf16 %v1327_v39, %v1326_v62 }
 0xa63   : > { %v4816_v37 = vpop.eup %4815 }
 0xa64   : > { %v2660_v31 = vpop.xlane.xlu1 %2659  ;;  %1348 = vst.msk [vmem:[#allocation2 + $0x10] sm:$0xff] %vm901_vm1, %v1340_v48  ;;  %v1329_v26 = vmul.f32 %v4816_v37, %v7044_v2  ;;  %v4818_v61 = vpop.eup %4817 }
 0xa65   : > { %v4820_v56 = vpop.eup %4819 }
 0xa66   : > { %v1341_v1 = vpack.c.bf16 %v1329_v26, %v1328_v25  ;;  %v4822_v50 = vpop.eup %4821 }
 0xa67   : > { %v4824_v8 = vpop.eup %4823 }
 0xa68   : > { %v2672_v41 = vpop.xlane.xlu1 %2671  ;;  %1349 = vst.msk [vmem:[#allocation2 + $0x18] sm:$0xff] %vm901_vm1, %v1341_v1 }
 0xa69   : > { %4827 = vrcp.f32 %v2672_v41 }
 0xa6a   : > { %4829 = vrcp.f32 %v2660_v31 }
 0xa6b   : > { %v4826_v14 = vpop.eup %4825 }
 0xa6c   : > { %v2668_v46 = vpop.xlane.xlu1 %2667 }
 0xa6d   : > { %4831 = vrcp.f32 %v2668_v46 }
 0xa6e   : > { %4833 = vrcp.f32 %v2678_v40 }
 0xa70   : > { %v2680_v11 = vpop.xlane.xlu1 %2679 }
 0xa73   : > { %v4828_v21 = vpop.eup %4827 }
 0xa74   : > { %v2676_v12 = vpop.xlane.xlu1 %2675  ;;  %v4830_v35 = vpop.eup %4829 }
 0xa77   : > { %v4832_v25 = vpop.eup %4831 }
 0xa78   : > { %v1164_v58 = vpop.xlane.xlu1 %1163 }
 0xa79   : > { %4835 = vrcp.f32 %v1164_v58 }
 0xa7a   : > { %4837 = vrcp.f32 %v2674_v16 }
 0xa7c   : > { %v1168_v43 = vpop.xlane.xlu1 %1167 }
 0xa80   : > { %v6398_v42 = vpop.xlane.xlu1 %2687 }
 0xa84   : > { %v6400_v59 = vpop.xlane.xlu1 %2683 }
 0xa88   : > { %v6402_v9 = vpop.xlane.xlu1 %1171 }
 0xa8c   : > { %v6404_v44 = vpop.xlane.xlu1 %1175 }
 0xa90   : > { %v1839_v55 = vpop.permute.xlu1 %1838 }
 0xa91   : > { %1862 = vst.msk [vmem:[#allocation2 + $0x8] sm:$0xff] %vm1860_vm3, %v1839_v55 }
 0xa94   : > { %v6409_v15 = vpop.permute.xlu1 %2351 }
 0xa99   : > { %v6407_v36 = vpop.xlane.xlu0 %2685 }
 0xa9d   : > { %v6411_v51 = vpop.xlane.xlu0 %2681 }
 0xa9e   : > { %v1841_v53 = vpop.permute.xlu1 %1840 }
 0xa9f   : > { %1863 = vst.msk [vmem:[#allocation2 + $0x10] sm:$0xff] %vm1860_vm3, %v1841_v53 }
 0xaa1   : > { %v1162_v49 = vpop.xlane.xlu0 %1161 }
 0xaa2   : > { %4839 = vrcp.f32 %v1162_v49  ;;  %v7045_v49 = vld [vmem:[#allocation21_spill] sm:$0xff] }
 0xaa3   : > { %4841 = vrcp.f32 %v2680_v11  ;;  %v4407_v4 = vpop.f32.mrb[80].mxu0  ;;  %v4411_v60 = vpop.f32.mrb[48].mxu1 }
 0xaa4   : > { %4843 = vrcp.f32 %v2676_v12  ;;  %v2755_v6 = vpop.f32.mrb[81].mxu0  ;;  %v2771_v22 = vpop.f32.mrb[49].mxu1  ;;  %v2836_v62 = vmul.f32 %v4818_v61, %v4407_v4  ;;  %v2840_v34 = vmul.f32 %v4820_v56, %v4411_v60 }
 0xaa5   : > { %4845 = vrcp.f32 %v1168_v43  ;;  %v4408_v19 = vpop.f32.mrb[82].mxu0  ;;  %v4412_v39 = vpop.f32.mrb[50].mxu1  ;;  %v2834_v2 = vmul.f32 %v4824_v8, %v2755_v6  ;;  %v2838_v46 = vmul.f32 %v4822_v50, %v2771_v22  ;;  %v7046_v50 = vld [vmem:[#allocation19_spill] sm:$0xff] }
 0xaa6   : > { %v2837_v48 = vmul.f32 %v4826_v14, %v4408_v19  ;;  %v2841_v37 = vmul.f32 %v4828_v21, %v4412_v39  ;;  %v1166_v31 = vpop.xlane.xlu0 %1165  ;;  %v2758_v32 = vpop.f32.mrb[83].mxu0 }
 0xaa7   : > { %4847 = vrcp.f32 %v1166_v31  ;;  %v2835_v26 = vmul.f32 %v4830_v35, %v2758_v32  ;;  %v2774_v1 = vpop.f32.mrb[51].mxu1  ;;  %v2356_v41 = vpop.permute.xlu1 %2355  ;;  %v7049_v32 = vld [vmem:[#allocation25_spill] sm:$0xff] }
 0xaa8   : > { %v2851_v11 = vpack.c.bf16 %v2837_v48, %v2836_v62  ;;  %v2853_v12 = vpack.c.bf16 %v2841_v37, %v2840_v34  ;;  %v2839_v58 = vmul.f32 %v4832_v25, %v2774_v1  ;;  %2378 = vst.msk [vmem:[#allocation2 + $0x10] sm:$0xff] %vm2375_vm4, %v2356_v41  ;;  %v4834_v43 = vpop.eup %4833  ;;  %4849 = vrcp.f32 %v6402_v9  ;;  %v7048_v48 = vld [vmem:[#allocation20_spill] sm:$0xff] }
 0xaa9   : > { %v2850_v10 = vpack.c.bf16 %v2835_v26, %v2834_v2  ;;  %v4836_v30 = vpop.eup %4835  ;;  %v7050_v2 = vld [vmem:[#allocation23_spill] sm:$0xff] }
 0xaaa   : > { %v2852_v28 = vpack.c.bf16 %v2839_v58, %v2838_v46  ;;  %v1170_v40 = vpop.xlane.xlu0 %1169  ;;  %2868 = vrot.lane.b32.xlu0 %v2851_v11, %s4998_s15  ;;  %v4838_v55 = vpop.eup %4837  ;;  %v1331_v9 = vmul.f32 %v4836_v30, %v7045_v49 }
 0xaab   : > { %4851 = vrcp.f32 %v1170_v40  ;;  %v4415_v16 = vpop.f32.mrb[52].mxu1  ;;  %2866 = vrot.lane.b32.xlu1 %v2850_v10, %s4998_s15 }
 0xaac   : > { %v4840_v53 = vpop.eup %4839  ;;  %v2787_v38 = vpop.f32.mrb[53].mxu1  ;;  %4853 = vrcp.f32 %v6404_v44  ;;  %v2844_v4 = vmul.f32 %v4834_v43, %v4415_v16 }
 0xaad   : > { %v4842_v61 = vpop.eup %4841  ;;  %v4416_v56 = vpop.f32.mrb[54].mxu1  ;;  %v1330_v7 = vmul.f32 %v4840_v53, %v7046_v50  ;;  %v2842_v21 = vmul.f32 %v4838_v55, %v2787_v38 }
 0xaae   : > { %v4844_v8 = vpop.eup %4843  ;;  %v2845_v60 = vmul.f32 %v4842_v61, %v4416_v56  ;;  %v1174_v14 = vpop.xlane.xlu0 %1173  ;;  %2361 = vrot.lane.b32.xlu0 %v2340_v3, %s4997_s23 }
 0xaaf   : > { %v2790_v6 = vpop.f32.mrb[55].mxu1  ;;  %v4846_v22 = vpop.eup %4845  ;;  %4855 = vrcp.f32 %v1174_v14  ;;  %v1342_v44 = vpack.c.bf16 %v1331_v9, %v1330_v7  ;;  %2359 = vrot.lane.b32.xlu1 %v2339_v24, %s4997_s23 }
 0xab0   : > { %v2843_v19 = vmul.f32 %v4844_v8, %v2790_v6  ;;  %v2855_v39 = vpack.c.bf16 %v2845_v60, %v2844_v4  ;;  %v1845_v34 = vpop.permute.xlu1 %1844  ;;  %v1333_v37 = vmul.f32 %v4846_v22, %v7048_v48  ;;  %4857 = vrcp.f32 %v6398_v42 }
 0xab1   : > { %v4848_v35 = vpop.eup %4847  ;;  %1350 = vst.msk [vmem:[#allocation2 + $0x20] sm:$0xff] %vm901_vm1, %v1342_v44  ;;  %4859 = vrcp.f32 %v6400_v59 }
 0xab2   : > { %v2854_v62 = vpack.c.bf16 %v2843_v19, %v2842_v21  ;;  %1865 = vst.msk [vmem:[#allocation2 + $0x20] sm:$0xff] %vm1860_vm3, %v1845_v34  ;;  %v1837_v20 = vpop.permute.xlu0 %1836  ;;  %2872 = vrot.lane.b32.xlu0 %v2853_v12, %s4998_s15  ;;  %v1332_v3 = vmul.f32 %v4848_v35, %v7047_v47  ;;  %v4850_v31 = vpop.eup %4849  ;;  %4861 = vrcp.f32 %v6407_v36 }
 0xab3   : > { %1861 = vst.msk [vmem:[#allocation2] sm:$0xff] %vm1860_vm3, %v1837_v20  ;;  %2870 = vrot.lane.b32.xlu1 %v2852_v28, %s4998_s15  ;;  %v1335_v25 = vmul.f32 %v4850_v31, %v7049_v32  ;;  %4863 = vrcp.f32 %v6411_v51  ;;  %v4963_v32 = vld [vmem:[%s5085_s30 + $0x8] sm:$0xff] }
 0xab4   : > { %2376 = vst.msk [vmem:[#allocation2] sm:$0xff] %vm2375_vm4, %v6409_v15  ;;  %v1343_v54 = vpack.c.bf16 %v1333_v37, %v1332_v3  ;;  %v4961_v37 = vld [vmem:[%s5085_s30] sm:$0xff] }
 0xab5   : > { %v4852_v5 = vpop.eup %4851 }
 0xab6   : > { %v2354_v24 = vpop.permute.xlu0 %2353  ;;  %1850 = vrot.lane.b32.xlu0 %v1827_v18, %s4996_s22  ;;  %1351 = vst.msk [vmem:[#allocation2 + $0x28] sm:$0xff] %vm901_vm1, %v1343_v54  ;;  %v1334_v26 = vmul.f32 %v4852_v5, %v7050_v2  ;;  %v4854_v1 = vpop.eup %4853  ;;  %v7052_v18 = vld [vmem:[#allocation24_spill] sm:$0xff]  ;;  %v4962_v5 = vld [vmem:[%s5085_s30 + $0x18] sm:$0xff] }
 0xab7   : > { %2377 = vst.msk [vmem:[#allocation2 + $0x8] sm:$0xff] %vm2375_vm4, %v2354_v24  ;;  %1848 = vrot.lane.b32.xlu1 %v1826_v17, %s4996_s22  ;;  %v1337_v11 = vmul.f32 %v4854_v1, %v7052_v18 }
 0xab8   : > { %v1344_v15 = vpack.c.bf16 %v1335_v25, %v1334_v26  ;;  %v4964_v26 = vld [vmem:[%s5085_s30 + $0x10] sm:$0xff] }
 0xab9   : > { %v4856_v41 = vpop.eup %4855 }
 0xaba   : > { %v1843_v46 = vpop.permute.xlu0 %1842  ;;  %2876 = vrot.lane.b32.xlu0 %v2855_v39, %s4998_s15  ;;  %v1336_v27 = vmul.f32 %v4856_v41, %v7051_v45  ;;  %1352 = vst.msk [vmem:[#allocation2 + $0x30] sm:$0xff] %vm901_vm1, %v1344_v15  ;;  %v4858_v29 = vpop.eup %4857  ;;  %v6504_v39 = vld [vmem:[%s6930_s6] ss:$0 sm:$0xff] }
 0xabb   : > { %1864 = vst.msk [vmem:[#allocation2 + $0x18] sm:$0xff] %vm1860_vm3, %v1843_v46  ;;  %2874 = vrot.lane.b32.xlu1 %v2854_v62, %s4998_s15  ;;  %v4860_v17 = vpop.eup %4859 }
 0xabc   : > { %v1345_v12 = vpack.c.bf16 %v1337_v11, %v1336_v27 }
 0xabe   : > { %v2358_v58 = vpop.permute.xlu0 %2357  ;;  %2365 = vrot.lane.b32.xlu0 %v2342_v52, %s4997_s23  ;;  %1353 = vst.msk [vmem:[#allocation2 + $0x38] sm:$0xff] %vm901_vm1, %v1345_v12  ;;  %v4862_v52 = vpop.eup %4861 }
 0xabf   : > { %2379 = vst.msk [vmem:[#allocation2 + $0x18] sm:$0xff] %vm2375_vm4, %v2358_v58  ;;  %2363 = vrot.lane.b32.xlu1 %v2341_v33, %s4997_s23  ;;  %v4864_v10 = vpop.eup %4863 }
 0xac2   : > { %v1847_v63 = vpop.permute.xlu0 %1846 }
 0xac3   : > { %1866 = vst.msk [vmem:[#allocation2 + $0x28] sm:$0xff] %vm1860_vm3, %v1847_v63  ;;  %v4965_v63 = vld [vmem:[%s5085_s30 + $0x20] sm:$0xff] }
 0xae1   : > { %v4419_v57 = vpop.f32.mrb[56].mxu1 }
 0xae2   : > { %v2803_v0 = vpop.f32.mrb[57].mxu1  ;;  %v2848_v23 = vmul.f32 %v4862_v52, %v4419_v57 }
 0xae3   : > { %v4420_v43 = vpop.f32.mrb[58].mxu1  ;;  %v2846_v30 = vmul.f32 %v4864_v10, %v2803_v0  ;;  %v4966_v0 = vld [vmem:[%s5085_s30 + $0x28] sm:$0xff] }
 0xae4   : > { %v2849_v13 = vmul.f32 %v4858_v29, %v4420_v43  ;;  %v2806_v33 = vpop.f32.mrb[59].mxu1  ;;  %v4967_v43 = vld [vmem:[%s5085_s30 + $0x30] sm:$0xff] }
 0xae5   : > { %v2847_v28 = vmul.f32 %v4860_v17, %v2806_v33 }
 0xae6   : > { %v2857_v40 = vpack.c.bf16 %v2849_v13, %v2848_v23  ;;  %v4968_v23 = vld [vmem:[%s5085_s30 + $0x38] sm:$0xff] }
 0xae7   : > { %v2856_v42 = vpack.c.bf16 %v2847_v28, %v2846_v30 }
 0xae8   : > { %2880 = vrot.lane.b32.xlu0 %v2857_v40, %s4998_s15 }
 0xae9   : > { %2878 = vrot.lane.b32.xlu1 %v2856_v42, %s4998_s15 }
 0xb1c   : > { %v2869_v59 = vpop.permute.xlu0 %2868 }
 0xb1d   : > { %2892 = vst.msk [vmem:[#allocation2 + $0x8] sm:$0xff] %vm2890_vm5, %v2869_v59  ;;  %v2867_v36 = vpop.permute.xlu1 %2866 }
 0xb1e   : > { %2891 = vst.msk [vmem:[#allocation2] sm:$0xff] %vm2890_vm5, %v2867_v36 }
 0xb20   : > { %v2362_v51 = vpop.permute.xlu0 %2361 }
 0xb21   : > { %2381 = vst.msk [vmem:[#allocation2 + $0x28] sm:$0xff] %vm2375_vm4, %v2362_v51  ;;  %v2360_v55 = vpop.permute.xlu1 %2359 }
 0xb22   : > { %2380 = vst.msk [vmem:[#allocation2 + $0x20] sm:$0xff] %vm2375_vm4, %v2360_v55 }
 0xb24   : > { %v2873_v16 = vpop.permute.xlu0 %2872  ;;  %v2900_v61 = vld [vmem:[#allocation2 + $0x8] sm:$0xff] }
 0xb25   : > { %2894 = vst.msk [vmem:[#allocation2 + $0x18] sm:$0xff] %vm2890_vm5, %v2873_v16  ;;  %v2871_v53 = vpop.permute.xlu1 %2870  ;;  %v2899_v38 = vld [vmem:[#allocation2] sm:$0xff] }
 0xb26   : > { %2893 = vst.msk [vmem:[#allocation2 + $0x10] sm:$0xff] %vm2890_vm5, %v2871_v53  ;;  %4425 = vmatprep.mubr.msk.bf16.mxu1 %vm460_vm0, %v2899_v38  ;;  %v4969_v53 = vld [vmem:[%s5085_s30 + $0x40] sm:$0xff] }
 0xb27   : > { %4426 = vmatmul.mubr.msk.bf16.vlgmr.msra.gmra.mrb[60].mxu1 %vm460_vm0, %v2900_v61 }
 0xb28   : > { %v1851_v56 = vpop.permute.xlu0 %1850 }
 0xb29   : > { %1868 = vst.msk [vmem:[#allocation2 + $0x38] sm:$0xff] %vm1860_vm3, %v1851_v56  ;;  %v1849_v49 = vpop.permute.xlu1 %1848 }
 0xb2a   : > { %1867 = vst.msk [vmem:[#allocation2 + $0x30] sm:$0xff] %vm1860_vm3, %v1849_v49  ;;  %v4970_v49 = vld [vmem:[%s5085_s30 + $0x48] sm:$0xff] }
 0xb2c   : > { %v2877_v9 = vpop.permute.xlu0 %2876  ;;  %v2902_v8 = vld [vmem:[#allocation2 + $0x18] sm:$0xff] }
 0xb2d   : > { %2896 = vst.msk [vmem:[#allocation2 + $0x28] sm:$0xff] %vm2890_vm5, %v2877_v9  ;;  %v2875_v50 = vpop.permute.xlu1 %2874  ;;  %v2901_v7 = vld [vmem:[#allocation2 + $0x10] sm:$0xff] }
 0xb2e   : > { %2895 = vst.msk [vmem:[#allocation2 + $0x20] sm:$0xff] %vm2890_vm5, %v2875_v50  ;;  %4429 = vmatprep.mubr.msk.bf16.mxu1 %vm460_vm0, %v2901_v7  ;;  %v4971_v50 = vld [vmem:[%s5085_s30 + $0x50] sm:$0xff] }
 0xb2f   : > { %4430 = vmatmul.mubr.msk.bf16.gmra.mrb[64].mxu1 %vm460_vm0, %v2902_v8  ;;  %v4972_v8 = vld [vmem:[%s5085_s30 + $0x58] sm:$0xff] }
 0xb30   : > { %v2366_v4 = vpop.permute.xlu0 %2365 }
 0xb31   : > { %2383 = vst.msk [vmem:[#allocation2 + $0x38] sm:$0xff] %vm2375_vm4, %v2366_v4  ;;  %v2364_v60 = vpop.permute.xlu1 %2363 }
 0xb32   : > { %2382 = vst.msk [vmem:[#allocation2 + $0x30] sm:$0xff] %vm2375_vm4, %v2364_v60 }
 0xb34   : > { %v2904_v6 = vld [vmem:[#allocation2 + $0x28] sm:$0xff] }
 0xb35   : > { %v2903_v14 = vld [vmem:[#allocation2 + $0x20] sm:$0xff] }
 0xb36   : > { %4433 = vmatprep.mubr.msk.bf16.mxu1 %vm460_vm0, %v2903_v14 }
 0xb37   : > { %4434 = vmatmul.mubr.msk.bf16.gmra.mrb[68].mxu1 %vm460_vm0, %v2904_v6 }
 0xb5a   : > { %v2881_v22 = vpop.permute.xlu0 %2880 }
 0xb5b   : > { %2898 = vst.msk [vmem:[#allocation2 + $0x38] sm:$0xff] %vm2890_vm5, %v2881_v22  ;;  %v2879_v21 = vpop.permute.xlu1 %2878 }
 0xb5c   : > { %2897 = vst.msk [vmem:[#allocation2 + $0x30] sm:$0xff] %vm2890_vm5, %v2879_v21 }
 0xb62   : > { %v2906_v44 = vld [vmem:[#allocation2 + $0x38] sm:$0xff] }
 0xb63   : > { %v2905_v19 = vld [vmem:[#allocation2 + $0x30] sm:$0xff] }
 0xb64   : > { %4437 = vmatprep.mubr.msk.bf16.mxu1 %vm460_vm0, %v2905_v19 }
 0xb65   : > { %4438 = vmatmul.mubr.msk.bf16.gmra.mrb[72].mxu1 %vm460_vm0, %v2906_v44 }
 0xbfa   : > { %v4427_v35 = vpop.f32.mrb[60].mxu1 }
 0xbfb   : > { %v2988_v62 = vpop.f32.mrb[61].mxu1  ;;  %v2997_v48 = vadd.f32 %v4427_v35, %v6504_v39 }
 0xbfc   : > { %v2989_v34 = vadd.f32 %v6504_v39, %v2988_v62  ;;  %v4428_v20 = vpop.f32.mrb[62].mxu1 }
 0xbfd   : > { %v3000_v47 = vadd.f32 %v4428_v20, %v6504_v39  ;;  %v2991_v3 = vpop.f32.mrb[63].mxu1  ;;  %v6522_v1 = vadd.f32 %v4964_v26, %v2997_v48  ;;  %v4973_v20 = vld [vmem:[%s5085_s30 + $0x60] sm:$0xff]  ;;  %v4976_v26 = vld [vmem:[%s5085_s30 + $0x78] sm:$0xff] }
 0xbfe   : > { %v6510_v31 = vadd.f32 %v4961_v37, %v2989_v34  ;;  %v2992_v54 = vadd.f32 %v6504_v39, %v2991_v3  ;;  %v4974_v37 = vld [vmem:[%s5085_s30 + $0x70] sm:$0xff] }
 0xbff   : > { %v6514_v24 = vadd.f32 %v4962_v5, %v3000_v47  ;;  %v3075_v17 = vsel %vm460_vm0, %v6522_v1, 0.0  ;;  %v4975_v5 = vld [vmem:[%s5085_s30 + $0x68] sm:$0xff] }
 0xc00   : > { %v6517_v25 = vadd.f32 %v4963_v32, %v2992_v54  ;;  %v3069_v2 = vsel %vm460_vm0, %v6510_v31, 0.0 }
 0xc01   : > { %3070 = vadd.xlane.f32.xlu1 %v3069_v2  ;;  %v3078_v18 = vsel %vm460_vm0, %v6514_v24, 0.0 }
 0xc02   : > { %v4431_v15 = vpop.f32.mrb[64].mxu1  ;;  %v3072_v41 = vsel %vm460_vm0, %v6517_v25, 0.0 }
 0xc03   : > { %3073 = vadd.xlane.f32.xlu0 %v3072_v41  ;;  %v3004_v46 = vpop.f32.mrb[65].mxu1  ;;  %v3013_v11 = vadd.f32 %v4431_v15, %v6504_v39 }
 0xc04   : > { %v3005_v45 = vadd.f32 %v6504_v39, %v3004_v46  ;;  %v4432_v27 = vpop.f32.mrb[66].mxu1 }
 0xc05   : > { %v3016_v12 = vadd.f32 %v4432_v27, %v6504_v39  ;;  %3079 = vadd.xlane.f32.xlu1 %v3078_v18  ;;  %v3007_v58 = vpop.f32.mrb[67].mxu1  ;;  %v6541_v10 = vadd.f32 %v4967_v43, %v3013_v11 }
 0xc06   : > { %v6532_v29 = vadd.f32 %v4965_v63, %v3005_v45  ;;  %v3008_v57 = vadd.f32 %v6504_v39, %v3007_v58 }
 0xc07   : > { %3076 = vadd.xlane.f32.xlu0 %v3075_v17  ;;  %v6544_v13 = vadd.f32 %v4968_v23, %v3016_v12  ;;  %v3087_v55 = vsel %vm460_vm0, %v6541_v10, 0.0 }
 0xc08   : > { %v6538_v52 = vadd.f32 %v4966_v0, %v3008_v57  ;;  %v3081_v28 = vsel %vm460_vm0, %v6532_v29, 0.0 }
 0xc09   : > { %v3090_v51 = vsel %vm460_vm0, %v6544_v13, 0.0 }
 0xc0a   : > { %v4435_v33 = vpop.f32.mrb[68].mxu1  ;;  %v3084_v30 = vsel %vm460_vm0, %v6538_v52, 0.0 }
 0xc0b   : > { %3085 = vadd.xlane.f32.xlu1 %v3084_v30  ;;  %3082 = vadd.xlane.f32.xlu0 %v3081_v28  ;;  %v3020_v40 = vpop.f32.mrb[69].mxu1  ;;  %v3029_v16 = vadd.f32 %v4435_v33, %v6504_v39 }
 0xc0c   : > { %v3021_v42 = vadd.f32 %v6504_v39, %v3020_v40  ;;  %v4436_v59 = vpop.f32.mrb[70].mxu1 }
 0xc0d   : > { %v3023_v36 = vpop.f32.mrb[71].mxu1  ;;  %v3032_v61 = vadd.f32 %v4436_v59, %v6504_v39  ;;  %v6565_v7 = vadd.f32 %v4971_v50, %v3029_v16 }
 0xc0e   : > { %v6557_v38 = vadd.f32 %v4969_v53, %v3021_v42  ;;  %v3024_v56 = vadd.f32 %v6504_v39, %v3023_v36 }
 0xc0f   : > { %3091 = vadd.xlane.f32.xlu1 %v3090_v51  ;;  %3088 = vadd.xlane.f32.xlu0 %v3087_v55  ;;  %v6568_v4 = vadd.f32 %v4972_v8, %v3032_v61  ;;  %v3099_v22 = vsel %vm460_vm0, %v6565_v7, 0.0 }
 0xc10   : > { %v6562_v9 = vadd.f32 %v4970_v49, %v3024_v56  ;;  %v3093_v14 = vsel %vm460_vm0, %v6557_v38, 0.0 }
 0xc11   : > { %v3102_v6 = vsel %vm460_vm0, %v6568_v4, 0.0 }
 0xc12   : > { %v3096_v60 = vsel %vm460_vm0, %v6562_v9, 0.0 }
 0xc13   : > { %3097 = vadd.xlane.f32.xlu1 %v3096_v60  ;;  %3094 = vadd.xlane.f32.xlu0 %v3093_v14 }
 0xc17   : > { %3103 = vadd.xlane.f32.xlu1 %v3102_v6  ;;  %3100 = vadd.xlane.f32.xlu0 %v3099_v22 }
 0xc38   : > { %v4439_v21 = vpop.f32.mrb[72].mxu1 }
 0xc39   : > { %v3036_v19 = vpop.f32.mrb[73].mxu1  ;;  %v3045_v44 = vadd.f32 %v4439_v21, %v6504_v39 }
 0xc3a   : > { %v3037_v35 = vadd.f32 %v6504_v39, %v3036_v19  ;;  %v4440_v62 = vpop.f32.mrb[74].mxu1 }
 0xc3b   : > { %v3039_v34 = vpop.f32.mrb[75].mxu1  ;;  %v3048_v3 = vadd.f32 %v4440_v62, %v6504_v39  ;;  %v6586_v54 = vadd.f32 %v4974_v37, %v3045_v44 }
 0xc3c   : > { %v6581_v47 = vadd.f32 %v4973_v20, %v3037_v35  ;;  %v3040_v48 = vadd.f32 %v6504_v39, %v3039_v34 }
 0xc3d   : > { %v6594_v15 = vadd.f32 %v4976_v26, %v3048_v3  ;;  %v3111_v39 = vsel %vm460_vm0, %v6586_v54, 0.0 }
 0xc3e   : > { %v6589_v32 = vadd.f32 %v4975_v5, %v3040_v48  ;;  %v3105_v2 = vsel %vm460_vm0, %v6581_v47, 0.0 }
 0xc3f   : > { %3106 = vadd.xlane.f32.xlu0 %v3105_v2  ;;  %v3114_v46 = vsel %vm460_vm0, %v6594_v15, 0.0 }
 0xc40   : > { %v3108_v41 = vsel %vm460_vm0, %v6589_v32, 0.0 }
 0xc41   : > { %3109 = vadd.xlane.f32.xlu1 %v3108_v41 }
 0xc43   : > { %3112 = vadd.xlane.f32.xlu0 %v3111_v39 }
 0xc45   : > { %3115 = vadd.xlane.f32.xlu1 %v3114_v46 }
 0xc8e   : > { %v3071_v45 = vpop.xlane.xlu1 %3070 }
 0xc8f   : > { %v3117_v27 = vmul.f32 0.03125, %v3071_v45 }
 0xc90   : > { %v3074_v18 = vpop.xlane.xlu0 %3073 }
 0xc91   : > { %v6603_v11 = vsub.f32 %v6510_v31, %v3117_v27  ;;  %v3118_v12 = vmul.f32 0.03125, %v3074_v18 }
 0xc92   : > { %v3080_v58 = vpop.xlane.xlu1 %3079 }
 0xc93   : > { %v6606_v63 = vsub.f32 %v6517_v25, %v3118_v12  ;;  %v3120_v57 = vmul.f32 0.03125, %v3080_v58  ;;  %v3149_v17 = vmul.f32 %v6603_v11, %v6603_v11 }
 0xc94   : > { %v3077_v0 = vpop.xlane.xlu0 %3076 }
 0xc95   : > { %v6611_v43 = vsub.f32 %v6514_v24, %v3120_v57  ;;  %v3119_v23 = vmul.f32 0.03125, %v3077_v0  ;;  %v3165_v33 = vsel %vm460_vm0, %v3149_v17, 0.0  ;;  %v3150_v30 = vmul.f32 %v6606_v63, %v6606_v63 }
 0xc96   : > { %3166 = vadd.xlane.f32.xlu0 %v3165_v33 }
 0xc97   : > { %v6617_v28 = vsub.f32 %v6522_v1, %v3119_v23  ;;  %v3168_v40 = vsel %vm460_vm0, %v3150_v30, 0.0  ;;  %v3152_v42 = vmul.f32 %v6611_v43, %v6611_v43 }
 0xc98   : > { %v3086_v59 = vpop.xlane.xlu1 %3085  ;;  %3169 = vadd.xlane.f32.xlu1 %v3168_v40  ;;  %v3083_v36 = vpop.xlane.xlu0 %3082 }
 0xc99   : > { %v3122_v51 = vmul.f32 0.03125, %v3086_v59  ;;  %v3121_v55 = vmul.f32 0.03125, %v3083_v36  ;;  %v3151_v16 = vmul.f32 %v6617_v28, %v6617_v28  ;;  %v3174_v56 = vsel %vm460_vm0, %v3152_v42, 0.0  ;;  %v4567_v42 = vld [vmem:[%s6933_s9] sm:$0xff]   ;;  %v4568_v59 = vld [vmem:[%s6933_s9 + $0x8] sm:$0xff]  }
 0xc9a   : > { %4441 = vmatprep.subr.bf16.mxu0 %v4567_v42 }
 0xc9b   : > { %v6625_v53 = vsub.f32 %v6538_v52, %v3122_v51  ;;  %v6628_v61 = vsub.f32 %v6532_v29, %v3121_v55  ;;  %v3171_v49 = vsel %vm460_vm0, %v3151_v16, 0.0  ;;  %4442 = vmatpush3.bf16.msra.mxu0 %v4567_v42 }
 0xc9c   : > { %v3092_v50 = vpop.xlane.xlu1 %3091  ;;  %3175 = vadd.xlane.f32.xlu1 %v3174_v56  ;;  %3172 = vadd.xlane.f32.xlu0 %v3171_v49  ;;  %v3089_v8 = vpop.xlane.xlu0 %3088 }
 0xc9d   : > { %v3124_v60 = vmul.f32 0.03125, %v3092_v50  ;;  %v3123_v14 = vmul.f32 0.03125, %v3089_v8  ;;  %v3154_v6 = vmul.f32 %v6625_v53, %v6625_v53  ;;  %v3153_v22 = vmul.f32 %v6628_v61, %v6628_v61  ;;  %4443 = vmatprep.subr.bf16.mxu0 %v4568_v59 }
 0xc9f   : > { %v6637_v21 = vsub.f32 %v6544_v13, %v3124_v60  ;;  %v6640_v19 = vsub.f32 %v6541_v10, %v3123_v14  ;;  %v3180_v44 = vsel %vm460_vm0, %v3154_v6, 0.0  ;;  %v3177_v35 = vsel %vm460_vm0, %v3153_v22, 0.0  ;;  %4444 = vmatpush3.bf16.msra.mxu0 %v4568_v59 }
 0xca0   : > { %v3098_v62 = vpop.xlane.xlu1 %3097  ;;  %3181 = vadd.xlane.f32.xlu1 %v3180_v44  ;;  %3178 = vadd.xlane.f32.xlu0 %v3177_v35  ;;  %v3095_v34 = vpop.xlane.xlu0 %3094 }
 0xca1   : > { %v3126_v20 = vmul.f32 0.03125, %v3098_v62  ;;  %v3125_v3 = vmul.f32 0.03125, %v3095_v34  ;;  %v3156_v48 = vmul.f32 %v6637_v21, %v6637_v21  ;;  %v3155_v37 = vmul.f32 %v6640_v19, %v6640_v19 }
 0xca3   : > { %v6649_v5 = vsub.f32 %v6562_v9, %v3126_v20  ;;  %v6652_v2 = vsub.f32 %v6557_v38, %v3125_v3  ;;  %v3186_v26 = vsel %vm460_vm0, %v3156_v48, 0.0  ;;  %v3183_v41 = vsel %vm460_vm0, %v3155_v37, 0.0 }
 0xca4   : > { %v3104_v39 = vpop.xlane.xlu1 %3103  ;;  %3187 = vadd.xlane.f32.xlu1 %v3186_v26  ;;  %3184 = vadd.xlane.f32.xlu0 %v3183_v41  ;;  %v3101_v46 = vpop.xlane.xlu0 %3100 }
 0xca5   : > { %v3128_v45 = vmul.f32 0.03125, %v3104_v39  ;;  %v3127_v27 = vmul.f32 0.03125, %v3101_v46  ;;  %v3158_v18 = vmul.f32 %v6649_v5, %v6649_v5  ;;  %v3157_v12 = vmul.f32 %v6652_v2, %v6652_v2 }
 0xca7   : > { %v6661_v58 = vsub.f32 %v6568_v4, %v3128_v45  ;;  %v6664_v57 = vsub.f32 %v6565_v7, %v3127_v27  ;;  %v3192_v17 = vsel %vm460_vm0, %v3158_v18, 0.0  ;;  %v3189_v0 = vsel %vm460_vm0, %v3157_v12, 0.0 }
 0xca8   : > { %3193 = vadd.xlane.f32.xlu1 %v3192_v17  ;;  %3190 = vadd.xlane.f32.xlu0 %v3189_v0 }
 0xca9   : > { %v3160_v23 = vmul.f32 %v6661_v58, %v6661_v58  ;;  %v3159_v33 = vmul.f32 %v6664_v57, %v6664_v57 }
 0xcab   : > { %v3198_v30 = vsel %vm460_vm0, %v3160_v23, 0.0  ;;  %v3195_v40 = vsel %vm460_vm0, %v3159_v33, 0.0 }
 0xcac   : > { %3199 = vadd.xlane.f32.xlu1 %v3198_v30  ;;  %3196 = vadd.xlane.f32.xlu0 %v3195_v40 }
 0xccc   : > { %v3107_v36 = vpop.xlane.xlu0 %3106 }
 0xccd   : > { %v3129_v51 = vmul.f32 0.03125, %v3107_v36 }
 0xcce   : > { %v3110_v55 = vpop.xlane.xlu1 %3109 }
 0xccf   : > { %v6681_v16 = vsub.f32 %v6581_v47, %v3129_v51  ;;  %v3130_v56 = vmul.f32 0.03125, %v3110_v55 }
 0xcd0   : > { %v3113_v49 = vpop.xlane.xlu0 %3112 }
 0xcd1   : > { %v6684_v50 = vsub.f32 %v6589_v32, %v3130_v56  ;;  %v3131_v8 = vmul.f32 0.03125, %v3113_v49  ;;  %v3161_v60 = vmul.f32 %v6681_v16, %v6681_v16 }
 0xcd2   : > { %v3116_v14 = vpop.xlane.xlu1 %3115 }
 0xcd3   : > { %v6689_v6 = vsub.f32 %v6586_v54, %v3131_v8  ;;  %v3132_v22 = vmul.f32 0.03125, %v3116_v14  ;;  %v3201_v44 = vsel %vm460_vm0, %v3161_v60, 0.0  ;;  %v3162_v35 = vmul.f32 %v6684_v50, %v6684_v50  ;;  %v6707_v8 = vld [vmem:[%s6931_s7] ss:$0 sm:$0xff] }
 0xcd4   : > { %3202 = vadd.xlane.f32.xlu0 %v3201_v44 }
 0xcd5   : > { %v6695_v62 = vsub.f32 %v6594_v15, %v3132_v22  ;;  %v3204_v34 = vsel %vm460_vm0, %v3162_v35, 0.0  ;;  %v3163_v20 = vmul.f32 %v6689_v6, %v6689_v6 }
 0xcd6   : > { %3205 = vadd.xlane.f32.xlu1 %v3204_v34 }
 0xcd7   : > { %v3207_v3 = vsel %vm460_vm0, %v3163_v20, 0.0  ;;  %v3164_v48 = vmul.f32 %v6695_v62, %v6695_v62 }
 0xcd8   : > { %3208 = vadd.xlane.f32.xlu0 %v3207_v3 }
 0xcd9   : > { %v3210_v37 = vsel %vm460_vm0, %v3164_v48, 0.0 }
 0xcda   : > { %3211 = vadd.xlane.f32.xlu1 %v3210_v37 }
 0xd23   : > { %v3167_v26 = vpop.xlane.xlu0 %3166 }
 0xd24   : > { %v3213_v41 = vmul.f32 0.03125, %v3167_v26 }
 0xd25   : > { %v3170_v39 = vpop.xlane.xlu1 %3169 }
 0xd26   : > { %v3229_v46 = vadd.f32 1e-05, %v3213_v41  ;;  %v3214_v45 = vmul.f32 0.03125, %v3170_v39  ;;  %v6715_v39 = vld [vmem:[%s6932_s8] ss:$0 sm:$0xff] }
 0xd28   : > { %4865 = vrsqrt.f32 %v3229_v46  ;;  %v3230_v27 = vadd.f32 1e-05, %v3214_v45 }
 0xd29   : > { %v3176_v18 = vpop.xlane.xlu1 %3175  ;;  %v3173_v12 = vpop.xlane.xlu0 %3172 }
 0xd2a   : > { %4867 = vrsqrt.f32 %v3230_v27  ;;  %v3216_v17 = vmul.f32 0.03125, %v3176_v18  ;;  %v3215_v0 = vmul.f32 0.03125, %v3173_v12 }
 0xd2c   : > { %v3232_v23 = vadd.f32 1e-05, %v3216_v17  ;;  %v3231_v33 = vadd.f32 1e-05, %v3215_v0 }
 0xd2d   : > { %v3182_v30 = vpop.xlane.xlu1 %3181  ;;  %v3179_v40 = vpop.xlane.xlu0 %3178 }
 0xd2e   : > { %4869 = vrsqrt.f32 %v3232_v23  ;;  %v3218_v42 = vmul.f32 0.03125, %v3182_v30  ;;  %v3217_v59 = vmul.f32 0.03125, %v3179_v40 }
 0xd2f   : > { %4871 = vrsqrt.f32 %v3231_v33 }
 0xd30   : > { %v3234_v36 = vadd.f32 1e-05, %v3218_v42  ;;  %v3233_v51 = vadd.f32 1e-05, %v3217_v59 }
 0xd31   : > { %v3188_v55 = vpop.xlane.xlu1 %3187  ;;  %v3185_v56 = vpop.xlane.xlu0 %3184 }
 0xd32   : > { %v4866_v49 = vpop.eup %4865  ;;  %4873 = vrsqrt.f32 %v3234_v36  ;;  %v3220_v60 = vmul.f32 0.03125, %v3188_v55  ;;  %v3219_v14 = vmul.f32 0.03125, %v3185_v56 }
 0xd33   : > { %v3261_v22 = vmul.f32 %v4866_v49, %v6603_v11  ;;  %4875 = vrsqrt.f32 %v3233_v51 }
 0xd34   : > { %v4868_v44 = vpop.eup %4867  ;;  %v3236_v35 = vadd.f32 1e-05, %v3220_v60  ;;  %v3235_v34 = vadd.f32 1e-05, %v3219_v14 }
 0xd35   : > { %v3262_v20 = vmul.f32 %v4868_v44, %v6606_v63  ;;  %v3194_v3 = vpop.xlane.xlu1 %3193  ;;  %v3191_v48 = vpop.xlane.xlu0 %3190  ;;  %v3283_v37 = vmul.f32 %v6707_v8, %v3261_v22 }
 0xd36   : > { %4877 = vrsqrt.f32 %v3236_v35  ;;  %v3222_v26 = vmul.f32 0.03125, %v3194_v3  ;;  %v3221_v41 = vmul.f32 0.03125, %v3191_v48 }
 0xd37   : > { %4879 = vrsqrt.f32 %v3235_v34  ;;  %v3284_v11 = vmul.f32 %v6707_v8, %v3262_v20  ;;  %v3305_v0 = vadd.f32 %v6715_v39, %v3283_v37 }
 0xd38   : > { %v4870_v46 = vpop.eup %4869  ;;  %v3238_v45 = vadd.f32 1e-05, %v3222_v26  ;;  %v3237_v27 = vadd.f32 1e-05, %v3221_v41 }
 0xd39   : > { %v4872_v18 = vpop.eup %4871  ;;  %v3264_v63 = vmul.f32 %v4870_v46, %v6611_v43  ;;  %v3200_v12 = vpop.xlane.xlu1 %3199  ;;  %v3306_v23 = vadd.f32 %v6715_v39, %v3284_v11 }
 0xd3a   : > { %v3197_v17 = vpop.xlane.xlu0 %3196  ;;  %v3263_v33 = vmul.f32 %v4872_v18, %v6617_v28  ;;  %4881 = vrsqrt.f32 %v3238_v45  ;;  %v3224_v30 = vmul.f32 0.03125, %v3200_v12 }
 0xd3b   : > { %v3223_v40 = vmul.f32 0.03125, %v3197_v17  ;;  %v3286_v42 = vmul.f32 %v6707_v8, %v3264_v63  ;;  %4883 = vrsqrt.f32 %v3237_v27  ;;  %v3321_v59 = vpack.c.bf16 %v3306_v23, %v3305_v0 }
 0xd3c   : > { %v4874_v36 = vpop.eup %4873  ;;  %v3285_v51 = vmul.f32 %v6707_v8, %v3263_v33  ;;  %v3240_v55 = vadd.f32 1e-05, %v3224_v30 }
 0xd3d   : > { %v3239_v43 = vadd.f32 1e-05, %v3223_v40  ;;  %v4876_v56 = vpop.eup %4875  ;;  %v3266_v49 = vmul.f32 %v4874_v36, %v6625_v53  ;;  %4445 = vmatprep.mubr.msk.bf16.mxu0 %vm460_vm0, %v3321_v59  ;;  %v3308_v60 = vadd.f32 %v6715_v39, %v3286_v42 }
 0xd3e   : > { %v3265_v28 = vmul.f32 %v4876_v56, %v6628_v61  ;;  %4885 = vrsqrt.f32 %v3240_v55  ;;  %v3307_v14 = vadd.f32 %v6715_v39, %v3285_v51 }
 0xd3f   : > { %4887 = vrsqrt.f32 %v3239_v43  ;;  %v3288_v22 = vmul.f32 %v6707_v8, %v3266_v49 }
 0xd40   : > { %v4878_v44 = vpop.eup %4877  ;;  %v3322_v35 = vpack.c.bf16 %v3308_v60, %v3307_v14  ;;  %v3287_v34 = vmul.f32 %v6707_v8, %v3265_v28 }
 0xd41   : > { %v4880_v20 = vpop.eup %4879  ;;  %v3268_v3 = vmul.f32 %v4878_v44, %v6637_v21  ;;  %v3310_v53 = vadd.f32 %v6715_v39, %v3288_v22 }
 0xd42   : > { %v3267_v48 = vmul.f32 %v4880_v20, %v6640_v19  ;;  %4446 = vmatmul.mubr.msk.bf16.vlgmr.msra.gmra.mrb[84].mxu0 %vm460_vm0, %v3322_v35  ;;  %v3309_v61 = vadd.f32 %v6715_v39, %v3287_v34 }
 0xd43   : > { %v3290_v37 = vmul.f32 %v6707_v8, %v3268_v3 }
 0xd44   : > { %v4882_v26 = vpop.eup %4881  ;;  %v3323_v41 = vpack.c.bf16 %v3310_v53, %v3309_v61  ;;  %v3289_v11 = vmul.f32 %v6707_v8, %v3267_v48 }
 0xd45   : > { %v4884_v46 = vpop.eup %4883  ;;  %v3270_v45 = vmul.f32 %v4882_v26, %v6649_v5  ;;  %v3312_v27 = vadd.f32 %v6715_v39, %v3290_v37 }
 0xd46   : > { %v3269_v21 = vmul.f32 %v4884_v46, %v6652_v2  ;;  %4449 = vmatprep.mubr.msk.bf16.mxu0 %vm460_vm0, %v3323_v41  ;;  %v3311_v19 = vadd.f32 %v6715_v39, %v3289_v11 }
 0xd47   : > { %v3292_v18 = vmul.f32 %v6707_v8, %v3270_v45 }
 0xd48   : > { %v4886_v63 = vpop.eup %4885  ;;  %v3324_v12 = vpack.c.bf16 %v3312_v27, %v3311_v19  ;;  %v3291_v17 = vmul.f32 %v6707_v8, %v3269_v21 }
 0xd49   : > { %v4888_v0 = vpop.eup %4887  ;;  %v3272_v23 = vmul.f32 %v4886_v63, %v6661_v58  ;;  %v3314_v33 = vadd.f32 %v6715_v39, %v3292_v18  ;;  %v4570_v18 = vld [vmem:[%s6935_s11 + $0x8] sm:$0xff]   ;;  %v4573_v63 = vld [vmem:[%s6935_s11 + $0x20] sm:$0xff]  }
 0xd4a   : > { %v3271_v5 = vmul.f32 %v4888_v0, %v6664_v57  ;;  %4450 = vmatmul.mubr.msk.bf16.gmra.mrb[88].mxu0 %vm460_vm0, %v3324_v12  ;;  %v3313_v2 = vadd.f32 %v6715_v39, %v3291_v17  ;;  %v4574_v12 = vld [vmem:[%s6935_s11 + $0x28] sm:$0xff]   ;;  %v4575_v17 = vld [vmem:[%s6935_s11 + $0x30] sm:$0xff]   ;;  %v4576_v0 = vld [vmem:[%s6935_s11 + $0x38] sm:$0xff]  }
 0xd4b   : > { %v3294_v30 = vmul.f32 %v6707_v8, %v3272_v23  ;;  %v6797_v23 = vld [vmem:[%s6934_s10] ss:$0 sm:$0xff] }
 0xd4c   : > { %v3325_v40 = vpack.c.bf16 %v3314_v33, %v3313_v2  ;;  %v3293_v42 = vmul.f32 %v6707_v8, %v3271_v5 }
 0xd4d   : > { %v3316_v59 = vadd.f32 %v6715_v39, %v3294_v30 }
 0xd4e   : > { %4453 = vmatprep.mubr.msk.bf16.mxu0 %vm460_vm0, %v3325_v40  ;;  %v3315_v36 = vadd.f32 %v6715_v39, %v3293_v42 }
 0xd50   : > { %v3326_v58 = vpack.c.bf16 %v3316_v59, %v3315_v36 }
 0xd52   : > { %4454 = vmatmul.mubr.msk.bf16.gmra.mrb[92].mxu0 %vm460_vm0, %v3326_v58 }
 0xd61   : > { %v3203_v51 = vpop.xlane.xlu0 %3202 }
 0xd62   : > { %v3225_v57 = vmul.f32 0.03125, %v3203_v51 }
 0xd63   : > { %v3206_v55 = vpop.xlane.xlu1 %3205 }
 0xd64   : > { %v3241_v43 = vadd.f32 1e-05, %v3225_v57  ;;  %v3226_v56 = vmul.f32 0.03125, %v3206_v55 }
 0xd65   : > { %v3209_v49 = vpop.xlane.xlu0 %3208 }
 0xd66   : > { %4889 = vrsqrt.f32 %v3241_v43  ;;  %v3242_v60 = vadd.f32 1e-05, %v3226_v56  ;;  %v3227_v28 = vmul.f32 0.03125, %v3209_v49 }
 0xd67   : > { %v3212_v14 = vpop.xlane.xlu1 %3211 }
 0xd68   : > { %4891 = vrsqrt.f32 %v3242_v60  ;;  %v3243_v22 = vadd.f32 1e-05, %v3227_v28  ;;  %v3228_v44 = vmul.f32 0.03125, %v3212_v14 }
 0xd6a   : > { %4893 = vrsqrt.f32 %v3243_v22  ;;  %v3244_v35 = vadd.f32 1e-05, %v3228_v44 }
 0xd6c   : > { %4895 = vrsqrt.f32 %v3244_v35 }
 0xd70   : > { %v4890_v34 = vpop.eup %4889 }
 0xd71   : > { %v3273_v20 = vmul.f32 %v4890_v34, %v6681_v16 }
 0xd72   : > { %v4892_v3 = vpop.eup %4891 }
 0xd73   : > { %v3274_v53 = vmul.f32 %v4892_v3, %v6684_v50  ;;  %v3295_v48 = vmul.f32 %v6707_v8, %v3273_v20 }
 0xd74   : > { %v4894_v61 = vpop.eup %4893 }
 0xd75   : > { %v3275_v37 = vmul.f32 %v4894_v61, %v6689_v6  ;;  %v3296_v26 = vmul.f32 %v6707_v8, %v3274_v53  ;;  %v3317_v46 = vadd.f32 %v6715_v39, %v3295_v48 }
 0xd76   : > { %v4896_v41 = vpop.eup %4895 }
 0xd77   : > { %v3276_v11 = vmul.f32 %v4896_v41, %v6695_v62  ;;  %v3318_v45 = vadd.f32 %v6715_v39, %v3296_v26  ;;  %v3297_v27 = vmul.f32 %v6707_v8, %v3275_v37  ;;  %v4569_v62 = vld [vmem:[%s6935_s11] sm:$0xff]  }
 0xd78   : > { %4461 = vmatprep.subr.bf16.mxu1 %v4569_v62 }
 0xd79   : > { %v3327_v16 = vpack.c.bf16 %v3318_v45, %v3317_v46  ;;  %v3298_v21 = vmul.f32 %v6707_v8, %v3276_v11  ;;  %v3319_v50 = vadd.f32 %v6715_v39, %v3297_v27  ;;  %4462 = vmatpush3.bf16.msra.mxu1 %v4569_v62  ;;  %v4571_v8 = vld [vmem:[%s6935_s11 + $0x10] sm:$0xff]  }
 0xd7a   : > { %4463 = vmatprep.subr.bf16.mxu1 %v4570_v18 }
 0xd7b   : > { %4457 = vmatprep.mubr.msk.bf16.mxu0 %vm460_vm0, %v3327_v16  ;;  %v3320_v6 = vadd.f32 %v6715_v39, %v3298_v21  ;;  %v4572_v39 = vld [vmem:[%s6935_s11 + $0x18] sm:$0xff]  }
 0xd7d   : > { %v3328_v19 = vpack.c.bf16 %v3320_v6, %v3319_v50  ;;  %4464 = vmatpush3.bf16.msra.mxu1 %v4570_v18 }
 0xd7e   : > { %4465 = vmatprep.subr.bf16.mxu1 %v4571_v8 }
 0xd7f   : > { %4458 = vmatmul.mubr.msk.bf16.gmra.mrb[96].mxu0 %vm460_vm0, %v3328_v19 }
 0xd81   : > { %4466 = vmatpush3.bf16.msra.mxu1 %v4571_v8 }
 0xd82   : > { %4467 = vmatprep.subr.bf16.mxu1 %v4572_v39 }
 0xd85   : > { %4468 = vmatpush3.bf16.msra.mxu1 %v4572_v39 }
 0xd86   : > { %4469 = vmatprep.subr.bf16.mxu1 %v4573_v63 }
 0xd89   : > { %4470 = vmatpush3.bf16.msra.mxu1 %v4573_v63 }
 0xd8a   : > { %4471 = vmatprep.subr.bf16.mxu1 %v4574_v12 }
 0xd8d   : > { %4472 = vmatpush3.bf16.msra.mxu1 %v4574_v12 }
 0xd8e   : > { %4473 = vmatprep.subr.bf16.mxu1 %v4575_v17 }
 0xd91   : > { %4474 = vmatpush3.bf16.msra.mxu1 %v4575_v17 }
 0xd92   : > { %4475 = vmatprep.subr.bf16.mxu1 %v4576_v0 }
 0xd95   : > { %4476 = vmatpush3.bf16.msra.mxu1 %v4576_v0 }
 0xe15   : > { %v4447_v33 = vpop.f32.mrb[84].mxu0 }
 0xe16   : > { %v6800_v5 = vadd.f32 %v4447_v33, %v6797_v23  ;;  %v3410_v2 = vpop.f32.mrb[85].mxu0 }
 0xe17   : > { %v6803_v30 = vadd.f32 %v6797_v23, %v3410_v2  ;;  %v4448_v40 = vpop.f32.mrb[86].mxu0 }
 0xe18   : > { %v3944_v42 = vmul.f32 -1.702, %v6800_v5  ;;  %v6807_v59 = vadd.f32 %v4448_v40, %v6797_v23  ;;  %v3413_v36 = vpop.f32.mrb[87].mxu0 }
 0xe19   : > { %v3942_v58 = vmul.f32 -1.702, %v6803_v30  ;;  %v6811_v51 = vadd.f32 %v6797_v23, %v3413_v36 }
 0xe1a   : > { %v3509_v57 = vmul.f32 1.442695, %v3944_v42  ;;  %v3945_v55 = vmul.f32 -1.702, %v6807_v59 }
 0xe1b   : > { %v3505_v43 = vmul.f32 1.442695, %v3942_v58  ;;  %v3943_v56 = vmul.f32 -1.702, %v6811_v51 }
 0xe1c   : > { %4897 = vpow2.f32 %v3509_v57  ;;  %v3511_v49 = vmul.f32 1.442695, %v3945_v55 }
 0xe1d   : > { %4899 = vpow2.f32 %v3505_v43  ;;  %v3507_v60 = vmul.f32 1.442695, %v3943_v56  ;;  %v4451_v28 = vpop.f32.mrb[88].mxu0 }
 0xe1e   : > { %4901 = vpow2.f32 %v3511_v49  ;;  %v6816_v14 = vadd.f32 %v4451_v28, %v6797_v23  ;;  %v3426_v22 = vpop.f32.mrb[89].mxu0 }
 0xe1f   : > { %4903 = vpow2.f32 %v3507_v60  ;;  %v6819_v44 = vadd.f32 %v6797_v23, %v3426_v22  ;;  %v4452_v35 = vpop.f32.mrb[90].mxu0 }
 0xe20   : > { %v3948_v34 = vmul.f32 -1.702, %v6816_v14  ;;  %v6823_v20 = vadd.f32 %v4452_v35, %v6797_v23  ;;  %v3429_v3 = vpop.f32.mrb[91].mxu0 }
 0xe21   : > { %v3946_v53 = vmul.f32 -1.702, %v6819_v44  ;;  %v6827_v48 = vadd.f32 %v6797_v23, %v3429_v3 }
 0xe22   : > { %v3517_v61 = vmul.f32 1.442695, %v3948_v34  ;;  %v3949_v37 = vmul.f32 -1.702, %v6823_v20 }
 0xe23   : > { %v3513_v26 = vmul.f32 1.442695, %v3946_v53  ;;  %v3947_v41 = vmul.f32 -1.702, %v6827_v48 }
 0xe24   : > { %4905 = vpow2.f32 %v3517_v61  ;;  %v3519_v11 = vmul.f32 1.442695, %v3949_v37 }
 0xe25   : > { %4907 = vpow2.f32 %v3513_v26  ;;  %v3515_v46 = vmul.f32 1.442695, %v3947_v41  ;;  %v4455_v45 = vpop.f32.mrb[92].mxu0 }
 0xe26   : > { %v4898_v27 = vpop.eup %4897  ;;  %4909 = vpow2.f32 %v3519_v11  ;;  %v6832_v16 = vadd.f32 %v4455_v45, %v6797_v23  ;;  %v3442_v21 = vpop.f32.mrb[93].mxu0 }
 0xe27   : > { %v4900_v50 = vpop.eup %4899  ;;  %v3539_v6 = vadd.f32 1.0, %v4898_v27  ;;  %4911 = vpow2.f32 %v3515_v46  ;;  %v6835_v19 = vadd.f32 %v6797_v23, %v3442_v21  ;;  %v4456_v62 = vpop.f32.mrb[94].mxu0 }
 0xe28   : > { %v4902_v18 = vpop.eup %4901  ;;  %v3537_v8 = vadd.f32 1.0, %v4900_v50  ;;  %v3952_v39 = vmul.f32 -1.702, %v6832_v16  ;;  %v6839_v63 = vadd.f32 %v4456_v62, %v6797_v23  ;;  %v3445_v12 = vpop.f32.mrb[95].mxu0 }
 0xe29   : > { %v4904_v17 = vpop.eup %4903  ;;  %4913 = vrcp.f32 %v3539_v6  ;;  %v3540_v0 = vadd.f32 1.0, %v4902_v18  ;;  %v3950_v33 = vmul.f32 -1.702, %v6835_v19  ;;  %v6843_v2 = vadd.f32 %v6797_v23, %v3445_v12 }
 0xe2a   : > { %4915 = vrcp.f32 %v3537_v8  ;;  %v3538_v40 = vadd.f32 1.0, %v4904_v17  ;;  %v3525_v42 = vmul.f32 1.442695, %v3952_v39  ;;  %v3953_v36 = vmul.f32 -1.702, %v6839_v63 }
 0xe2b   : > { %4917 = vrcp.f32 %v3540_v0  ;;  %v3521_v58 = vmul.f32 1.442695, %v3950_v33  ;;  %v3951_v57 = vmul.f32 -1.702, %v6843_v2 }
 0xe2c   : > { %4919 = vrcp.f32 %v3538_v40  ;;  %v3527_v55 = vmul.f32 1.442695, %v3953_v36 }
 0xe2d   : > { %4921 = vpow2.f32 %v3525_v42  ;;  %v3523_v43 = vmul.f32 1.442695, %v3951_v57 }
 0xe2e   : > { %v4906_v56 = vpop.eup %4905  ;;  %4923 = vpow2.f32 %v3521_v58 }
 0xe2f   : > { %v4908_v49 = vpop.eup %4907  ;;  %v3543_v60 = vadd.f32 1.0, %v4906_v56  ;;  %4925 = vpow2.f32 %v3527_v55 }
 0xe30   : > { %v4910_v28 = vpop.eup %4909  ;;  %v3541_v22 = vadd.f32 1.0, %v4908_v49  ;;  %4927 = vpow2.f32 %v3523_v43 }
 0xe31   : > { %v4912_v35 = vpop.eup %4911  ;;  %4929 = vrcp.f32 %v3543_v60  ;;  %v3544_v34 = vadd.f32 1.0, %v4910_v28 }
 0xe32   : > { %4931 = vrcp.f32 %v3541_v22  ;;  %v3542_v3 = vadd.f32 1.0, %v4912_v35 }
 0xe33   : > { %v4914_v53 = vpop.eup %4913  ;;  %4933 = vrcp.f32 %v3544_v34 }
 0xe34   : > { %v4916_v61 = vpop.eup %4915  ;;  %4935 = vrcp.f32 %v3542_v3  ;;  %v3587_v41 = vmul.f32 %v4914_v53, %v6800_v5 }
 0xe35   : > { %v4918_v37 = vpop.eup %4917  ;;  %v3585_v45 = vmul.f32 %v4916_v61, %v6803_v30 }
 0xe36   : > { %v4920_v26 = vpop.eup %4919  ;;  %v3588_v11 = vmul.f32 %v4918_v37, %v6807_v59 }
 0xe37   : > { %v4922_v46 = vpop.eup %4921  ;;  %v3586_v27 = vmul.f32 %v4920_v26, %v6811_v51 }
 0xe38   : > { %v4924_v21 = vpop.eup %4923  ;;  %v3602_v50 = vpack.c.bf16 %v3588_v11, %v3587_v41  ;;  %v3547_v6 = vadd.f32 1.0, %v4922_v46 }
 0xe39   : > { %v4926_v62 = vpop.eup %4925  ;;  %v3545_v18 = vadd.f32 1.0, %v4924_v21  ;;  %v3601_v8 = vpack.c.bf16 %v3586_v27, %v3585_v45 }
 0xe3a   : > { %v4928_v39 = vpop.eup %4927  ;;  %4937 = vrcp.f32 %v3547_v6  ;;  %v3548_v12 = vadd.f32 1.0, %v4926_v62 }
 0xe3b   : > { %v4930_v17 = vpop.eup %4929  ;;  %4939 = vrcp.f32 %v3545_v18  ;;  %v3546_v0 = vadd.f32 1.0, %v4928_v39  ;;  %4477 = vmatprep.mubr.bf16.mxu1 %v3601_v8 }
 0xe3c   : > { %v4932_v5 = vpop.eup %4931  ;;  %4941 = vrcp.f32 %v3548_v12  ;;  %4478 = vmatmul.mubr.bf16.vlgmr.msra.gmra.mrb[76].mxu1 %v3602_v50  ;;  %v3591_v51 = vmul.f32 %v4930_v17, %v6816_v14 }
 0xe3d   : > { %v4934_v59 = vpop.eup %4933  ;;  %4943 = vrcp.f32 %v3546_v0  ;;  %v3589_v40 = vmul.f32 %v4932_v5, %v6819_v44 }
 0xe3e   : > { %v4936_v30 = vpop.eup %4935  ;;  %v3592_v33 = vmul.f32 %v4934_v59, %v6823_v20 }
 0xe3f   : > { %v3590_v42 = vmul.f32 %v4936_v30, %v6827_v48 }
 0xe40   : > { %v3604_v36 = vpack.c.bf16 %v3592_v33, %v3591_v51 }
 0xe41   : > { %v3603_v58 = vpack.c.bf16 %v3590_v42, %v3589_v40  ;;  %v3958_v40 = vld [vmem:[%s6936_s12] ss:$0 sm:$0xff] }
 0xe43   : > { %4481 = vmatprep.mubr.bf16.mxu1 %v3603_v58 }
 0xe44   : > { %v4938_v57 = vpop.eup %4937  ;;  %4482 = vmatmul.mubr.bf16.gmra.mrb[80].mxu1 %v3604_v36 }
 0xe45   : > { %v4940_v55 = vpop.eup %4939  ;;  %v3595_v49 = vmul.f32 %v4938_v57, %v6832_v16 }
 0xe46   : > { %v4942_v43 = vpop.eup %4941  ;;  %v3593_v14 = vmul.f32 %v4940_v55, %v6835_v19 }
 0xe47   : > { %v4944_v56 = vpop.eup %4943  ;;  %v3596_v60 = vmul.f32 %v4942_v43, %v6839_v63 }
 0xe48   : > { %v3594_v20 = vmul.f32 %v4944_v56, %v6843_v2 }
 0xe49   : > { %v3606_v28 = vpack.c.bf16 %v3596_v60, %v3595_v49 }
 0xe4a   : > { %v3605_v44 = vpack.c.bf16 %v3594_v20, %v3593_v14 }
 0xe4c   : > { %4485 = vmatprep.mubr.bf16.mxu1 %v3605_v44 }
 0xe4d   : > { %4486 = vmatmul.mubr.bf16.gmra.mrb[84].mxu1 %v3606_v28 }
 0xe52   : > { %v4459_v48 = vpop.f32.mrb[96].mxu0 }
 0xe53   : > { %v3467_v22 = vadd.f32 %v4459_v48, %v6797_v23  ;;  %v3458_v35 = vpop.f32.mrb[97].mxu0 }
 0xe54   : > { %v3459_v34 = vadd.f32 %v6797_v23, %v3458_v35  ;;  %v4460_v3 = vpop.f32.mrb[98].mxu0 }
 0xe55   : > { %v3956_v53 = vmul.f32 -1.702, %v3467_v22  ;;  %v3470_v16 = vadd.f32 %v4460_v3, %v6797_v23  ;;  %v3461_v61 = vpop.f32.mrb[99].mxu0 }
 0xe56   : > { %v3954_v63 = vmul.f32 -1.702, %v3459_v34  ;;  %v3462_v19 = vadd.f32 %v6797_v23, %v3461_v61 }
 0xe57   : > { %v3533_v37 = vmul.f32 1.442695, %v3956_v53  ;;  %v3957_v2 = vmul.f32 -1.702, %v3470_v16 }
 0xe58   : > { %v3529_v26 = vmul.f32 1.442695, %v3954_v63  ;;  %v3955_v41 = vmul.f32 -1.702, %v3462_v19 }
 0xe59   : > { %4945 = vpow2.f32 %v3533_v37  ;;  %v3535_v11 = vmul.f32 1.442695, %v3957_v2 }
 0xe5a   : > { %4947 = vpow2.f32 %v3529_v26  ;;  %v3531_v46 = vmul.f32 1.442695, %v3955_v41 }
 0xe5b   : > { %4949 = vpow2.f32 %v3535_v11 }
 0xe5c   : > { %4951 = vpow2.f32 %v3531_v46 }
 0xe63   : > { %v4946_v45 = vpop.eup %4945 }
 0xe64   : > { %v4948_v27 = vpop.eup %4947  ;;  %v3551_v21 = vadd.f32 1.0, %v4946_v45 }
 0xe65   : > { %v4950_v50 = vpop.eup %4949  ;;  %v3549_v6 = vadd.f32 1.0, %v4948_v27 }
 0xe66   : > { %v4952_v62 = vpop.eup %4951  ;;  %4953 = vrcp.f32 %v3551_v21  ;;  %v3552_v18 = vadd.f32 1.0, %v4950_v50 }
 0xe67   : > { %4955 = vrcp.f32 %v3549_v6  ;;  %v3550_v23 = vadd.f32 1.0, %v4952_v62 }
 0xe68   : > { %4957 = vrcp.f32 %v3552_v18 }
 0xe69   : > { %4959 = vrcp.f32 %v3550_v23 }
 0xe70   : > { %v4954_v8 = vpop.eup %4953 }
 0xe71   : > { %v4956_v39 = vpop.eup %4955  ;;  %v3599_v0 = vmul.f32 %v4954_v8, %v3467_v22 }
 0xe72   : > { %v4958_v12 = vpop.eup %4957  ;;  %v3597_v59 = vmul.f32 %v4956_v39, %v3459_v34 }
 0xe73   : > { %v4960_v17 = vpop.eup %4959  ;;  %v3600_v5 = vmul.f32 %v4958_v12, %v3470_v16 }
 0xe74   : > { %v3598_v30 = vmul.f32 %v4960_v17, %v3462_v19 }
 0xe75   : > { %v3608_v51 = vpack.c.bf16 %v3600_v5, %v3599_v0 }
 0xe76   : > { %v3607_v33 = vpack.c.bf16 %v3598_v30, %v3597_v59 }
 0xe78   : > { %4489 = vmatprep.mubr.bf16.mxu1 %v3607_v33 }
 0xe79   : > { %4490 = vmatmul.mubr.bf16.gmra.mrb[88].mxu1 %v3608_v51 }
 0xf0f   : > { %v4479_v42 = vpop.f32.mrb[76].mxu1 }
 0xf10   : > { %v3723_v36 = vadd.f32 %v4479_v42, %v3958_v40  ;;  %v3714_v58 = vpop.f32.mrb[77].mxu1 }
 0xf11   : > { %v3715_v57 = vadd.f32 %v3958_v40, %v3714_v58  ;;  %v4480_v55 = vpop.f32.mrb[78].mxu1 }
 0xf12   : > { %v3779_v43 = vadd.f32 %v3723_v36, %v6522_v1  ;;  %v3726_v56 = vadd.f32 %v4480_v55, %v3958_v40  ;;  %v3717_v49 = vpop.f32.mrb[79].mxu1 }
 0xf13   : > { %v3777_v60 = vadd.f32 %v3715_v57, %v6510_v31  ;;  %v3718_v14 = vadd.f32 %v3958_v40, %v3717_v49 }
 0xf14   : > { %3795 = vst.msk [vmem:[%s6871_s19 + $0x10] sm:$0xff] %vm460_vm0, %v3779_v43  ;;  %v3780_v20 = vadd.f32 %v3726_v56, %v6514_v24 }
 0xf15   : > { %3793 = vst.msk [vmem:[%s6871_s19] sm:$0xff] %vm460_vm0, %v3777_v60  ;;  %v3778_v28 = vadd.f32 %v3718_v14, %v6517_v25 }
 0xf16   : > { %3796 = vst.msk [vmem:[%s6871_s19 + $0x18] sm:$0xff] %vm460_vm0, %v3780_v20 }
 0xf17   : > { %3794 = vst.msk [vmem:[%s6871_s19 + $0x8] sm:$0xff] %vm460_vm0, %v3778_v28  ;;  %v4483_v1 = vpop.f32.mrb[80].mxu1 }
 0xf18   : > { %v3739_v44 = vadd.f32 %v4483_v1, %v3958_v40  ;;  %v3730_v31 = vpop.f32.mrb[81].mxu1 }
 0xf19   : > { %v3731_v48 = vadd.f32 %v3958_v40, %v3730_v31  ;;  %v4484_v22 = vpop.f32.mrb[82].mxu1 }
 0xf1a   : > { %v3783_v35 = vadd.f32 %v3739_v44, %v6541_v10  ;;  %v3742_v34 = vadd.f32 %v4484_v22, %v3958_v40  ;;  %v3733_v24 = vpop.f32.mrb[83].mxu1 }
 0xf1b   : > { %v3781_v3 = vadd.f32 %v3731_v48, %v6532_v29  ;;  %v3734_v53 = vadd.f32 %v3958_v40, %v3733_v24 }
 0xf1c   : > { %3799 = vst.msk [vmem:[%s6871_s19 + $0x30] sm:$0xff] %vm460_vm0, %v3783_v35  ;;  %v3784_v25 = vadd.f32 %v3742_v34, %v6544_v13 }
 0xf1d   : > { %3797 = vst.msk [vmem:[%s6871_s19 + $0x20] sm:$0xff] %vm460_vm0, %v3781_v3  ;;  %v3782_v16 = vadd.f32 %v3734_v53, %v6538_v52 }
 0xf1e   : > { %3800 = vst.msk [vmem:[%s6871_s19 + $0x38] sm:$0xff] %vm460_vm0, %v3784_v25 }
 0xf1f   : > { %3798 = vst.msk [vmem:[%s6871_s19 + $0x28] sm:$0xff] %vm460_vm0, %v3782_v16 }
 0xf20   : > { %v4487_v10 = vpop.f32.mrb[84].mxu1 }
 0xf21   : > { %v3755_v61 = vadd.f32 %v4487_v10, %v3958_v40  ;;  %v3746_v29 = vpop.f32.mrb[85].mxu1 }
 0xf22   : > { %v3747_v63 = vadd.f32 %v3958_v40, %v3746_v29  ;;  %v4488_v19 = vpop.f32.mrb[86].mxu1 }
 0xf23   : > { %v3787_v37 = vadd.f32 %v3755_v61, %v6565_v7  ;;  %v3758_v2 = vadd.f32 %v4488_v19, %v3958_v40  ;;  %v3749_v13 = vpop.f32.mrb[87].mxu1 }
 0xf24   : > { %v3785_v26 = vadd.f32 %v3747_v63, %v6557_v38  ;;  %v3750_v41 = vadd.f32 %v3958_v40, %v3749_v13 }
 0xf25   : > { %3803 = vst.msk [vmem:[%s6871_s19 + $0x50] sm:$0xff] %vm460_vm0, %v3787_v37  ;;  %v3788_v52 = vadd.f32 %v3758_v2, %v6568_v4 }
 0xf26   : > { %3801 = vst.msk [vmem:[%s6871_s19 + $0x40] sm:$0xff] %vm460_vm0, %v3785_v26  ;;  %v3786_v11 = vadd.f32 %v3750_v41, %v6562_v9 }
 0xf27   : > { %3804 = vst.msk [vmem:[%s6871_s19 + $0x58] sm:$0xff] %vm460_vm0, %v3788_v52 }
 0xf28   : > { %3802 = vst.msk [vmem:[%s6871_s19 + $0x48] sm:$0xff] %vm460_vm0, %v3786_v11 }
 0xf4c   : > { %v4491_v7 = vpop.f32.mrb[88].mxu1 }
 0xf4d   : > { %v3771_v46 = vadd.f32 %v4491_v7, %v3958_v40  ;;  %v3762_v38 = vpop.f32.mrb[89].mxu1 }
 0xf4e   : > { %v3763_v45 = vadd.f32 %v3958_v40, %v3762_v38  ;;  %v4492_v27 = vpop.f32.mrb[90].mxu1 }
 0xf4f   : > { %v3791_v21 = vadd.f32 %v3771_v46, %v6586_v54  ;;  %v3774_v50 = vadd.f32 %v4492_v27, %v3958_v40  ;;  %v3765_v4 = vpop.f32.mrb[91].mxu1 }
 0xf50   : > { %v3789_v6 = vadd.f32 %v3763_v45, %v6581_v47  ;;  %v3766_v62 = vadd.f32 %v3958_v40, %v3765_v4 }
 0xf51   : > { %3807 = vst.msk [vmem:[%s6871_s19 + $0x70] sm:$0xff] %vm460_vm0, %v3791_v21  ;;  %v3792_v9 = vadd.f32 %v3774_v50, %v6594_v15 }
 0xf52   : > { %3805 = vst.msk [vmem:[%s6871_s19 + $0x60] sm:$0xff] %vm460_vm0, %v3789_v6  ;;  %v3790_v18 = vadd.f32 %v3766_v62, %v6589_v32 }
 0xf53   : > { %3808 = vst.msk [vmem:[%s6871_s19 + $0x78] sm:$0xff] %vm460_vm0, %v3792_v9 }
 0xf54   : > { %3806 = vst.msk [vmem:[%s6871_s19 + $0x68] sm:$0xff] %vm460_vm0, %v3790_v18 }
 0xf55 PF: > { %s23_s25 = sadd.s32 1, %s4983_s25  }
 0xf56   : > { %p20_p4 = scmp.ge.s32.totalorder %s23_s25, 4  }
 0xf58   :  { %22 = sbr.rel (!%p20_p4) target bundleno = 1 (0x1), region = 102 }

// kernel: tpu_custom_call.1
= control target key start
LH: loop header
LB: loop body
LE: loop exit
PB: predicated region body
PF: predicated region fallthrough
CT: control target
= control target key end

     0   :  { %s5069_s25 = smov 0   ;;  %s6924_s0 = inlined_call_operand.vmem [shape: f32[2,128,32], index: 0, kind: input, shape index: {}]   ;;  %s6925_s1 = inlined_call_operand.vmem [shape: f32[1,32], index: 1, kind: input, shape index: {}]   ;;  %s6926_s2 = inlined_call_operand.vmem [shape: f32[1,32], index: 2, kind: input, shape index: {}]   ;;  %s6927_s3 = inlined_call_operand.vmem [shape: bf16[32,96], index: 3, kind: input, shape index: {}]   ;;  %s6928_s4 = inlined_call_operand.vmem [shape: f32[1,96], index: 4, kind: input, shape index: {}]   ;;  %s6929_s5 = inlined_call_operand.vmem [shape: bf16[32,32], index: 5, kind: input, shape index: {}]   ;;  %s6930_s6 = inlined_call_operand.vmem [shape: f32[1,32], index: 6, kind: input, shape index: {}]   ;;  %s6931_s7 = inlined_call_operand.vmem [shape: f32[1,32], index: 7, kind: input, shape index: {}]   ;;  %s6932_s8 = inlined_call_operand.vmem [shape: f32[1,32], index: 8, kind: input, shape index: {}]   ;;  %s6933_s9 = inlined_call_operand.vmem [shape: bf16[32,128], index: 9, kind: input, shape index: {}]   ;;  %s6934_s10 = inlined_call_operand.vmem [shape: f32[1,128], index: 10, kind: input, shape index: {}]   ;;  %s6935_s11 = inlined_call_operand.vmem [shape: bf16[128,32], index: 11, kind: input, shape index: {}]   ;;  %s6936_s12 = inlined_call_operand.vmem [shape: f32[1,32], index: 12, kind: input, shape index: {}]   ;;  %s6937_s13 = inlined_call_operand.vmem [shape: f32[2,128,32], index: 13, kind: output, shape index: {}]  }
   0x1 LB: > { %s3864_s26 = sadd.s32 4294967295, %s4983_s25   ;;  %p3868_p0 = scmp.ge.s32.totalorder %s4983_s25, 1  ;;  %s4983_s25 = sphi %s5069_s25, %s23_s25  }
   0x2   : > { %p387_p1 = scmp.lt.s32.totalorder %s4983_s25, 3 }
   0x4   : > { %p388_p2 = pnand %p3868_p0, %p387_p1 }
   0x6   : > { %391 = sbr.rel (%p388_p2) target bundleno = 3925 (0xf55), region = 72 }
   0xd   : > { %p431_p3 = scmp.lt.s32.totalorder %s3864_s26, 1  ;;  %vm460_vm0 = vcmask 261120   ;;  %vm901_vm1 = vcmask 64512   ;;  %s4985_s24 = smov 96   ;;  %vm1860_vm3 = vcmask 130112   ;;  %vm2375_vm4 = vcmask 195712  }
   0xe   : > { %s4986_s28 = smov 64   ;;  %s4987_s29 = smov 88   ;;  %vm2890_vm5 = vcmask 261312  }
   0xf   : > { %s7054_s26 = smov (!%p431_p3, %s3864_s26), 1  ;;  %s4988_s14 = smov 120  }
  0x10   : > { %s3969_s27 = sshll.u32 %s7054_s26, 7  ;;  %s4989_s15 = smov 56  }
  0x11   : > { %s5085_s30 = scalar_lea.vmem %s6924_s0, %s3969_s27  ;;  %s4990_s16 = smov 80  }
  0x12   : > { %v442_v0 = vld [vmem:[%s5085_s30] sm:$0xff]  ;;  %v444_v1 = vld [vmem:[%s5085_s30 + $0x10] sm:$0xff]  ;;  %v443_v2 = vld [vmem:[%s5085_s30 + $0x8] sm:$0xff]  ;;  %s4991_s17 = smov 112   ;;  %s4992_s18 = smov 48  }
  0x13   : > { %v461_v3 = vsel %vm460_vm0, %v442_v0, 0.0  ;;  %v467_v4 = vsel %vm460_vm0, %v444_v1, 0.0  ;;  %v445_v5 = vld [vmem:[%s5085_s30 + $0x18] sm:$0xff]  ;;  %v5094_v6 = vld [vmem:[%s5085_s30 + $0x20] sm:$0xff]  ;;  %v464_v7 = vsel %vm460_vm0, %v443_v2, 0.0  ;;  %v447_v9 = vld [vmem:[%s5085_s30 + $0x28] sm:$0xff] }
  0x14   : > { %462 = vadd.xlane.f32.xlu0 %v461_v3  ;;  %468 = vadd.xlane.f32.xlu1 %v467_v4  ;;  %v470_v8 = vsel %vm460_vm0, %v445_v5, 0.0  ;;  %v473_v10 = vsel %vm460_vm0, %v5094_v6, 0.0  ;;  %v476_v11 = vsel %vm460_vm0, %v447_v9, 0.0  ;;  %v5103_v12 = vld [vmem:[%s5085_s30 + $0x30] sm:$0xff]  ;;  %v5106_v13 = vld [vmem:[%s5085_s30 + $0x38] sm:$0xff]  ;;  %v5113_v16 = vld [vmem:[%s5085_s30 + $0x40] sm:$0xff] }
  0x15   : > { %v479_v14 = vsel %vm460_vm0, %v5103_v12, 0.0  ;;  %v482_v15 = vsel %vm460_vm0, %v5106_v13, 0.0  ;;  %v5116_v17 = vld [vmem:[%s5085_s30 + $0x48] sm:$0xff]  ;;  %v485_v18 = vsel %vm460_vm0, %v5113_v16, 0.0  ;;  %v5123_v20 = vld [vmem:[%s5085_s30 + $0x50] sm:$0xff]  ;;  %v5126_v21 = vld [vmem:[%s5085_s30 + $0x58] sm:$0xff] }
  0x16   : > { %v488_v19 = vsel %vm460_vm0, %v5116_v17, 0.0  ;;  %v491_v22 = vsel %vm460_vm0, %v5123_v20, 0.0  ;;  %v494_v23 = vsel %vm460_vm0, %v5126_v21, 0.0  ;;  %v5133_v24 = vld [vmem:[%s5085_s30 + $0x60] sm:$0xff]  ;;  %v5136_v25 = vld [vmem:[%s5085_s30 + $0x68] sm:$0xff]  ;;  %v5143_v28 = vld [vmem:[%s5085_s30 + $0x70] sm:$0xff] }
  0x17   : > { %v497_v26 = vsel %vm460_vm0, %v5133_v24, 0.0  ;;  %v500_v27 = vsel %vm460_vm0, %v5136_v25, 0.0  ;;  %v5146_v29 = vld [vmem:[%s5085_s30 + $0x78] sm:$0xff]  ;;  %v503_v30 = vsel %vm460_vm0, %v5143_v28, 0.0  ;;  %s4993_s19 = smov 72   ;;  %s4994_s20 = smov 104  }
  0x18   : > { %465 = vadd.xlane.f32.xlu0 %v464_v7  ;;  %471 = vadd.xlane.f32.xlu1 %v470_v8  ;;  %v506_v31 = vsel %vm460_vm0, %v5146_v29, 0.0  ;;  %s4995_s21 = smov 40   ;;  %s4996_s22 = smov 8  }
  0x19   : > { %s4997_s23 = smov 16  }
  0x1c   : > { %474 = vadd.xlane.f32.xlu0 %v473_v10  ;;  %477 = vadd.xlane.f32.xlu1 %v476_v11 }
  0x20   : > { %480 = vadd.xlane.f32.xlu0 %v479_v14  ;;  %483 = vadd.xlane.f32.xlu1 %v482_v15 }
  0x24   : > { %486 = vadd.xlane.f32.xlu0 %v485_v18  ;;  %489 = vadd.xlane.f32.xlu1 %v488_v19 }
  0x28   : > { %492 = vadd.xlane.f32.xlu0 %v491_v22  ;;  %495 = vadd.xlane.f32.xlu1 %v494_v23 }
  0x2c   : > { %498 = vadd.xlane.f32.xlu0 %v497_v26  ;;  %501 = vadd.xlane.f32.xlu1 %v500_v27 }
  0x30   : > { %504 = vadd.xlane.f32.xlu0 %v503_v30  ;;  %507 = vadd.xlane.f32.xlu1 %v506_v31 }
  0xa1   : > { %v463_v32 = vpop.xlane.xlu0 %462  ;;  %v469_v33 = vpop.xlane.xlu1 %468 }
  0xa2   : > { %v510_v34 = vmul.f32 0.03125, %v463_v32  ;;  %v512_v35 = vmul.f32 0.03125, %v469_v33 }
  0xa4   : > { %v5152_v36 = vsub.f32 %v442_v0, %v510_v34  ;;  %v5154_v37 = vsub.f32 %v444_v1, %v512_v35 }
  0xa5   : > { %v466_v38 = vpop.xlane.xlu0 %465  ;;  %v472_v39 = vpop.xlane.xlu1 %471 }
  0xa6   : > { %v511_v40 = vmul.f32 0.03125, %v466_v38  ;;  %v513_v41 = vmul.f32 0.03125, %v472_v39  ;;  %v542_v42 = vmul.f32 %v5152_v36, %v5152_v36  ;;  %v544_v43 = vmul.f32 %v5154_v37, %v5154_v37 }
  0xa8   : > { %v5160_v44 = vsub.f32 %v443_v2, %v511_v40  ;;  %v5162_v45 = vsub.f32 %v445_v5, %v513_v41  ;;  %v558_v46 = vsel %vm460_vm0, %v542_v42, 0.0  ;;  %v564_v49 = vsel %vm460_vm0, %v544_v43, 0.0 }
  0xa9   : > { %559 = vadd.xlane.f32.xlu0 %v558_v46  ;;  %v475_v47 = vpop.xlane.xlu0 %474  ;;  %v478_v48 = vpop.xlane.xlu1 %477 }
  0xaa   : > { %v514_v50 = vmul.f32 0.03125, %v475_v47  ;;  %v515_v51 = vmul.f32 0.03125, %v478_v48  ;;  %v543_v52 = vmul.f32 %v5160_v44, %v5160_v44  ;;  %v545_v53 = vmul.f32 %v5162_v45, %v5162_v45 }
  0xac   : > { %v5171_v54 = vsub.f32 %v5094_v6, %v514_v50  ;;  %v5173_v55 = vsub.f32 %v447_v9, %v515_v51  ;;  %v561_v56 = vsel %vm460_vm0, %v543_v52, 0.0  ;;  %v567_v59 = vsel %vm460_vm0, %v545_v53, 0.0  ;;  %v4564_v53 = vld [vmem:[%s6927_s3 + $0x8] sm:$0xff]  }
  0xad   : > { %565 = vadd.xlane.f32.xlu0 %v564_v49  ;;  %562 = vadd.xlane.f32.xlu1 %v561_v56  ;;  %v481_v57 = vpop.xlane.xlu0 %480  ;;  %v484_v58 = vpop.xlane.xlu1 %483 }
  0xae   : > { %v516_v60 = vmul.f32 0.03125, %v481_v57  ;;  %v517_v61 = vmul.f32 0.03125, %v484_v58  ;;  %v546_v62 = vmul.f32 %v5171_v54, %v5171_v54  ;;  %v547_v63 = vmul.f32 %v5173_v55, %v5173_v55 }
  0xb0   : > { %v5182_v0 = vsub.f32 %v5103_v12, %v516_v60  ;;  %v5185_v1 = vsub.f32 %v5106_v13, %v517_v61  ;;  %v570_v2 = vsel %vm460_vm0, %v546_v62, 0.0  ;;  %v573_v5 = vsel %vm460_vm0, %v547_v63, 0.0 }
  0xb1   : > { %568 = vadd.xlane.f32.xlu1 %v567_v59  ;;  %571 = vadd.xlane.f32.xlu0 %v570_v2  ;;  %v487_v3 = vpop.xlane.xlu0 %486  ;;  %v490_v4 = vpop.xlane.xlu1 %489 }
  0xb2   : > { %v518_v6 = vmul.f32 0.03125, %v487_v3  ;;  %v519_v7 = vmul.f32 0.03125, %v490_v4  ;;  %v548_v8 = vmul.f32 %v5182_v0, %v5182_v0  ;;  %v549_v9 = vmul.f32 %v5185_v1, %v5185_v1 }
  0xb4   : > { %v5194_v10 = vsub.f32 %v5113_v16, %v518_v6  ;;  %v5197_v11 = vsub.f32 %v5116_v17, %v519_v7  ;;  %v576_v12 = vsel %vm460_vm0, %v548_v8, 0.0  ;;  %v579_v15 = vsel %vm460_vm0, %v549_v9, 0.0 }
  0xb5   : > { %574 = vadd.xlane.f32.xlu1 %v573_v5  ;;  %577 = vadd.xlane.f32.xlu0 %v576_v12  ;;  %v493_v13 = vpop.xlane.xlu0 %492  ;;  %v496_v14 = vpop.xlane.xlu1 %495 }
  0xb6   : > { %v520_v18 = vmul.f32 0.03125, %v493_v13  ;;  %v521_v19 = vmul.f32 0.03125, %v496_v14  ;;  %v550_v22 = vmul.f32 %v5194_v10, %v5194_v10  ;;  %v551_v16 = vmul.f32 %v5197_v11, %v5197_v11 }
  0xb8   : > { %v5206_v23 = vsub.f32 %v5123_v20, %v520_v18  ;;  %v5209_v17 = vsub.f32 %v5126_v21, %v521_v19  ;;  %v582_v26 = vsel %vm460_vm0, %v550_v22, 0.0  ;;  %v585_v31 = vsel %vm460_vm0, %v551_v16, 0.0 }
  0xb9   : > { %580 = vadd.xlane.f32.xlu1 %v579_v15  ;;  %583 = vadd.xlane.f32.xlu0 %v582_v26  ;;  %v499_v27 = vpop.xlane.xlu0 %498  ;;  %v502_v30 = vpop.xlane.xlu1 %501 }
  0xba   : > { %v522_v32 = vmul.f32 0.03125, %v499_v27  ;;  %v523_v33 = vmul.f32 0.03125, %v502_v30  ;;  %v552_v34 = vmul.f32 %v5206_v23, %v5206_v23  ;;  %v553_v20 = vmul.f32 %v5209_v17, %v5209_v17 }
  0xbc   : > { %v5218_v35 = vsub.f32 %v5133_v24, %v522_v32  ;;  %v5221_v21 = vsub.f32 %v5136_v25, %v523_v33  ;;  %v588_v38 = vsel %vm460_vm0, %v552_v34, 0.0  ;;  %v591_v41 = vsel %vm460_vm0, %v553_v20, 0.0 }
  0xbd   : > { %586 = vadd.xlane.f32.xlu1 %v585_v31  ;;  %589 = vadd.xlane.f32.xlu0 %v588_v38  ;;  %v505_v39 = vpop.xlane.xlu0 %504  ;;  %v508_v40 = vpop.xlane.xlu1 %507  ;;  %v5253_v31 = vld [vmem:[%s6925_s1] ss:$0 sm:$0xff] }
  0xbe   : > { %v524_v42 = vmul.f32 0.03125, %v505_v39  ;;  %v525_v43 = vmul.f32 0.03125, %v508_v40  ;;  %v554_v46 = vmul.f32 %v5218_v35, %v5218_v35  ;;  %v555_v24 = vmul.f32 %v5221_v21, %v5221_v21 }
  0xc0   : > { %v5230_v47 = vsub.f32 %v5143_v28, %v524_v42  ;;  %v5233_v25 = vsub.f32 %v5146_v29, %v525_v43  ;;  %v594_v48 = vsel %vm460_vm0, %v554_v46, 0.0  ;;  %v597_v49 = vsel %vm460_vm0, %v555_v24, 0.0  ;;  %v4563_v29 = vld [vmem:[%s6927_s3] sm:$0xff]  }
  0xc1   : > { %592 = vadd.xlane.f32.xlu1 %v591_v41  ;;  %595 = vadd.xlane.f32.xlu0 %v594_v48  ;;  %v5260_v43 = vld [vmem:[%s6926_s2] ss:$0 sm:$0xff] }
  0xc2   : > { %v556_v50 = vmul.f32 %v5230_v47, %v5230_v47  ;;  %v557_v51 = vmul.f32 %v5233_v25, %v5233_v25  ;;  %4145 = vmatprep.subr.bf16.mxu0 %v4563_v29 }
  0xc3   : > { %4146 = vmatpush3.bf16.msra.mxu0 %v4563_v29 }
  0xc4   : > { %v600_v52 = vsel %vm460_vm0, %v556_v50, 0.0  ;;  %v603_v28 = vsel %vm460_vm0, %v557_v51, 0.0  ;;  %4147 = vmatprep.subr.bf16.mxu0 %v4564_v53 }
  0xc5   : > { %598 = vadd.xlane.f32.xlu1 %v597_v49  ;;  %601 = vadd.xlane.f32.xlu0 %v600_v52 }
  0xc7   : > { %4148 = vmatpush3.bf16.msra.mxu0 %v4564_v53 }
  0xc9   : > { %604 = vadd.xlane.f32.xlu1 %v603_v28 }
 0x136   : > { %v560_v56 = vpop.xlane.xlu0 %559 }
 0x137   : > { %v606_v57 = vmul.f32 0.03125, %v560_v56 }
 0x139   : > { %v622_v58 = vadd.f32 1e-05, %v606_v57 }
 0x13a   : > { %v563_v59 = vpop.xlane.xlu1 %562  ;;  %v566_v60 = vpop.xlane.xlu0 %565 }
 0x13b   : > { %4577 = vrsqrt.f32 %v622_v58  ;;  %v607_v61 = vmul.f32 0.03125, %v563_v59  ;;  %v608_v62 = vmul.f32 0.03125, %v566_v60 }
 0x13d   : > { %v623_v63 = vadd.f32 1e-05, %v607_v61  ;;  %v624_v2 = vadd.f32 1e-05, %v608_v62 }
 0x13e   : > { %v569_v3 = vpop.xlane.xlu1 %568  ;;  %v572_v4 = vpop.xlane.xlu0 %571 }
 0x13f   : > { %4579 = vrsqrt.f32 %v623_v63  ;;  %v609_v5 = vmul.f32 0.03125, %v569_v3  ;;  %v610_v6 = vmul.f32 0.03125, %v572_v4 }
 0x140   : > { %4581 = vrsqrt.f32 %v624_v2 }
 0x141   : > { %v625_v7 = vadd.f32 1e-05, %v609_v5  ;;  %v626_v8 = vadd.f32 1e-05, %v610_v6 }
 0x142   : > { %v575_v9 = vpop.xlane.xlu1 %574  ;;  %v578_v12 = vpop.xlane.xlu0 %577 }
 0x143   : > { %4583 = vrsqrt.f32 %v625_v7  ;;  %v611_v13 = vmul.f32 0.03125, %v575_v9  ;;  %v612_v14 = vmul.f32 0.03125, %v578_v12 }
 0x144   : > { %4585 = vrsqrt.f32 %v626_v8 }
 0x145   : > { %v4578_v15 = vpop.eup %4577  ;;  %v627_v18 = vadd.f32 1e-05, %v611_v13  ;;  %v628_v19 = vadd.f32 1e-05, %v612_v14 }
 0x146   : > { %v581_v22 = vpop.xlane.xlu1 %580  ;;  %v584_v16 = vpop.xlane.xlu0 %583  ;;  %v654_v26 = vmul.f32 %v4578_v15, %v5152_v36 }
 0x147   : > { %4587 = vrsqrt.f32 %v627_v18  ;;  %v613_v27 = vmul.f32 0.03125, %v581_v22  ;;  %v614_v30 = vmul.f32 0.03125, %v584_v16 }
 0x148   : > { %4589 = vrsqrt.f32 %v628_v19  ;;  %v676_v41 = vmul.f32 %v5253_v31, %v654_v26 }
 0x149   : > { %v4580_v32 = vpop.eup %4579  ;;  %v629_v33 = vadd.f32 1e-05, %v613_v27  ;;  %v630_v34 = vadd.f32 1e-05, %v614_v30 }
 0x14a   : > { %v4582_v20 = vpop.eup %4581  ;;  %v587_v38 = vpop.xlane.xlu1 %586  ;;  %v655_v40 = vmul.f32 %v4580_v32, %v5160_v44  ;;  %v698_v28 = vadd.f32 %v5260_v43, %v676_v41 }
 0x14b   : > { %v590_v39 = vpop.xlane.xlu0 %589  ;;  %4591 = vrsqrt.f32 %v629_v33  ;;  %v615_v36 = vmul.f32 0.03125, %v587_v38  ;;  %v656_v46 = vmul.f32 %v4582_v20, %v5154_v37 }
 0x14c   : > { %v616_v42 = vmul.f32 0.03125, %v590_v39  ;;  %4593 = vrsqrt.f32 %v630_v34  ;;  %v677_v24 = vmul.f32 %v5253_v31, %v655_v40 }
 0x14d   : > { %v4584_v48 = vpop.eup %4583  ;;  %v631_v49 = vadd.f32 1e-05, %v615_v36  ;;  %v678_v56 = vmul.f32 %v5253_v31, %v656_v46 }
 0x14e   : > { %v632_v50 = vadd.f32 1e-05, %v616_v42  ;;  %v4586_v51 = vpop.eup %4585  ;;  %v593_v44 = vpop.xlane.xlu1 %592  ;;  %v699_v29 = vadd.f32 %v5260_v43, %v677_v24  ;;  %v657_v53 = vmul.f32 %v4584_v48, %v5162_v45 }
 0x14f   : > { %v596_v52 = vpop.xlane.xlu0 %595  ;;  %4595 = vrsqrt.f32 %v631_v49  ;;  %v617_v57 = vmul.f32 0.03125, %v593_v44  ;;  %v658_v60 = vmul.f32 %v4586_v51, %v5171_v54  ;;  %v700_v45 = vadd.f32 %v5260_v43, %v678_v56 }
 0x150   : > { %v618_v37 = vmul.f32 0.03125, %v596_v52  ;;  %4597 = vrsqrt.f32 %v632_v50  ;;  %v714_v58 = vpack.c.bf16 %v699_v29, %v698_v28  ;;  %v679_v59 = vmul.f32 %v5253_v31, %v657_v53 }
 0x151   : > { %v4588_v61 = vpop.eup %4587  ;;  %v633_v62 = vadd.f32 1e-05, %v617_v57  ;;  %v680_v7 = vmul.f32 %v5253_v31, %v658_v60 }
 0x152   : > { %v634_v63 = vadd.f32 1e-05, %v618_v37  ;;  %v4590_v2 = vpop.eup %4589  ;;  %v599_v3 = vpop.xlane.xlu1 %598  ;;  %4149 = vmatprep.mubr.msk.bf16.mxu0 %vm460_vm0, %v714_v58  ;;  %v701_v5 = vadd.f32 %v5260_v43, %v679_v59  ;;  %v659_v6 = vmul.f32 %v4588_v61, %v5173_v55 }
 0x153   : > { %v602_v4 = vpop.xlane.xlu0 %601  ;;  %4599 = vrsqrt.f32 %v633_v62  ;;  %v619_v8 = vmul.f32 0.03125, %v599_v3  ;;  %v660_v54 = vmul.f32 %v4590_v2, %v5182_v0  ;;  %v702_v55 = vadd.f32 %v5260_v43, %v680_v7 }
 0x154   : > { %v620_v9 = vmul.f32 0.03125, %v602_v4  ;;  %4601 = vrsqrt.f32 %v634_v63  ;;  %v715_v12 = vpack.c.bf16 %v701_v5, %v700_v45  ;;  %v681_v13 = vmul.f32 %v5253_v31, %v659_v6  ;;  %v3875_v45 = vld [vmem:[%s6928_s4] ss:$0 sm:$0xff] }
 0x155   : > { %v4592_v14 = vpop.eup %4591  ;;  %v635_v15 = vadd.f32 1e-05, %v619_v8  ;;  %v682_v27 = vmul.f32 %v5253_v31, %v660_v54 }
 0x156   : > { %v636_v18 = vadd.f32 1e-05, %v620_v9  ;;  %v4594_v19 = vpop.eup %4593  ;;  %v605_v22 = vpop.xlane.xlu1 %604  ;;  %4150 = vmatmul.mubr.msk.bf16.vlgmr.msra.gmra.mrb[0].mxu0 %vm460_vm0, %v715_v12  ;;  %v703_v16 = vadd.f32 %v5260_v43, %v681_v13  ;;  %v661_v26 = vmul.f32 %v4592_v14, %v5185_v1 }
 0x157   : > { %4603 = vrsqrt.f32 %v635_v15  ;;  %v621_v0 = vmul.f32 0.03125, %v605_v22  ;;  %v662_v30 = vmul.f32 %v4594_v19, %v5194_v10  ;;  %v704_v39 = vadd.f32 %v5260_v43, %v682_v27 }
 0x158   : > { %4605 = vrsqrt.f32 %v636_v18  ;;  %v716_v32 = vpack.c.bf16 %v703_v16, %v702_v55  ;;  %v683_v33 = vmul.f32 %v5253_v31, %v661_v26 }
 0x159   : > { %v4596_v34 = vpop.eup %4595  ;;  %v637_v20 = vadd.f32 1e-05, %v621_v0  ;;  %v684_v41 = vmul.f32 %v5253_v31, %v662_v30 }
 0x15a   : > { %v4598_v38 = vpop.eup %4597  ;;  %4153 = vmatprep.mubr.msk.bf16.mxu0 %vm460_vm0, %v716_v32  ;;  %v705_v40 = vadd.f32 %v5260_v43, %v683_v33  ;;  %v663_v1 = vmul.f32 %v4596_v34, %v5197_v11 }
 0x15b   : > { %4607 = vrsqrt.f32 %v637_v20  ;;  %v664_v10 = vmul.f32 %v4598_v38, %v5206_v23  ;;  %v706_v48 = vadd.f32 %v5260_v43, %v684_v41 }
 0x15c   : > { %v717_v36 = vpack.c.bf16 %v705_v40, %v704_v39  ;;  %v685_v42 = vmul.f32 %v5253_v31, %v663_v1 }
 0x15d   : > { %v4600_v46 = vpop.eup %4599  ;;  %v686_v11 = vmul.f32 %v5253_v31, %v664_v10 }
 0x15e   : > { %v4602_v24 = vpop.eup %4601  ;;  %4154 = vmatmul.mubr.msk.bf16.gmra.mrb[4].mxu0 %vm460_vm0, %v717_v36  ;;  %v707_v49 = vadd.f32 %v5260_v43, %v685_v42  ;;  %v665_v50 = vmul.f32 %v4600_v46, %v5209_v17 }
 0x15f   : > { %v666_v51 = vmul.f32 %v4602_v24, %v5218_v35  ;;  %v708_v29 = vadd.f32 %v5260_v43, %v686_v11 }
 0x160   : > { %v718_v44 = vpack.c.bf16 %v707_v49, %v706_v48  ;;  %v687_v23 = vmul.f32 %v5253_v31, %v665_v50 }
 0x161   : > { %v4604_v52 = vpop.eup %4603  ;;  %v688_v57 = vmul.f32 %v5253_v31, %v666_v51 }
 0x162   : > { %v4606_v28 = vpop.eup %4605  ;;  %4157 = vmatprep.mubr.msk.bf16.mxu0 %vm460_vm0, %v718_v44  ;;  %v709_v53 = vadd.f32 %v5260_v43, %v687_v23  ;;  %v667_v56 = vmul.f32 %v4604_v52, %v5221_v21 }
 0x163   : > { %v668_v17 = vmul.f32 %v4606_v28, %v5230_v47  ;;  %v710_v59 = vadd.f32 %v5260_v43, %v688_v57 }
 0x164   : > { %v719_v37 = vpack.c.bf16 %v709_v53, %v708_v29  ;;  %v689_v35 = vmul.f32 %v5253_v31, %v667_v56 }
 0x165   : > { %v4608_v58 = vpop.eup %4607  ;;  %v690_v62 = vmul.f32 %v5253_v31, %v668_v17 }
 0x166   : > { %4158 = vmatmul.mubr.msk.bf16.gmra.mrb[8].mxu0 %vm460_vm0, %v719_v37  ;;  %v711_v60 = vadd.f32 %v5260_v43, %v689_v35  ;;  %v669_v61 = vmul.f32 %v4608_v58, %v5233_v25 }
 0x167   : > { %v712_v47 = vadd.f32 %v5260_v43, %v690_v62 }
 0x168   : > { %v720_v63 = vpack.c.bf16 %v711_v60, %v710_v59  ;;  %v691_v21 = vmul.f32 %v5253_v31, %v669_v61 }
 0x16a   : > { %4161 = vmatprep.mubr.msk.bf16.mxu0 %vm460_vm0, %v720_v63  ;;  %v713_v2 = vadd.f32 %v5260_v43, %v691_v21 }
 0x16c   : > { %v721_v3 = vpack.c.bf16 %v713_v2, %v712_v47 }
 0x16e   : > { %4162 = vmatmul.mubr.msk.bf16.gmra.mrb[12].mxu0 %vm460_vm0, %v721_v3 }
 0x229   : > { %v4151_v4 = vpop.f32.mrb[0].mxu0 }
 0x22a   : > { %v803_v25 = vpop.f32.mrb[1].mxu0  ;;  %v812_v6 = vadd.f32 %v4151_v4, %v3875_v45 }
 0x22b   : > { %v4152_v5 = vpop.f32.mrb[2].mxu0  ;;  %v804_v31 = vadd.f32 %v3875_v45, %v803_v25 }
 0x22c   : > { %v815_v7 = vadd.f32 %v4152_v5, %v3875_v45  ;;  %v806_v8 = vpop.f32.mrb[3].mxu0 }
 0x22d   : > { %v807_v9 = vadd.f32 %v3875_v45, %v806_v8 }
 0x22e   : > { %v5318_v54 = vpack.c.bf16 %v815_v7, %v812_v6  ;;  %v874_v6 = vlaneseq }
 0x22f   : > { %v5320_v12 = vpack.c.bf16 %v807_v9, %v804_v31 }
 0x230   : > { %887 = vrot.lane.b32.xlu1 %v5318_v54, %s4985_s24  ;;  %v5406_v7 = vand.u32 127, %v874_v6 }
 0x231   : > { %885 = vrot.lane.b32.xlu0 %v5320_v12, %s4985_s24  ;;  %v4155_v43 = vpop.f32.mrb[4].mxu0  ;;  %4181 = vmatprep.mubr.msk.bf16.mxu1 %vm901_vm1, %v5320_v12 }
 0x232   : > { %v819_v13 = vpop.f32.mrb[5].mxu0  ;;  %v828_v15 = vadd.f32 %v4155_v43, %v3875_v45  ;;  %vm876_vm2 = vcmp.lt.s32.totalorder %v5406_v7, 8 }
 0x233   : > { %v4156_v14 = vpop.f32.mrb[6].mxu0  ;;  %v820_v22 = vadd.f32 %v3875_v45, %v819_v13 }
 0x234   : > { %v831_v18 = vadd.f32 %v4156_v14, %v3875_v45  ;;  %v822_v19 = vpop.f32.mrb[7].mxu0 }
 0x235   : > { %v823_v55 = vadd.f32 %v3875_v45, %v822_v19 }
 0x236   : > { %v5328_v16 = vpack.c.bf16 %v831_v18, %v828_v15 }
 0x237   : > { %v5330_v26 = vpack.c.bf16 %v823_v55, %v820_v22 }
 0x239   : > { %889 = vrot.lane.b32.xlu1 %v5330_v26, %s4985_s24  ;;  %v4159_v27 = vpop.f32.mrb[8].mxu0 }
 0x23a   : > { %v835_v0 = vpop.f32.mrb[9].mxu0  ;;  %v844_v32 = vadd.f32 %v4159_v27, %v3875_v45 }
 0x23b   : > { %v4160_v30 = vpop.f32.mrb[10].mxu0  ;;  %v836_v20 = vadd.f32 %v3875_v45, %v835_v0 }
 0x23c   : > { %v847_v33 = vadd.f32 %v4160_v30, %v3875_v45  ;;  %v838_v34 = vpop.f32.mrb[11].mxu0 }
 0x23d   : > { %v839_v38 = vadd.f32 %v3875_v45, %v838_v34  ;;  %891 = vrot.lane.b32.xlu1 %v5328_v16, %s4985_s24 }
 0x23e   : > { %v5336_v39 = vpack.c.bf16 %v847_v33, %v844_v32 }
 0x23f   : > { %v5338_v40 = vpack.c.bf16 %v839_v38, %v836_v20 }
 0x241   : > { %895 = vrot.lane.b32.xlu1 %v5336_v39, %s4985_s24  ;;  %893 = vrot.lane.b32.xlu0 %v5338_v40, %s4985_s24  ;;  %v4163_v1 = vpop.f32.mrb[12].mxu0 }
 0x242   : > { %v851_v41 = vpop.f32.mrb[13].mxu0  ;;  %v860_v36 = vadd.f32 %v4163_v1, %v3875_v45 }
 0x243   : > { %v4164_v10 = vpop.f32.mrb[14].mxu0  ;;  %v852_v24 = vadd.f32 %v3875_v45, %v851_v41 }
 0x244   : > { %v863_v42 = vadd.f32 %v4164_v10, %v3875_v45  ;;  %v854_v46 = vpop.f32.mrb[15].mxu0 }
 0x245   : > { %v855_v48 = vadd.f32 %v3875_v45, %v854_v46 }
 0x246   : > { %v5344_v49 = vpack.c.bf16 %v863_v42, %v860_v36 }
 0x247   : > { %v5346_v50 = vpack.c.bf16 %v855_v48, %v852_v24 }
 0x248   : > { %899 = vrot.lane.b32.xlu1 %v5344_v49, %s4985_s24 }
 0x249   : > { %897 = vrot.lane.b32.xlu0 %v5346_v50, %s4985_s24 }
 0x24c   : > { %1187 = vrot.lane.b32.xlu1 %v5318_v54, %s4986_s28 }
 0x24d   : > { %1185 = vrot.lane.b32.xlu0 %v5320_v12, %s4986_s28 }
 0x250   : > { %1191 = vrot.lane.b32.xlu1 %v5328_v16, %s4986_s28 }
 0x251   : > { %1189 = vrot.lane.b32.xlu0 %v5330_v26, %s4986_s28 }
 0x254   : > { %1193 = vrot.lane.b32.xlu1 %v5338_v40, %s4986_s28 }
 0x255   : > { %1370 = vrot.lane.b32.xlu0 %v5320_v12, %s4987_s29 }
 0x258   : > { %1195 = vrot.lane.b32.xlu1 %v5336_v39, %s4986_s28 }
 0x259   : > { %1372 = vrot.lane.b32.xlu0 %v5318_v54, %s4987_s29 }
 0x25c   : > { %1199 = vrot.lane.b32.xlu1 %v5344_v49, %s4986_s28 }
 0x25d   : > { %1376 = vrot.lane.b32.xlu0 %v5328_v16, %s4987_s29 }
 0x260   : > { %1374 = vrot.lane.b32.xlu1 %v5330_v26, %s4987_s29 }
 0x261   : > { %1197 = vrot.lane.b32.xlu0 %v5346_v50, %s4986_s28 }
 0x2a2   : > { %v888_v44 = vpop.permute.xlu1 %887 }
 0x2a3   : > { %v886_v11 = vpop.permute.xlu0 %885  ;;  %v930_v52 = vsel %vm901_vm1, %v888_v44, 0 }
 0x2a4   : > { %4509 = vmatprep.subr.msk.bf16.mxu1 %vm901_vm1, %v886_v11  ;;  %v927_v51 = vsel %vm901_vm1, %v886_v11, 0 }
 0x2a5   : > { %4166 = vmatpush3.bf16.xpose.msra.mxu1 %v927_v51 }
 0x2a6   : > { %4510 = vmatprep.subr.msk.bf16.mxu1 %vm901_vm1, %v888_v44 }
 0x2ab   : > { %v890_v23 = vpop.permute.xlu1 %889 }
 0x2ac   : > { %v933_v29 = vsel %vm901_vm1, %v890_v23, 0 }
 0x2ad   : > { %4168 = vmatpush3.bf16.xpose.msra.mxu1 %v930_v52 }
 0x2ae   : > { %4511 = vmatprep.subr.msk.bf16.mxu1 %vm901_vm1, %v890_v23 }
 0x2af   : > { %v892_v28 = vpop.permute.xlu1 %891 }
 0x2b0   : > { %v936_v37 = vsel %vm901_vm1, %v892_v28, 0 }
 0x2b3   : > { %v896_v53 = vpop.permute.xlu1 %895  ;;  %v894_v56 = vpop.permute.xlu0 %893 }
 0x2b4   : > { %v939_v60 = vsel %vm901_vm1, %v894_v56, 0  ;;  %v942_v47 = vsel %vm901_vm1, %v896_v53, 0 }
 0x2b5   : > { %4170 = vmatpush3.bf16.xpose.msra.mxu1 %v933_v29 }
 0x2b6   : > { %4512 = vmatprep.subr.msk.bf16.mxu1 %vm901_vm1, %v892_v28 }
 0x2ba   : > { %v900_v57 = vpop.permute.xlu1 %899 }
 0x2bb   : > { %v898_v17 = vpop.permute.xlu0 %897  ;;  %v948_v5 = vsel %vm901_vm1, %v900_v57, 0 }
 0x2bc   : > { %v945_v4 = vsel %vm901_vm1, %v898_v17, 0 }
 0x2bd   : > { %4172 = vmatpush3.bf16.xpose.msra.mxu1 %v936_v37 }
 0x2be   : > { %4513 = vmatprep.subr.msk.bf16.mxu1 %vm901_vm1, %v894_v56  ;;  %v1188_v35 = vpop.permute.xlu1 %1187 }
 0x2bf   : > { %v1186_v58 = vpop.permute.xlu0 %1185 }
 0x2c0   : > { %4197 = vmatprep.subr.bf16.mxu0 %v1186_v58 }
 0x2c1   : > { %4198 = vmatpush3.bf16.msra.mxu0 %v1186_v58 }
 0x2c2   : > { %4199 = vmatprep.subr.bf16.mxu0 %v1188_v35  ;;  %v1192_v61 = vpop.permute.xlu1 %1191 }
 0x2c3   : > { %v1190_v59 = vpop.permute.xlu0 %1189 }
 0x2c5   : > { %4174 = vmatpush3.bf16.xpose.msra.mxu1 %v939_v60  ;;  %4200 = vmatpush3.bf16.msra.mxu0 %v1188_v35 }
 0x2c6   : > { %4514 = vmatprep.subr.msk.bf16.mxu1 %vm901_vm1, %v896_v53  ;;  %4201 = vmatprep.subr.bf16.mxu0 %v1190_v59  ;;  %v1194_v63 = vpop.permute.xlu1 %1193 }
 0x2c7   : > { %v5379_v62 = vpop.permute.xlu0 %1370 }
 0x2c9   : > { %4202 = vmatpush3.bf16.msra.mxu0 %v1190_v59 }
 0x2ca   : > { %4203 = vmatprep.subr.bf16.mxu0 %v1192_v61  ;;  %v1196_v3 = vpop.permute.xlu1 %1195 }
 0x2cb   : > { %v5381_v21 = vpop.permute.xlu0 %1372 }
 0x2cd   : > { %4176 = vmatpush3.bf16.xpose.msra.mxu1 %v942_v47  ;;  %4204 = vmatpush3.bf16.msra.mxu0 %v1192_v61 }
 0x2ce   : > { %4515 = vmatprep.subr.msk.bf16.mxu1 %vm901_vm1, %v898_v17  ;;  %4205 = vmatprep.subr.bf16.mxu0 %v1194_v63  ;;  %v1200_v25 = vpop.permute.xlu1 %1199 }
 0x2cf   : > { %v5385_v2 = vpop.permute.xlu0 %1376 }
 0x2d1   : > { %4206 = vmatpush3.bf16.msra.mxu0 %v1194_v63 }
 0x2d2   : > { %4207 = vmatprep.subr.bf16.mxu0 %v1196_v3  ;;  %v5517_v28 = vpop.permute.xlu1 %1374 }
 0x2d3   : > { %v1198_v45 = vpop.permute.xlu0 %1197 }
 0x2d5   : > { %4178 = vmatpush3.bf16.xpose.msra.mxu1 %v945_v4  ;;  %4208 = vmatpush3.bf16.msra.mxu0 %v1196_v3 }
 0x2d6   : > { %4516 = vmatprep.subr.msk.bf16.mxu1 %vm901_vm1, %v900_v57  ;;  %4209 = vmatprep.subr.bf16.mxu0 %v1198_v45 }
 0x2d9   : > { %4210 = vmatpush3.bf16.msra.mxu0 %v1198_v45 }
 0x2da   : > { %4211 = vmatprep.subr.bf16.mxu0 %v1200_v25 }
 0x2dd   : > { %4180 = vmatpush3.bf16.xpose.msra.mxu1 %v948_v5  ;;  %4212 = vmatpush3.bf16.msra.mxu0 %v1200_v25 }
 0x2de   : > { %4517 = vmatprep.subr.msk.bf16.mxu0 %vm901_vm1, %v5379_v62 }
 0x2e4   : > { %4182 = vmatmul.mubr.msk.bf16.vlgmr.msra.gmra.mrb[0].mxu1 %vm901_vm1, %v5318_v54 }
 0x2e5   : > { %4185 = vmatprep.mubr.msk.bf16.mxu1 %vm901_vm1, %v5330_v26 }
 0x2ec   : > { %4186 = vmatmul.mubr.msk.bf16.gmra.mrb[4].mxu1 %vm901_vm1, %v5328_v16 }
 0x2ed   : > { %4189 = vmatprep.mubr.msk.bf16.mxu1 %vm901_vm1, %v5338_v40 }
 0x2f4   : > { %4190 = vmatmul.mubr.msk.bf16.gmra.mrb[8].mxu1 %vm901_vm1, %v5336_v39 }
 0x2f5   : > { %4193 = vmatprep.mubr.msk.bf16.mxu1 %vm901_vm1, %v5346_v50 }
 0x2fc   : > { %4194 = vmatmul.mubr.msk.bf16.gmra.mrb[12].mxu1 %vm901_vm1, %v5344_v49 }
 0x3b7   : > { %v4183_v8 = vpop.f32.mrb[0].mxu1 }
 0x3b8   : > { %v984_v31 = vpop.f32.mrb[1].mxu1  ;;  %v5411_v9 = vsel %vm876_vm2, %v4183_v8, -1e+30 }
 0x3b9   : > { %1069 = vmax.xlane.f32.xlu0 %v5411_v9  ;;  %v4184_v43 = vpop.f32.mrb[2].mxu1  ;;  %v5421_v15 = vsel %vm876_vm2, %v984_v31, -1e+30 }
 0x3ba   : > { %v987_v13 = vpop.f32.mrb[3].mxu1  ;;  %v5426_v22 = vsel %vm876_vm2, %v4184_v43, -1e+30 }
 0x3bb   : > { %v5416_v14 = vsel %vm876_vm2, %v987_v13, -1e+30 }
 0x3bc   : > { %1067 = vmax.xlane.f32.xlu1 %v5416_v14 }
 0x3bd   : > { %1065 = vmax.xlane.f32.xlu0 %v5421_v15 }
 0x3bf   : > { %v4187_v18 = vpop.f32.mrb[4].mxu1 }
 0x3c0   : > { %v1000_v19 = vpop.f32.mrb[5].mxu1  ;;  %v5430_v55 = vsel %vm876_vm2, %v4187_v18, -1e+30 }
 0x3c1   : > { %1071 = vmax.xlane.f32.xlu0 %v5426_v22  ;;  %1077 = vmax.xlane.f32.xlu1 %v5430_v55  ;;  %v4188_v27 = vpop.f32.mrb[6].mxu1  ;;  %v5440_v32 = vsel %vm876_vm2, %v1000_v19, -1e+30 }
 0x3c2   : > { %v1003_v0 = vpop.f32.mrb[7].mxu1  ;;  %v5446_v20 = vsel %vm876_vm2, %v4188_v27, -1e+30 }
 0x3c3   : > { %v5436_v30 = vsel %vm876_vm2, %v1003_v0, -1e+30 }
 0x3c5   : > { %1073 = vmax.xlane.f32.xlu1 %v5440_v32  ;;  %1075 = vmax.xlane.f32.xlu0 %v5436_v30 }
 0x3c7   : > { %v4191_v33 = vpop.f32.mrb[8].mxu1 }
 0x3c8   : > { %v1016_v34 = vpop.f32.mrb[9].mxu1  ;;  %v5450_v38 = vsel %vm876_vm2, %v4191_v33, -1e+30 }
 0x3c9   : > { %1079 = vmax.xlane.f32.xlu1 %v5446_v20  ;;  %1085 = vmax.xlane.f32.xlu0 %v5450_v38  ;;  %v4192_v1 = vpop.f32.mrb[10].mxu1  ;;  %v5456_v10 = vsel %vm876_vm2, %v1016_v34, -1e+30 }
 0x3ca   : > { %v1019_v41 = vpop.f32.mrb[11].mxu1  ;;  %v5461_v46 = vsel %vm876_vm2, %v4192_v1, -1e+30 }
 0x3cb   : > { %v5471_v51 = vsel %vm876_vm2, %v1019_v41, -1e+30  ;;  %v1411_v41 = vsel %vm901_vm1, %v5379_v62, 0 }
 0x3cd   : > { %1081 = vmax.xlane.f32.xlu1 %v5456_v10 }
 0x3cf   : > { %v4195_v36 = vpop.f32.mrb[12].mxu1 }
 0x3d0   : > { %v1032_v42 = vpop.f32.mrb[13].mxu1  ;;  %v5476_v44 = vsel %vm876_vm2, %v4195_v36, -1e+30 }
 0x3d1   : > { %1087 = vmax.xlane.f32.xlu1 %v5461_v46  ;;  %v4196_v24 = vpop.f32.mrb[14].mxu1  ;;  %v5466_v48 = vsel %vm876_vm2, %v1032_v42, -1e+30 }
 0x3d2   : > { %1089 = vmax.xlane.f32.xlu0 %v5466_v48  ;;  %v1035_v11 = vpop.f32.mrb[15].mxu1  ;;  %v5481_v23 = vsel %vm876_vm2, %v4196_v24, -1e+30 }
 0x3d3   : > { %v5496_v52 = vsel %vm876_vm2, %v1035_v11, -1e+30 }
 0x3d5   : > { %1083 = vmax.xlane.f32.xlu1 %v5471_v51 }
 0x3d9   : > { %1093 = vmax.xlane.f32.xlu1 %v5476_v44 }
 0x3dd   : > { %1095 = vmax.xlane.f32.xlu1 %v5481_v23 }
 0x3e8   : > { %1380 = vrot.lane.b32.xlu0 %v5336_v39, %s4987_s29 }
 0x3ee   : > { %1378 = vrot.lane.b32.xlu1 %v5338_v40, %s4987_s29 }
 0x3f2   : > { %1356 = vrot.lane.b32.xlu1 %v5318_v54, %s4988_s14 }
 0x3f6   : > { %1360 = vrot.lane.b32.xlu1 %v5328_v16, %s4988_s14 }
 0x3fa   : > { %1364 = vrot.lane.b32.xlu1 %v5336_v39, %s4988_s14 }
 0x3fe   : > { %1368 = vrot.lane.b32.xlu1 %v5344_v49, %s4988_s14 }
 0x402   : > { %1669 = vrot.lane.b32.xlu1 %v5318_v54, %s4989_s15 }
 0x406   : > { %1673 = vrot.lane.b32.xlu1 %v5328_v16, %s4989_s15 }
 0x407   : > { %1091 = vmax.xlane.f32.xlu0 %v5496_v52 }
 0x40a   : > { %1675 = vrot.lane.b32.xlu1 %v5338_v40, %s4989_s15 }
 0x40e   : > { %1677 = vrot.lane.b32.xlu1 %v5336_v39, %s4989_s15 }
 0x412   : > { %1681 = vrot.lane.b32.xlu1 %v5344_v49, %s4989_s15 }
 0x416   : > { %1889 = vrot.lane.b32.xlu1 %v5330_v26, %s4990_s16 }
 0x41d   : > { %1382 = vrot.lane.b32.xlu0 %v5346_v50, %s4987_s29 }
 0x421   : > { %1384 = vrot.lane.b32.xlu0 %v5344_v49, %s4987_s29 }
 0x425   : > { %1354 = vrot.lane.b32.xlu0 %v5320_v12, %s4988_s14 }
 0x429   : > { %1358 = vrot.lane.b32.xlu0 %v5330_v26, %s4988_s14 }
 0x42d   : > { %1362 = vrot.lane.b32.xlu0 %v5338_v40, %s4988_s14 }
 0x431   : > { %1366 = vrot.lane.b32.xlu0 %v5346_v50, %s4988_s14 }
 0x435   : > { %1667 = vrot.lane.b32.xlu0 %v5320_v12, %s4989_s15 }
 0x439   : > { %1671 = vrot.lane.b32.xlu0 %v5330_v26, %s4989_s15 }
 0x43d   : > { %1679 = vrot.lane.b32.xlu0 %v5346_v50, %s4989_s15  ;;  %s4998_s15 = smov 24  }
 0x441   : > { %1885 = vrot.lane.b32.xlu0 %v5320_v12, %s4990_s16 }
 0x445   : > { %1887 = vrot.lane.b32.xlu0 %v5318_v54, %s4990_s16 }
 0x446   : > { %v1070_v29 = vpop.xlane.xlu0 %1069 }
 0x447   : > { %v1099_v17 = vsub.f32 %v5411_v9, %v1070_v29 }
 0x449   : > { %v1068_v53 = vpop.xlane.xlu1 %1067  ;;  %1891 = vrot.lane.b32.xlu0 %v5328_v16, %s4990_s16  ;;  %v1117_v61 = vmul.f32 1.442695, %v1099_v17 }
 0x44a   : > { %v1098_v56 = vsub.f32 %v5416_v14, %v1068_v53  ;;  %v1066_v57 = vpop.xlane.xlu0 %1065 }
 0x44b   : > { %v1097_v37 = vsub.f32 %v5421_v15, %v1066_v57 }
 0x44c   : > { %v1115_v35 = vmul.f32 1.442695, %v1098_v56 }
 0x44d   : > { %v1113_v58 = vmul.f32 1.442695, %v1097_v37 }
 0x44e   : > { %4609 = vpow2.f32 %v1115_v35  ;;  %v1078_v59 = vpop.xlane.xlu1 %1077  ;;  %v1072_v60 = vpop.xlane.xlu0 %1071  ;;  %v1417_v35 = vsel %vm901_vm1, %v5517_v28, 0 }
 0x44f   : > { %4611 = vpow2.f32 %v1113_v58  ;;  %v1100_v63 = vsub.f32 %v5426_v22, %v1072_v60  ;;  %v1103_v3 = vsub.f32 %v5430_v55, %v1078_v59 }
 0x450   : > { %4613 = vpow2.f32 %v1117_v61  ;;  %v1420_v61 = vsel %vm901_vm1, %v5385_v2, 0 }
 0x451   : > { %v1119_v47 = vmul.f32 1.442695, %v1100_v63  ;;  %v1125_v31 = vmul.f32 1.442695, %v1103_v3 }
 0x452   : > { %v1074_v4 = vpop.xlane.xlu1 %1073  ;;  %v1076_v45 = vpop.xlane.xlu0 %1075 }
 0x453   : > { %v1101_v25 = vsub.f32 %v5440_v32, %v1074_v4  ;;  %v1102_v5 = vsub.f32 %v5436_v30, %v1076_v45  ;;  %4615 = vpow2.f32 %v1119_v47 }
 0x455   : > { %v1121_v6 = vmul.f32 1.442695, %v1101_v25  ;;  %v1123_v8 = vmul.f32 1.442695, %v1102_v5 }
 0x456   : > { %v1080_v9 = vpop.xlane.xlu1 %1079  ;;  %v1086_v55 = vpop.xlane.xlu0 %1085 }
 0x457   : > { %4617 = vpow2.f32 %v1121_v6  ;;  %v1104_v43 = vsub.f32 %v5446_v20, %v1080_v9  ;;  %v1107_v34 = vsub.f32 %v5450_v38, %v1086_v55 }
 0x458   : > { %v5531_v13 = vpop.eup %4609  ;;  %4619 = vpow2.f32 %v1123_v8 }
 0x459   : > { %v5533_v14 = vpop.eup %4611  ;;  %v1127_v15 = vmul.f32 1.442695, %v1104_v43  ;;  %4621 = vpow2.f32 %v1125_v31  ;;  %v1133_v11 = vmul.f32 1.442695, %v1107_v34 }
 0x45a   : > { %v1082_v18 = vpop.xlane.xlu1 %1081  ;;  %v1177_v19 = vpack.c.bf16 %v5531_v13, %v5533_v14  ;;  %v5537_v22 = vpop.eup %4613 }
 0x45b   : > { %4623 = vpow2.f32 %v1127_v15  ;;  %v1105_v27 = vsub.f32 %v5456_v10, %v1082_v18 }
 0x45c   : > { %4213 = vmatprep.mubr.bf16.mxu0 %v1177_v19 }
 0x45d   : > { %v5540_v0 = vpop.eup %4615  ;;  %v1129_v1 = vmul.f32 1.442695, %v1105_v27 }
 0x45e   : > { %v1088_v30 = vpop.xlane.xlu1 %1087  ;;  %v1178_v33 = vpack.c.bf16 %v5540_v0, %v5537_v22 }
 0x45f   : > { %v1108_v32 = vsub.f32 %v5461_v46, %v1088_v30  ;;  %4625 = vpow2.f32 %v1129_v1 }
 0x460   : > { %4214 = vmatmul.mubr.bf16.vlgmr.msra.gmra.mrb[16].mxu0 %v1178_v33 }
 0x461   : > { %v5546_v20 = vpop.eup %4617  ;;  %v1135_v10 = vmul.f32 1.442695, %v1108_v32  ;;  %4230 = vmatpush3.bf16.xpose.msra.mxu0 %v1411_v41 }
 0x462   : > { %v5550_v36 = vpop.eup %4619  ;;  %v1084_v42 = vpop.xlane.xlu1 %1083  ;;  %4518 = vmatprep.subr.msk.bf16.mxu0 %vm901_vm1, %v5381_v21 }
 0x463   : > { %v1106_v46 = vsub.f32 %v5471_v51, %v1084_v42  ;;  %v1179_v38 = vpack.c.bf16 %v5550_v36, %v5546_v20  ;;  %v5557_v24 = vpop.eup %4621  ;;  %4627 = vpow2.f32 %v1135_v10  ;;  %v1414_v51 = vsel %vm901_vm1, %v5381_v21, 0 }
 0x465   : > { %v5559_v29 = vpop.eup %4623  ;;  %v1131_v62 = vmul.f32 1.442695, %v1106_v46  ;;  %4217 = vmatprep.mubr.bf16.mxu0 %v1179_v38 }
 0x466   : > { %v1180_v53 = vpack.c.bf16 %v5559_v29, %v5557_v24  ;;  %v1094_v56 = vpop.xlane.xlu1 %1093 }
 0x467   : > { %4629 = vpow2.f32 %v1131_v62 }
 0x468   : > { %4631 = vpow2.f32 %v1133_v11  ;;  %4218 = vmatmul.mubr.bf16.gmra.mrb[20].mxu0 %v1180_v53 }
 0x469   : > { %4232 = vmatpush3.bf16.xpose.msra.mxu0 %v1414_v51  ;;  %v5567_v57 = vpop.eup %4625 }
 0x46a   : > { %4519 = vmatprep.subr.msk.bf16.mxu0 %vm901_vm1, %v5517_v28  ;;  %6945 = vst [vmem:[#allocation3_spill] sm:$0xff] %v5567_v57  ;;  %v1096_v60 = vpop.xlane.xlu1 %1095  ;;  %v1090_v28 = vpop.xlane.xlu0 %1089 }
 0x46b   : > { %v1109_v45 = vsub.f32 %v5466_v48, %v1090_v28  ;;  %v1112_v25 = vsub.f32 %v5481_v23, %v1096_v60 }
 0x46d   : > { %v5569_v17 = vpop.eup %4627  ;;  %v1137_v5 = vmul.f32 1.442695, %v1109_v45  ;;  %v1143_v6 = vmul.f32 1.442695, %v1112_v25 }
 0x46e   : > { %6946 = vst [vmem:[#allocation4_spill] sm:$0xff] %v5569_v17  ;;  %v1379_v63 = vpop.permute.xlu1 %1378  ;;  %v1381_v3 = vpop.permute.xlu0 %1380 }
 0x46f   : > { %v1423_v47 = vsel %vm901_vm1, %v1379_v63, 0  ;;  %v1426_v4 = vsel %vm901_vm1, %v1381_v3, 0  ;;  %4633 = vpow2.f32 %v1137_v5 }
 0x470   : > { %4635 = vpow2.f32 %v1143_v6 }
 0x471   : > { %v5571_v37 = vpop.eup %4629  ;;  %4234 = vmatpush3.bf16.xpose.msra.mxu0 %v1417_v35 }
 0x472   : > { %v5575_v58 = vpop.eup %4631  ;;  %v1181_v21 = vpack.c.bf16 %v5571_v37, %v5567_v57  ;;  %4520 = vmatprep.subr.msk.bf16.mxu0 %vm901_vm1, %v5385_v2  ;;  %v1111_v2 = vsub.f32 %v5476_v44, %v1094_v56  ;;  %v1357_v15 = vpop.permute.xlu1 %1356 }
 0x473   : > { %6947 = vst [vmem:[#allocation5_spill] sm:$0xff] %v5575_v58  ;;  %v1182_v59 = vpack.c.bf16 %v5569_v17, %v5575_v58 }
 0x474   : > { %4221 = vmatprep.mubr.bf16.mxu0 %v1181_v21  ;;  %v1141_v9 = vmul.f32 1.442695, %v1111_v2 }
 0x475   : > { %4222 = vmatmul.mubr.bf16.gmra.mrb[24].mxu0 %v1182_v59 }
 0x476   : > { %v1361_v44 = vpop.permute.xlu1 %1360 }
 0x479   : > { %4236 = vmatpush3.bf16.xpose.msra.mxu0 %v1420_v61  ;;  %v5596_v55 = vpop.eup %4633 }
 0x47a   : > { %4521 = vmatprep.subr.msk.bf16.mxu0 %vm901_vm1, %v1379_v63  ;;  %6948 = vst [vmem:[#allocation6_spill] sm:$0xff] %v5596_v55  ;;  %v5599_v27 = vpop.eup %4635  ;;  %v1365_v33 = vpop.permute.xlu1 %1364 }
 0x47b   : > { %6949 = vst [vmem:[#allocation7_spill] sm:$0xff] %v5599_v27 }
 0x47e   : > { %v1369_v42 = vpop.permute.xlu1 %1368 }
 0x481   : > { %4238 = vmatpush3.bf16.xpose.msra.mxu0 %v1423_v47 }
 0x482   : > { %4522 = vmatprep.subr.msk.bf16.mxu0 %vm901_vm1, %v1381_v3  ;;  %v1670_v38 = vpop.permute.xlu1 %1669 }
 0x486   : > { %v1674_v62 = vpop.permute.xlu1 %1673 }
 0x489   : > { %4240 = vmatpush3.bf16.xpose.msra.mxu0 %v1426_v4 }
 0x48a   : > { %v1676_v51 = vpop.permute.xlu1 %1675 }
 0x48e   : > { %v1678_v56 = vpop.permute.xlu1 %1677 }
 0x492   : > { %v1682_v21 = vpop.permute.xlu1 %1681 }
 0x494   : > { %v1092_v8 = vpop.xlane.xlu0 %1091 }
 0x495   : > { %v1110_v31 = vsub.f32 %v5496_v52, %v1092_v8 }
 0x497   : > { %v1139_v43 = vmul.f32 1.442695, %v1110_v31 }
 0x498   : > { %v1383_v18 = vpop.permute.xlu0 %1382 }
 0x499   : > { %4637 = vpow2.f32 %v1139_v43  ;;  %4523 = vmatprep.subr.msk.bf16.mxu0 %vm901_vm1, %v1383_v18  ;;  %v1429_v48 = vsel %vm901_vm1, %v1383_v18, 0 }
 0x49a   : > { %4639 = vpow2.f32 %v1141_v9  ;;  %4242 = vmatpush3.bf16.xpose.msra.mxu0 %v1429_v48 }
 0x49c   : > { %v1385_v23 = vpop.permute.xlu0 %1384 }
 0x49d   : > { %4524 = vmatprep.subr.msk.bf16.mxu0 %vm901_vm1, %v1385_v23  ;;  %v1432_v52 = vsel %vm901_vm1, %v1385_v23, 0 }
 0x4a0   : > { %v1355_v19 = vpop.permute.xlu0 %1354 }
 0x4a2   : > { %4244 = vmatpush3.bf16.xpose.msra.mxu0 %v1432_v52 }
 0x4a3   : > { %v5601_v30 = vpop.eup %4637 }
 0x4a4   : > { %6950 = vst [vmem:[#allocation8_spill] sm:$0xff] %v5601_v30  ;;  %v5603_v32 = vpop.eup %4639  ;;  %v1359_v34 = vpop.permute.xlu0 %1358  ;;  %v1183_v1 = vpack.c.bf16 %v5601_v30, %v5596_v55 }
 0x4a5   : > { %6951 = vst [vmem:[#allocation9_spill] sm:$0xff] %v5603_v32  ;;  %v1184_v41 = vpack.c.bf16 %v5599_v27, %v5603_v32 }
 0x4a6   : > { %4225 = vmatprep.mubr.bf16.mxu0 %v1183_v1 }
 0x4a7   : > { %4226 = vmatmul.mubr.bf16.gmra.mrb[28].mxu0 %v1184_v41 }
 0x4a8   : > { %4245 = vmatprep.mubr.msk.bf16.mxu0 %vm901_vm1, %v1355_v19  ;;  %v1363_v10 = vpop.permute.xlu0 %1362 }
 0x4ac   : > { %v1367_v46 = vpop.permute.xlu0 %1366 }
 0x4af   : > { %4246 = vmatmul.mubr.msk.bf16.vlgmr.msra.gmra.mrb[32].mxu0 %vm901_vm1, %v1357_v15 }
 0x4b0   : > { %4249 = vmatprep.mubr.msk.bf16.mxu0 %vm901_vm1, %v1359_v34  ;;  %v1668_v11 = vpop.permute.xlu0 %1667 }
 0x4b1   : > { %4261 = vmatprep.subr.bf16.mxu1 %v1668_v11 }
 0x4b2   : > { %4262 = vmatpush3.bf16.msra.mxu1 %v1668_v11 }
 0x4b3   : > { %4263 = vmatprep.subr.bf16.mxu1 %v1670_v38 }
 0x4b4   : > { %v1672_v53 = vpop.permute.xlu0 %1671 }
 0x4b6   : > { %4264 = vmatpush3.bf16.msra.mxu1 %v1670_v38 }
 0x4b7   : > { %4250 = vmatmul.mubr.msk.bf16.gmra.mrb[36].mxu0 %vm901_vm1, %v1361_v44  ;;  %4265 = vmatprep.subr.bf16.mxu1 %v1672_v53 }
 0x4b8   : > { %4253 = vmatprep.mubr.msk.bf16.mxu0 %vm901_vm1, %v1363_v10  ;;  %v1680_v35 = vpop.permute.xlu0 %1679 }
 0x4ba   : > { %4266 = vmatpush3.bf16.msra.mxu1 %v1672_v53 }
 0x4bb   : > { %4267 = vmatprep.subr.bf16.mxu1 %v1674_v62 }
 0x4bc   : > { %v5617_v59 = vpop.permute.xlu0 %1885 }
 0x4be   : > { %4268 = vmatpush3.bf16.msra.mxu1 %v1674_v62 }
 0x4bf   : > { %4254 = vmatmul.mubr.msk.bf16.gmra.mrb[40].mxu0 %vm901_vm1, %v1365_v33  ;;  %4269 = vmatprep.subr.bf16.mxu1 %v1676_v51 }
 0x4c0   : > { %4257 = vmatprep.mubr.msk.bf16.mxu0 %vm901_vm1, %v1367_v46 }
 0x4c2   : > { %4270 = vmatpush3.bf16.msra.mxu1 %v1676_v51 }
 0x4c3   : > { %4271 = vmatprep.subr.bf16.mxu1 %v1678_v56 }
 0x4c6   : > { %4272 = vmatpush3.bf16.msra.mxu1 %v1678_v56 }
 0x4c7   : > { %4258 = vmatmul.mubr.msk.bf16.gmra.mrb[44].mxu0 %vm901_vm1, %v1369_v42  ;;  %4273 = vmatprep.subr.bf16.mxu1 %v1680_v35 }
 0x4ca   : > { %4274 = vmatpush3.bf16.msra.mxu1 %v1680_v35 }
 0x4cb   : > { %4275 = vmatprep.subr.bf16.mxu1 %v1682_v21 }
 0x4ce   : > { %4276 = vmatpush3.bf16.msra.mxu1 %v1682_v21 }
 0x4cf   : > { %4525 = vmatprep.subr.msk.bf16.mxu1 %vm901_vm1, %v5617_v59 }
 0x533   : > { %v5621_v60 = vpop.f32.mrb[16].mxu0 }
 0x534   : > { %6952 = vst [vmem:[#allocation10_spill] sm:$0xff] %v5621_v60  ;;  %v5623_v61 = vpop.f32.mrb[17].mxu0 }
 0x535   : > { %6953 = vst [vmem:[#allocation11_spill] sm:$0xff] %v5623_v61  ;;  %v5625_v63 = vpop.f32.mrb[18].mxu0 }
 0x536   : > { %6954 = vst [vmem:[#allocation12_spill] sm:$0xff] %v5625_v63  ;;  %v5627_v28 = vpop.f32.mrb[19].mxu0 }
 0x537   : > { %6955 = vst [vmem:[#allocation13_spill] sm:$0xff] %v5627_v28 }
 0x53b   : > { %v5629_v47 = vpop.f32.mrb[20].mxu0 }
 0x53c   : > { %6956 = vst [vmem:[#allocation14_spill] sm:$0xff] %v5629_v47  ;;  %v5631_v3 = vpop.f32.mrb[21].mxu0 }
 0x53d   : > { %6957 = vst [vmem:[#allocation15_spill] sm:$0xff] %v5631_v3  ;;  %v5633_v4 = vpop.f32.mrb[22].mxu0 }
 0x53e   : > { %6958 = vst [vmem:[#allocation16_spill] sm:$0xff] %v5633_v4  ;;  %v5635_v45 = vpop.f32.mrb[23].mxu0 }
 0x53f   : > { %6959 = vst [vmem:[#allocation17_spill] sm:$0xff] %v5635_v45 }
 0x548   : > { %v5637_v25 = vpop.f32.mrb[24].mxu0 }
 0x549   : > { %6960 = vst [vmem:[#allocation18_spill] sm:$0xff] %v5637_v25  ;;  %v5639_v2 = vpop.f32.mrb[25].mxu0 }
 0x54a   : > { %6961 = vst [vmem:[#allocation19_spill] sm:$0xff] %v5639_v2  ;;  %v5641_v5 = vpop.f32.mrb[26].mxu0 }
 0x54b   : > { %6962 = vst [vmem:[#allocation20_spill] sm:$0xff] %v5641_v5  ;;  %v5643_v6 = vpop.f32.mrb[27].mxu0 }
 0x54c   : > { %6963 = vst [vmem:[#allocation21_spill] sm:$0xff] %v5643_v6 }
 0x57a   : > { %v5645_v8 = vpop.f32.mrb[28].mxu0 }
 0x57b   : > { %6964 = vst [vmem:[#allocation22_spill] sm:$0xff] %v5645_v8  ;;  %v5647_v31 = vpop.f32.mrb[29].mxu0 }
 0x57c   : > { %6965 = vst [vmem:[#allocation23_spill] sm:$0xff] %v5647_v31  ;;  %v5649_v9 = vpop.f32.mrb[30].mxu0 }
 0x57d   : > { %6966 = vst [vmem:[#allocation24_spill] sm:$0xff] %v5649_v9  ;;  %v5651_v43 = vpop.f32.mrb[31].mxu0 }
 0x57e   : > { %6967 = vst [vmem:[#allocation25_spill] sm:$0xff] %v5651_v43 }
 0x582   : > { %v4247_v15 = vpop.f32.mrb[32].mxu0 }
 0x583   : > { %v1468_v18 = vpop.f32.mrb[33].mxu0  ;;  %v5655_v48 = vsel %vm876_vm2, %v4247_v15, -1e+30 }
 0x584   : > { %1551 = vmax.xlane.f32.xlu0 %v5655_v48  ;;  %v4248_v23 = vpop.f32.mrb[34].mxu0  ;;  %v5665_v52 = vsel %vm876_vm2, %v1468_v18, -1e+30 }
 0x585   : > { %v1471_v44 = vpop.f32.mrb[35].mxu0  ;;  %v5670_v1 = vsel %vm876_vm2, %v4248_v23, -1e+30 }
 0x586   : > { %v5660_v19 = vsel %vm876_vm2, %v1471_v44, -1e+30 }
 0x587   : > { %1549 = vmax.xlane.f32.xlu1 %v5660_v19 }
 0x588   : > { %1547 = vmax.xlane.f32.xlu0 %v5665_v52 }
 0x58a   : > { %v4251_v33 = vpop.f32.mrb[36].mxu0 }
 0x58b   : > { %v1484_v34 = vpop.f32.mrb[37].mxu0  ;;  %v5674_v41 = vsel %vm876_vm2, %v4251_v33, -1e+30 }
 0x58c   : > { %1553 = vmax.xlane.f32.xlu0 %v5670_v1  ;;  %1559 = vmax.xlane.f32.xlu1 %v5674_v41  ;;  %v4252_v10 = vpop.f32.mrb[38].mxu0  ;;  %v5684_v38 = vsel %vm876_vm2, %v1484_v34, -1e+30 }
 0x58d   : > { %v1487_v42 = vpop.f32.mrb[39].mxu0  ;;  %v5690_v62 = vsel %vm876_vm2, %v4252_v10, -1e+30 }
 0x58e   : > { %v5680_v46 = vsel %vm876_vm2, %v1487_v42, -1e+30 }
 0x590   : > { %1555 = vmax.xlane.f32.xlu1 %v5684_v38  ;;  %1557 = vmax.xlane.f32.xlu0 %v5680_v46 }
 0x592   : > { %v4255_v11 = vpop.f32.mrb[40].mxu0 }
 0x593   : > { %v5694_v53 = vsel %vm876_vm2, %v4255_v11, -1e+30  ;;  %v1500_v51 = vpop.f32.mrb[41].mxu0 }
 0x594   : > { %1561 = vmax.xlane.f32.xlu1 %v5690_v62  ;;  %1567 = vmax.xlane.f32.xlu0 %v5694_v53  ;;  %v4256_v56 = vpop.f32.mrb[42].mxu0  ;;  %v5700_v21 = vsel %vm876_vm2, %v1500_v51, -1e+30 }
 0x595   : > { %v1503_v35 = vpop.f32.mrb[43].mxu0  ;;  %v5705_v18 = vsel %vm876_vm2, %v4256_v56, -1e+30  ;;  %v5758_v56 = vpop.permute.xlu0 %1887 }
 0x596   : > { %v5715_v10 = vsel %vm876_vm2, %v1503_v35, -1e+30 }
 0x598   : > { %1563 = vmax.xlane.f32.xlu1 %v5700_v21 }
 0x599   : > { %v5763_v35 = vpop.permute.xlu0 %1891 }
 0x59a   : > { %v4259_v15 = vpop.f32.mrb[44].mxu0 }
 0x59b   : > { %v1516_v23 = vpop.f32.mrb[45].mxu0  ;;  %v5720_v42 = vsel %vm876_vm2, %v4259_v15, -1e+30  ;;  %v5765_v15 = vpop.permute.xlu1 %1889 }
 0x59c   : > { %v5709_v44 = vsel %vm876_vm2, %v1516_v23, -1e+30  ;;  %1569 = vmax.xlane.f32.xlu1 %v5705_v18  ;;  %v4260_v33 = vpop.f32.mrb[46].mxu0 }
 0x59d   : > { %1571 = vmax.xlane.f32.xlu0 %v5709_v44  ;;  %v1519_v34 = vpop.f32.mrb[47].mxu0  ;;  %v5725_v11 = vsel %vm876_vm2, %v4260_v33, -1e+30 }
 0x59e   : > { %v5739_v51 = vsel %vm876_vm2, %v1519_v34, -1e+30 }
 0x5a0   : > { %1565 = vmax.xlane.f32.xlu1 %v5715_v10 }
 0x5a4   : > { %1575 = vmax.xlane.f32.xlu1 %v5720_v42 }
 0x5a8   : > { %1577 = vmax.xlane.f32.xlu1 %v5725_v11 }
 0x5b3   : > { %1895 = vrot.lane.b32.xlu0 %v5336_v39, %s4990_s16 }
 0x5b9   : > { %1893 = vrot.lane.b32.xlu1 %v5338_v40, %s4990_s16 }
 0x5bd   : > { %1871 = vrot.lane.b32.xlu1 %v5318_v54, %s4991_s17 }
 0x5c1   : > { %1875 = vrot.lane.b32.xlu1 %v5328_v16, %s4991_s17 }
 0x5c5   : > { %1879 = vrot.lane.b32.xlu1 %v5336_v39, %s4991_s17 }
 0x5c9   : > { %1883 = vrot.lane.b32.xlu1 %v5344_v49, %s4991_s17 }
 0x5cd   : > { %2184 = vrot.lane.b32.xlu1 %v5318_v54, %s4992_s18 }
 0x5d1   : > { %2188 = vrot.lane.b32.xlu1 %v5328_v16, %s4992_s18 }
 0x5d2   : > { %1573 = vmax.xlane.f32.xlu0 %v5739_v51 }
 0x5d5   : > { %2190 = vrot.lane.b32.xlu1 %v5338_v40, %s4992_s18 }
 0x5d9   : > { %2192 = vrot.lane.b32.xlu1 %v5336_v39, %s4992_s18 }
 0x5dd   : > { %2196 = vrot.lane.b32.xlu1 %v5344_v49, %s4992_s18 }
 0x5e1   : > { %2404 = vrot.lane.b32.xlu1 %v5330_v26, %s4993_s19 }
 0x5e8   : > { %1897 = vrot.lane.b32.xlu0 %v5346_v50, %s4990_s16 }
 0x5ec   : > { %1899 = vrot.lane.b32.xlu0 %v5344_v49, %s4990_s16 }
 0x5f0   : > { %1869 = vrot.lane.b32.xlu0 %v5320_v12, %s4991_s17 }
 0x5f4   : > { %1873 = vrot.lane.b32.xlu0 %v5330_v26, %s4991_s17 }
 0x5f8   : > { %1877 = vrot.lane.b32.xlu0 %v5338_v40, %s4991_s17 }
 0x5fc   : > { %1881 = vrot.lane.b32.xlu0 %v5346_v50, %s4991_s17 }
 0x600   : > { %2182 = vrot.lane.b32.xlu0 %v5320_v12, %s4992_s18 }
 0x604   : > { %2186 = vrot.lane.b32.xlu0 %v5330_v26, %s4992_s18 }
 0x608   : > { %2194 = vrot.lane.b32.xlu0 %v5346_v50, %s4992_s18 }
 0x60c   : > { %2400 = vrot.lane.b32.xlu0 %v5320_v12, %s4993_s19 }
 0x610   : > { %2402 = vrot.lane.b32.xlu0 %v5318_v54, %s4993_s19 }
 0x611   : > { %v1552_v23 = vpop.xlane.xlu0 %1551 }
 0x612   : > { %v1581_v8 = vsub.f32 %v5655_v48, %v1552_v23 }
 0x614   : > { %v1550_v33 = vpop.xlane.xlu1 %1549  ;;  %2406 = vrot.lane.b32.xlu0 %v5328_v16, %s4993_s19  ;;  %v1599_v6 = vmul.f32 1.442695, %v1581_v8 }
 0x615   : > { %v1580_v34 = vsub.f32 %v5660_v19, %v1550_v33  ;;  %v1548_v9 = vpop.xlane.xlu0 %1547  ;;  %v1926_v33 = vsel %vm901_vm1, %v5617_v59, 0 }
 0x616   : > { %v1579_v31 = vsub.f32 %v5665_v52, %v1548_v9 }
 0x617   : > { %v1597_v43 = vmul.f32 1.442695, %v1580_v34 }
 0x618   : > { %v1595_v5 = vmul.f32 1.442695, %v1579_v31 }
 0x619   : > { %4641 = vpow2.f32 %v1597_v43  ;;  %v1560_v25 = vpop.xlane.xlu1 %1559  ;;  %v1554_v2 = vpop.xlane.xlu0 %1553 }
 0x61a   : > { %4643 = vpow2.f32 %v1595_v5  ;;  %v1582_v4 = vsub.f32 %v5670_v1, %v1554_v2  ;;  %v1585_v3 = vsub.f32 %v5674_v41, %v1560_v25 }
 0x61b   : > { %4645 = vpow2.f32 %v1599_v6 }
 0x61c   : > { %v1601_v47 = vmul.f32 1.442695, %v1582_v4  ;;  %v1607_v43 = vmul.f32 1.442695, %v1585_v3 }
 0x61d   : > { %v1556_v45 = vpop.xlane.xlu1 %1555  ;;  %v1558_v60 = vpop.xlane.xlu0 %1557 }
 0x61e   : > { %v1583_v19 = vsub.f32 %v5684_v38, %v1556_v45  ;;  %v1584_v48 = vsub.f32 %v5680_v46, %v1558_v60  ;;  %4647 = vpow2.f32 %v1601_v47 }
 0x620   : > { %v1603_v9 = vmul.f32 1.442695, %v1583_v19  ;;  %v1605_v31 = vmul.f32 1.442695, %v1584_v48 }
 0x621   : > { %v1562_v52 = vpop.xlane.xlu1 %1561  ;;  %v1568_v47 = vpop.xlane.xlu0 %1567 }
 0x622   : > { %4649 = vpow2.f32 %v1603_v9  ;;  %v1586_v5 = vsub.f32 %v5690_v62, %v1562_v52  ;;  %v1589_v38 = vsub.f32 %v5694_v53, %v1568_v47 }
 0x623   : > { %v5779_v8 = vpop.eup %4641  ;;  %4651 = vpow2.f32 %v1605_v31 }
 0x624   : > { %v5781_v4 = vpop.eup %4643  ;;  %v1609_v25 = vmul.f32 1.442695, %v1586_v5  ;;  %4653 = vpow2.f32 %v1607_v43  ;;  %v1615_v9 = vmul.f32 1.442695, %v1589_v38 }
 0x625   : > { %v1564_v2 = vpop.xlane.xlu1 %1563  ;;  %v1659_v45 = vpack.c.bf16 %v5779_v8, %v5781_v4  ;;  %v5785_v60 = vpop.eup %4645 }
 0x626   : > { %4655 = vpow2.f32 %v1609_v25  ;;  %v1587_v3 = vsub.f32 %v5700_v21, %v1564_v2 }
 0x627   : > { %4277 = vmatprep.mubr.bf16.mxu1 %v1659_v45  ;;  %v1932_v45 = vsel %vm901_vm1, %v5765_v15, 0 }
 0x628   : > { %v5788_v6 = vpop.eup %4647  ;;  %v1611_v23 = vmul.f32 1.442695, %v1587_v3 }
 0x629   : > { %v1570_v1 = vpop.xlane.xlu1 %1569  ;;  %v1660_v46 = vpack.c.bf16 %v5788_v6, %v5785_v60 }
 0x62a   : > { %v1590_v41 = vsub.f32 %v5705_v18, %v1570_v1  ;;  %4657 = vpow2.f32 %v1611_v23 }
 0x62b   : > { %4278 = vmatmul.mubr.bf16.vlgmr.msra.gmra.mrb[16].mxu1 %v1660_v46 }
 0x62c   : > { %v5794_v62 = vpop.eup %4649  ;;  %v1617_v21 = vmul.f32 1.442695, %v1590_v41  ;;  %4294 = vmatpush3.bf16.xpose.msra.mxu1 %v1926_v33  ;;  %v1935_v41 = vsel %vm901_vm1, %v5763_v35, 0 }
 0x62d   : > { %v5798_v34 = vpop.eup %4651  ;;  %v1566_v19 = vpop.xlane.xlu1 %1565  ;;  %4526 = vmatprep.subr.msk.bf16.mxu1 %vm901_vm1, %v5758_v56 }
 0x62e   : > { %v1588_v18 = vsub.f32 %v5715_v10, %v1566_v19  ;;  %v1661_v53 = vpack.c.bf16 %v5798_v34, %v5794_v62  ;;  %v5805_v48 = vpop.eup %4653  ;;  %4659 = vpow2.f32 %v1617_v21  ;;  %v1929_v10 = vsel %vm901_vm1, %v5758_v56, 0 }
 0x630   : > { %v5807_v31 = vpop.eup %4655  ;;  %v1613_v59 = vmul.f32 1.442695, %v1588_v18  ;;  %4281 = vmatprep.mubr.bf16.mxu1 %v1661_v53 }
 0x631   : > { %v1662_v43 = vpack.c.bf16 %v5807_v31, %v5805_v48  ;;  %v1576_v52 = vpop.xlane.xlu1 %1575 }
 0x632   : > { %4661 = vpow2.f32 %v1613_v59 }
 0x633   : > { %4663 = vpow2.f32 %v1615_v9  ;;  %4282 = vmatmul.mubr.bf16.gmra.mrb[20].mxu1 %v1662_v43 }
 0x634   : > { %4296 = vmatpush3.bf16.xpose.msra.mxu1 %v1929_v10  ;;  %v5815_v5 = vpop.eup %4657 }
 0x635   : > { %4527 = vmatprep.subr.msk.bf16.mxu1 %vm901_vm1, %v5765_v15  ;;  %v1578_v1 = vpop.xlane.xlu1 %1577  ;;  %v1572_v15 = vpop.xlane.xlu0 %1571 }
 0x636   : > { %v1591_v21 = vsub.f32 %v5709_v44, %v1572_v15  ;;  %v1594_v19 = vsub.f32 %v5725_v11, %v1578_v1 }
 0x638   : > { %v5817_v25 = vpop.eup %4659  ;;  %v1619_v18 = vmul.f32 1.442695, %v1591_v21  ;;  %v1625_v53 = vmul.f32 1.442695, %v1594_v19 }
 0x639   : > { %v1894_v46 = vpop.permute.xlu1 %1893  ;;  %v1896_v23 = vpop.permute.xlu0 %1895 }
 0x63a   : > { %v1938_v38 = vsel %vm901_vm1, %v1894_v46, 0  ;;  %v1941_v33 = vsel %vm901_vm1, %v1896_v23, 0  ;;  %4665 = vpow2.f32 %v1619_v18 }
 0x63b   : > { %4667 = vpow2.f32 %v1625_v53 }
 0x63c   : > { %v5819_v2 = vpop.eup %4661  ;;  %4298 = vmatpush3.bf16.xpose.msra.mxu1 %v1932_v45 }
 0x63d   : > { %v5823_v47 = vpop.eup %4663  ;;  %v1663_v56 = vpack.c.bf16 %v5819_v2, %v5815_v5  ;;  %4528 = vmatprep.subr.msk.bf16.mxu1 %vm901_vm1, %v5763_v35  ;;  %v1593_v35 = vsub.f32 %v5720_v42, %v1576_v52  ;;  %v1872_v45 = vpop.permute.xlu1 %1871 }
 0x63e   : > { %v1664_v3 = vpack.c.bf16 %v5817_v25, %v5823_v47 }
 0x63f   : > { %4285 = vmatprep.mubr.bf16.mxu1 %v1663_v56  ;;  %v1623_v43 = vmul.f32 1.442695, %v1593_v35 }
 0x640   : > { %4286 = vmatmul.mubr.bf16.gmra.mrb[24].mxu1 %v1664_v3 }
 0x641   : > { %v1876_v42 = vpop.permute.xlu1 %1875 }
 0x644   : > { %4300 = vmatpush3.bf16.xpose.msra.mxu1 %v1935_v41  ;;  %v5844_v3 = vpop.eup %4665 }
 0x645   : > { %4529 = vmatprep.subr.msk.bf16.mxu1 %vm901_vm1, %v1894_v46  ;;  %v5847_v1 = vpop.eup %4667  ;;  %v1880_v15 = vpop.permute.xlu1 %1879 }
 0x649   : > { %v1884_v19 = vpop.permute.xlu1 %1883 }
 0x64c   : > { %4302 = vmatpush3.bf16.xpose.msra.mxu1 %v1938_v38 }
 0x64d   : > { %4530 = vmatprep.subr.msk.bf16.mxu1 %vm901_vm1, %v1896_v23  ;;  %v2185_v18 = vpop.permute.xlu1 %2184 }
 0x654   : > { %4304 = vmatpush3.bf16.xpose.msra.mxu1 %v1941_v33 }
 0x65f   : > { %v1574_v9 = vpop.xlane.xlu0 %1573 }
 0x660   : > { %v1592_v59 = vsub.f32 %v5739_v51, %v1574_v9  ;;  %v2189_v9 = vpop.permute.xlu1 %2188 }
 0x662   : > { %v1621_v10 = vmul.f32 1.442695, %v1592_v59 }
 0x663   : > { %v1898_v56 = vpop.permute.xlu0 %1897 }
 0x664   : > { %4669 = vpow2.f32 %v1621_v10  ;;  %4531 = vmatprep.subr.msk.bf16.mxu1 %vm901_vm1, %v1898_v56  ;;  %v1944_v44 = vsel %vm901_vm1, %v1898_v56, 0 }
 0x665   : > { %4671 = vpow2.f32 %v1623_v43  ;;  %4306 = vmatpush3.bf16.xpose.msra.mxu1 %v1944_v44  ;;  %v2191_v43 = vpop.permute.xlu1 %2190 }
 0x667   : > { %v1900_v11 = vpop.permute.xlu0 %1899 }
 0x668   : > { %4532 = vmatprep.subr.msk.bf16.mxu1 %vm901_vm1, %v1900_v11  ;;  %v1947_v51 = vsel %vm901_vm1, %v1900_v11, 0 }
 0x669   : > { %v2193_v10 = vpop.permute.xlu1 %2192 }
 0x66b   : > { %v1870_v52 = vpop.permute.xlu0 %1869 }
 0x66d   : > { %4308 = vmatpush3.bf16.xpose.msra.mxu1 %v1947_v51  ;;  %v2197_v56 = vpop.permute.xlu1 %2196 }
 0x66e   : > { %v5849_v41 = vpop.eup %4669 }
 0x66f   : > { %v5851_v46 = vpop.eup %4671  ;;  %v1874_v38 = vpop.permute.xlu0 %1873  ;;  %v1665_v23 = vpack.c.bf16 %v5849_v41, %v5844_v3 }
 0x670   : > { %v1666_v33 = vpack.c.bf16 %v5847_v1, %v5851_v46 }
 0x671   : > { %4289 = vmatprep.mubr.bf16.mxu1 %v1665_v23 }
 0x672   : > { %4290 = vmatmul.mubr.bf16.gmra.mrb[28].mxu1 %v1666_v33 }
 0x673   : > { %4309 = vmatprep.mubr.msk.bf16.mxu1 %vm901_vm1, %v1870_v52  ;;  %v1878_v21 = vpop.permute.xlu0 %1877 }
 0x677   : > { %v1882_v35 = vpop.permute.xlu0 %1881 }
 0x67a   : > { %4310 = vmatmul.mubr.msk.bf16.vlgmr.msra.gmra.mrb[32].mxu1 %vm901_vm1, %v1872_v45 }
 0x67b   : > { %4313 = vmatprep.mubr.msk.bf16.mxu1 %vm901_vm1, %v1874_v38  ;;  %v2183_v53 = vpop.permute.xlu0 %2182 }
 0x67c   : > { %4325 = vmatprep.subr.bf16.mxu0 %v2183_v53 }
 0x67d   : > { %4326 = vmatpush3.bf16.msra.mxu0 %v2183_v53 }
 0x67e   : > { %4327 = vmatprep.subr.bf16.mxu0 %v2185_v18 }
 0x67f   : > { %v2187_v59 = vpop.permute.xlu0 %2186 }
 0x681   : > { %4328 = vmatpush3.bf16.msra.mxu0 %v2185_v18 }
 0x682   : > { %4314 = vmatmul.mubr.msk.bf16.gmra.mrb[36].mxu1 %vm901_vm1, %v1876_v42  ;;  %4329 = vmatprep.subr.bf16.mxu0 %v2187_v59 }
 0x683   : > { %4317 = vmatprep.mubr.msk.bf16.mxu1 %vm901_vm1, %v1878_v21  ;;  %v2195_v45 = vpop.permute.xlu0 %2194 }
 0x685   : > { %4330 = vmatpush3.bf16.msra.mxu0 %v2187_v59 }
 0x686   : > { %4331 = vmatprep.subr.bf16.mxu0 %v2189_v9 }
 0x687   : > { %v5865_v44 = vpop.permute.xlu0 %2400 }
 0x689   : > { %4332 = vmatpush3.bf16.msra.mxu0 %v2189_v9 }
 0x68a   : > { %4318 = vmatmul.mubr.msk.bf16.gmra.mrb[40].mxu1 %vm901_vm1, %v1880_v15  ;;  %4333 = vmatprep.subr.bf16.mxu0 %v2191_v43 }
 0x68b   : > { %4321 = vmatprep.mubr.msk.bf16.mxu1 %vm901_vm1, %v1882_v35 }
 0x68d   : > { %4334 = vmatpush3.bf16.msra.mxu0 %v2191_v43 }
 0x68e   : > { %4335 = vmatprep.subr.bf16.mxu0 %v2193_v10 }
 0x691   : > { %4336 = vmatpush3.bf16.msra.mxu0 %v2193_v10 }
 0x692   : > { %4322 = vmatmul.mubr.msk.bf16.gmra.mrb[44].mxu1 %vm901_vm1, %v1884_v19  ;;  %4337 = vmatprep.subr.bf16.mxu0 %v2195_v45 }
 0x695   : > { %4338 = vmatpush3.bf16.msra.mxu0 %v2195_v45 }
 0x696   : > { %4339 = vmatprep.subr.bf16.mxu0 %v2197_v56 }
 0x699   : > { %4340 = vmatpush3.bf16.msra.mxu0 %v2197_v56 }
 0x69a   : > { %4533 = vmatprep.subr.msk.bf16.mxu0 %vm901_vm1, %v5865_v44 }
 0x6fe   : > { %v5869_v11 = vpop.f32.mrb[16].mxu1 }
 0x6ff   : > { %6968 = vst [vmem:[#allocation26_spill] sm:$0xff] %v5869_v11  ;;  %v5871_v42 = vpop.f32.mrb[17].mxu1 }
 0x700   : > { %6969 = vst [vmem:[#allocation27_spill] sm:$0xff] %v5871_v42  ;;  %v5873_v52 = vpop.f32.mrb[18].mxu1 }
 0x701   : > { %6970 = vst [vmem:[#allocation28_spill] sm:$0xff] %v5873_v52  ;;  %v5875_v51 = vpop.f32.mrb[19].mxu1 }
 0x702   : > { %6971 = vst [vmem:[#allocation29_spill] sm:$0xff] %v5875_v51 }
 0x706   : > { %v5877_v15 = vpop.f32.mrb[20].mxu1 }
 0x707   : > { %6972 = vst [vmem:[#allocation30_spill] sm:$0xff] %v5877_v15  ;;  %v5879_v38 = vpop.f32.mrb[21].mxu1 }
 0x708   : > { %6973 = vst [vmem:[#allocation31_spill] sm:$0xff] %v5879_v38  ;;  %v5881_v23 = vpop.f32.mrb[22].mxu1 }
 0x709   : > { %6974 = vst [vmem:[#allocation32_spill] sm:$0xff] %v5881_v23  ;;  %v5883_v33 = vpop.f32.mrb[23].mxu1 }
 0x70a   : > { %6975 = vst [vmem:[#allocation33_spill] sm:$0xff] %v5883_v33 }
 0x713   : > { %v5885_v21 = vpop.f32.mrb[24].mxu1 }
 0x714   : > { %6976 = vst [vmem:[#allocation34_spill] sm:$0xff] %v5885_v21  ;;  %v5887_v19 = vpop.f32.mrb[25].mxu1 }
 0x715   : > { %6977 = vst [vmem:[#allocation35_spill] sm:$0xff] %v5887_v19  ;;  %v5889_v35 = vpop.f32.mrb[26].mxu1 }
 0x716   : > { %6978 = vst [vmem:[#allocation36_spill] sm:$0xff] %v5889_v35  ;;  %v5891_v18 = vpop.f32.mrb[27].mxu1 }
 0x717   : > { %6979 = vst [vmem:[#allocation37_spill] sm:$0xff] %v5891_v18 }
 0x745   : > { %v5893_v53 = vpop.f32.mrb[28].mxu1 }
 0x746   : > { %6980 = vst [vmem:[#allocation38_spill] sm:$0xff] %v5893_v53  ;;  %v5895_v9 = vpop.f32.mrb[29].mxu1 }
 0x747   : > { %6981 = vst [vmem:[#allocation39_spill] sm:$0xff] %v5895_v9  ;;  %v5897_v59 = vpop.f32.mrb[30].mxu1 }
 0x748   : > { %6982 = vst [vmem:[#allocation40_spill] sm:$0xff] %v5897_v59  ;;  %v5899_v43 = vpop.f32.mrb[31].mxu1 }
 0x749   : > { %6983 = vst [vmem:[#allocation41_spill] sm:$0xff] %v5899_v43 }
 0x74d   : > { %v4311_v10 = vpop.f32.mrb[32].mxu1 }
 0x74e   : > { %v5903_v45 = vsel %vm876_vm2, %v4311_v10, -1e+30  ;;  %v1983_v56 = vpop.f32.mrb[33].mxu1 }
 0x74f   : > { %2066 = vmax.xlane.f32.xlu0 %v5903_v45  ;;  %v4312_v63 = vpop.f32.mrb[34].mxu1  ;;  %v5912_v35 = vsel %vm876_vm2, %v1983_v56, -1e+30 }
 0x750   : > { %v1986_v28 = vpop.f32.mrb[35].mxu1  ;;  %v5918_v10 = vsel %vm876_vm2, %v4312_v63, -1e+30 }
 0x751   : > { %v5908_v61 = vsel %vm876_vm2, %v1986_v28, -1e+30 }
 0x752   : > { %2064 = vmax.xlane.f32.xlu1 %v5908_v61 }
 0x753   : > { %2062 = vmax.xlane.f32.xlu0 %v5912_v35 }
 0x755   : > { %v4315_v59 = vpop.f32.mrb[36].mxu1 }
 0x756   : > { %v5922_v43 = vsel %vm876_vm2, %v4315_v59, -1e+30  ;;  %v1999_v21 = vpop.f32.mrb[37].mxu1 }
 0x757   : > { %2068 = vmax.xlane.f32.xlu0 %v5918_v10  ;;  %2074 = vmax.xlane.f32.xlu1 %v5922_v43  ;;  %v4316_v28 = vpop.f32.mrb[38].mxu1  ;;  %v5932_v19 = vsel %vm876_vm2, %v1999_v21, -1e+30 }
 0x758   : > { %v2002_v56 = vpop.f32.mrb[39].mxu1  ;;  %v5938_v59 = vsel %vm876_vm2, %v4316_v28, -1e+30 }
 0x759   : > { %v5928_v18 = vsel %vm876_vm2, %v2002_v56, -1e+30 }
 0x75b   : > { %2070 = vmax.xlane.f32.xlu1 %v5932_v19  ;;  %2072 = vmax.xlane.f32.xlu0 %v5928_v18 }
 0x75d   : > { %v4319_v63 = vpop.f32.mrb[40].mxu1 }
 0x75e   : > { %v5942_v53 = vsel %vm876_vm2, %v4319_v63, -1e+30  ;;  %v2015_v23 = vpop.f32.mrb[41].mxu1 }
 0x75f   : > { %2076 = vmax.xlane.f32.xlu1 %v5938_v59  ;;  %2082 = vmax.xlane.f32.xlu0 %v5942_v53  ;;  %v4320_v21 = vpop.f32.mrb[42].mxu1  ;;  %v5948_v15 = vsel %vm876_vm2, %v2015_v23, -1e+30 }
 0x760   : > { %v2018_v56 = vpop.f32.mrb[43].mxu1  ;;  %v5953_v28 = vsel %vm876_vm2, %v4320_v21, -1e+30 }
 0x761   : > { %v5963_v23 = vsel %vm876_vm2, %v2018_v56, -1e+30 }
 0x763   : > { %2078 = vmax.xlane.f32.xlu1 %v5948_v15 }
 0x765   : > { %v4323_v9 = vpop.f32.mrb[44].mxu1 }
 0x766   : > { %v2031_v63 = vpop.f32.mrb[45].mxu1  ;;  %v5968_v21 = vsel %vm876_vm2, %v4323_v9, -1e+30  ;;  %v6013_v9 = vpop.permute.xlu1 %2404 }
 0x767   : > { %v5957_v33 = vsel %vm876_vm2, %v2031_v63, -1e+30  ;;  %2084 = vmax.xlane.f32.xlu1 %v5953_v28  ;;  %v4324_v38 = vpop.f32.mrb[46].mxu1 }
 0x768   : > { %2086 = vmax.xlane.f32.xlu0 %v5957_v33  ;;  %v2034_v32 = vpop.f32.mrb[47].mxu1  ;;  %v5973_v63 = vsel %vm876_vm2, %v4324_v38, -1e+30 }
 0x769   : > { %v5988_v38 = vsel %vm876_vm2, %v2034_v32, -1e+30 }
 0x76b   : > { %2080 = vmax.xlane.f32.xlu1 %v5963_v23 }
 0x76f   : > { %2090 = vmax.xlane.f32.xlu1 %v5968_v21 }
 0x773   : > { %2092 = vmax.xlane.f32.xlu1 %v5973_v63 }
 0x77e   : > { %2410 = vrot.lane.b32.xlu0 %v5336_v39, %s4993_s19 }
 0x784   : > { %2408 = vrot.lane.b32.xlu1 %v5338_v40, %s4993_s19 }
 0x788   : > { %2386 = vrot.lane.b32.xlu1 %v5318_v54, %s4994_s20 }
 0x78c   : > { %2390 = vrot.lane.b32.xlu1 %v5328_v16, %s4994_s20 }
 0x790   : > { %2394 = vrot.lane.b32.xlu1 %v5336_v39, %s4994_s20 }
 0x794   : > { %2398 = vrot.lane.b32.xlu1 %v5344_v49, %s4994_s20 }
 0x798   : > { %2699 = vrot.lane.b32.xlu1 %v5318_v54, %s4995_s21  ;;  %v6005_v54 = vpop.permute.xlu0 %2402 }
 0x79c   : > { %2705 = vrot.lane.b32.xlu1 %v5338_v40, %s4995_s21  ;;  %v6011_v32 = vpop.permute.xlu0 %2406 }
 0x79d   : > { %2088 = vmax.xlane.f32.xlu0 %v5988_v38 }
 0x7b3   : > { %2412 = vrot.lane.b32.xlu0 %v5346_v50, %s4993_s19 }
 0x7b7   : > { %2414 = vrot.lane.b32.xlu0 %v5344_v49, %s4993_s19  ;;  %s6871_s19 = scalar_lea.vmem %s6937_s13, %s3969_s27 }
 0x7bb   : > { %2384 = vrot.lane.b32.xlu0 %v5320_v12, %s4994_s20 }
 0x7bf   : > { %2388 = vrot.lane.b32.xlu0 %v5330_v26, %s4994_s20 }
 0x7c3   : > { %2392 = vrot.lane.b32.xlu0 %v5338_v40, %s4994_s20 }
 0x7c7   : > { %2396 = vrot.lane.b32.xlu0 %v5346_v50, %s4994_s20 }
 0x7cb   : > { %2697 = vrot.lane.b32.xlu0 %v5320_v12, %s4995_s21 }
 0x7cf   : > { %2701 = vrot.lane.b32.xlu0 %v5330_v26, %s4995_s21 }
 0x7d3   : > { %2703 = vrot.lane.b32.xlu0 %v5328_v16, %s4995_s21 }
 0x7d7   : > { %2707 = vrot.lane.b32.xlu0 %v5336_v39, %s4995_s21 }
 0x7dc   : > { %v2067_v40 = vpop.xlane.xlu0 %2066 }
 0x7dd   : > { %v2096_v58 = vsub.f32 %v5903_v45, %v2067_v40 }
 0x7df   : > { %v2065_v56 = vpop.xlane.xlu1 %2064  ;;  %v2114_v51 = vmul.f32 1.442695, %v2096_v58 }
 0x7e0   : > { %v2095_v55 = vsub.f32 %v5908_v61, %v2065_v56  ;;  %v2063_v12 = vpop.xlane.xlu0 %2062 }
 0x7e1   : > { %v2094_v26 = vsub.f32 %v5912_v35, %v2063_v12 }
 0x7e2   : > { %v2112_v52 = vmul.f32 1.442695, %v2095_v55 }
 0x7e3   : > { %v2110_v11 = vmul.f32 1.442695, %v2094_v26 }
 0x7e4   : > { %4673 = vpow2.f32 %v2112_v52  ;;  %v2075_v16 = vpop.xlane.xlu1 %2074  ;;  %v2069_v57 = vpop.xlane.xlu0 %2068 }
 0x7e5   : > { %4675 = vpow2.f32 %v2110_v11  ;;  %v2097_v39 = vsub.f32 %v5918_v10, %v2069_v57  ;;  %v2100_v27 = vsub.f32 %v5922_v43, %v2075_v16  ;;  %v2441_v16 = vsel %vm901_vm1, %v5865_v44, 0 }
 0x7e6   : > { %4677 = vpow2.f32 %v2114_v51 }
 0x7e7   : > { %v2116_v42 = vmul.f32 1.442695, %v2097_v39  ;;  %v2122_v52 = vmul.f32 1.442695, %v2100_v27 }
 0x7e8   : > { %v2071_v30 = vpop.xlane.xlu1 %2070  ;;  %v2073_v17 = vpop.xlane.xlu0 %2072 }
 0x7e9   : > { %v2098_v61 = vsub.f32 %v5932_v19, %v2071_v30  ;;  %v2099_v45 = vsub.f32 %v5928_v18, %v2073_v17  ;;  %4679 = vpow2.f32 %v2116_v42 }
 0x7eb   : > { %v2118_v55 = vmul.f32 1.442695, %v2098_v61  ;;  %v2120_v35 = vmul.f32 1.442695, %v2099_v45 }
 0x7ec   : > { %v2077_v40 = vpop.xlane.xlu1 %2076  ;;  %v2083_v27 = vpop.xlane.xlu0 %2082 }
 0x7ed   : > { %4681 = vpow2.f32 %v2118_v55  ;;  %v2101_v58 = vsub.f32 %v5938_v59, %v2077_v40  ;;  %v2104_v56 = vsub.f32 %v5942_v53, %v2083_v27 }
 0x7ee   : > { %v6023_v11 = vpop.eup %4673  ;;  %4683 = vpow2.f32 %v2120_v35 }
 0x7ef   : > { %v6025_v57 = vpop.eup %4675  ;;  %v2124_v43 = vmul.f32 1.442695, %v2101_v58  ;;  %4685 = vpow2.f32 %v2122_v52  ;;  %v2130_v55 = vmul.f32 1.442695, %v2104_v56 }
 0x7f0   : > { %v2079_v51 = vpop.xlane.xlu1 %2078  ;;  %v2174_v30 = vpack.c.bf16 %v6023_v11, %v6025_v57  ;;  %v6029_v17 = vpop.eup %4677 }
 0x7f1   : > { %4687 = vpow2.f32 %v2124_v43  ;;  %v2102_v42 = vsub.f32 %v5948_v15, %v2079_v51 }
 0x7f2   : > { %4341 = vmatprep.mubr.bf16.mxu0 %v2174_v30  ;;  %v2447_v30 = vsel %vm901_vm1, %v6013_v9, 0 }
 0x7f3   : > { %v6032_v19 = vpop.eup %4679  ;;  %v2126_v26 = vmul.f32 1.442695, %v2102_v42 }
 0x7f4   : > { %v2085_v18 = vpop.xlane.xlu1 %2084  ;;  %v2175_v59 = vpack.c.bf16 %v6032_v19, %v6029_v17 }
 0x7f5   : > { %v2105_v10 = vsub.f32 %v5953_v28, %v2085_v18  ;;  %4689 = vpow2.f32 %v2126_v26 }
 0x7f6   : > { %4342 = vmatmul.mubr.bf16.vlgmr.msra.gmra.mrb[48].mxu0 %v2175_v59 }
 0x7f7   : > { %v6038_v12 = vpop.eup %4681  ;;  %v2132_v15 = vmul.f32 1.442695, %v2105_v10  ;;  %4358 = vmatpush3.bf16.xpose.msra.mxu0 %v2441_v16  ;;  %v2450_v10 = vsel %vm901_vm1, %v6011_v32, 0 }
 0x7f8   : > { %v6042_v39 = vpop.eup %4683  ;;  %v2081_v61 = vpop.xlane.xlu1 %2080  ;;  %4534 = vmatprep.subr.msk.bf16.mxu0 %vm901_vm1, %v6005_v54 }
 0x7f9   : > { %v2103_v28 = vsub.f32 %v5963_v23, %v2081_v61  ;;  %v2176_v53 = vpack.c.bf16 %v6042_v39, %v6038_v12  ;;  %v6049_v45 = vpop.eup %4685  ;;  %4691 = vpow2.f32 %v2132_v15  ;;  %v2444_v23 = vsel %vm901_vm1, %v6005_v54, 0 }
 0x7fb   : > { %v6051_v35 = vpop.eup %4687  ;;  %v2128_v44 = vmul.f32 1.442695, %v2103_v28  ;;  %4345 = vmatprep.mubr.bf16.mxu0 %v2176_v53 }
 0x7fc   : > { %v2177_v52 = vpack.c.bf16 %v6051_v35, %v6049_v45  ;;  %v2091_v40 = vpop.xlane.xlu1 %2090 }
 0x7fd   : > { %4693 = vpow2.f32 %v2128_v44 }
 0x7fe   : > { %4695 = vpow2.f32 %v2130_v55  ;;  %4346 = vmatmul.mubr.bf16.gmra.mrb[52].mxu0 %v2177_v52 }
 0x7ff   : > { %4360 = vmatpush3.bf16.xpose.msra.mxu0 %v2444_v23  ;;  %v6059_v58 = vpop.eup %4689 }
 0x800   : > { %4535 = vmatprep.subr.msk.bf16.mxu0 %vm901_vm1, %v6013_v9  ;;  %v2093_v18 = vpop.xlane.xlu1 %2092  ;;  %v2087_v9 = vpop.xlane.xlu0 %2086 }
 0x801   : > { %v2106_v15 = vsub.f32 %v5957_v33, %v2087_v9  ;;  %v2109_v61 = vsub.f32 %v5973_v63, %v2093_v18 }
 0x803   : > { %v6061_v43 = vpop.eup %4691  ;;  %v2134_v28 = vmul.f32 1.442695, %v2106_v15  ;;  %v2140_v53 = vmul.f32 1.442695, %v2109_v61 }
 0x804   : > { %v2409_v59 = vpop.permute.xlu1 %2408  ;;  %v2411_v26 = vpop.permute.xlu0 %2410 }
 0x805   : > { %v2453_v56 = vsel %vm901_vm1, %v2409_v59, 0  ;;  %v2456_v16 = vsel %vm901_vm1, %v2411_v26, 0  ;;  %4697 = vpow2.f32 %v2134_v28 }
 0x806   : > { %4699 = vpow2.f32 %v2140_v53 }
 0x807   : > { %v6063_v51 = vpop.eup %4693  ;;  %4362 = vmatpush3.bf16.xpose.msra.mxu0 %v2447_v30 }
 0x808   : > { %v6067_v27 = vpop.eup %4695  ;;  %v2178_v54 = vpack.c.bf16 %v6063_v51, %v6059_v58  ;;  %4536 = vmatprep.subr.msk.bf16.mxu0 %vm901_vm1, %v6011_v32  ;;  %v2108_v32 = vsub.f32 %v5968_v21, %v2091_v40  ;;  %v2387_v33 = vpop.permute.xlu1 %2386 }
 0x809   : > { %v2179_v42 = vpack.c.bf16 %v6061_v43, %v6067_v27 }
 0x80a   : > { %4349 = vmatprep.mubr.bf16.mxu0 %v2178_v54  ;;  %v2138_v52 = vmul.f32 1.442695, %v2108_v32 }
 0x80b   : > { %4350 = vmatmul.mubr.bf16.gmra.mrb[56].mxu0 %v2179_v42 }
 0x80c   : > { %v2391_v21 = vpop.permute.xlu1 %2390 }
 0x80f   : > { %4364 = vmatpush3.bf16.xpose.msra.mxu0 %v2450_v10  ;;  %v6088_v42 = vpop.eup %4697 }
 0x810   : > { %4537 = vmatprep.subr.msk.bf16.mxu0 %vm901_vm1, %v2409_v59  ;;  %v6091_v18 = vpop.eup %4699 }
 0x817   : > { %4366 = vmatpush3.bf16.xpose.msra.mxu0 %v2453_v56 }
 0x818   : > { %4538 = vmatprep.subr.msk.bf16.mxu0 %vm901_vm1, %v2411_v26 }
 0x81f   : > { %4368 = vmatpush3.bf16.xpose.msra.mxu0 %v2456_v16  ;;  %v2395_v16 = vpop.permute.xlu1 %2394 }
 0x823   : > { %v2399_v61 = vpop.permute.xlu1 %2398 }
 0x827   : > { %v2700_v53 = vpop.permute.xlu1 %2699 }
 0x82a   : > { %v2089_v55 = vpop.xlane.xlu0 %2088 }
 0x82b   : > { %v2107_v44 = vsub.f32 %v5988_v38, %v2089_v55 }
 0x82d   : > { %v2136_v23 = vmul.f32 1.442695, %v2107_v44 }
 0x82e   : > { %v2413_v30 = vpop.permute.xlu0 %2412 }
 0x82f   : > { %4701 = vpow2.f32 %v2136_v23  ;;  %4539 = vmatprep.subr.msk.bf16.mxu0 %vm901_vm1, %v2413_v30  ;;  %v2459_v54 = vsel %vm901_vm1, %v2413_v30, 0 }
 0x830   : > { %4703 = vpow2.f32 %v2138_v52  ;;  %4370 = vmatpush3.bf16.xpose.msra.mxu0 %v2459_v54  ;;  %v2706_v52 = vpop.permute.xlu1 %2705 }
 0x832   : > { %v2415_v63 = vpop.permute.xlu0 %2414 }
 0x833   : > { %4540 = vmatprep.subr.msk.bf16.mxu0 %vm901_vm1, %v2415_v63  ;;  %v2462_v38 = vsel %vm901_vm1, %v2415_v63, 0 }
 0x836   : > { %v2385_v40 = vpop.permute.xlu0 %2384 }
 0x838   : > { %4372 = vmatpush3.bf16.xpose.msra.mxu0 %v2462_v38 }
 0x839   : > { %v6093_v10 = vpop.eup %4701 }
 0x83a   : > { %v6095_v59 = vpop.eup %4703  ;;  %v2389_v9 = vpop.permute.xlu0 %2388  ;;  %v2180_v56 = vpack.c.bf16 %v6093_v10, %v6088_v42 }
 0x83b   : > { %v2181_v26 = vpack.c.bf16 %v6091_v18, %v6095_v59 }
 0x83c   : > { %4353 = vmatprep.mubr.bf16.mxu0 %v2180_v56 }
 0x83d   : > { %4354 = vmatmul.mubr.bf16.gmra.mrb[60].mxu0 %v2181_v26 }
 0x83e   : > { %4373 = vmatprep.mubr.msk.bf16.mxu0 %vm901_vm1, %v2385_v40  ;;  %v2393_v15 = vpop.permute.xlu0 %2392 }
 0x842   : > { %v2397_v32 = vpop.permute.xlu0 %2396 }
 0x845   : > { %4374 = vmatmul.mubr.msk.bf16.vlgmr.msra.gmra.mrb[64].mxu0 %vm901_vm1, %v2387_v33 }
 0x846   : > { %4377 = vmatprep.mubr.msk.bf16.mxu0 %vm901_vm1, %v2389_v9  ;;  %v2698_v28 = vpop.permute.xlu0 %2697 }
 0x847   : > { %4389 = vmatprep.subr.bf16.mxu0 %v2698_v28  ;;  %4493 = vmatprep.subr.bf16.mxu1 %v2698_v28 }
 0x848   : > { %4390 = vmatpush3.bf16.msra.mxu0 %v2698_v28  ;;  %4501 = vmatpush3.bf16.msra.mxu1 %v2698_v28 }
 0x849   : > { %4391 = vmatprep.subr.bf16.mxu0 %v2700_v53  ;;  %4494 = vmatprep.subr.bf16.mxu1 %v2700_v53 }
 0x84a   : > { %v2702_v55 = vpop.permute.xlu0 %2701 }
 0x84c   : > { %4392 = vmatpush3.bf16.msra.mxu0 %v2700_v53  ;;  %4502 = vmatpush3.bf16.msra.mxu1 %v2700_v53 }
 0x84d   : > { %4378 = vmatmul.mubr.msk.bf16.gmra.mrb[68].mxu0 %vm901_vm1, %v2391_v21  ;;  %4393 = vmatprep.subr.bf16.mxu0 %v2702_v55 }
 0x84e   : > { %4495 = vmatprep.subr.bf16.mxu1 %v2702_v55  ;;  %4381 = vmatprep.mubr.msk.bf16.mxu0 %vm901_vm1, %v2393_v15  ;;  %v2704_v44 = vpop.permute.xlu0 %2703 }
 0x850   : > { %4394 = vmatpush3.bf16.msra.mxu0 %v2702_v55  ;;  %4503 = vmatpush3.bf16.msra.mxu1 %v2702_v55 }
 0x851   : > { %4395 = vmatprep.subr.bf16.mxu0 %v2704_v44  ;;  %4496 = vmatprep.subr.bf16.mxu1 %v2704_v44 }
 0x852   : > { %v2708_v23 = vpop.permute.xlu0 %2707 }
 0x854   : > { %4396 = vmatpush3.bf16.msra.mxu0 %v2704_v44  ;;  %4504 = vmatpush3.bf16.msra.mxu1 %v2704_v44 }
 0x855   : > { %4382 = vmatmul.mubr.msk.bf16.gmra.mrb[72].mxu0 %vm901_vm1, %v2395_v16  ;;  %4397 = vmatprep.subr.bf16.mxu0 %v2706_v52 }
 0x856   : > { %4497 = vmatprep.subr.bf16.mxu1 %v2706_v52  ;;  %4385 = vmatprep.mubr.msk.bf16.mxu0 %vm901_vm1, %v2397_v32 }
 0x858   : > { %4398 = vmatpush3.bf16.msra.mxu0 %v2706_v52  ;;  %4505 = vmatpush3.bf16.msra.mxu1 %v2706_v52 }
 0x859   : > { %4399 = vmatprep.subr.bf16.mxu0 %v2708_v23  ;;  %4498 = vmatprep.subr.bf16.mxu1 %v2708_v23 }
 0x85c   : > { %4400 = vmatpush3.bf16.msra.mxu0 %v2708_v23  ;;  %4506 = vmatpush3.bf16.msra.mxu1 %v2708_v23 }
 0x85d   : > { %4386 = vmatmul.mubr.msk.bf16.gmra.mrb[76].mxu0 %vm901_vm1, %v2399_v61 }
 0x8c9   : > { %v6109_v30 = vpop.f32.mrb[48].mxu0 }
 0x8ca   : > { %6984 = vst [vmem:[#allocation42_spill] sm:$0xff] %v6109_v30  ;;  %v6111_v54 = vpop.f32.mrb[49].mxu0 }
 0x8cb   : > { %v6113_v33 = vpop.f32.mrb[50].mxu0 }
 0x8cc   : > { %6985 = vst [vmem:[#allocation43_spill] sm:$0xff] %v6113_v33  ;;  %v6115_v63 = vpop.f32.mrb[51].mxu0 }
 0x8cd   : > { %6986 = vst [vmem:[#allocation44_spill] sm:$0xff] %v6115_v63 }
 0x8d1   : > { %v6117_v21 = vpop.f32.mrb[52].mxu0 }
 0x8d2   : > { %6987 = vst [vmem:[#allocation45_spill] sm:$0xff] %v6117_v21  ;;  %v6119_v40 = vpop.f32.mrb[53].mxu0 }
 0x8d3   : > { %6988 = vst [vmem:[#allocation46_spill] sm:$0xff] %v6119_v40  ;;  %v6121_v38 = vpop.f32.mrb[54].mxu0 }
 0x8d4   : > { %6989 = vst [vmem:[#allocation47_spill] sm:$0xff] %v6121_v38  ;;  %v6123_v9 = vpop.f32.mrb[55].mxu0 }
 0x8d5   : > { %6990 = vst [vmem:[#allocation48_spill] sm:$0xff] %v6123_v9 }
 0x8de   : > { %v6125_v56 = vpop.f32.mrb[56].mxu0 }
 0x8df   : > { %6991 = vst [vmem:[#allocation49_spill] sm:$0xff] %v6125_v56  ;;  %v6127_v26 = vpop.f32.mrb[57].mxu0 }
 0x8e0   : > { %6992 = vst [vmem:[#allocation50_spill] sm:$0xff] %v6127_v26  ;;  %v6129_v16 = vpop.f32.mrb[58].mxu0 }
 0x8e1   : > { %6993 = vst [vmem:[#allocation51_spill] sm:$0xff] %v6129_v16  ;;  %v6131_v15 = vpop.f32.mrb[59].mxu0 }
 0x8e2   : > { %6994 = vst [vmem:[#allocation52_spill] sm:$0xff] %v6131_v15 }
 0x910   : > { %v6133_v61 = vpop.f32.mrb[60].mxu0 }
 0x911   : > { %6995 = vst [vmem:[#allocation53_spill] sm:$0xff] %v6133_v61  ;;  %v6135_v32 = vpop.f32.mrb[61].mxu0 }
 0x912   : > { %6996 = vst [vmem:[#allocation54_spill] sm:$0xff] %v6135_v32  ;;  %v6137_v28 = vpop.f32.mrb[62].mxu0 }
 0x913   : > { %6997 = vst [vmem:[#allocation55_spill] sm:$0xff] %v6137_v28  ;;  %v6139_v53 = vpop.f32.mrb[63].mxu0 }
 0x914   : > { %6998 = vst [vmem:[#allocation56_spill] sm:$0xff] %v6139_v53 }
 0x918   : > { %v4375_v55 = vpop.f32.mrb[64].mxu0 }
 0x919   : > { %v6143_v44 = vsel %vm876_vm2, %v4375_v55, -1e+30  ;;  %v2498_v52 = vpop.f32.mrb[65].mxu0 }
 0x91a   : > { %v6147_v23 = vsel %vm876_vm2, %v2498_v52, -1e+30  ;;  %2581 = vmax.xlane.f32.xlu1 %v6143_v44  ;;  %v4376_v16 = vpop.f32.mrb[66].mxu0 }
 0x91b   : > { %2577 = vmax.xlane.f32.xlu0 %v6147_v23  ;;  %v2501_v15 = vpop.f32.mrb[67].mxu0  ;;  %v6153_v28 = vsel %vm876_vm2, %v4376_v16, -1e+30 }
 0x91c   : > { %v6158_v55 = vsel %vm876_vm2, %v2501_v15, -1e+30 }
 0x91e   : > { %2583 = vmax.xlane.f32.xlu1 %v6153_v28 }
 0x920   : > { %v4379_v53 = vpop.f32.mrb[68].mxu0 }
 0x921   : > { %v2514_v61 = vpop.f32.mrb[69].mxu0  ;;  %v6168_v16 = vsel %vm876_vm2, %v4379_v53, -1e+30 }
 0x922   : > { %v6162_v52 = vsel %vm876_vm2, %v2514_v61, -1e+30  ;;  %2579 = vmax.xlane.f32.xlu1 %v6158_v55  ;;  %v4380_v38 = vpop.f32.mrb[70].mxu0 }
 0x923   : > { %2585 = vmax.xlane.f32.xlu0 %v6162_v52  ;;  %v2517_v21 = vpop.f32.mrb[71].mxu0  ;;  %v6173_v15 = vsel %vm876_vm2, %v4380_v38, -1e+30 }
 0x924   : > { %v6183_v53 = vsel %vm876_vm2, %v2517_v21, -1e+30 }
 0x926   : > { %2589 = vmax.xlane.f32.xlu1 %v6168_v16 }
 0x928   : > { %v4383_v32 = vpop.f32.mrb[72].mxu0 }
 0x929   : > { %v2530_v9 = vpop.f32.mrb[73].mxu0 }
 0x92a   : > { %2591 = vmax.xlane.f32.xlu1 %v6173_v15  ;;  %v4384_v61 = vpop.f32.mrb[74].mxu0 }
 0x92b   : > { %v6178_v40 = vsel %vm876_vm2, %v4384_v61, -1e+30  ;;  %v2533_v56 = vpop.f32.mrb[75].mxu0  ;;  %v6193_v61 = vsel %vm876_vm2, %v4383_v32, -1e+30 }
 0x92c   : > { %2599 = vmax.xlane.f32.xlu0 %v6178_v40  ;;  %v6188_v38 = vsel %vm876_vm2, %v2533_v56, -1e+30  ;;  %v6203_v56 = vsel %vm876_vm2, %v2530_v9, -1e+30 }
 0x92e   : > { %2587 = vmax.xlane.f32.xlu1 %v6183_v53 }
 0x930   : > { %2595 = vmax.xlane.f32.xlu0 %v6188_v38  ;;  %v4387_v33 = vpop.f32.mrb[76].mxu0 }
 0x931   : > { %v2546_v30 = vpop.f32.mrb[77].mxu0 }
 0x932   : > { %2597 = vmax.xlane.f32.xlu1 %v6193_v61  ;;  %v4388_v26 = vpop.f32.mrb[78].mxu0 }
 0x933   : > { %v6198_v21 = vsel %vm876_vm2, %v4388_v26, -1e+30  ;;  %v2549_v63 = vpop.f32.mrb[79].mxu0  ;;  %v6217_v26 = vsel %vm876_vm2, %v2546_v30, -1e+30 }
 0x934   : > { %2607 = vmax.xlane.f32.xlu0 %v6198_v21  ;;  %v6208_v32 = vsel %vm876_vm2, %v2549_v63, -1e+30  ;;  %v6223_v63 = vsel %vm876_vm2, %v4387_v33, -1e+30 }
 0x936   : > { %2593 = vmax.xlane.f32.xlu1 %v6203_v56 }
 0x938   : > { %2603 = vmax.xlane.f32.xlu0 %v6208_v32 }
 0x947   : > { %2709 = vrot.lane.b32.xlu1 %v5346_v50, %s4995_s21 }
 0x94e   : > { %2711 = vrot.lane.b32.xlu0 %v5344_v49, %s4995_s21 }
 0x96b   : > { %2601 = vmax.xlane.f32.xlu1 %v6217_v26 }
 0x96d   : > { %1629 = vadd.xlane.f32.xlu0 %v5779_v8 }
 0x96f   : > { %2605 = vmax.xlane.f32.xlu1 %v6223_v63 }
 0x971   : > { %1635 = vadd.xlane.f32.xlu0 %v5794_v62 }
 0x973   : > { %1627 = vadd.xlane.f32.xlu1 %v5781_v4 }
 0x975   : > { %1639 = vadd.xlane.f32.xlu0 %v5805_v48 }
 0x977   : > { %1631 = vadd.xlane.f32.xlu1 %v5785_v60 }
 0x979   : > { %2150 = vadd.xlane.f32.xlu0 %v6038_v12 }
 0x97b   : > { %1633 = vadd.xlane.f32.xlu1 %v5788_v6 }
 0x97d   : > { %2154 = vadd.xlane.f32.xlu0 %v6049_v45 }
 0x97f   : > { %2142 = vadd.xlane.f32.xlu1 %v6025_v57 }
 0x981   : > { %1643 = vadd.xlane.f32.xlu0 %v5815_v5 }
 0x983   : > { %2144 = vadd.xlane.f32.xlu1 %v6023_v11 }
 0x985   : > { %1647 = vadd.xlane.f32.xlu0 %v5823_v47 }
 0x987   : > { %2146 = vadd.xlane.f32.xlu1 %v6029_v17 }
 0x989   : > { %2158 = vadd.xlane.f32.xlu0 %v6059_v58 }
 0x98b   : > { %2148 = vadd.xlane.f32.xlu1 %v6032_v19 }
 0x98d   : > { %2162 = vadd.xlane.f32.xlu0 %v6067_v27 }
 0x98f   : > { %1637 = vadd.xlane.f32.xlu1 %v5798_v34 }
 0x991   : > { %1651 = vadd.xlane.f32.xlu0 %v5844_v3 }
 0x993   : > { %1641 = vadd.xlane.f32.xlu1 %v5807_v31 }
 0x995   : > { %1655 = vadd.xlane.f32.xlu0 %v5851_v46 }
 0x997   : > { %2152 = vadd.xlane.f32.xlu1 %v6042_v39 }
 0x999   : > { %2166 = vadd.xlane.f32.xlu0 %v6088_v42 }
 0x99b   : > { %2156 = vadd.xlane.f32.xlu1 %v6051_v35 }
 0x99d   : > { %2170 = vadd.xlane.f32.xlu0 %v6095_v59 }
 0x99f   : > { %1645 = vadd.xlane.f32.xlu1 %v5819_v2 }
 0x9a1   : > { %1145 = vadd.xlane.f32.xlu0 %v5533_v14 }
 0x9a3   : > { %1649 = vadd.xlane.f32.xlu1 %v5817_v25 }
 0x9a5   : > { %1149 = vadd.xlane.f32.xlu0 %v5537_v22 }
 0x9a7   : > { %v2582_v49 = vpop.xlane.xlu1 %2581  ;;  %2160 = vadd.xlane.f32.xlu1 %v6063_v51 }
 0x9a8   : > { %v2611_v50 = vsub.f32 %v6143_v44, %v2582_v49  ;;  %v2578_v7 = vpop.xlane.xlu0 %2577 }
 0x9a9   : > { %1153 = vadd.xlane.f32.xlu0 %v5546_v20  ;;  %v2609_v4 = vsub.f32 %v6147_v23, %v2578_v7 }
 0x9aa   : > { %v2629_v8 = vmul.f32 1.442695, %v2611_v50 }
 0x9ab   : > { %v2584_v60 = vpop.xlane.xlu1 %2583  ;;  %2164 = vadd.xlane.f32.xlu1 %v6061_v43  ;;  %v2625_v14 = vmul.f32 1.442695, %v2609_v4  ;;  %v6999_v4 = vld [vmem:[#allocation4_spill] sm:$0xff] }
 0x9ac   : > { %4705 = vpow2.f32 %v2629_v8  ;;  %v2612_v25 = vsub.f32 %v6153_v28, %v2584_v60 }
 0x9ad   : > { %1157 = vadd.xlane.f32.xlu0 %v5557_v24  ;;  %4707 = vpow2.f32 %v2625_v14 }
 0x9af   : > { %v2580_v6 = vpop.xlane.xlu1 %2579  ;;  %1653 = vadd.xlane.f32.xlu1 %v5849_v41  ;;  %v2631_v41 = vmul.f32 1.442695, %v2612_v25 }
 0x9b0   : > { %v2610_v22 = vsub.f32 %v6158_v55, %v2580_v6  ;;  %v2586_v62 = vpop.xlane.xlu0 %2585 }
 0x9b1   : > { %v2613_v20 = vsub.f32 %v6162_v52, %v2586_v62 }
 0x9b2   : > { %v2627_v34 = vmul.f32 1.442695, %v2610_v22 }
 0x9b3   : > { %v2590_v48 = vpop.xlane.xlu1 %2589  ;;  %1657 = vadd.xlane.f32.xlu1 %v5847_v1  ;;  %v2633_v47 = vmul.f32 1.442695, %v2613_v20 }
 0x9b4   : > { %4709 = vpow2.f32 %v2627_v34  ;;  %v2615_v31 = vsub.f32 %v6168_v16, %v2590_v48  ;;  %v7000_v34 = vld [vmem:[#allocation8_spill] sm:$0xff] }
 0x9b6   : > { %v6264_v5 = vpop.eup %4705  ;;  %v2637_v24 = vmul.f32 1.442695, %v2615_v31  ;;  %v7001_v31 = vld [vmem:[#allocation7_spill] sm:$0xff] }
 0x9b7   : > { %v2592_v2 = vpop.xlane.xlu1 %2591  ;;  %2168 = vadd.xlane.f32.xlu1 %v6093_v10  ;;  %2661 = vadd.xlane.f32.xlu0 %v6264_v5  ;;  %v4708_v57 = vpop.eup %4707 }
 0x9b8   : > { %4711 = vpow2.f32 %v2637_v24  ;;  %v2616_v3 = vsub.f32 %v6173_v15, %v2592_v2 }
 0x9b9   : > { %v2600_v1 = vpop.xlane.xlu0 %2599  ;;  %4713 = vpow2.f32 %v2633_v47 }
 0x9ba   : > { %v2639_v17 = vmul.f32 1.442695, %v2616_v3  ;;  %4715 = vpow2.f32 %v2631_v41 }
 0x9bb   : > { %v2588_v46 = vpop.xlane.xlu1 %2587  ;;  %2172 = vadd.xlane.f32.xlu1 %v6091_v18  ;;  %v2620_v18 = vsub.f32 %v6178_v40, %v2600_v1 }
 0x9bc   : > { %v2614_v11 = vsub.f32 %v6183_v53, %v2588_v46 }
 0x9bd   : > { %v2596_v19 = vpop.xlane.xlu0 %2595  ;;  %v2647_v28 = vmul.f32 1.442695, %v2620_v18  ;;  %v7004_v18 = vld [vmem:[#allocation3_spill] sm:$0xff] }
 0x9be   : > { %v4710_v12 = vpop.eup %4709  ;;  %v2635_v39 = vmul.f32 1.442695, %v2614_v11  ;;  %v2618_v45 = vsub.f32 %v6188_v38, %v2596_v19 }
 0x9bf   : > { %v2598_v35 = vpop.xlane.xlu1 %2597  ;;  %1147 = vadd.xlane.f32.xlu1 %v5531_v13  ;;  %v2689_v58 = vpack.c.bf16 %v4710_v12, %v4708_v57 }
 0x9c0   : > { %4717 = vpow2.f32 %v2635_v39  ;;  %v2619_v43 = vsub.f32 %v6193_v61, %v2598_v35  ;;  %v2643_v10 = vmul.f32 1.442695, %v2618_v45 }
 0x9c1   : > { %4719 = vpow2.f32 %v2639_v17  ;;  %4405 = vmatprep.mubr.bf16.mxu0 %v2689_v58  ;;  %v2608_v51 = vpop.xlane.xlu0 %2607  ;;  %v7002_v17 = vld [vmem:[#allocation27_spill] sm:$0xff] }
 0x9c2   : > { %v4712_v27 = vpop.eup %4711  ;;  %v2645_v42 = vmul.f32 1.442695, %v2619_v43  ;;  %v2624_v49 = vsub.f32 %v6198_v21, %v2608_v51 }
 0x9c3   : > { %v2594_v59 = vpop.xlane.xlu1 %2593  ;;  %1151 = vadd.xlane.f32.xlu1 %v5540_v0  ;;  %2669 = vadd.xlane.f32.xlu0 %v4712_v27  ;;  %v4714_v33 = vpop.eup %4713 }
 0x9c4   : > { %4721 = vpow2.f32 %v2645_v42  ;;  %v2617_v30 = vsub.f32 %v6203_v56, %v2594_v59  ;;  %v4716_v40 = vpop.eup %4715  ;;  %v2655_v50 = vmul.f32 1.442695, %v2624_v49 }
 0x9c5   : > { %v2604_v13 = vpop.xlane.xlu0 %2603  ;;  %4723 = vpow2.f32 %v2643_v10  ;;  %v7005_v10 = vld [vmem:[#allocation26_spill] sm:$0xff] }
 0x9c6   : > { %v2641_v9 = vmul.f32 1.442695, %v2617_v30  ;;  %v2622_v7 = vsub.f32 %v6208_v32, %v2604_v13  ;;  %v7006_v30 = vld [vmem:[#allocation28_spill] sm:$0xff] }
 0x9c7   : > { %v2710_v44 = vpop.permute.xlu1 %2709  ;;  %1155 = vadd.xlane.f32.xlu1 %v5550_v36  ;;  %2665 = vadd.xlane.f32.xlu0 %v4714_v33  ;;  %v2690_v36 = vpack.c.bf16 %v4716_v40, %v6264_v5 }
 0x9c8   : > { %4725 = vpow2.f32 %v2641_v9  ;;  %4401 = vmatprep.subr.bf16.mxu0 %v2710_v44  ;;  %4499 = vmatprep.subr.bf16.mxu1 %v2710_v44  ;;  %v2651_v8 = vmul.f32 1.442695, %v2622_v7  ;;  %v7011_v7 = vld [vmem:[#allocation50_spill] sm:$0xff] }
 0x9c9   : > { %4402 = vmatpush3.bf16.msra.mxu0 %v2710_v44  ;;  %4507 = vmatpush3.bf16.msra.mxu1 %v2710_v44  ;;  %v2712_v0 = vpop.permute.xlu0 %2711  ;;  %4727 = vpow2.f32 %v2647_v28  ;;  %v7007_v44 = vld [vmem:[#allocation5_spill] sm:$0xff] }
 0x9ca   : > { %v4718_v23 = vpop.eup %4717  ;;  %4403 = vmatprep.subr.bf16.mxu0 %v2712_v0  ;;  %4500 = vmatprep.subr.bf16.mxu1 %v2712_v0  ;;  %4729 = vpow2.f32 %v2655_v50 }
 0x9cb   : > { %v4720_v55 = vpop.eup %4719  ;;  %1159 = vadd.xlane.f32.xlu1 %v5559_v29  ;;  %v2691_v52 = vpack.c.bf16 %v4718_v23, %v4714_v33  ;;  %4731 = vpow2.f32 %v2651_v8 }
 0x9cc   : > { %v2692_v15 = vpack.c.bf16 %v4720_v55, %v4712_v27 }
 0x9cd   : > { %4404 = vmatpush3.bf16.msra.mxu0 %v2712_v0  ;;  %4508 = vmatpush3.bf16.msra.mxu1 %v2712_v0 }
 0x9ce   : > { %v4722_v16 = vpop.eup %4721  ;;  %4409 = vmatprep.mubr.bf16.mxu1 %v2691_v52  ;;  %v7008_v52 = vld [vmem:[#allocation6_spill] sm:$0xff] }
 0x9cf   : > { %2657 = vadd.xlane.f32.xlu1 %v4708_v57  ;;  %2677 = vadd.xlane.f32.xlu0 %v4722_v16  ;;  %v4724_v53 = vpop.eup %4723 }
 0x9d0   : > { %4406 = vmatmul.mubr.bf16.vlgmr.msra.gmra.mrb[80].mxu0 %v2690_v36  ;;  %4410 = vmatmul.mubr.bf16.vlgmr.msra.gmra.mrb[48].mxu1 %v2692_v15  ;;  %v7009_v36 = vld [vmem:[#allocation44_spill] sm:$0xff] }
 0x9d2   : > { %v4726_v38 = vpop.eup %4725 }
 0x9d3   : > { %2663 = vadd.xlane.f32.xlu1 %v4716_v40  ;;  %2673 = vadd.xlane.f32.xlu0 %v4726_v38  ;;  %v2693_v61 = vpack.c.bf16 %v4724_v53, %v4726_v38  ;;  %v4728_v56 = vpop.eup %4727 }
 0x9d4   : > { %v2694_v29 = vpack.c.bf16 %v4728_v56, %v4722_v16  ;;  %v4730_v60 = vpop.eup %4729 }
 0x9d5   : > { %4413 = vmatprep.mubr.bf16.mxu1 %v2693_v61  ;;  %v4732_v14 = vpop.eup %4731 }
 0x9d7   : > { %2659 = vadd.xlane.f32.xlu1 %v4710_v12  ;;  %v7003_v12 = vld [vmem:[#allocation29_spill] sm:$0xff] }
 0x9d8   : > { %4414 = vmatmul.mubr.bf16.gmra.mrb[52].mxu1 %v2694_v29  ;;  %v7010_v29 = vld [vmem:[#allocation9_spill] sm:$0xff] }
 0x9db   : > { %2671 = vadd.xlane.f32.xlu1 %v4720_v55 }
 0x9df   : > { %2667 = vadd.xlane.f32.xlu1 %v4718_v23 }
 0x9e3   : > { %2679 = vadd.xlane.f32.xlu1 %v4728_v56 }
 0x9e7   : > { %2675 = vadd.xlane.f32.xlu1 %v4724_v53 }
 0x9eb   : > { %1163 = vadd.xlane.f32.xlu1 %v5571_v37 }
 0x9ef   : > { %1167 = vadd.xlane.f32.xlu1 %v6999_v4 }
 0x9f3   : > { %2687 = vadd.xlane.f32.xlu1 %v4730_v60 }
 0x9f7   : > { %2683 = vadd.xlane.f32.xlu1 %v4732_v14 }
 0x9f8   : > { %v2602_v6 = vpop.xlane.xlu1 %2601 }
 0x9f9   : > { %v2621_v22 = vsub.f32 %v6217_v26, %v2602_v6 }
 0x9fa   : > { %v1630_v21 = vpop.xlane.xlu0 %1629 }
 0x9fb   : > { %v2649_v62 = vmul.f32 1.442695, %v2621_v22  ;;  %1171 = vadd.xlane.f32.xlu1 %v7000_v34  ;;  %v7013_v22 = vld [vmem:[#allocation43_spill] sm:$0xff] }
 0x9fc   : > { %v2606_v32 = vpop.xlane.xlu1 %2605 }
 0x9fd   : > { %4733 = vpow2.f32 %v2649_v62  ;;  %v2623_v48 = vsub.f32 %v6223_v63, %v2606_v32 }
 0x9fe   : > { %v1636_v20 = vpop.xlane.xlu0 %1635  ;;  %4735 = vrcp.f32 %v1630_v21 }
 0x9ff   : > { %v2653_v37 = vmul.f32 1.442695, %v2623_v48  ;;  %1175 = vadd.xlane.f32.xlu1 %v7001_v31  ;;  %v7014_v48 = vld [vmem:[#allocation49_spill] sm:$0xff] }
 0xa00   : > { %v1628_v5 = vpop.xlane.xlu1 %1627 }
 0xa01   : > { %4737 = vpow2.f32 %v2653_v37 }
 0xa02   : > { %4739 = vrcp.f32 %v1628_v5  ;;  %v1640_v24 = vpop.xlane.xlu0 %1639 }
 0xa04   : > { %v1632_v25 = vpop.xlane.xlu1 %1631 }
 0xa05   : > { %4741 = vrcp.f32 %v1632_v25 }
 0xa06   : > { %v2151_v2 = vpop.xlane.xlu0 %2150 }
 0xa07   : > { %v4734_v26 = vpop.eup %4733 }
 0xa08   : > { %v1634_v47 = vpop.xlane.xlu1 %1633  ;;  %v2695_v3 = vpack.c.bf16 %v4732_v14, %v4734_v26  ;;  %v4736_v1 = vpop.eup %4735  ;;  %v7012_v14 = vld [vmem:[#allocation42_spill] sm:$0xff] }
 0xa09   : > { %4743 = vrcp.f32 %v1634_v47  ;;  %v6293_v39 = vmul.f32 %v4736_v1, %v7003_v12 }
 0xa0a   : > { %4417 = vmatprep.mubr.bf16.mxu1 %v2695_v3  ;;  %v2155_v41 = vpop.xlane.xlu0 %2154 }
 0xa0b   : > { %v4738_v63 = vpop.eup %4737 }
 0xa0c   : > { %v4740_v46 = vpop.eup %4739  ;;  %v2143_v11 = vpop.xlane.xlu1 %2142  ;;  %2685 = vadd.xlane.f32.xlu0 %v4738_v63  ;;  %v2696_v57 = vpack.c.bf16 %v4730_v60, %v4738_v63 }
 0xa0d   : > { %v6290_v19 = vmul.f32 %v4740_v46, %v7002_v17  ;;  %4745 = vrcp.f32 %v2143_v11  ;;  %v7018_v17 = vld [vmem:[#allocation30_spill] sm:$0xff] }
 0xa0e   : > { %4418 = vmatmul.mubr.bf16.gmra.mrb[56].mxu1 %v2696_v57  ;;  %v6295_v45 = vpop.xlane.xlu0 %1643 }
 0xa0f   : > { %v1820_v35 = vpack.c.bf16 %v6293_v39, %v6290_v19  ;;  %v4742_v43 = vpop.eup %4741  ;;  %v7029_v19 = vld [vmem:[#allocation34_spill] sm:$0xff] }
 0xa10   : > { %v2145_v58 = vpop.xlane.xlu1 %2144  ;;  %2681 = vadd.xlane.f32.xlu0 %v4734_v26  ;;  %v1806_v59 = vmul.f32 %v4742_v43, %v7005_v10 }
 0xa11   : > { %4747 = vrcp.f32 %v2145_v58  ;;  %v7019_v58 = vld [vmem:[#allocation32_spill] sm:$0xff] }
 0xa12   : > { %v6299_v51 = vpop.xlane.xlu0 %1647 }
 0xa13   : > { %v4744_v27 = vpop.eup %4743 }
 0xa14   : > { %v2147_v42 = vpop.xlane.xlu1 %2146  ;;  %1161 = vadd.xlane.f32.xlu0 %v7004_v18  ;;  %v1807_v13 = vmul.f32 %v4744_v27, %v7006_v30  ;;  %v7020_v18 = vld [vmem:[#allocation38_spill] sm:$0xff] }
 0xa15   : > { %4749 = vrcp.f32 %v2147_v42 }
 0xa16   : > { %v2159_v33 = vpop.xlane.xlu0 %2158  ;;  %v1821_v9 = vpack.c.bf16 %v1807_v13, %v1806_v59  ;;  %v7021_v13 = vld [vmem:[#allocation46_spill] sm:$0xff] }
 0xa17   : > { %4751 = vrcp.f32 %v2159_v33  ;;  %v4746_v40 = vpop.eup %4745 }
 0xa18   : > { %v2149_v28 = vpop.xlane.xlu1 %2148  ;;  %1165 = vadd.xlane.f32.xlu0 %v7007_v44  ;;  %1838 = vrot.lane.b32.xlu1 %v1821_v9, %s4996_s22  ;;  %v2319_v16 = vmul.f32 %v4746_v40, %v6111_v54  ;;  %v7022_v9 = vld [vmem:[#allocation48_spill] sm:$0xff] }
 0xa19   : > { %4753 = vrcp.f32 %v2149_v28 }
 0xa1a   : > { %4755 = vrcp.f32 %v1636_v20  ;;  %v2163_v0 = vpop.xlane.xlu0 %2162 }
 0xa1b   : > { %v4748_v23 = vpop.eup %4747  ;;  %4757 = vrcp.f32 %v2163_v0  ;;  %v7023_v0 = vld [vmem:[#allocation54_spill] sm:$0xff] }
 0xa1c   : > { %v1638_v55 = vpop.xlane.xlu1 %1637  ;;  %1169 = vadd.xlane.f32.xlu0 %v7008_v52  ;;  %v2320_v15 = vmul.f32 %v4748_v23, %v7009_v36  ;;  %v7024_v36 = vld [vmem:[#allocation45_spill] sm:$0xff] }
 0xa1d   : > { %4759 = vrcp.f32 %v1638_v55 }
 0xa1e   : > { %4761 = vrcp.f32 %v1640_v24  ;;  %v1652_v53 = vpop.xlane.xlu0 %1651  ;;  %v2335_v38 = vpack.c.bf16 %v2320_v15, %v2319_v16  ;;  %v7015_v24 = vld [vmem:[#allocation31_spill] sm:$0xff] }
 0xa1f   : > { %4763 = vrcp.f32 %v1652_v53  ;;  %v4750_v61 = vpop.eup %4749 }
 0xa20   : > { %v1642_v56 = vpop.xlane.xlu1 %1641  ;;  %1173 = vadd.xlane.f32.xlu0 %v7010_v29  ;;  %2351 = vrot.lane.b32.xlu1 %v2335_v38, %s4997_s23  ;;  %v2321_v6 = vmul.f32 %v4750_v61, %v7012_v14 }
 0xa21   : > { %v4752_v49 = vpop.eup %4751  ;;  %4765 = vrcp.f32 %v1642_v56  ;;  %v7026_v56 = vld [vmem:[#allocation53_spill] sm:$0xff] }
 0xa22   : > { %4767 = vrcp.f32 %v2151_v2  ;;  %v1656_v50 = vpop.xlane.xlu0 %1655  ;;  %v6312_v54 = vmul.f32 %v4752_v49, %v7011_v7  ;;  %v7016_v2 = vld [vmem:[#allocation33_spill] sm:$0xff]  ;;  %v7027_v7 = vld [vmem:[#allocation35_spill] sm:$0xff] }
 0xa23   : > { %v4754_v8 = vpop.eup %4753  ;;  %4769 = vrcp.f32 %v1656_v50 }
 0xa24   : > { %v4756_v4 = vpop.eup %4755  ;;  %v2153_v60 = vpop.xlane.xlu1 %2152  ;;  %v2322_v21 = vmul.f32 %v4754_v8, %v7013_v22 }
 0xa25   : > { %v4758_v62 = vpop.eup %4757  ;;  %4771 = vrcp.f32 %v2153_v60  ;;  %v1808_v25 = vmul.f32 %v4756_v4, %v7015_v24  ;;  %v7028_v4 = vld [vmem:[#allocation37_spill] sm:$0xff] }
 0xa26   : > { %4773 = vrcp.f32 %v2155_v41  ;;  %v2167_v34 = vpop.xlane.xlu0 %2166  ;;  %v2336_v32 = vpack.c.bf16 %v2322_v21, %v2321_v6  ;;  %v6317_v20 = vmul.f32 %v4758_v62, %v7014_v48  ;;  %v7017_v41 = vld [vmem:[#allocation39_spill] sm:$0xff] }
 0xa27   : > { %v4760_v37 = vpop.eup %4759  ;;  %4775 = vrcp.f32 %v2167_v34 }
 0xa28   : > { %v4762_v31 = vpop.eup %4761  ;;  %v2157_v5 = vpop.xlane.xlu1 %2156  ;;  %v1809_v26 = vmul.f32 %v4760_v37, %v7016_v2 }
 0xa29   : > { %v4764_v47 = vpop.eup %4763  ;;  %4777 = vrcp.f32 %v2157_v5  ;;  %v1810_v12 = vmul.f32 %v4762_v31, %v7018_v17  ;;  %v7031_v31 = vld [vmem:[#allocation52_spill] sm:$0xff] }
 0xa2a   : > { %4779 = vrcp.f32 %v6295_v45  ;;  %v2171_v3 = vpop.xlane.xlu0 %2170  ;;  %v1822_v1 = vpack.c.bf16 %v1809_v26, %v1808_v25  ;;  %v6323_v63 = vmul.f32 %v4764_v47, %v7017_v41  ;;  %v7032_v26 = vld [vmem:[#allocation51_spill] sm:$0xff] }
 0xa2b   : > { %v4766_v46 = vpop.eup %4765  ;;  %4781 = vrcp.f32 %v2171_v3 }
 0xa2c   : > { %v4768_v11 = vpop.eup %4767  ;;  %v1646_v57 = vpop.xlane.xlu1 %1645  ;;  %1840 = vrot.lane.b32.xlu1 %v1822_v1, %s4996_s22  ;;  %v1811_v43 = vmul.f32 %v4766_v46, %v7019_v58 }
 0xa2d   : > { %v4770_v27 = vpop.eup %4769  ;;  %4783 = vrcp.f32 %v1646_v57  ;;  %v2323_v33 = vmul.f32 %v4768_v11, %v7021_v13  ;;  %v7033_v11 = vld [vmem:[#allocation41_spill] sm:$0xff] }
 0xa2e   : > { %v1823_v42 = vpack.c.bf16 %v1811_v43, %v1810_v12  ;;  %v6329_v45 = vmul.f32 %v4770_v27, %v7020_v18  ;;  %4785 = vrcp.f32 %v6299_v51  ;;  %v7025_v51 = vld [vmem:[#allocation47_spill] sm:$0xff]  ;;  %v7034_v43 = vld [vmem:[#allocation40_spill] sm:$0xff] }
 0xa2f   : > { %v4772_v10 = vpop.eup %4771 }
 0xa30   : > { %v4774_v59 = vpop.eup %4773  ;;  %v1650_v30 = vpop.xlane.xlu1 %1649  ;;  %v2324_v28 = vmul.f32 %v4772_v10, %v7022_v9 }
 0xa31   : > { %v4776_v44 = vpop.eup %4775  ;;  %4787 = vrcp.f32 %v1650_v30  ;;  %v2325_v15 = vmul.f32 %v4774_v59, %v7024_v36  ;;  %v7035_v30 = vld [vmem:[#allocation56_spill] sm:$0xff] }
 0xa32   : > { %v2337_v40 = vpack.c.bf16 %v2324_v28, %v2323_v33  ;;  %v6335_v23 = vmul.f32 %v4776_v44, %v7023_v0 }
 0xa33   : > { %v4778_v55 = vpop.eup %4777 }
 0xa34   : > { %v4780_v52 = vpop.eup %4779  ;;  %v2161_v16 = vpop.xlane.xlu1 %2160  ;;  %2355 = vrot.lane.b32.xlu1 %v2337_v40, %s4997_s23  ;;  %v2326_v53 = vmul.f32 %v4778_v55, %v7025_v51  ;;  %v7036_v40 = vld [vmem:[#allocation55_spill] sm:$0xff] }
 0xa35   : > { %v4782_v38 = vpop.eup %4781  ;;  %4789 = vrcp.f32 %v2161_v16  ;;  %v1812_v8 = vmul.f32 %v4780_v52, %v7027_v7  ;;  %v7039_v7 = vld [vmem:[#allocation12_spill] sm:$0xff] }
 0xa36   : > { %1836 = vrot.lane.b32.xlu0 %v1820_v35, %s4996_s22  ;;  %v2338_v61 = vpack.c.bf16 %v2326_v53, %v2325_v15  ;;  %v6345_v29 = vmul.f32 %v4782_v38, %v7026_v56  ;;  %v7030_v35 = vld [vmem:[#allocation36_spill] sm:$0xff]  ;;  %v7037_v15 = vld [vmem:[#allocation11_spill] sm:$0xff]  ;;  %v7038_v53 = vld [vmem:[#allocation13_spill] sm:$0xff] }
 0xa37   : > { %v4784_v49 = vpop.eup %4783 }
 0xa38   : > { %v2165_v50 = vpop.xlane.xlu1 %2164  ;;  %v1813_v60 = vmul.f32 %v4784_v49, %v7028_v4  ;;  %v4786_v14 = vpop.eup %4785  ;;  %v7040_v4 = vld [vmem:[#allocation10_spill] sm:$0xff] }
 0xa39   : > { %4791 = vrcp.f32 %v2165_v50  ;;  %v1814_v39 = vmul.f32 %v4786_v14, %v7029_v19  ;;  %v7041_v19 = vld [vmem:[#allocation17_spill] sm:$0xff] }
 0xa3a   : > { %2353 = vrot.lane.b32.xlu0 %v2336_v32, %s4997_s23  ;;  %v1824_v6 = vpack.c.bf16 %v1813_v60, %v1812_v8  ;;  %v1146_v32 = vpop.xlane.xlu0 %1145 }
 0xa3b   : > { %v4788_v22 = vpop.eup %4787 }
 0xa3c   : > { %v1654_v21 = vpop.xlane.xlu1 %1653  ;;  %1844 = vrot.lane.b32.xlu1 %v1824_v6, %s4996_s22  ;;  %v1815_v62 = vmul.f32 %v4788_v22, %v7030_v35  ;;  %v7042_v35 = vld [vmem:[#allocation15_spill] sm:$0xff] }
 0xa3d   : > { %4793 = vrcp.f32 %v1654_v21 }
 0xa3e   : > { %1842 = vrot.lane.b32.xlu0 %v1823_v42, %s4996_s22  ;;  %v1825_v34 = vpack.c.bf16 %v1815_v62, %v1814_v39  ;;  %v1150_v41 = vpop.xlane.xlu0 %1149 }
 0xa3f   : > { %v4790_v48 = vpop.eup %4789 }
 0xa40   : > { %v1658_v37 = vpop.xlane.xlu1 %1657  ;;  %v6355_v5 = vmul.f32 %v4790_v48, %v7031_v31 }
 0xa41   : > { %4795 = vrcp.f32 %v1658_v37 }
 0xa42   : > { %2357 = vrot.lane.b32.xlu0 %v2338_v61, %s4997_s23  ;;  %v2339_v24 = vpack.c.bf16 %v6355_v5, %v6312_v54  ;;  %v1154_v42 = vpop.xlane.xlu0 %1153 }
 0xa43   : > { %v4792_v25 = vpop.eup %4791 }
 0xa44   : > { %v2169_v2 = vpop.xlane.xlu1 %2168  ;;  %v6361_v47 = vmul.f32 %v4792_v25, %v7032_v26 }
 0xa45   : > { %4797 = vrcp.f32 %v2169_v2  ;;  %v7044_v2 = vld [vmem:[#allocation16_spill] sm:$0xff] }
 0xa46   : > { %1846 = vrot.lane.b32.xlu0 %v1825_v34, %s4996_s22  ;;  %v2340_v3 = vpack.c.bf16 %v6361_v47, %v6317_v20  ;;  %v1158_v28 = vpop.xlane.xlu0 %1157  ;;  %v7047_v47 = vld [vmem:[#allocation18_spill] sm:$0xff] }
 0xa47   : > { %v4794_v1 = vpop.eup %4793 }
 0xa48   : > { %v2173_v46 = vpop.xlane.xlu1 %2172  ;;  %v6367_v57 = vmul.f32 %v4794_v1, %v7033_v11 }
 0xa49   : > { %4799 = vrcp.f32 %v2173_v46 }
 0xa4a   : > { %v1826_v17 = vpack.c.bf16 %v6367_v57, %v6323_v63  ;;  %4801 = vrcp.f32 %v1146_v32  ;;  %v7043_v32 = vld [vmem:[#allocation14_spill] sm:$0xff] }
 0xa4b   : > { %v4796_v12 = vpop.eup %4795 }
 0xa4c   : > { %v1148_v58 = vpop.xlane.xlu1 %1147  ;;  %v6372_v27 = vmul.f32 %v4796_v12, %v7034_v43 }
 0xa4d   : > { %4803 = vrcp.f32 %v1148_v58 }
 0xa4e   : > { %v1827_v18 = vpack.c.bf16 %v6372_v27, %v6329_v45  ;;  %4805 = vrcp.f32 %v1150_v41  ;;  %v7051_v45 = vld [vmem:[#allocation22_spill] sm:$0xff] }
 0xa4f   : > { %v4798_v10 = vpop.eup %4797 }
 0xa50   : > { %v1152_v59 = vpop.xlane.xlu1 %1151  ;;  %v6377_v13 = vmul.f32 %v4798_v10, %v7035_v30  ;;  %v2662_v10 = vpop.xlane.xlu0 %2661 }
 0xa51   : > { %4807 = vrcp.f32 %v1152_v59 }
 0xa52   : > { %v2341_v33 = vpack.c.bf16 %v6377_v13, %v6335_v23  ;;  %4809 = vrcp.f32 %v1154_v42 }
 0xa53   : > { %v4800_v9 = vpop.eup %4799 }
 0xa54   : > { %v1156_v44 = vpop.xlane.xlu1 %1155  ;;  %v6382_v0 = vmul.f32 %v4800_v9, %v7036_v40  ;;  %v4802_v55 = vpop.eup %4801 }
 0xa55   : > { %4811 = vrcp.f32 %v1156_v44  ;;  %v1322_v51 = vmul.f32 %v4802_v55, %v7037_v15  ;;  %v2670_v30 = vpop.xlane.xlu0 %2669 }
 0xa56   : > { %v2342_v52 = vpack.c.bf16 %v6382_v0, %v6345_v29  ;;  %4813 = vrcp.f32 %v1158_v28 }
 0xa57   : > { %v4804_v16 = vpop.eup %4803 }
 0xa58   : > { %v1160_v36 = vpop.xlane.xlu1 %1159  ;;  %v1323_v38 = vmul.f32 %v4804_v16, %v7038_v53  ;;  %v4806_v61 = vpop.eup %4805 }
 0xa59   : > { %4815 = vrcp.f32 %v1160_v36  ;;  %v1324_v60 = vmul.f32 %v4806_v61, %v7040_v4  ;;  %v2666_v28 = vpop.xlane.xlu0 %2665 }
 0xa5a   : > { %v1338_v56 = vpack.c.bf16 %v1323_v38, %v1322_v51  ;;  %4817 = vrcp.f32 %v2662_v10  ;;  %v4565_v38 = vld [vmem:[%s6929_s5] sm:$0xff]  }
 0xa5b   : > { %v4808_v49 = vpop.eup %4807  ;;  %4819 = vrcp.f32 %v2670_v30  ;;  %4421 = vmatprep.subr.bf16.mxu1 %v4565_v38 }
 0xa5c   : > { %v2658_v50 = vpop.xlane.xlu1 %2657  ;;  %v1325_v8 = vmul.f32 %v4808_v49, %v7039_v7  ;;  %1346 = vst.msk [vmem:[#allocation2] sm:$0xff] %vm901_vm1, %v1338_v56  ;;  %v4810_v14 = vpop.eup %4809  ;;  %4821 = vrcp.f32 %v2666_v28  ;;  %4422 = vmatpush3.bf16.msra.mxu1 %v4565_v38  ;;  %v4566_v7 = vld [vmem:[%s6929_s5 + $0x8] sm:$0xff]  }
 0xa5d   : > { %v1326_v62 = vmul.f32 %v4810_v14, %v7042_v35  ;;  %v2678_v40 = vpop.xlane.xlu0 %2677  ;;  %4823 = vrcp.f32 %v2658_v50  ;;  %4423 = vmatprep.subr.bf16.mxu1 %v4566_v7 }
 0xa5e   : > { %v1339_v6 = vpack.c.bf16 %v1325_v8, %v1324_v60 }
 0xa5f   : > { %v4812_v22 = vpop.eup %4811 }
 0xa60   : > { %v2664_v21 = vpop.xlane.xlu1 %2663  ;;  %1347 = vst.msk [vmem:[#allocation2 + $0x8] sm:$0xff] %vm901_vm1, %v1339_v6  ;;  %v1327_v39 = vmul.f32 %v4812_v22, %v7041_v19  ;;  %v4814_v34 = vpop.eup %4813  ;;  %4424 = vmatpush3.bf16.msra.mxu1 %v4566_v7 }
 0xa61   : > { %v1328_v25 = vmul.f32 %v4814_v34, %v7043_v32  ;;  %v2674_v16 = vpop.xlane.xlu0 %2673  ;;  %4825 = vrcp.f32 %v2664_v21 }
 0xa62   : > { %v1340_v48 = vpack.c.bf16 %v1327_v39, %v1326_v62 }
 0xa63   : > { %v4816_v37 = vpop.eup %4815 }
 0xa64   : > { %v2660_v31 = vpop.xlane.xlu1 %2659  ;;  %1348 = vst.msk [vmem:[#allocation2 + $0x10] sm:$0xff] %vm901_vm1, %v1340_v48  ;;  %v1329_v26 = vmul.f32 %v4816_v37, %v7044_v2  ;;  %v4818_v61 = vpop.eup %4817 }
 0xa65   : > { %v4820_v56 = vpop.eup %4819 }
 0xa66   : > { %v1341_v1 = vpack.c.bf16 %v1329_v26, %v1328_v25  ;;  %v4822_v50 = vpop.eup %4821 }
 0xa67   : > { %v4824_v8 = vpop.eup %4823 }
 0xa68   : > { %v2672_v41 = vpop.xlane.xlu1 %2671  ;;  %1349 = vst.msk [vmem:[#allocation2 + $0x18] sm:$0xff] %vm901_vm1, %v1341_v1 }
 0xa69   : > { %4827 = vrcp.f32 %v2672_v41 }
 0xa6a   : > { %4829 = vrcp.f32 %v2660_v31 }
 0xa6b   : > { %v4826_v14 = vpop.eup %4825 }
 0xa6c   : > { %v2668_v46 = vpop.xlane.xlu1 %2667 }
 0xa6d   : > { %4831 = vrcp.f32 %v2668_v46 }
 0xa6e   : > { %4833 = vrcp.f32 %v2678_v40 }
 0xa70   : > { %v2680_v11 = vpop.xlane.xlu1 %2679 }
 0xa73   : > { %v4828_v21 = vpop.eup %4827 }
 0xa74   : > { %v2676_v12 = vpop.xlane.xlu1 %2675  ;;  %v4830_v35 = vpop.eup %4829 }
 0xa77   : > { %v4832_v25 = vpop.eup %4831 }
 0xa78   : > { %v1164_v58 = vpop.xlane.xlu1 %1163 }
 0xa79   : > { %4835 = vrcp.f32 %v1164_v58 }
 0xa7a   : > { %4837 = vrcp.f32 %v2674_v16 }
 0xa7c   : > { %v1168_v43 = vpop.xlane.xlu1 %1167 }
 0xa80   : > { %v6398_v42 = vpop.xlane.xlu1 %2687 }
 0xa84   : > { %v6400_v59 = vpop.xlane.xlu1 %2683 }
 0xa88   : > { %v6402_v9 = vpop.xlane.xlu1 %1171 }
 0xa8c   : > { %v6404_v44 = vpop.xlane.xlu1 %1175 }
 0xa90   : > { %v1839_v55 = vpop.permute.xlu1 %1838 }
 0xa91   : > { %1862 = vst.msk [vmem:[#allocation2 + $0x8] sm:$0xff] %vm1860_vm3, %v1839_v55 }
 0xa94   : > { %v6409_v15 = vpop.permute.xlu1 %2351 }
 0xa99   : > { %v6407_v36 = vpop.xlane.xlu0 %2685 }
 0xa9d   : > { %v6411_v51 = vpop.xlane.xlu0 %2681 }
 0xa9e   : > { %v1841_v53 = vpop.permute.xlu1 %1840 }
 0xa9f   : > { %1863 = vst.msk [vmem:[#allocation2 + $0x10] sm:$0xff] %vm1860_vm3, %v1841_v53 }
 0xaa1   : > { %v1162_v49 = vpop.xlane.xlu0 %1161 }
 0xaa2   : > { %4839 = vrcp.f32 %v1162_v49  ;;  %v7045_v49 = vld [vmem:[#allocation21_spill] sm:$0xff] }
 0xaa3   : > { %4841 = vrcp.f32 %v2680_v11  ;;  %v4407_v4 = vpop.f32.mrb[80].mxu0  ;;  %v4411_v60 = vpop.f32.mrb[48].mxu1 }
 0xaa4   : > { %4843 = vrcp.f32 %v2676_v12  ;;  %v2755_v6 = vpop.f32.mrb[81].mxu0  ;;  %v2771_v22 = vpop.f32.mrb[49].mxu1  ;;  %v2836_v62 = vmul.f32 %v4818_v61, %v4407_v4  ;;  %v2840_v34 = vmul.f32 %v4820_v56, %v4411_v60 }
 0xaa5   : > { %4845 = vrcp.f32 %v1168_v43  ;;  %v4408_v19 = vpop.f32.mrb[82].mxu0  ;;  %v4412_v39 = vpop.f32.mrb[50].mxu1  ;;  %v2834_v2 = vmul.f32 %v4824_v8, %v2755_v6  ;;  %v2838_v46 = vmul.f32 %v4822_v50, %v2771_v22  ;;  %v7046_v50 = vld [vmem:[#allocation19_spill] sm:$0xff] }
 0xaa6   : > { %v2837_v48 = vmul.f32 %v4826_v14, %v4408_v19  ;;  %v2841_v37 = vmul.f32 %v4828_v21, %v4412_v39  ;;  %v1166_v31 = vpop.xlane.xlu0 %1165  ;;  %v2758_v32 = vpop.f32.mrb[83].mxu0 }
 0xaa7   : > { %4847 = vrcp.f32 %v1166_v31  ;;  %v2835_v26 = vmul.f32 %v4830_v35, %v2758_v32  ;;  %v2774_v1 = vpop.f32.mrb[51].mxu1  ;;  %v2356_v41 = vpop.permute.xlu1 %2355  ;;  %v7049_v32 = vld [vmem:[#allocation25_spill] sm:$0xff] }
 0xaa8   : > { %v2851_v11 = vpack.c.bf16 %v2837_v48, %v2836_v62  ;;  %v2853_v12 = vpack.c.bf16 %v2841_v37, %v2840_v34  ;;  %v2839_v58 = vmul.f32 %v4832_v25, %v2774_v1  ;;  %2378 = vst.msk [vmem:[#allocation2 + $0x10] sm:$0xff] %vm2375_vm4, %v2356_v41  ;;  %v4834_v43 = vpop.eup %4833  ;;  %4849 = vrcp.f32 %v6402_v9  ;;  %v7048_v48 = vld [vmem:[#allocation20_spill] sm:$0xff] }
 0xaa9   : > { %v2850_v10 = vpack.c.bf16 %v2835_v26, %v2834_v2  ;;  %v4836_v30 = vpop.eup %4835  ;;  %v7050_v2 = vld [vmem:[#allocation23_spill] sm:$0xff] }
 0xaaa   : > { %v2852_v28 = vpack.c.bf16 %v2839_v58, %v2838_v46  ;;  %v1170_v40 = vpop.xlane.xlu0 %1169  ;;  %2868 = vrot.lane.b32.xlu0 %v2851_v11, %s4998_s15  ;;  %v4838_v55 = vpop.eup %4837  ;;  %v1331_v9 = vmul.f32 %v4836_v30, %v7045_v49 }
 0xaab   : > { %4851 = vrcp.f32 %v1170_v40  ;;  %v4415_v16 = vpop.f32.mrb[52].mxu1  ;;  %2866 = vrot.lane.b32.xlu1 %v2850_v10, %s4998_s15 }
 0xaac   : > { %v4840_v53 = vpop.eup %4839  ;;  %v2787_v38 = vpop.f32.mrb[53].mxu1  ;;  %4853 = vrcp.f32 %v6404_v44  ;;  %v2844_v4 = vmul.f32 %v4834_v43, %v4415_v16 }
 0xaad   : > { %v4842_v61 = vpop.eup %4841  ;;  %v4416_v56 = vpop.f32.mrb[54].mxu1  ;;  %v1330_v7 = vmul.f32 %v4840_v53, %v7046_v50  ;;  %v2842_v21 = vmul.f32 %v4838_v55, %v2787_v38 }
 0xaae   : > { %v4844_v8 = vpop.eup %4843  ;;  %v2845_v60 = vmul.f32 %v4842_v61, %v4416_v56  ;;  %v1174_v14 = vpop.xlane.xlu0 %1173  ;;  %2361 = vrot.lane.b32.xlu0 %v2340_v3, %s4997_s23 }
 0xaaf   : > { %v2790_v6 = vpop.f32.mrb[55].mxu1  ;;  %v4846_v22 = vpop.eup %4845  ;;  %4855 = vrcp.f32 %v1174_v14  ;;  %v1342_v44 = vpack.c.bf16 %v1331_v9, %v1330_v7  ;;  %2359 = vrot.lane.b32.xlu1 %v2339_v24, %s4997_s23 }
 0xab0   : > { %v2843_v19 = vmul.f32 %v4844_v8, %v2790_v6  ;;  %v2855_v39 = vpack.c.bf16 %v2845_v60, %v2844_v4  ;;  %v1845_v34 = vpop.permute.xlu1 %1844  ;;  %v1333_v37 = vmul.f32 %v4846_v22, %v7048_v48  ;;  %4857 = vrcp.f32 %v6398_v42 }
 0xab1   : > { %v4848_v35 = vpop.eup %4847  ;;  %1350 = vst.msk [vmem:[#allocation2 + $0x20] sm:$0xff] %vm901_vm1, %v1342_v44  ;;  %4859 = vrcp.f32 %v6400_v59 }
 0xab2   : > { %v2854_v62 = vpack.c.bf16 %v2843_v19, %v2842_v21  ;;  %1865 = vst.msk [vmem:[#allocation2 + $0x20] sm:$0xff] %vm1860_vm3, %v1845_v34  ;;  %v1837_v20 = vpop.permute.xlu0 %1836  ;;  %2872 = vrot.lane.b32.xlu0 %v2853_v12, %s4998_s15  ;;  %v1332_v3 = vmul.f32 %v4848_v35, %v7047_v47  ;;  %v4850_v31 = vpop.eup %4849  ;;  %4861 = vrcp.f32 %v6407_v36 }
 0xab3   : > { %1861 = vst.msk [vmem:[#allocation2] sm:$0xff] %vm1860_vm3, %v1837_v20  ;;  %2870 = vrot.lane.b32.xlu1 %v2852_v28, %s4998_s15  ;;  %v1335_v25 = vmul.f32 %v4850_v31, %v7049_v32  ;;  %4863 = vrcp.f32 %v6411_v51  ;;  %v4963_v32 = vld [vmem:[%s5085_s30 + $0x8] sm:$0xff] }
 0xab4   : > { %2376 = vst.msk [vmem:[#allocation2] sm:$0xff] %vm2375_vm4, %v6409_v15  ;;  %v1343_v54 = vpack.c.bf16 %v1333_v37, %v1332_v3  ;;  %v4961_v37 = vld [vmem:[%s5085_s30] sm:$0xff] }
 0xab5   : > { %v4852_v5 = vpop.eup %4851 }
 0xab6   : > { %v2354_v24 = vpop.permute.xlu0 %2353  ;;  %1850 = vrot.lane.b32.xlu0 %v1827_v18, %s4996_s22  ;;  %1351 = vst.msk [vmem:[#allocation2 + $0x28] sm:$0xff] %vm901_vm1, %v1343_v54  ;;  %v1334_v26 = vmul.f32 %v4852_v5, %v7050_v2  ;;  %v4854_v1 = vpop.eup %4853  ;;  %v7052_v18 = vld [vmem:[#allocation24_spill] sm:$0xff]  ;;  %v4962_v5 = vld [vmem:[%s5085_s30 + $0x18] sm:$0xff] }
 0xab7   : > { %2377 = vst.msk [vmem:[#allocation2 + $0x8] sm:$0xff] %vm2375_vm4, %v2354_v24  ;;  %1848 = vrot.lane.b32.xlu1 %v1826_v17, %s4996_s22  ;;  %v1337_v11 = vmul.f32 %v4854_v1, %v7052_v18 }
 0xab8   : > { %v1344_v15 = vpack.c.bf16 %v1335_v25, %v1334_v26  ;;  %v4964_v26 = vld [vmem:[%s5085_s30 + $0x10] sm:$0xff] }
 0xab9   : > { %v4856_v41 = vpop.eup %4855 }
 0xaba   : > { %v1843_v46 = vpop.permute.xlu0 %1842  ;;  %2876 = vrot.lane.b32.xlu0 %v2855_v39, %s4998_s15  ;;  %v1336_v27 = vmul.f32 %v4856_v41, %v7051_v45  ;;  %1352 = vst.msk [vmem:[#allocation2 + $0x30] sm:$0xff] %vm901_vm1, %v1344_v15  ;;  %v4858_v29 = vpop.eup %4857  ;;  %v6504_v39 = vld [vmem:[%s6930_s6] ss:$0 sm:$0xff] }
 0xabb   : > { %1864 = vst.msk [vmem:[#allocation2 + $0x18] sm:$0xff] %vm1860_vm3, %v1843_v46  ;;  %2874 = vrot.lane.b32.xlu1 %v2854_v62, %s4998_s15  ;;  %v4860_v17 = vpop.eup %4859 }
 0xabc   : > { %v1345_v12 = vpack.c.bf16 %v1337_v11, %v1336_v27 }
 0xabe   : > { %v2358_v58 = vpop.permute.xlu0 %2357  ;;  %2365 = vrot.lane.b32.xlu0 %v2342_v52, %s4997_s23  ;;  %1353 = vst.msk [vmem:[#allocation2 + $0x38] sm:$0xff] %vm901_vm1, %v1345_v12  ;;  %v4862_v52 = vpop.eup %4861 }
 0xabf   : > { %2379 = vst.msk [vmem:[#allocation2 + $0x18] sm:$0xff] %vm2375_vm4, %v2358_v58  ;;  %2363 = vrot.lane.b32.xlu1 %v2341_v33, %s4997_s23  ;;  %v4864_v10 = vpop.eup %4863 }
 0xac2   : > { %v1847_v63 = vpop.permute.xlu0 %1846 }
 0xac3   : > { %1866 = vst.msk [vmem:[#allocation2 + $0x28] sm:$0xff] %vm1860_vm3, %v1847_v63  ;;  %v4965_v63 = vld [vmem:[%s5085_s30 + $0x20] sm:$0xff] }
 0xae1   : > { %v4419_v57 = vpop.f32.mrb[56].mxu1 }
 0xae2   : > { %v2803_v0 = vpop.f32.mrb[57].mxu1  ;;  %v2848_v23 = vmul.f32 %v4862_v52, %v4419_v57 }
 0xae3   : > { %v4420_v43 = vpop.f32.mrb[58].mxu1  ;;  %v2846_v30 = vmul.f32 %v4864_v10, %v2803_v0  ;;  %v4966_v0 = vld [vmem:[%s5085_s30 + $0x28] sm:$0xff] }
 0xae4   : > { %v2849_v13 = vmul.f32 %v4858_v29, %v4420_v43  ;;  %v2806_v33 = vpop.f32.mrb[59].mxu1  ;;  %v4967_v43 = vld [vmem:[%s5085_s30 + $0x30] sm:$0xff] }
 0xae5   : > { %v2847_v28 = vmul.f32 %v4860_v17, %v2806_v33 }
 0xae6   : > { %v2857_v40 = vpack.c.bf16 %v2849_v13, %v2848_v23  ;;  %v4968_v23 = vld [vmem:[%s5085_s30 + $0x38] sm:$0xff] }
 0xae7   : > { %v2856_v42 = vpack.c.bf16 %v2847_v28, %v2846_v30 }
 0xae8   : > { %2880 = vrot.lane.b32.xlu0 %v2857_v40, %s4998_s15 }
 0xae9   : > { %2878 = vrot.lane.b32.xlu1 %v2856_v42, %s4998_s15 }
 0xb1c   : > { %v2869_v59 = vpop.permute.xlu0 %2868 }
 0xb1d   : > { %2892 = vst.msk [vmem:[#allocation2 + $0x8] sm:$0xff] %vm2890_vm5, %v2869_v59  ;;  %v2867_v36 = vpop.permute.xlu1 %2866 }
 0xb1e   : > { %2891 = vst.msk [vmem:[#allocation2] sm:$0xff] %vm2890_vm5, %v2867_v36 }
 0xb20   : > { %v2362_v51 = vpop.permute.xlu0 %2361 }
 0xb21   : > { %2381 = vst.msk [vmem:[#allocation2 + $0x28] sm:$0xff] %vm2375_vm4, %v2362_v51  ;;  %v2360_v55 = vpop.permute.xlu1 %2359 }
 0xb22   : > { %2380 = vst.msk [vmem:[#allocation2 + $0x20] sm:$0xff] %vm2375_vm4, %v2360_v55 }
 0xb24   : > { %v2873_v16 = vpop.permute.xlu0 %2872  ;;  %v2900_v61 = vld [vmem:[#allocation2 + $0x8] sm:$0xff] }
 0xb25   : > { %2894 = vst.msk [vmem:[#allocation2 + $0x18] sm:$0xff] %vm2890_vm5, %v2873_v16  ;;  %v2871_v53 = vpop.permute.xlu1 %2870  ;;  %v2899_v38 = vld [vmem:[#allocation2] sm:$0xff] }
 0xb26   : > { %2893 = vst.msk [vmem:[#allocation2 + $0x10] sm:$0xff] %vm2890_vm5, %v2871_v53  ;;  %4425 = vmatprep.mubr.msk.bf16.mxu1 %vm460_vm0, %v2899_v38  ;;  %v4969_v53 = vld [vmem:[%s5085_s30 + $0x40] sm:$0xff] }
 0xb27   : > { %4426 = vmatmul.mubr.msk.bf16.vlgmr.msra.gmra.mrb[60].mxu1 %vm460_vm0, %v2900_v61 }
 0xb28   : > { %v1851_v56 = vpop.permute.xlu0 %1850 }
 0xb29   : > { %1868 = vst.msk [vmem:[#allocation2 + $0x38] sm:$0xff] %vm1860_vm3, %v1851_v56  ;;  %v1849_v49 = vpop.permute.xlu1 %1848 }
 0xb2a   : > { %1867 = vst.msk [vmem:[#allocation2 + $0x30] sm:$0xff] %vm1860_vm3, %v1849_v49  ;;  %v4970_v49 = vld [vmem:[%s5085_s30 + $0x48] sm:$0xff] }
 0xb2c   : > { %v2877_v9 = vpop.permute.xlu0 %2876  ;;  %v2902_v8 = vld [vmem:[#allocation2 + $0x18] sm:$0xff] }
 0xb2d   : > { %2896 = vst.msk [vmem:[#allocation2 + $0x28] sm:$0xff] %vm2890_vm5, %v2877_v9  ;;  %v2875_v50 = vpop.permute.xlu1 %2874  ;;  %v2901_v7 = vld [vmem:[#allocation2 + $0x10] sm:$0xff] }
 0xb2e   : > { %2895 = vst.msk [vmem:[#allocation2 + $0x20] sm:$0xff] %vm2890_vm5, %v2875_v50  ;;  %4429 = vmatprep.mubr.msk.bf16.mxu1 %vm460_vm0, %v2901_v7  ;;  %v4971_v50 = vld [vmem:[%s5085_s30 + $0x50] sm:$0xff] }
 0xb2f   : > { %4430 = vmatmul.mubr.msk.bf16.gmra.mrb[64].mxu1 %vm460_vm0, %v2902_v8  ;;  %v4972_v8 = vld [vmem:[%s5085_s30 + $0x58] sm:$0xff] }
 0xb30   : > { %v2366_v4 = vpop.permute.xlu0 %2365 }
 0xb31   : > { %2383 = vst.msk [vmem:[#allocation2 + $0x38] sm:$0xff] %vm2375_vm4, %v2366_v4  ;;  %v2364_v60 = vpop.permute.xlu1 %2363 }
 0xb32   : > { %2382 = vst.msk [vmem:[#allocation2 + $0x30] sm:$0xff] %vm2375_vm4, %v2364_v60 }
 0xb34   : > { %v2904_v6 = vld [vmem:[#allocation2 + $0x28] sm:$0xff] }
 0xb35   : > { %v2903_v14 = vld [vmem:[#allocation2 + $0x20] sm:$0xff] }
 0xb36   : > { %4433 = vmatprep.mubr.msk.bf16.mxu1 %vm460_vm0, %v2903_v14 }
 0xb37   : > { %4434 = vmatmul.mubr.msk.bf16.gmra.mrb[68].mxu1 %vm460_vm0, %v2904_v6 }
 0xb5a   : > { %v2881_v22 = vpop.permute.xlu0 %2880 }
 0xb5b   : > { %2898 = vst.msk [vmem:[#allocation2 + $0x38] sm:$0xff] %vm2890_vm5, %v2881_v22  ;;  %v2879_v21 = vpop.permute.xlu1 %2878 }
 0xb5c   : > { %2897 = vst.msk [vmem:[#allocation2 + $0x30] sm:$0xff] %vm2890_vm5, %v2879_v21 }
 0xb62   : > { %v2906_v44 = vld [vmem:[#allocation2 + $0x38] sm:$0xff] }
 0xb63   : > { %v2905_v19 = vld [vmem:[#allocation2 + $0x30] sm:$0xff] }
 0xb64   : > { %4437 = vmatprep.mubr.msk.bf16.mxu1 %vm460_vm0, %v2905_v19 }
 0xb65   : > { %4438 = vmatmul.mubr.msk.bf16.gmra.mrb[72].mxu1 %vm460_vm0, %v2906_v44 }
 0xbfa   : > { %v4427_v35 = vpop.f32.mrb[60].mxu1 }
 0xbfb   : > { %v2988_v62 = vpop.f32.mrb[61].mxu1  ;;  %v2997_v48 = vadd.f32 %v4427_v35, %v6504_v39 }
 0xbfc   : > { %v2989_v34 = vadd.f32 %v6504_v39, %v2988_v62  ;;  %v4428_v20 = vpop.f32.mrb[62].mxu1 }
 0xbfd   : > { %v3000_v47 = vadd.f32 %v4428_v20, %v6504_v39  ;;  %v2991_v3 = vpop.f32.mrb[63].mxu1  ;;  %v6522_v1 = vadd.f32 %v4964_v26, %v2997_v48  ;;  %v4973_v20 = vld [vmem:[%s5085_s30 + $0x60] sm:$0xff]  ;;  %v4976_v26 = vld [vmem:[%s5085_s30 + $0x78] sm:$0xff] }
 0xbfe   : > { %v6510_v31 = vadd.f32 %v4961_v37, %v2989_v34  ;;  %v2992_v54 = vadd.f32 %v6504_v39, %v2991_v3  ;;  %v4974_v37 = vld [vmem:[%s5085_s30 + $0x70] sm:$0xff] }
 0xbff   : > { %v6514_v24 = vadd.f32 %v4962_v5, %v3000_v47  ;;  %v3075_v17 = vsel %vm460_vm0, %v6522_v1, 0.0  ;;  %v4975_v5 = vld [vmem:[%s5085_s30 + $0x68] sm:$0xff] }
 0xc00   : > { %v6517_v25 = vadd.f32 %v4963_v32, %v2992_v54  ;;  %v3069_v2 = vsel %vm460_vm0, %v6510_v31, 0.0 }
 0xc01   : > { %3070 = vadd.xlane.f32.xlu1 %v3069_v2  ;;  %v3078_v18 = vsel %vm460_vm0, %v6514_v24, 0.0 }
 0xc02   : > { %v4431_v15 = vpop.f32.mrb[64].mxu1  ;;  %v3072_v41 = vsel %vm460_vm0, %v6517_v25, 0.0 }
 0xc03   : > { %3073 = vadd.xlane.f32.xlu0 %v3072_v41  ;;  %v3004_v46 = vpop.f32.mrb[65].mxu1  ;;  %v3013_v11 = vadd.f32 %v4431_v15, %v6504_v39 }
 0xc04   : > { %v3005_v45 = vadd.f32 %v6504_v39, %v3004_v46  ;;  %v4432_v27 = vpop.f32.mrb[66].mxu1 }
 0xc05   : > { %v3016_v12 = vadd.f32 %v4432_v27, %v6504_v39  ;;  %3079 = vadd.xlane.f32.xlu1 %v3078_v18  ;;  %v3007_v58 = vpop.f32.mrb[67].mxu1  ;;  %v6541_v10 = vadd.f32 %v4967_v43, %v3013_v11 }
 0xc06   : > { %v6532_v29 = vadd.f32 %v4965_v63, %v3005_v45  ;;  %v3008_v57 = vadd.f32 %v6504_v39, %v3007_v58 }
 0xc07   : > { %3076 = vadd.xlane.f32.xlu0 %v3075_v17  ;;  %v6544_v13 = vadd.f32 %v4968_v23, %v3016_v12  ;;  %v3087_v55 = vsel %vm460_vm0, %v6541_v10, 0.0 }
 0xc08   : > { %v6538_v52 = vadd.f32 %v4966_v0, %v3008_v57  ;;  %v3081_v28 = vsel %vm460_vm0, %v6532_v29, 0.0 }
 0xc09   : > { %v3090_v51 = vsel %vm460_vm0, %v6544_v13, 0.0 }
 0xc0a   : > { %v4435_v33 = vpop.f32.mrb[68].mxu1  ;;  %v3084_v30 = vsel %vm460_vm0, %v6538_v52, 0.0 }
 0xc0b   : > { %3085 = vadd.xlane.f32.xlu1 %v3084_v30  ;;  %3082 = vadd.xlane.f32.xlu0 %v3081_v28  ;;  %v3020_v40 = vpop.f32.mrb[69].mxu1  ;;  %v3029_v16 = vadd.f32 %v4435_v33, %v6504_v39 }
 0xc0c   : > { %v3021_v42 = vadd.f32 %v6504_v39, %v3020_v40  ;;  %v4436_v59 = vpop.f32.mrb[70].mxu1 }
 0xc0d   : > { %v3023_v36 = vpop.f32.mrb[71].mxu1  ;;  %v3032_v61 = vadd.f32 %v4436_v59, %v6504_v39  ;;  %v6565_v7 = vadd.f32 %v4971_v50, %v3029_v16 }
 0xc0e   : > { %v6557_v38 = vadd.f32 %v4969_v53, %v3021_v42  ;;  %v3024_v56 = vadd.f32 %v6504_v39, %v3023_v36 }
 0xc0f   : > { %3091 = vadd.xlane.f32.xlu1 %v3090_v51  ;;  %3088 = vadd.xlane.f32.xlu0 %v3087_v55  ;;  %v6568_v4 = vadd.f32 %v4972_v8, %v3032_v61  ;;  %v3099_v22 = vsel %vm460_vm0, %v6565_v7, 0.0 }
 0xc10   : > { %v6562_v9 = vadd.f32 %v4970_v49, %v3024_v56  ;;  %v3093_v14 = vsel %vm460_vm0, %v6557_v38, 0.0 }
 0xc11   : > { %v3102_v6 = vsel %vm460_vm0, %v6568_v4, 0.0 }
 0xc12   : > { %v3096_v60 = vsel %vm460_vm0, %v6562_v9, 0.0 }
 0xc13   : > { %3097 = vadd.xlane.f32.xlu1 %v3096_v60  ;;  %3094 = vadd.xlane.f32.xlu0 %v3093_v14 }
 0xc17   : > { %3103 = vadd.xlane.f32.xlu1 %v3102_v6  ;;  %3100 = vadd.xlane.f32.xlu0 %v3099_v22 }
 0xc38   : > { %v4439_v21 = vpop.f32.mrb[72].mxu1 }
 0xc39   : > { %v3036_v19 = vpop.f32.mrb[73].mxu1  ;;  %v3045_v44 = vadd.f32 %v4439_v21, %v6504_v39 }
 0xc3a   : > { %v3037_v35 = vadd.f32 %v6504_v39, %v3036_v19  ;;  %v4440_v62 = vpop.f32.mrb[74].mxu1 }
 0xc3b   : > { %v3039_v34 = vpop.f32.mrb[75].mxu1  ;;  %v3048_v3 = vadd.f32 %v4440_v62, %v6504_v39  ;;  %v6586_v54 = vadd.f32 %v4974_v37, %v3045_v44 }
 0xc3c   : > { %v6581_v47 = vadd.f32 %v4973_v20, %v3037_v35  ;;  %v3040_v48 = vadd.f32 %v6504_v39, %v3039_v34 }
 0xc3d   : > { %v6594_v15 = vadd.f32 %v4976_v26, %v3048_v3  ;;  %v3111_v39 = vsel %vm460_vm0, %v6586_v54, 0.0 }
 0xc3e   : > { %v6589_v32 = vadd.f32 %v4975_v5, %v3040_v48  ;;  %v3105_v2 = vsel %vm460_vm0, %v6581_v47, 0.0 }
 0xc3f   : > { %3106 = vadd.xlane.f32.xlu0 %v3105_v2  ;;  %v3114_v46 = vsel %vm460_vm0, %v6594_v15, 0.0 }
 0xc40   : > { %v3108_v41 = vsel %vm460_vm0, %v6589_v32, 0.0 }
 0xc41   : > { %3109 = vadd.xlane.f32.xlu1 %v3108_v41 }
 0xc43   : > { %3112 = vadd.xlane.f32.xlu0 %v3111_v39 }
 0xc45   : > { %3115 = vadd.xlane.f32.xlu1 %v3114_v46 }
 0xc8e   : > { %v3071_v45 = vpop.xlane.xlu1 %3070 }
 0xc8f   : > { %v3117_v27 = vmul.f32 0.03125, %v3071_v45 }
 0xc90   : > { %v3074_v18 = vpop.xlane.xlu0 %3073 }
 0xc91   : > { %v6603_v11 = vsub.f32 %v6510_v31, %v3117_v27  ;;  %v3118_v12 = vmul.f32 0.03125, %v3074_v18 }
 0xc92   : > { %v3080_v58 = vpop.xlane.xlu1 %3079 }
 0xc93   : > { %v6606_v63 = vsub.f32 %v6517_v25, %v3118_v12  ;;  %v3120_v57 = vmul.f32 0.03125, %v3080_v58  ;;  %v3149_v17 = vmul.f32 %v6603_v11, %v6603_v11 }
 0xc94   : > { %v3077_v0 = vpop.xlane.xlu0 %3076 }
 0xc95   : > { %v6611_v43 = vsub.f32 %v6514_v24, %v3120_v57  ;;  %v3119_v23 = vmul.f32 0.03125, %v3077_v0  ;;  %v3165_v33 = vsel %vm460_vm0, %v3149_v17, 0.0  ;;  %v3150_v30 = vmul.f32 %v6606_v63, %v6606_v63 }
 0xc96   : > { %3166 = vadd.xlane.f32.xlu0 %v3165_v33 }
 0xc97   : > { %v6617_v28 = vsub.f32 %v6522_v1, %v3119_v23  ;;  %v3168_v40 = vsel %vm460_vm0, %v3150_v30, 0.0  ;;  %v3152_v42 = vmul.f32 %v6611_v43, %v6611_v43 }
 0xc98   : > { %v3086_v59 = vpop.xlane.xlu1 %3085  ;;  %3169 = vadd.xlane.f32.xlu1 %v3168_v40  ;;  %v3083_v36 = vpop.xlane.xlu0 %3082 }
 0xc99   : > { %v3122_v51 = vmul.f32 0.03125, %v3086_v59  ;;  %v3121_v55 = vmul.f32 0.03125, %v3083_v36  ;;  %v3151_v16 = vmul.f32 %v6617_v28, %v6617_v28  ;;  %v3174_v56 = vsel %vm460_vm0, %v3152_v42, 0.0  ;;  %v4567_v42 = vld [vmem:[%s6933_s9] sm:$0xff]   ;;  %v4568_v59 = vld [vmem:[%s6933_s9 + $0x8] sm:$0xff]  }
 0xc9a   : > { %4441 = vmatprep.subr.bf16.mxu0 %v4567_v42 }
 0xc9b   : > { %v6625_v53 = vsub.f32 %v6538_v52, %v3122_v51  ;;  %v6628_v61 = vsub.f32 %v6532_v29, %v3121_v55  ;;  %v3171_v49 = vsel %vm460_vm0, %v3151_v16, 0.0  ;;  %4442 = vmatpush3.bf16.msra.mxu0 %v4567_v42 }
 0xc9c   : > { %v3092_v50 = vpop.xlane.xlu1 %3091  ;;  %3175 = vadd.xlane.f32.xlu1 %v3174_v56  ;;  %3172 = vadd.xlane.f32.xlu0 %v3171_v49  ;;  %v3089_v8 = vpop.xlane.xlu0 %3088 }
 0xc9d   : > { %v3124_v60 = vmul.f32 0.03125, %v3092_v50  ;;  %v3123_v14 = vmul.f32 0.03125, %v3089_v8  ;;  %v3154_v6 = vmul.f32 %v6625_v53, %v6625_v53  ;;  %v3153_v22 = vmul.f32 %v6628_v61, %v6628_v61  ;;  %4443 = vmatprep.subr.bf16.mxu0 %v4568_v59 }
 0xc9f   : > { %v6637_v21 = vsub.f32 %v6544_v13, %v3124_v60  ;;  %v6640_v19 = vsub.f32 %v6541_v10, %v3123_v14  ;;  %v3180_v44 = vsel %vm460_vm0, %v3154_v6, 0.0  ;;  %v3177_v35 = vsel %vm460_vm0, %v3153_v22, 0.0  ;;  %4444 = vmatpush3.bf16.msra.mxu0 %v4568_v59 }
 0xca0   : > { %v3098_v62 = vpop.xlane.xlu1 %3097  ;;  %3181 = vadd.xlane.f32.xlu1 %v3180_v44  ;;  %3178 = vadd.xlane.f32.xlu0 %v3177_v35  ;;  %v3095_v34 = vpop.xlane.xlu0 %3094 }
 0xca1   : > { %v3126_v20 = vmul.f32 0.03125, %v3098_v62  ;;  %v3125_v3 = vmul.f32 0.03125, %v3095_v34  ;;  %v3156_v48 = vmul.f32 %v6637_v21, %v6637_v21  ;;  %v3155_v37 = vmul.f32 %v6640_v19, %v6640_v19 }
 0xca3   : > { %v6649_v5 = vsub.f32 %v6562_v9, %v3126_v20  ;;  %v6652_v2 = vsub.f32 %v6557_v38, %v3125_v3  ;;  %v3186_v26 = vsel %vm460_vm0, %v3156_v48, 0.0  ;;  %v3183_v41 = vsel %vm460_vm0, %v3155_v37, 0.0 }
 0xca4   : > { %v3104_v39 = vpop.xlane.xlu1 %3103  ;;  %3187 = vadd.xlane.f32.xlu1 %v3186_v26  ;;  %3184 = vadd.xlane.f32.xlu0 %v3183_v41  ;;  %v3101_v46 = vpop.xlane.xlu0 %3100 }
 0xca5   : > { %v3128_v45 = vmul.f32 0.03125, %v3104_v39  ;;  %v3127_v27 = vmul.f32 0.03125, %v3101_v46  ;;  %v3158_v18 = vmul.f32 %v6649_v5, %v6649_v5  ;;  %v3157_v12 = vmul.f32 %v6652_v2, %v6652_v2 }
 0xca7   : > { %v6661_v58 = vsub.f32 %v6568_v4, %v3128_v45  ;;  %v6664_v57 = vsub.f32 %v6565_v7, %v3127_v27  ;;  %v3192_v17 = vsel %vm460_vm0, %v3158_v18, 0.0  ;;  %v3189_v0 = vsel %vm460_vm0, %v3157_v12, 0.0 }
 0xca8   : > { %3193 = vadd.xlane.f32.xlu1 %v3192_v17  ;;  %3190 = vadd.xlane.f32.xlu0 %v3189_v0 }
 0xca9   : > { %v3160_v23 = vmul.f32 %v6661_v58, %v6661_v58  ;;  %v3159_v33 = vmul.f32 %v6664_v57, %v6664_v57 }
 0xcab   : > { %v3198_v30 = vsel %vm460_vm0, %v3160_v23, 0.0  ;;  %v3195_v40 = vsel %vm460_vm0, %v3159_v33, 0.0 }
 0xcac   : > { %3199 = vadd.xlane.f32.xlu1 %v3198_v30  ;;  %3196 = vadd.xlane.f32.xlu0 %v3195_v40 }
 0xccc   : > { %v3107_v36 = vpop.xlane.xlu0 %3106 }
 0xccd   : > { %v3129_v51 = vmul.f32 0.03125, %v3107_v36 }
 0xcce   : > { %v3110_v55 = vpop.xlane.xlu1 %3109 }
 0xccf   : > { %v6681_v16 = vsub.f32 %v6581_v47, %v3129_v51  ;;  %v3130_v56 = vmul.f32 0.03125, %v3110_v55 }
 0xcd0   : > { %v3113_v49 = vpop.xlane.xlu0 %3112 }
 0xcd1   : > { %v6684_v50 = vsub.f32 %v6589_v32, %v3130_v56  ;;  %v3131_v8 = vmul.f32 0.03125, %v3113_v49  ;;  %v3161_v60 = vmul.f32 %v6681_v16, %v6681_v16 }
 0xcd2   : > { %v3116_v14 = vpop.xlane.xlu1 %3115 }
 0xcd3   : > { %v6689_v6 = vsub.f32 %v6586_v54, %v3131_v8  ;;  %v3132_v22 = vmul.f32 0.03125, %v3116_v14  ;;  %v3201_v44 = vsel %vm460_vm0, %v3161_v60, 0.0  ;;  %v3162_v35 = vmul.f32 %v6684_v50, %v6684_v50  ;;  %v6707_v8 = vld [vmem:[%s6931_s7] ss:$0 sm:$0xff] }
 0xcd4   : > { %3202 = vadd.xlane.f32.xlu0 %v3201_v44 }
 0xcd5   : > { %v6695_v62 = vsub.f32 %v6594_v15, %v3132_v22  ;;  %v3204_v34 = vsel %vm460_vm0, %v3162_v35, 0.0  ;;  %v3163_v20 = vmul.f32 %v6689_v6, %v6689_v6 }
 0xcd6   : > { %3205 = vadd.xlane.f32.xlu1 %v3204_v34 }
 0xcd7   : > { %v3207_v3 = vsel %vm460_vm0, %v3163_v20, 0.0  ;;  %v3164_v48 = vmul.f32 %v6695_v62, %v6695_v62 }
 0xcd8   : > { %3208 = vadd.xlane.f32.xlu0 %v3207_v3 }
 0xcd9   : > { %v3210_v37 = vsel %vm460_vm0, %v3164_v48, 0.0 }
 0xcda   : > { %3211 = vadd.xlane.f32.xlu1 %v3210_v37 }
 0xd23   : > { %v3167_v26 = vpop.xlane.xlu0 %3166 }
 0xd24   : > { %v3213_v41 = vmul.f32 0.03125, %v3167_v26 }
 0xd25   : > { %v3170_v39 = vpop.xlane.xlu1 %3169 }
 0xd26   : > { %v3229_v46 = vadd.f32 1e-05, %v3213_v41  ;;  %v3214_v45 = vmul.f32 0.03125, %v3170_v39  ;;  %v6715_v39 = vld [vmem:[%s6932_s8] ss:$0 sm:$0xff] }
 0xd28   : > { %4865 = vrsqrt.f32 %v3229_v46  ;;  %v3230_v27 = vadd.f32 1e-05, %v3214_v45 }
 0xd29   : > { %v3176_v18 = vpop.xlane.xlu1 %3175  ;;  %v3173_v12 = vpop.xlane.xlu0 %3172 }
 0xd2a   : > { %4867 = vrsqrt.f32 %v3230_v27  ;;  %v3216_v17 = vmul.f32 0.03125, %v3176_v18  ;;  %v3215_v0 = vmul.f32 0.03125, %v3173_v12 }
 0xd2c   : > { %v3232_v23 = vadd.f32 1e-05, %v3216_v17  ;;  %v3231_v33 = vadd.f32 1e-05, %v3215_v0 }
 0xd2d   : > { %v3182_v30 = vpop.xlane.xlu1 %3181  ;;  %v3179_v40 = vpop.xlane.xlu0 %3178 }
 0xd2e   : > { %4869 = vrsqrt.f32 %v3232_v23  ;;  %v3218_v42 = vmul.f32 0.03125, %v3182_v30  ;;  %v3217_v59 = vmul.f32 0.03125, %v3179_v40 }
 0xd2f   : > { %4871 = vrsqrt.f32 %v3231_v33 }
 0xd30   : > { %v3234_v36 = vadd.f32 1e-05, %v3218_v42  ;;  %v3233_v51 = vadd.f32 1e-05, %v3217_v59 }
 0xd31   : > { %v3188_v55 = vpop.xlane.xlu1 %3187  ;;  %v3185_v56 = vpop.xlane.xlu0 %3184 }
 0xd32   : > { %v4866_v49 = vpop.eup %4865  ;;  %4873 = vrsqrt.f32 %v3234_v36  ;;  %v3220_v60 = vmul.f32 0.03125, %v3188_v55  ;;  %v3219_v14 = vmul.f32 0.03125, %v3185_v56 }
 0xd33   : > { %v3261_v22 = vmul.f32 %v4866_v49, %v6603_v11  ;;  %4875 = vrsqrt.f32 %v3233_v51 }
 0xd34   : > { %v4868_v44 = vpop.eup %4867  ;;  %v3236_v35 = vadd.f32 1e-05, %v3220_v60  ;;  %v3235_v34 = vadd.f32 1e-05, %v3219_v14 }
 0xd35   : > { %v3262_v20 = vmul.f32 %v4868_v44, %v6606_v63  ;;  %v3194_v3 = vpop.xlane.xlu1 %3193  ;;  %v3191_v48 = vpop.xlane.xlu0 %3190  ;;  %v3283_v37 = vmul.f32 %v6707_v8, %v3261_v22 }
 0xd36   : > { %4877 = vrsqrt.f32 %v3236_v35  ;;  %v3222_v26 = vmul.f32 0.03125, %v3194_v3  ;;  %v3221_v41 = vmul.f32 0.03125, %v3191_v48 }
 0xd37   : > { %4879 = vrsqrt.f32 %v3235_v34  ;;  %v3284_v11 = vmul.f32 %v6707_v8, %v3262_v20  ;;  %v3305_v0 = vadd.f32 %v6715_v39, %v3283_v37 }
 0xd38   : > { %v4870_v46 = vpop.eup %4869  ;;  %v3238_v45 = vadd.f32 1e-05, %v3222_v26  ;;  %v3237_v27 = vadd.f32 1e-05, %v3221_v41 }
 0xd39   : > { %v4872_v18 = vpop.eup %4871  ;;  %v3264_v63 = vmul.f32 %v4870_v46, %v6611_v43  ;;  %v3200_v12 = vpop.xlane.xlu1 %3199  ;;  %v3306_v23 = vadd.f32 %v6715_v39, %v3284_v11 }
 0xd3a   : > { %v3197_v17 = vpop.xlane.xlu0 %3196  ;;  %v3263_v33 = vmul.f32 %v4872_v18, %v6617_v28  ;;  %4881 = vrsqrt.f32 %v3238_v45  ;;  %v3224_v30 = vmul.f32 0.03125, %v3200_v12 }
 0xd3b   : > { %v3223_v40 = vmul.f32 0.03125, %v3197_v17  ;;  %v3286_v42 = vmul.f32 %v6707_v8, %v3264_v63  ;;  %4883 = vrsqrt.f32 %v3237_v27  ;;  %v3321_v59 = vpack.c.bf16 %v3306_v23, %v3305_v0 }
 0xd3c   : > { %v4874_v36 = vpop.eup %4873  ;;  %v3285_v51 = vmul.f32 %v6707_v8, %v3263_v33  ;;  %v3240_v55 = vadd.f32 1e-05, %v3224_v30 }
 0xd3d   : > { %v3239_v43 = vadd.f32 1e-05, %v3223_v40  ;;  %v4876_v56 = vpop.eup %4875  ;;  %v3266_v49 = vmul.f32 %v4874_v36, %v6625_v53  ;;  %4445 = vmatprep.mubr.msk.bf16.mxu0 %vm460_vm0, %v3321_v59  ;;  %v3308_v60 = vadd.f32 %v6715_v39, %v3286_v42 }
 0xd3e   : > { %v3265_v28 = vmul.f32 %v4876_v56, %v6628_v61  ;;  %4885 = vrsqrt.f32 %v3240_v55  ;;  %v3307_v14 = vadd.f32 %v6715_v39, %v3285_v51 }
 0xd3f   : > { %4887 = vrsqrt.f32 %v3239_v43  ;;  %v3288_v22 = vmul.f32 %v6707_v8, %v3266_v49 }
 0xd40   : > { %v4878_v44 = vpop.eup %4877  ;;  %v3322_v35 = vpack.c.bf16 %v3308_v60, %v3307_v14  ;;  %v3287_v34 = vmul.f32 %v6707_v8, %v3265_v28 }
 0xd41   : > { %v4880_v20 = vpop.eup %4879  ;;  %v3268_v3 = vmul.f32 %v4878_v44, %v6637_v21  ;;  %v3310_v53 = vadd.f32 %v6715_v39, %v3288_v22 }
 0xd42   : > { %v3267_v48 = vmul.f32 %v4880_v20, %v6640_v19  ;;  %4446 = vmatmul.mubr.msk.bf16.vlgmr.msra.gmra.mrb[84].mxu0 %vm460_vm0, %v3322_v35  ;;  %v3309_v61 = vadd.f32 %v6715_v39, %v3287_v34 }
 0xd43   : > { %v3290_v37 = vmul.f32 %v6707_v8, %v3268_v3 }
 0xd44   : > { %v4882_v26 = vpop.eup %4881  ;;  %v3323_v41 = vpack.c.bf16 %v3310_v53, %v3309_v61  ;;  %v3289_v11 = vmul.f32 %v6707_v8, %v3267_v48 }
 0xd45   : > { %v4884_v46 = vpop.eup %4883  ;;  %v3270_v45 = vmul.f32 %v4882_v26, %v6649_v5  ;;  %v3312_v27 = vadd.f32 %v6715_v39, %v3290_v37 }
 0xd46   : > { %v3269_v21 = vmul.f32 %v4884_v46, %v6652_v2  ;;  %4449 = vmatprep.mubr.msk.bf16.mxu0 %vm460_vm0, %v3323_v41  ;;  %v3311_v19 = vadd.f32 %v6715_v39, %v3289_v11 }
 0xd47   : > { %v3292_v18 = vmul.f32 %v6707_v8, %v3270_v45 }
 0xd48   : > { %v4886_v63 = vpop.eup %4885  ;;  %v3324_v12 = vpack.c.bf16 %v3312_v27, %v3311_v19  ;;  %v3291_v17 = vmul.f32 %v6707_v8, %v3269_v21 }
 0xd49   : > { %v4888_v0 = vpop.eup %4887  ;;  %v3272_v23 = vmul.f32 %v4886_v63, %v6661_v58  ;;  %v3314_v33 = vadd.f32 %v6715_v39, %v3292_v18  ;;  %v4570_v18 = vld [vmem:[%s6935_s11 + $0x8] sm:$0xff]   ;;  %v4573_v63 = vld [vmem:[%s6935_s11 + $0x20] sm:$0xff]  }
 0xd4a   : > { %v3271_v5 = vmul.f32 %v4888_v0, %v6664_v57  ;;  %4450 = vmatmul.mubr.msk.bf16.gmra.mrb[88].mxu0 %vm460_vm0, %v3324_v12  ;;  %v3313_v2 = vadd.f32 %v6715_v39, %v3291_v17  ;;  %v4574_v12 = vld [vmem:[%s6935_s11 + $0x28] sm:$0xff]   ;;  %v4575_v17 = vld [vmem:[%s6935_s11 + $0x30] sm:$0xff]   ;;  %v4576_v0 = vld [vmem:[%s6935_s11 + $0x38] sm:$0xff]  }
 0xd4b   : > { %v3294_v30 = vmul.f32 %v6707_v8, %v3272_v23  ;;  %v6797_v23 = vld [vmem:[%s6934_s10] ss:$0 sm:$0xff] }
 0xd4c   : > { %v3325_v40 = vpack.c.bf16 %v3314_v33, %v3313_v2  ;;  %v3293_v42 = vmul.f32 %v6707_v8, %v3271_v5 }
 0xd4d   : > { %v3316_v59 = vadd.f32 %v6715_v39, %v3294_v30 }
 0xd4e   : > { %4453 = vmatprep.mubr.msk.bf16.mxu0 %vm460_vm0, %v3325_v40  ;;  %v3315_v36 = vadd.f32 %v6715_v39, %v3293_v42 }
 0xd50   : > { %v3326_v58 = vpack.c.bf16 %v3316_v59, %v3315_v36 }
 0xd52   : > { %4454 = vmatmul.mubr.msk.bf16.gmra.mrb[92].mxu0 %vm460_vm0, %v3326_v58 }
 0xd61   : > { %v3203_v51 = vpop.xlane.xlu0 %3202 }
 0xd62   : > { %v3225_v57 = vmul.f32 0.03125, %v3203_v51 }
 0xd63   : > { %v3206_v55 = vpop.xlane.xlu1 %3205 }
 0xd64   : > { %v3241_v43 = vadd.f32 1e-05, %v3225_v57  ;;  %v3226_v56 = vmul.f32 0.03125, %v3206_v55 }
 0xd65   : > { %v3209_v49 = vpop.xlane.xlu0 %3208 }
 0xd66   : > { %4889 = vrsqrt.f32 %v3241_v43  ;;  %v3242_v60 = vadd.f32 1e-05, %v3226_v56  ;;  %v3227_v28 = vmul.f32 0.03125, %v3209_v49 }
 0xd67   : > { %v3212_v14 = vpop.xlane.xlu1 %3211 }
 0xd68   : > { %4891 = vrsqrt.f32 %v3242_v60  ;;  %v3243_v22 = vadd.f32 1e-05, %v3227_v28  ;;  %v3228_v44 = vmul.f32 0.03125, %v3212_v14 }
 0xd6a   : > { %4893 = vrsqrt.f32 %v3243_v22  ;;  %v3244_v35 = vadd.f32 1e-05, %v3228_v44 }
 0xd6c   : > { %4895 = vrsqrt.f32 %v3244_v35 }
 0xd70   : > { %v4890_v34 = vpop.eup %4889 }
 0xd71   : > { %v3273_v20 = vmul.f32 %v4890_v34, %v6681_v16 }
 0xd72   : > { %v4892_v3 = vpop.eup %4891 }
 0xd73   : > { %v3274_v53 = vmul.f32 %v4892_v3, %v6684_v50  ;;  %v3295_v48 = vmul.f32 %v6707_v8, %v3273_v20 }
 0xd74   : > { %v4894_v61 = vpop.eup %4893 }
 0xd75   : > { %v3275_v37 = vmul.f32 %v4894_v61, %v6689_v6  ;;  %v3296_v26 = vmul.f32 %v6707_v8, %v3274_v53  ;;  %v3317_v46 = vadd.f32 %v6715_v39, %v3295_v48 }
 0xd76   : > { %v4896_v41 = vpop.eup %4895 }
 0xd77   : > { %v3276_v11 = vmul.f32 %v4896_v41, %v6695_v62  ;;  %v3318_v45 = vadd.f32 %v6715_v39, %v3296_v26  ;;  %v3297_v27 = vmul.f32 %v6707_v8, %v3275_v37  ;;  %v4569_v62 = vld [vmem:[%s6935_s11] sm:$0xff]  }
 0xd78   : > { %4461 = vmatprep.subr.bf16.mxu1 %v4569_v62 }
 0xd79   : > { %v3327_v16 = vpack.c.bf16 %v3318_v45, %v3317_v46  ;;  %v3298_v21 = vmul.f32 %v6707_v8, %v3276_v11  ;;  %v3319_v50 = vadd.f32 %v6715_v39, %v3297_v27  ;;  %4462 = vmatpush3.bf16.msra.mxu1 %v4569_v62  ;;  %v4571_v8 = vld [vmem:[%s6935_s11 + $0x10] sm:$0xff]  }
 0xd7a   : > { %4463 = vmatprep.subr.bf16.mxu1 %v4570_v18 }
 0xd7b   : > { %4457 = vmatprep.mubr.msk.bf16.mxu0 %vm460_vm0, %v3327_v16  ;;  %v3320_v6 = vadd.f32 %v6715_v39, %v3298_v21  ;;  %v4572_v39 = vld [vmem:[%s6935_s11 + $0x18] sm:$0xff]  }
 0xd7d   : > { %v3328_v19 = vpack.c.bf16 %v3320_v6, %v3319_v50  ;;  %4464 = vmatpush3.bf16.msra.mxu1 %v4570_v18 }
 0xd7e   : > { %4465 = vmatprep.subr.bf16.mxu1 %v4571_v8 }
 0xd7f   : > { %4458 = vmatmul.mubr.msk.bf16.gmra.mrb[96].mxu0 %vm460_vm0, %v3328_v19 }
 0xd81   : > { %4466 = vmatpush3.bf16.msra.mxu1 %v4571_v8 }
 0xd82   : > { %4467 = vmatprep.subr.bf16.mxu1 %v4572_v39 }
 0xd85   : > { %4468 = vmatpush3.bf16.msra.mxu1 %v4572_v39 }
 0xd86   : > { %4469 = vmatprep.subr.bf16.mxu1 %v4573_v63 }
 0xd89   : > { %4470 = vmatpush3.bf16.msra.mxu1 %v4573_v63 }
 0xd8a   : > { %4471 = vmatprep.subr.bf16.mxu1 %v4574_v12 }
 0xd8d   : > { %4472 = vmatpush3.bf16.msra.mxu1 %v4574_v12 }
 0xd8e   : > { %4473 = vmatprep.subr.bf16.mxu1 %v4575_v17 }
 0xd91   : > { %4474 = vmatpush3.bf16.msra.mxu1 %v4575_v17 }
 0xd92   : > { %4475 = vmatprep.subr.bf16.mxu1 %v4576_v0 }
 0xd95   : > { %4476 = vmatpush3.bf16.msra.mxu1 %v4576_v0 }
 0xe15   : > { %v4447_v33 = vpop.f32.mrb[84].mxu0 }
 0xe16   : > { %v6800_v5 = vadd.f32 %v4447_v33, %v6797_v23  ;;  %v3410_v2 = vpop.f32.mrb[85].mxu0 }
 0xe17   : > { %v6803_v30 = vadd.f32 %v6797_v23, %v3410_v2  ;;  %v4448_v40 = vpop.f32.mrb[86].mxu0 }
 0xe18   : > { %v3944_v42 = vmul.f32 -1.702, %v6800_v5  ;;  %v6807_v59 = vadd.f32 %v4448_v40, %v6797_v23  ;;  %v3413_v36 = vpop.f32.mrb[87].mxu0 }
 0xe19   : > { %v3942_v58 = vmul.f32 -1.702, %v6803_v30  ;;  %v6811_v51 = vadd.f32 %v6797_v23, %v3413_v36 }
 0xe1a   : > { %v3509_v57 = vmul.f32 1.442695, %v3944_v42  ;;  %v3945_v55 = vmul.f32 -1.702, %v6807_v59 }
 0xe1b   : > { %v3505_v43 = vmul.f32 1.442695, %v3942_v58  ;;  %v3943_v56 = vmul.f32 -1.702, %v6811_v51 }
 0xe1c   : > { %4897 = vpow2.f32 %v3509_v57  ;;  %v3511_v49 = vmul.f32 1.442695, %v3945_v55 }
 0xe1d   : > { %4899 = vpow2.f32 %v3505_v43  ;;  %v3507_v60 = vmul.f32 1.442695, %v3943_v56  ;;  %v4451_v28 = vpop.f32.mrb[88].mxu0 }
 0xe1e   : > { %4901 = vpow2.f32 %v3511_v49  ;;  %v6816_v14 = vadd.f32 %v4451_v28, %v6797_v23  ;;  %v3426_v22 = vpop.f32.mrb[89].mxu0 }
 0xe1f   : > { %4903 = vpow2.f32 %v3507_v60  ;;  %v6819_v44 = vadd.f32 %v6797_v23, %v3426_v22  ;;  %v4452_v35 = vpop.f32.mrb[90].mxu0 }
 0xe20   : > { %v3948_v34 = vmul.f32 -1.702, %v6816_v14  ;;  %v6823_v20 = vadd.f32 %v4452_v35, %v6797_v23  ;;  %v3429_v3 = vpop.f32.mrb[91].mxu0 }
 0xe21   : > { %v3946_v53 = vmul.f32 -1.702, %v6819_v44  ;;  %v6827_v48 = vadd.f32 %v6797_v23, %v3429_v3 }
 0xe22   : > { %v3517_v61 = vmul.f32 1.442695, %v3948_v34  ;;  %v3949_v37 = vmul.f32 -1.702, %v6823_v20 }
 0xe23   : > { %v3513_v26 = vmul.f32 1.442695, %v3946_v53  ;;  %v3947_v41 = vmul.f32 -1.702, %v6827_v48 }
 0xe24   : > { %4905 = vpow2.f32 %v3517_v61  ;;  %v3519_v11 = vmul.f32 1.442695, %v3949_v37 }
 0xe25   : > { %4907 = vpow2.f32 %v3513_v26  ;;  %v3515_v46 = vmul.f32 1.442695, %v3947_v41  ;;  %v4455_v45 = vpop.f32.mrb[92].mxu0 }
 0xe26   : > { %v4898_v27 = vpop.eup %4897  ;;  %4909 = vpow2.f32 %v3519_v11  ;;  %v6832_v16 = vadd.f32 %v4455_v45, %v6797_v23  ;;  %v3442_v21 = vpop.f32.mrb[93].mxu0 }
 0xe27   : > { %v4900_v50 = vpop.eup %4899  ;;  %v3539_v6 = vadd.f32 1.0, %v4898_v27  ;;  %4911 = vpow2.f32 %v3515_v46  ;;  %v6835_v19 = vadd.f32 %v6797_v23, %v3442_v21  ;;  %v4456_v62 = vpop.f32.mrb[94].mxu0 }
 0xe28   : > { %v4902_v18 = vpop.eup %4901  ;;  %v3537_v8 = vadd.f32 1.0, %v4900_v50  ;;  %v3952_v39 = vmul.f32 -1.702, %v6832_v16  ;;  %v6839_v63 = vadd.f32 %v4456_v62, %v6797_v23  ;;  %v3445_v12 = vpop.f32.mrb[95].mxu0 }
 0xe29   : > { %v4904_v17 = vpop.eup %4903  ;;  %4913 = vrcp.f32 %v3539_v6  ;;  %v3540_v0 = vadd.f32 1.0, %v4902_v18  ;;  %v3950_v33 = vmul.f32 -1.702, %v6835_v19  ;;  %v6843_v2 = vadd.f32 %v6797_v23, %v3445_v12 }
 0xe2a   : > { %4915 = vrcp.f32 %v3537_v8  ;;  %v3538_v40 = vadd.f32 1.0, %v4904_v17  ;;  %v3525_v42 = vmul.f32 1.442695, %v3952_v39  ;;  %v3953_v36 = vmul.f32 -1.702, %v6839_v63 }
 0xe2b   : > { %4917 = vrcp.f32 %v3540_v0  ;;  %v3521_v58 = vmul.f32 1.442695, %v3950_v33  ;;  %v3951_v57 = vmul.f32 -1.702, %v6843_v2 }
 0xe2c   : > { %4919 = vrcp.f32 %v3538_v40  ;;  %v3527_v55 = vmul.f32 1.442695, %v3953_v36 }
 0xe2d   : > { %4921 = vpow2.f32 %v3525_v42  ;;  %v3523_v43 = vmul.f32 1.442695, %v3951_v57 }
 0xe2e   : > { %v4906_v56 = vpop.eup %4905  ;;  %4923 = vpow2.f32 %v3521_v58 }
 0xe2f   : > { %v4908_v49 = vpop.eup %4907  ;;  %v3543_v60 = vadd.f32 1.0, %v4906_v56  ;;  %4925 = vpow2.f32 %v3527_v55 }
 0xe30   : > { %v4910_v28 = vpop.eup %4909  ;;  %v3541_v22 = vadd.f32 1.0, %v4908_v49  ;;  %4927 = vpow2.f32 %v3523_v43 }
 0xe31   : > { %v4912_v35 = vpop.eup %4911  ;;  %4929 = vrcp.f32 %v3543_v60  ;;  %v3544_v34 = vadd.f32 1.0, %v4910_v28 }
 0xe32   : > { %4931 = vrcp.f32 %v3541_v22  ;;  %v3542_v3 = vadd.f32 1.0, %v4912_v35 }
 0xe33   : > { %v4914_v53 = vpop.eup %4913  ;;  %4933 = vrcp.f32 %v3544_v34 }
 0xe34   : > { %v4916_v61 = vpop.eup %4915  ;;  %4935 = vrcp.f32 %v3542_v3  ;;  %v3587_v41 = vmul.f32 %v4914_v53, %v6800_v5 }
 0xe35   : > { %v4918_v37 = vpop.eup %4917  ;;  %v3585_v45 = vmul.f32 %v4916_v61, %v6803_v30 }
 0xe36   : > { %v4920_v26 = vpop.eup %4919  ;;  %v3588_v11 = vmul.f32 %v4918_v37, %v6807_v59 }
 0xe37   : > { %v4922_v46 = vpop.eup %4921  ;;  %v3586_v27 = vmul.f32 %v4920_v26, %v6811_v51 }
 0xe38   : > { %v4924_v21 = vpop.eup %4923  ;;  %v3602_v50 = vpack.c.bf16 %v3588_v11, %v3587_v41  ;;  %v3547_v6 = vadd.f32 1.0, %v4922_v46 }
 0xe39   : > { %v4926_v62 = vpop.eup %4925  ;;  %v3545_v18 = vadd.f32 1.0, %v4924_v21  ;;  %v3601_v8 = vpack.c.bf16 %v3586_v27, %v3585_v45 }
 0xe3a   : > { %v4928_v39 = vpop.eup %4927  ;;  %4937 = vrcp.f32 %v3547_v6  ;;  %v3548_v12 = vadd.f32 1.0, %v4926_v62 }
 0xe3b   : > { %v4930_v17 = vpop.eup %4929  ;;  %4939 = vrcp.f32 %v3545_v18  ;;  %v3546_v0 = vadd.f32 1.0, %v4928_v39  ;;  %4477 = vmatprep.mubr.bf16.mxu1 %v3601_v8 }
 0xe3c   : > { %v4932_v5 = vpop.eup %4931  ;;  %4941 = vrcp.f32 %v3548_v12  ;;  %4478 = vmatmul.mubr.bf16.vlgmr.msra.gmra.mrb[76].mxu1 %v3602_v50  ;;  %v3591_v51 = vmul.f32 %v4930_v17, %v6816_v14 }
 0xe3d   : > { %v4934_v59 = vpop.eup %4933  ;;  %4943 = vrcp.f32 %v3546_v0  ;;  %v3589_v40 = vmul.f32 %v4932_v5, %v6819_v44 }
 0xe3e   : > { %v4936_v30 = vpop.eup %4935  ;;  %v3592_v33 = vmul.f32 %v4934_v59, %v6823_v20 }
 0xe3f   : > { %v3590_v42 = vmul.f32 %v4936_v30, %v6827_v48 }
 0xe40   : > { %v3604_v36 = vpack.c.bf16 %v3592_v33, %v3591_v51 }
 0xe41   : > { %v3603_v58 = vpack.c.bf16 %v3590_v42, %v3589_v40  ;;  %v3958_v40 = vld [vmem:[%s6936_s12] ss:$0 sm:$0xff] }
 0xe43   : > { %4481 = vmatprep.mubr.bf16.mxu1 %v3603_v58 }
 0xe44   : > { %v4938_v57 = vpop.eup %4937  ;;  %4482 = vmatmul.mubr.bf16.gmra.mrb[80].mxu1 %v3604_v36 }
 0xe45   : > { %v4940_v55 = vpop.eup %4939  ;;  %v3595_v49 = vmul.f32 %v4938_v57, %v6832_v16 }
 0xe46   : > { %v4942_v43 = vpop.eup %4941  ;;  %v3593_v14 = vmul.f32 %v4940_v55, %v6835_v19 }
 0xe47   : > { %v4944_v56 = vpop.eup %4943  ;;  %v3596_v60 = vmul.f32 %v4942_v43, %v6839_v63 }
 0xe48   : > { %v3594_v20 = vmul.f32 %v4944_v56, %v6843_v2 }
 0xe49   : > { %v3606_v28 = vpack.c.bf16 %v3596_v60, %v3595_v49 }
 0xe4a   : > { %v3605_v44 = vpack.c.bf16 %v3594_v20, %v3593_v14 }
 0xe4c   : > { %4485 = vmatprep.mubr.bf16.mxu1 %v3605_v44 }
 0xe4d   : > { %4486 = vmatmul.mubr.bf16.gmra.mrb[84].mxu1 %v3606_v28 }
 0xe52   : > { %v4459_v48 = vpop.f32.mrb[96].mxu0 }
 0xe53   : > { %v3467_v22 = vadd.f32 %v4459_v48, %v6797_v23  ;;  %v3458_v35 = vpop.f32.mrb[97].mxu0 }
 0xe54   : > { %v3459_v34 = vadd.f32 %v6797_v23, %v3458_v35  ;;  %v4460_v3 = vpop.f32.mrb[98].mxu0 }
 0xe55   : > { %v3956_v53 = vmul.f32 -1.702, %v3467_v22  ;;  %v3470_v16 = vadd.f32 %v4460_v3, %v6797_v23  ;;  %v3461_v61 = vpop.f32.mrb[99].mxu0 }
 0xe56   : > { %v3954_v63 = vmul.f32 -1.702, %v3459_v34  ;;  %v3462_v19 = vadd.f32 %v6797_v23, %v3461_v61 }
 0xe57   : > { %v3533_v37 = vmul.f32 1.442695, %v3956_v53  ;;  %v3957_v2 = vmul.f32 -1.702, %v3470_v16 }
 0xe58   : > { %v3529_v26 = vmul.f32 1.442695, %v3954_v63  ;;  %v3955_v41 = vmul.f32 -1.702, %v3462_v19 }
 0xe59   : > { %4945 = vpow2.f32 %v3533_v37  ;;  %v3535_v11 = vmul.f32 1.442695, %v3957_v2 }
 0xe5a   : > { %4947 = vpow2.f32 %v3529_v26  ;;  %v3531_v46 = vmul.f32 1.442695, %v3955_v41 }
 0xe5b   : > { %4949 = vpow2.f32 %v3535_v11 }
 0xe5c   : > { %4951 = vpow2.f32 %v3531_v46 }
 0xe63   : > { %v4946_v45 = vpop.eup %4945 }
 0xe64   : > { %v4948_v27 = vpop.eup %4947  ;;  %v3551_v21 = vadd.f32 1.0, %v4946_v45 }
 0xe65   : > { %v4950_v50 = vpop.eup %4949  ;;  %v3549_v6 = vadd.f32 1.0, %v4948_v27 }
 0xe66   : > { %v4952_v62 = vpop.eup %4951  ;;  %4953 = vrcp.f32 %v3551_v21  ;;  %v3552_v18 = vadd.f32 1.0, %v4950_v50 }
 0xe67   : > { %4955 = vrcp.f32 %v3549_v6  ;;  %v3550_v23 = vadd.f32 1.0, %v4952_v62 }
 0xe68   : > { %4957 = vrcp.f32 %v3552_v18 }
 0xe69   : > { %4959 = vrcp.f32 %v3550_v23 }
 0xe70   : > { %v4954_v8 = vpop.eup %4953 }
 0xe71   : > { %v4956_v39 = vpop.eup %4955  ;;  %v3599_v0 = vmul.f32 %v4954_v8, %v3467_v22 }
 0xe72   : > { %v4958_v12 = vpop.eup %4957  ;;  %v3597_v59 = vmul.f32 %v4956_v39, %v3459_v34 }
 0xe73   : > { %v4960_v17 = vpop.eup %4959  ;;  %v3600_v5 = vmul.f32 %v4958_v12, %v3470_v16 }
 0xe74   : > { %v3598_v30 = vmul.f32 %v4960_v17, %v3462_v19 }
 0xe75   : > { %v3608_v51 = vpack.c.bf16 %v3600_v5, %v3599_v0 }
 0xe76   : > { %v3607_v33 = vpack.c.bf16 %v3598_v30, %v3597_v59 }
 0xe78   : > { %4489 = vmatprep.mubr.bf16.mxu1 %v3607_v33 }
 0xe79   : > { %4490 = vmatmul.mubr.bf16.gmra.mrb[88].mxu1 %v3608_v51 }
 0xf0f   : > { %v4479_v42 = vpop.f32.mrb[76].mxu1 }
 0xf10   : > { %v3723_v36 = vadd.f32 %v4479_v42, %v3958_v40  ;;  %v3714_v58 = vpop.f32.mrb[77].mxu1 }
 0xf11   : > { %v3715_v57 = vadd.f32 %v3958_v40, %v3714_v58  ;;  %v4480_v55 = vpop.f32.mrb[78].mxu1 }
 0xf12   : > { %v3779_v43 = vadd.f32 %v3723_v36, %v6522_v1  ;;  %v3726_v56 = vadd.f32 %v4480_v55, %v3958_v40  ;;  %v3717_v49 = vpop.f32.mrb[79].mxu1 }
 0xf13   : > { %v3777_v60 = vadd.f32 %v3715_v57, %v6510_v31  ;;  %v3718_v14 = vadd.f32 %v3958_v40, %v3717_v49 }
 0xf14   : > { %3795 = vst.msk [vmem:[%s6871_s19 + $0x10] sm:$0xff] %vm460_vm0, %v3779_v43  ;;  %v3780_v20 = vadd.f32 %v3726_v56, %v6514_v24 }
 0xf15   : > { %3793 = vst.msk [vmem:[%s6871_s19] sm:$0xff] %vm460_vm0, %v3777_v60  ;;  %v3778_v28 = vadd.f32 %v3718_v14, %v6517_v25 }
 0xf16   : > { %3796 = vst.msk [vmem:[%s6871_s19 + $0x18] sm:$0xff] %vm460_vm0, %v3780_v20 }
 0xf17   : > { %3794 = vst.msk [vmem:[%s6871_s19 + $0x8] sm:$0xff] %vm460_vm0, %v3778_v28  ;;  %v4483_v1 = vpop.f32.mrb[80].mxu1 }
 0xf18   : > { %v3739_v44 = vadd.f32 %v4483_v1, %v3958_v40  ;;  %v3730_v31 = vpop.f32.mrb[81].mxu1 }
 0xf19   : > { %v3731_v48 = vadd.f32 %v3958_v40, %v3730_v31  ;;  %v4484_v22 = vpop.f32.mrb[82].mxu1 }
 0xf1a   : > { %v3783_v35 = vadd.f32 %v3739_v44, %v6541_v10  ;;  %v3742_v34 = vadd.f32 %v4484_v22, %v3958_v40  ;;  %v3733_v24 = vpop.f32.mrb[83].mxu1 }
 0xf1b   : > { %v3781_v3 = vadd.f32 %v3731_v48, %v6532_v29  ;;  %v3734_v53 = vadd.f32 %v3958_v40, %v3733_v24 }
 0xf1c   : > { %3799 = vst.msk [vmem:[%s6871_s19 + $0x30] sm:$0xff] %vm460_vm0, %v3783_v35  ;;  %v3784_v25 = vadd.f32 %v3742_v34, %v6544_v13 }
 0xf1d   : > { %3797 = vst.msk [vmem:[%s6871_s19 + $0x20] sm:$0xff] %vm460_vm0, %v3781_v3  ;;  %v3782_v16 = vadd.f32 %v3734_v53, %v6538_v52 }
 0xf1e   : > { %3800 = vst.msk [vmem:[%s6871_s19 + $0x38] sm:$0xff] %vm460_vm0, %v3784_v25 }
 0xf1f   : > { %3798 = vst.msk [vmem:[%s6871_s19 + $0x28] sm:$0xff] %vm460_vm0, %v3782_v16 }
 0xf20   : > { %v4487_v10 = vpop.f32.mrb[84].mxu1 }
 0xf21   : > { %v3755_v61 = vadd.f32 %v4487_v10, %v3958_v40  ;;  %v3746_v29 = vpop.f32.mrb[85].mxu1 }
 0xf22   : > { %v3747_v63 = vadd.f32 %v3958_v40, %v3746_v29  ;;  %v4488_v19 = vpop.f32.mrb[86].mxu1 }
 0xf23   : > { %v3787_v37 = vadd.f32 %v3755_v61, %v6565_v7  ;;  %v3758_v2 = vadd.f32 %v4488_v19, %v3958_v40  ;;  %v3749_v13 = vpop.f32.mrb[87].mxu1 }
 0xf24   : > { %v3785_v26 = vadd.f32 %v3747_v63, %v6557_v38  ;;  %v3750_v41 = vadd.f32 %v3958_v40, %v3749_v13 }
 0xf25   : > { %3803 = vst.msk [vmem:[%s6871_s19 + $0x50] sm:$0xff] %vm460_vm0, %v3787_v37  ;;  %v3788_v52 = vadd.f32 %v3758_v2, %v6568_v4 }
 0xf26   : > { %3801 = vst.msk [vmem:[%s6871_s19 + $0x40] sm:$0xff] %vm460_vm0, %v3785_v26  ;;  %v3786_v11 = vadd.f32 %v3750_v41, %v6562_v9 }
 0xf27   : > { %3804 = vst.msk [vmem:[%s6871_s19 + $0x58] sm:$0xff] %vm460_vm0, %v3788_v52 }
 0xf28   : > { %3802 = vst.msk [vmem:[%s6871_s19 + $0x48] sm:$0xff] %vm460_vm0, %v3786_v11 }
 0xf4c   : > { %v4491_v7 = vpop.f32.mrb[88].mxu1 }
 0xf4d   : > { %v3771_v46 = vadd.f32 %v4491_v7, %v3958_v40  ;;  %v3762_v38 = vpop.f32.mrb[89].mxu1 }
 0xf4e   : > { %v3763_v45 = vadd.f32 %v3958_v40, %v3762_v38  ;;  %v4492_v27 = vpop.f32.mrb[90].mxu1 }
 0xf4f   : > { %v3791_v21 = vadd.f32 %v3771_v46, %v6586_v54  ;;  %v3774_v50 = vadd.f32 %v4492_v27, %v3958_v40  ;;  %v3765_v4 = vpop.f32.mrb[91].mxu1 }
 0xf50   : > { %v3789_v6 = vadd.f32 %v3763_v45, %v6581_v47  ;;  %v3766_v62 = vadd.f32 %v3958_v40, %v3765_v4 }
 0xf51   : > { %3807 = vst.msk [vmem:[%s6871_s19 + $0x70] sm:$0xff] %vm460_vm0, %v3791_v21  ;;  %v3792_v9 = vadd.f32 %v3774_v50, %v6594_v15 }
 0xf52   : > { %3805 = vst.msk [vmem:[%s6871_s19 + $0x60] sm:$0xff] %vm460_vm0, %v3789_v6  ;;  %v3790_v18 = vadd.f32 %v3766_v62, %v6589_v32 }
 0xf53   : > { %3808 = vst.msk [vmem:[%s6871_s19 + $0x78] sm:$0xff] %vm460_vm0, %v3792_v9 }
 0xf54   : > { %3806 = vst.msk [vmem:[%s6871_s19 + $0x68] sm:$0xff] %vm460_vm0, %v3790_v18 }
 0xf55 PF: > { %s23_s25 = sadd.s32 1, %s4983_s25  }
 0xf56   : > { %p20_p4 = scmp.ge.s32.totalorder %s23_s25, 4  }
 0xf58   :  { %22 = sbr.rel (!%p20_p4) target bundleno = 1 (0x1), region = 102 }

</bundles_post_ra>
